<compile_context>
chip_gen: v6e
topology: v6e:2x2x1
jax: 0.10.0
libtpu: 0.0.40
codegen_flags: <defaults>
</compile_context>

<pallas_src>
import functools

import numpy as np
import jax
import jax.numpy as jnp
from jax.experimental import pallas as pl
from jax.experimental.pallas import tpu as pltpu

PRELU_ALPHA = 0.25   # nn.PReLU() default; weights_init() never touches PReLU.
LANE = 128


# ----------------------------------------------------------------------------
# small helpers
# ----------------------------------------------------------------------------
def _round_up(x, m):
    return ((x + m - 1) // m) * m


def pad_last(x, mult=LANE):
    c = x.shape[-1]
    cp = _round_up(c, mult)
    if cp == c:
        return x
    return jnp.pad(x, [(0, 0)] * (x.ndim - 1) + [(0, cp - c)])


# ----------------------------------------------------------------------------
# fused conv (+bias, +PReLU, +H-half of MaxPool2d(2)) kernel
# ----------------------------------------------------------------------------
def _make_conv_kernel(H, W, Wp, kh, kw, pool_h, prelu_alpha):
    taps = [(di, dj) for di in range(kh) for dj in range(kw)]
    # ~128 flat rows per MXU matmul keeps the f32 accumulator register-friendly.
    target = max(1, 128 // Wp)
    if pool_h:
        trh = min(H, max(2, (target // 2) * 2))
    else:
        trh = min(H, max(1, target))

    def kernel(x_ref, w_ref, b_ref, o_ref):
        bias = b_ref[0]                                    # (1, Coutp) f32
        cout = bias.shape[-1]
        for h0 in range(0, H, trh):
            rows = min(trh, H - h0)
            fr = rows * Wp
            acc = None
            for t, (di, dj) in enumerate(taps):
                start = (h0 + di) * Wp + dj
                a = x_ref[0, 0, start:start + fr, :].astype(jnp.bfloat16)
                c = jnp.dot(a, w_ref[0, t], preferred_element_type=jnp.float32)
                acc = c if acc is None else acc + c

            # vectorized epilogue on the whole slab (padding columns are
            # harmless: they are sliced off before the store)
            acc = acc + bias
            if prelu_alpha is not None:
                acc = jnp.where(acc >= 0.0, acc, jnp.float32(prelu_alpha) * acc)

            if pool_h:
                # (rows*Wp, C) -> (rows/2, 2, Wp, C): major-dim split only
                # (Wp % 8 == 0), so the reshape is a free relabel; the 2x1 max
                # is an elementwise max over a major axis.
                v = jnp.max(acc.reshape(rows // 2, 2, Wp, cout), axis=1)
                o_ref[0, 0, h0 // 2:(h0 + rows) // 2, :, :] = (
                    v[:, :W, :].astype(o_ref.dtype))
            else:
                v = acc.reshape(rows, Wp, cout)
                o_ref[0, 0, h0:h0 + rows, :, :] = v[:, :W, :].astype(o_ref.dtype)

    return kernel


def conv2d(x, wt, bias, *, kh, kw, ph, pw, prelu=False, pool_h=False,
           out_dtype=jnp.bfloat16):
    """x: (G, B, H, W, Cin_p) channels-last (Cin_p % 128 == 0).
       wt: (G, kh*kw, Cin_p, Cout_p) bf16.  bias: (G, 1, Cout_p) f32.
       Returns (G, B, Ho, W, Cout_p) with Ho = H//2 if pool_h else H."""
    G, B, H, W, Cin_p = x.shape
    Gw, KT, Cin_w, Cout_p = wt.shape
    assert Gw == G and KT == kh * kw and Cin_w == Cin_p
    if pool_h:
        assert H % 2 == 0
    Wp = _round_up(W + 2 * pw, 8)          # width padded (zeros) + sublane-aligned rows
    Hp = H + 2 * ph + 1                    # +1 guard row keeps tap windows in-bounds
    xp = jnp.pad(x, ((0, 0), (0, 0),
                     (ph, Hp - H - ph),
                     (pw, Wp - W - pw),
                     (0, 0)))
    xflat = xp.reshape(G, B, Hp * Wp, Cin_p)
    Ho = H // 2 if pool_h else H

    kernel = _make_conv_kernel(H, W, Wp, kh, kw, pool_h,
                               PRELU_ALPHA if prelu else None)
    return pl.pallas_call(
        kernel,
        out_shape=jax.ShapeDtypeStruct((G, B, Ho, W, Cout_p), out_dtype),
        grid=(G, B),
        in_specs=[
            pl.BlockSpec((1, 1, Hp * Wp, Cin_p), lambda g, b: (g, b, 0, 0)),
            pl.BlockSpec((1, KT, Cin_p, Cout_p), lambda g, b: (g, 0, 0, 0)),
            pl.BlockSpec((1, 1, Cout_p), lambda g, b: (g, 0, 0)),
        ],
        out_specs=pl.BlockSpec((1, 1, Ho, W, Cout_p),
                               lambda g, b: (g, b, 0, 0, 0)),
        compiler_params=pltpu.CompilerParams(
            dimension_semantics=("parallel", "parallel")),
    )(xflat, wt, bias)


# ----------------------------------------------------------------------------
# W-half of MaxPool2d(2) (optionally fused with the person-wise max)
# ----------------------------------------------------------------------------
def _pool_kernel(x_ref, o_ref):
    r_dim = x_ref.shape[1]
    v = x_ref[0, 0]                                    # (Ho, Wo, 2*Cp)
    for r in range(1, r_dim):
        v = jnp.maximum(v, x_ref[0, r])                # person-wise max (fused)
    cp = o_ref.shape[-1]
    o_ref[0] = jnp.maximum(v[..., :cp], v[..., cp:]).astype(o_ref.dtype)


def maxpool_w(y, person_group=1):
    """y: (..., Ho, W, Cp) -> (..., Ho, W//2, Cp).  With person_group=M the
    leading batch is additionally max-reduced in groups of M."""
    *lead, Ho, W, Cp = y.shape
    assert W % 2 == 0
    B2 = int(np.prod(lead)) if lead else 1
    assert B2 % person_group == 0
    R = person_group
    Bo = B2 // R
    xv = y.reshape(Bo, R, Ho, W // 2, 2 * Cp)          # free, contiguous reshape
    out = pl.pallas_call(
        _pool_kernel,
        out_shape=jax.ShapeDtypeStruct((Bo, Ho, W // 2, Cp), y.dtype),
        grid=(Bo,),
        in_specs=[pl.BlockSpec((1, R, Ho, W // 2, 2 * Cp),
                               lambda i: (i, 0, 0, 0, 0))],
        out_specs=pl.BlockSpec((1, Ho, W // 2, Cp), lambda i: (i, 0, 0, 0)),
        compiler_params=pltpu.CompilerParams(dimension_semantics=("parallel",)),
    )(xv)
    if person_group == 1:
        return out.reshape(*lead, Ho, W // 2, Cp)
    return out


# ----------------------------------------------------------------------------
# motion stream: frame difference + bilinear (linear along T) upsample, fused
# ----------------------------------------------------------------------------
def _make_motion_kernel(T, i0, i1, lam):
    def kernel(x_ref, o_ref):
        # all frame differences, computed once and reused by the lerp taps
        diffs = [x_ref[0, j + 1] - x_ref[0, j] for j in range(T - 1)]
        for t in range(T):
            j0, j1, w = int(i0[t]), int(i1[t]), float(lam[t])
            if j1 == j0 or w == 0.0:
                d = diffs[j0]
            else:
                d = (jnp.float32(1.0 - w) * diffs[j0]
                     + jnp.float32(w) * diffs[j1])
            o_ref[0, t] = d.astype(o_ref.dtype)
    return kernel


def motion_upsample(xb):
    """xb: (B, T, V, Cp) f32.  Returns the upsampled frame-difference stream."""
    B, T, V, Cp = xb.shape
    ratio = (T - 1) / T                                 # align_corners=False
    dst = np.arange(T)
    src = np.maximum(ratio * (dst + 0.5) - 0.5, 0.0)
    i0 = np.minimum(np.floor(src).astype(np.int32), T - 2)
    i1 = np.minimum(i0 + 1, T - 2)
    lam = (src - i0).astype(np.float32)
    kernel = _make_motion_kernel(T, i0, i1, lam)
    return pl.pallas_call(
        kernel,
        out_shape=jax.ShapeDtypeStruct((B, T, V, Cp), xb.dtype),
        grid=(B,),
        in_specs=[pl.BlockSpec((1, T, V, Cp), lambda b: (b, 0, 0, 0))],
        out_specs=pl.BlockSpec((1, T, V, Cp), lambda b: (b, 0, 0, 0)),
        compiler_params=pltpu.CompilerParams(dimension_semantics=("parallel",)),
    )(xb)


# ----------------------------------------------------------------------------
# fused fc7 (+bias +PReLU) -> fc8 (+bias) head: two back-to-back MXU matmuls
# ----------------------------------------------------------------------------
def _fc_head_kernel(x_ref, w7_ref, b7_ref, w8_ref, b8_ref, o_ref):
    x = x_ref[...].astype(jnp.bfloat16)                       # (N, F)
    h = jnp.dot(x, w7_ref[...], preferred_element_type=jnp.float32)
    h = h + b7_ref[...]
    h = jnp.where(h >= 0.0, h, jnp.float32(PRELU_ALPHA) * h)  # fc7 PReLU
    # TODO(synk): fc7 Dropout2d(p=0.5) is identity (inference semantics).
    o = jnp.dot(h.astype(jnp.bfloat16), w8_ref[...],
                preferred_element_type=jnp.float32)
    o_ref[...] = o + b8_ref[...]


def fc_head(feat, w7, b7, w8, b8):
    """feat: (N, F) channels-last-flattened conv6 features (F % 128 == 0)."""
    N_, F = feat.shape
    K7, H7 = w7.shape
    K8, O8 = w8.shape
    assert K7 == F and K8 == H7
    vspec = pl.BlockSpec(memory_space=pltpu.MemorySpace.VMEM)
    return pl.pallas_call(
        _fc_head_kernel,
        out_shape=jax.ShapeDtypeStruct((N_, O8), jnp.float32),
        in_specs=[vspec] * 5,
        out_specs=vspec,
    )(feat, w7, b7, w8, b8)


# ----------------------------------------------------------------------------
# parameter init (matches weights_init) and kernel-layout preparation
# ----------------------------------------------------------------------------
def init_params(key, cfg):
    C, V = cfg["in_channel"], cfg["num_joint"]
    oc, ws, ncls = cfg["out_channel"], cfg["window_size"], cfg["num_class"]

    def conv_p(k, cout, cin, kh, kw):
        fan_in = cin * kh * kw
        fan_out = kh * kw * cout
        bound = float(np.sqrt(6.0 / (fan_in + fan_out)))
        w = jax.random.uniform(k, (cout, cin, kh, kw), jnp.float32, -bound, bound)
        return w, jnp.zeros((cout,), jnp.float32)

    def lin_p(k, cout, cin):
        bound = float(np.sqrt(6.0 / (cin + cout)))
        w = jax.random.uniform(k, (cout, cin), jnp.float32, -bound, bound)
        return w, jnp.zeros((cout,), jnp.float32)

    keys = iter(jax.random.split(key, 16))
    raw = {}
    for tag in ("p", "m"):                 # position / motion streams
        raw[f"w1{tag}"], raw[f"b1{tag}"] = conv_p(next(keys), oc, C, 1, 1)
        raw[f"w2{tag}"], raw[f"b2{tag}"] = conv_p(next(keys), ws, oc, 3, 1)
        raw[f"w3{tag}"], raw[f"b3{tag}"] = conv_p(next(keys), oc // 2, V, 3, 3)
        raw[f"w4{tag}"], raw[f"b4{tag}"] = conv_p(next(keys), oc, oc // 2, 3, 3)
    raw["w5"], raw["b5"] = conv_p(next(keys), oc * 2, oc * 2, 3, 3)
    raw["w6"], raw["b6"] = conv_p(next(keys), oc * 4, oc * 2, 3, 3)
    fc7_in = oc * 4 * (ws // 16) * (ws // 16)
    raw["w7"], raw["b7"] = lin_p(next(keys), 256 * 2, fc7_in)
    raw["w8"], raw["b8"] = lin_p(next(keys), ncls, 256 * 2)
    return raw


def _prep_conv_w(pairs):
    """pairs: list of (w, b) in torch layout (Cout, Cin, kh, kw).
       -> (G, kh*kw, Cinp, Coutp) bf16, (G, 1, Coutp) f32."""
    cout, cin, kh, kw = pairs[0][0].shape
    cinp, coutp = _round_up(cin, LANE), _round_up(cout, LANE)
    wts, bs = [], []
    for w, b in pairs:
        wt = jnp.transpose(w, (2, 3, 1, 0)).reshape(kh * kw, cin, cout)
        wt = jnp.pad(wt, ((0, 0), (0, cinp - cin), (0, coutp - cout)))
        wts.append(wt.astype(jnp.bfloat16))
        bs.append(jnp.pad(b, (0, coutp - cout)).astype(jnp.float32).reshape(1, coutp))
    return jnp.stack(wts, 0), jnp.stack(bs, 0)


def _prep_fc7_w(w, b, c, h, wd, cp):
    """fc7 weight, pre-permuted from torch's (C,H,W)-major flatten order into
    the channels-last (H,W,Cp) flatten order of the conv6 feature map, with
    zero rows for the padded channels.  Makes the wrapper-side flatten a free
    contiguous reshape (no transpose / channel slice in the data path)."""
    out_d, in_d = w.shape
    assert in_d == c * h * wd
    outp = _round_up(out_d, LANE)
    wr = w.reshape(out_d, c, h, wd)                 # (O, c, h, w) torch order
    wr = jnp.transpose(wr, (2, 3, 1, 0))            # (h, w, c, O)
    wr = jnp.pad(wr, ((0, 0), (0, 0), (0, cp - c), (0, outp - out_d)))
    wt = wr.reshape(h * wd * cp, outp).astype(jnp.bfloat16)
    bb = jnp.pad(b, (0, outp - out_d)).astype(jnp.float32).reshape(1, outp)
    return wt, bb


def _prep_fc_w(w, b):
    out_d, in_d = w.shape
    outp = _round_up(out_d, LANE)
    wt = jnp.pad(w.T, ((0, 0), (0, outp - out_d))).astype(jnp.bfloat16)
    bb = jnp.pad(b, (0, outp - out_d)).astype(jnp.float32).reshape(1, outp)
    return wt, bb


def prepare_params(raw, cfg):
    oc, ws = cfg["out_channel"], cfg["window_size"]
    P = {}
    for i in (1, 2, 3, 4):
        P[f"w{i}"], P[f"b{i}"] = _prep_conv_w(
            [(raw[f"w{i}p"], raw[f"b{i}p"]), (raw[f"w{i}m"], raw[f"b{i}m"])])
    for i in (5, 6):
        P[f"w{i}"], P[f"b{i}"] = _prep_conv_w([(raw[f"w{i}"], raw[f"b{i}"])])
    h6 = w6 = ws // 16
    cp6 = _round_up(oc * 4, LANE)
    P["w7"], P["b7"] = _prep_fc7_w(raw["w7"], raw["b7"], oc * 4, h6, w6, cp6)
    P["w8"], P["b8"] = _prep_fc_w(raw["w8"], raw["b8"])
    return P


# ----------------------------------------------------------------------------
# forward pass
# ----------------------------------------------------------------------------
def hcn_forward(x, P, cfg):
    """x: (N, C, T, V, M) f32.  Returns logits (N, num_class) f32."""
    N, C, T, V, M = x.shape
    oc, ws, ncls = cfg["out_channel"], cfg["window_size"], cfg["num_class"]
    assert T == ws and T % 16 == 0 and V == cfg["num_joint"] and M == cfg["num_person"]
    B = N * M

    # persons folded into batch, channels-last, lanes padded to 128
    xb = pad_last(jnp.transpose(x, (0, 4, 2, 3, 1)).reshape(B, T, V, C))
    mo = motion_upsample(xb)                                       # (B,T,V,128) f32
    s = jnp.stack([xb, mo], axis=0).astype(jnp.bfloat16)           # (2,B,T,V,128)

    y = conv2d(s, P["w1"], P["b1"], kh=1, kw=1, ph=0, pw=0, prelu=True)
    y = conv2d(y, P["w2"], P["b2"], kh=3, kw=1, ph=1, pw=0)
    # permute(0,3,2,1): joints become channels, window_size becomes width
    y = pad_last(jnp.transpose(y[..., :ws], (0, 1, 2, 4, 3)))      # (2,B,T,ws,128)
    y = conv2d(y, P["w3"], P["b3"], kh=3, kw=3, ph=1, pw=1, pool_h=True)
    y = maxpool_w(y)                                               # (2,B,T/2,ws/2,128)
    y = conv2d(y, P["w4"], P["b4"], kh=3, kw=3, ph=1, pw=1, pool_h=True)
    y = maxpool_w(y)                                               # (2,B,T/4,ws/4,128)

    # concat position / motion streams along channels
    cat = pad_last(jnp.concatenate([y[0, ..., :oc], y[1, ..., :oc]], axis=-1))
    y = conv2d(cat[None], P["w5"], P["b5"], kh=3, kw=3, ph=1, pw=1,
               prelu=True, pool_h=True)
    y = maxpool_w(y)                                               # (1,B,T/8,ws/8,128)
    y = conv2d(y, P["w6"], P["b6"], kh=3, kw=3, ph=1, pw=1,
               prelu=True, pool_h=True)
    y = maxpool_w(y, person_group=M)                               # (N,T/16,ws/16,128)

    # channels-last flatten is free (fc7 weight was pre-permuted to match)
    h6, w6 = T // 16, ws // 16
    feat = y.reshape(N, h6 * w6 * y.shape[-1])
    out = fc_head(feat, P["w7"], P["b7"], P["w8"], P["b8"])        # fc7+PReLU, fc8
    return out[:, :ncls]


if __name__ == "__main__":
    # Small config consistent with the module: T == window_size, divisible by 16
    # (four MaxPool2d(2) stages), num_joint == V.
    N, C, T, V, M = 2, 3, 16, 8, 2
    cfg = dict(in_channel=C, num_joint=V, num_person=M,
               out_channel=16, window_size=T, num_class=10)

    key = jax.random.PRNGKey(0)
    kx, kp = jax.random.split(key)
    x = jax.random.normal(kx, (N, C, T, V, M), dtype=jnp.float32)
    raw = init_params(kp, cfg)
    P = prepare_params(raw, cfg)

    fwd = jax.jit(functools.partial(hcn_forward, cfg=cfg))
    out = jax.block_until_ready(fwd(x, P))

    # mirror the PyTorch asserts
    assert out.shape == (N, cfg["num_class"])
    assert not bool(jnp.any(jnp.isnan(out)))
    assert not bool(jnp.sum(jnp.abs(out)) == 0)

    print("KERNEL_OK")
</pallas_src>

<mosaic_0001>
module attributes {stable_mosaic.version = 11 : i64} {
  func.func @kernel(%arg0: i32, %arg1: memref<1x16x8x128xf32, #tpu.memory_space<vmem>>, %arg2: memref<1x16x8x128xf32, #tpu.memory_space<vmem>>) attributes {dimension_semantics = [#tpu.dimension_semantics<parallel>], iteration_bounds = array<i64: 4>, scalar_prefetch = 0 : i64, scratch_operands = 0 : i64, tpu.core_type = #tpu.core_type<tc>, window_params = [{transform_indices = @transform_0, window_bounds = array<i64: 1, 16, 8, 128>}, {transform_indices = @transform_1, window_bounds = array<i64: 1, 16, 8, 128>}]} {
    %c0 = arith.constant 0 : index
    %c1 = arith.constant 1 : index
    %c0_0 = arith.constant 0 : index
    %c0_1 = arith.constant 0 : index
    %0 = vector.load %arg1[%c0, %c1, %c0_0, %c0_1] : memref<1x16x8x128xf32, #tpu.memory_space<vmem>>, vector<1x1x8x128xf32>
    %1 = vector.shape_cast %0 : vector<1x1x8x128xf32> to vector<8x128xf32>
    %c0_2 = arith.constant 0 : index
    %c0_3 = arith.constant 0 : index
    %c0_4 = arith.constant 0 : index
    %c0_5 = arith.constant 0 : index
    %2 = vector.load %arg1[%c0_2, %c0_3, %c0_4, %c0_5] : memref<1x16x8x128xf32, #tpu.memory_space<vmem>>, vector<1x1x8x128xf32>
    %3 = vector.shape_cast %2 : vector<1x1x8x128xf32> to vector<8x128xf32>
    %4 = arith.subf %1, %3 : vector<8x128xf32>
    %c0_6 = arith.constant 0 : index
    %c2 = arith.constant 2 : index
    %c0_7 = arith.constant 0 : index
    %c0_8 = arith.constant 0 : index
    %5 = vector.load %arg1[%c0_6, %c2, %c0_7, %c0_8] : memref<1x16x8x128xf32, #tpu.memory_space<vmem>>, vector<1x1x8x128xf32>
    %6 = vector.shape_cast %5 : vector<1x1x8x128xf32> to vector<8x128xf32>
    %c0_9 = arith.constant 0 : index
    %c1_10 = arith.constant 1 : index
    %c0_11 = arith.constant 0 : index
    %c0_12 = arith.constant 0 : index
    %7 = vector.load %arg1[%c0_9, %c1_10, %c0_11, %c0_12] : memref<1x16x8x128xf32, #tpu.memory_space<vmem>>, vector<1x1x8x128xf32>
    %8 = vector.shape_cast %7 : vector<1x1x8x128xf32> to vector<8x128xf32>
    %9 = arith.subf %6, %8 : vector<8x128xf32>
    %c0_13 = arith.constant 0 : index
    %c3 = arith.constant 3 : index
    %c0_14 = arith.constant 0 : index
    %c0_15 = arith.constant 0 : index
    %10 = vector.load %arg1[%c0_13, %c3, %c0_14, %c0_15] : memref<1x16x8x128xf32, #tpu.memory_space<vmem>>, vector<1x1x8x128xf32>
    %11 = vector.shape_cast %10 : vector<1x1x8x128xf32> to vector<8x128xf32>
    %c0_16 = arith.constant 0 : index
    %c2_17 = arith.constant 2 : index
    %c0_18 = arith.constant 0 : index
    %c0_19 = arith.constant 0 : index
    %12 = vector.load %arg1[%c0_16, %c2_17, %c0_18, %c0_19] : memref<1x16x8x128xf32, #tpu.memory_space<vmem>>, vector<1x1x8x128xf32>
    %13 = vector.shape_cast %12 : vector<1x1x8x128xf32> to vector<8x128xf32>
    %14 = arith.subf %11, %13 : vector<8x128xf32>
    %c0_20 = arith.constant 0 : index
    %c4 = arith.constant 4 : index
    %c0_21 = arith.constant 0 : index
    %c0_22 = arith.constant 0 : index
    %15 = vector.load %arg1[%c0_20, %c4, %c0_21, %c0_22] : memref<1x16x8x128xf32, #tpu.memory_space<vmem>>, vector<1x1x8x128xf32>
    %16 = vector.shape_cast %15 : vector<1x1x8x128xf32> to vector<8x128xf32>
    %c0_23 = arith.constant 0 : index
    %c3_24 = arith.constant 3 : index
    %c0_25 = arith.constant 0 : index
    %c0_26 = arith.constant 0 : index
    %17 = vector.load %arg1[%c0_23, %c3_24, %c0_25, %c0_26] : memref<1x16x8x128xf32, #tpu.memory_space<vmem>>, vector<1x1x8x128xf32>
    %18 = vector.shape_cast %17 : vector<1x1x8x128xf32> to vector<8x128xf32>
    %19 = arith.subf %16, %18 : vector<8x128xf32>
    %c0_27 = arith.constant 0 : index
    %c5 = arith.constant 5 : index
    %c0_28 = arith.constant 0 : index
    %c0_29 = arith.constant 0 : index
    %20 = vector.load %arg1[%c0_27, %c5, %c0_28, %c0_29] : memref<1x16x8x128xf32, #tpu.memory_space<vmem>>, vector<1x1x8x128xf32>
    %21 = vector.shape_cast %20 : vector<1x1x8x128xf32> to vector<8x128xf32>
    %c0_30 = arith.constant 0 : index
    %c4_31 = arith.constant 4 : index
    %c0_32 = arith.constant 0 : index
    %c0_33 = arith.constant 0 : index
    %22 = vector.load %arg1[%c0_30, %c4_31, %c0_32, %c0_33] : memref<1x16x8x128xf32, #tpu.memory_space<vmem>>, vector<1x1x8x128xf32>
    %23 = vector.shape_cast %22 : vector<1x1x8x128xf32> to vector<8x128xf32>
    %24 = arith.subf %21, %23 : vector<8x128xf32>
    %c0_34 = arith.constant 0 : index
    %c6 = arith.constant 6 : index
    %c0_35 = arith.constant 0 : index
    %c0_36 = arith.constant 0 : index
    %25 = vector.load %arg1[%c0_34, %c6, %c0_35, %c0_36] : memref<1x16x8x128xf32, #tpu.memory_space<vmem>>, vector<1x1x8x128xf32>
    %26 = vector.shape_cast %25 : vector<1x1x8x128xf32> to vector<8x128xf32>
    %c0_37 = arith.constant 0 : index
    %c5_38 = arith.constant 5 : index
    %c0_39 = arith.constant 0 : index
    %c0_40 = arith.constant 0 : index
    %27 = vector.load %arg1[%c0_37, %c5_38, %c0_39, %c0_40] : memref<1x16x8x128xf32, #tpu.memory_space<vmem>>, vector<1x1x8x128xf32>
    %28 = vector.shape_cast %27 : vector<1x1x8x128xf32> to vector<8x128xf32>
    %29 = arith.subf %26, %28 : vector<8x128xf32>
    %c0_41 = arith.constant 0 : index
    %c7 = arith.constant 7 : index
    %c0_42 = arith.constant 0 : index
    %c0_43 = arith.constant 0 : index
    %30 = vector.load %arg1[%c0_41, %c7, %c0_42, %c0_43] : memref<1x16x8x128xf32, #tpu.memory_space<vmem>>, vector<1x1x8x128xf32>
    %31 = vector.shape_cast %30 : vector<1x1x8x128xf32> to vector<8x128xf32>
    %c0_44 = arith.constant 0 : index
    %c6_45 = arith.constant 6 : index
    %c0_46 = arith.constant 0 : index
    %c0_47 = arith.constant 0 : index
    %32 = vector.load %arg1[%c0_44, %c6_45, %c0_46, %c0_47] : memref<1x16x8x128xf32, #tpu.memory_space<vmem>>, vector<1x1x8x128xf32>
    %33 = vector.shape_cast %32 : vector<1x1x8x128xf32> to vector<8x128xf32>
    %34 = arith.subf %31, %33 : vector<8x128xf32>
    %c0_48 = arith.constant 0 : index
    %c8 = arith.constant 8 : index
    %c0_49 = arith.constant 0 : index
    %c0_50 = arith.constant 0 : index
    %35 = vector.load %arg1[%c0_48, %c8, %c0_49, %c0_50] : memref<1x16x8x128xf32, #tpu.memory_space<vmem>>, vector<1x1x8x128xf32>
    %36 = vector.shape_cast %35 : vector<1x1x8x128xf32> to vector<8x128xf32>
    %c0_51 = arith.constant 0 : index
    %c7_52 = arith.constant 7 : index
    %c0_53 = arith.constant 0 : index
    %c0_54 = arith.constant 0 : index
    %37 = vector.load %arg1[%c0_51, %c7_52, %c0_53, %c0_54] : memref<1x16x8x128xf32, #tpu.memory_space<vmem>>, vector<1x1x8x128xf32>
    %38 = vector.shape_cast %37 : vector<1x1x8x128xf32> to vector<8x128xf32>
    %39 = arith.subf %36, %38 : vector<8x128xf32>
    %c0_55 = arith.constant 0 : index
    %c9 = arith.constant 9 : index
    %c0_56 = arith.constant 0 : index
    %c0_57 = arith.constant 0 : index
    %40 = vector.load %arg1[%c0_55, %c9, %c0_56, %c0_57] : memref<1x16x8x128xf32, #tpu.memory_space<vmem>>, vector<1x1x8x128xf32>
    %41 = vector.shape_cast %40 : vector<1x1x8x128xf32> to vector<8x128xf32>
    %c0_58 = arith.constant 0 : index
    %c8_59 = arith.constant 8 : index
    %c0_60 = arith.constant 0 : index
    %c0_61 = arith.constant 0 : index
    %42 = vector.load %arg1[%c0_58, %c8_59, %c0_60, %c0_61] : memref<1x16x8x128xf32, #tpu.memory_space<vmem>>, vector<1x1x8x128xf32>
    %43 = vector.shape_cast %42 : vector<1x1x8x128xf32> to vector<8x128xf32>
    %44 = arith.subf %41, %43 : vector<8x128xf32>
    %c0_62 = arith.constant 0 : index
    %c10 = arith.constant 10 : index
    %c0_63 = arith.constant 0 : index
    %c0_64 = arith.constant 0 : index
    %45 = vector.load %arg1[%c0_62, %c10, %c0_63, %c0_64] : memref<1x16x8x128xf32, #tpu.memory_space<vmem>>, vector<1x1x8x128xf32>
    %46 = vector.shape_cast %45 : vector<1x1x8x128xf32> to vector<8x128xf32>
    %c0_65 = arith.constant 0 : index
    %c9_66 = arith.constant 9 : index
    %c0_67 = arith.constant 0 : index
    %c0_68 = arith.constant 0 : index
    %47 = vector.load %arg1[%c0_65, %c9_66, %c0_67, %c0_68] : memref<1x16x8x128xf32, #tpu.memory_space<vmem>>, vector<1x1x8x128xf32>
    %48 = vector.shape_cast %47 : vector<1x1x8x128xf32> to vector<8x128xf32>
    %49 = arith.subf %46, %48 : vector<8x128xf32>
    %c0_69 = arith.constant 0 : index
    %c11 = arith.constant 11 : index
    %c0_70 = arith.constant 0 : index
    %c0_71 = arith.constant 0 : index
    %50 = vector.load %arg1[%c0_69, %c11, %c0_70, %c0_71] : memref<1x16x8x128xf32, #tpu.memory_space<vmem>>, vector<1x1x8x128xf32>
    %51 = vector.shape_cast %50 : vector<1x1x8x128xf32> to vector<8x128xf32>
    %c0_72 = arith.constant 0 : index
    %c10_73 = arith.constant 10 : index
    %c0_74 = arith.constant 0 : index
    %c0_75 = arith.constant 0 : index
    %52 = vector.load %arg1[%c0_72, %c10_73, %c0_74, %c0_75] : memref<1x16x8x128xf32, #tpu.memory_space<vmem>>, vector<1x1x8x128xf32>
    %53 = vector.shape_cast %52 : vector<1x1x8x128xf32> to vector<8x128xf32>
    %54 = arith.subf %51, %53 : vector<8x128xf32>
    %c0_76 = arith.constant 0 : index
    %c12 = arith.constant 12 : index
    %c0_77 = arith.constant 0 : index
    %c0_78 = arith.constant 0 : index
    %55 = vector.load %arg1[%c0_76, %c12, %c0_77, %c0_78] : memref<1x16x8x128xf32, #tpu.memory_space<vmem>>, vector<1x1x8x128xf32>
    %56 = vector.shape_cast %55 : vector<1x1x8x128xf32> to vector<8x128xf32>
    %c0_79 = arith.constant 0 : index
    %c11_80 = arith.constant 11 : index
    %c0_81 = arith.constant 0 : index
    %c0_82 = arith.constant 0 : index
    %57 = vector.load %arg1[%c0_79, %c11_80, %c0_81, %c0_82] : memref<1x16x8x128xf32, #tpu.memory_space<vmem>>, vector<1x1x8x128xf32>
    %58 = vector.shape_cast %57 : vector<1x1x8x128xf32> to vector<8x128xf32>
    %59 = arith.subf %56, %58 : vector<8x128xf32>
    %c0_83 = arith.constant 0 : index
    %c13 = arith.constant 13 : index
    %c0_84 = arith.constant 0 : index
    %c0_85 = arith.constant 0 : index
    %60 = vector.load %arg1[%c0_83, %c13, %c0_84, %c0_85] : memref<1x16x8x128xf32, #tpu.memory_space<vmem>>, vector<1x1x8x128xf32>
    %61 = vector.shape_cast %60 : vector<1x1x8x128xf32> to vector<8x128xf32>
    %c0_86 = arith.constant 0 : index
    %c12_87 = arith.constant 12 : index
    %c0_88 = arith.constant 0 : index
    %c0_89 = arith.constant 0 : index
    %62 = vector.load %arg1[%c0_86, %c12_87, %c0_88, %c0_89] : memref<1x16x8x128xf32, #tpu.memory_space<vmem>>, vector<1x1x8x128xf32>
    %63 = vector.shape_cast %62 : vector<1x1x8x128xf32> to vector<8x128xf32>
    %64 = arith.subf %61, %63 : vector<8x128xf32>
    %c0_90 = arith.constant 0 : index
    %c14 = arith.constant 14 : index
    %c0_91 = arith.constant 0 : index
    %c0_92 = arith.constant 0 : index
    %65 = vector.load %arg1[%c0_90, %c14, %c0_91, %c0_92] : memref<1x16x8x128xf32, #tpu.memory_space<vmem>>, vector<1x1x8x128xf32>
    %66 = vector.shape_cast %65 : vector<1x1x8x128xf32> to vector<8x128xf32>
    %c0_93 = arith.constant 0 : index
    %c13_94 = arith.constant 13 : index
    %c0_95 = arith.constant 0 : index
    %c0_96 = arith.constant 0 : index
    %67 = vector.load %arg1[%c0_93, %c13_94, %c0_95, %c0_96] : memref<1x16x8x128xf32, #tpu.memory_space<vmem>>, vector<1x1x8x128xf32>
    %68 = vector.shape_cast %67 : vector<1x1x8x128xf32> to vector<8x128xf32>
    %69 = arith.subf %66, %68 : vector<8x128xf32>
    %c0_97 = arith.constant 0 : index
    %c15 = arith.constant 15 : index
    %c0_98 = arith.constant 0 : index
    %c0_99 = arith.constant 0 : index
    %70 = vector.load %arg1[%c0_97, %c15, %c0_98, %c0_99] : memref<1x16x8x128xf32, #tpu.memory_space<vmem>>, vector<1x1x8x128xf32>
    %71 = vector.shape_cast %70 : vector<1x1x8x128xf32> to vector<8x128xf32>
    %c0_100 = arith.constant 0 : index
    %c14_101 = arith.constant 14 : index
    %c0_102 = arith.constant 0 : index
    %c0_103 = arith.constant 0 : index
    %72 = vector.load %arg1[%c0_100, %c14_101, %c0_102, %c0_103] : memref<1x16x8x128xf32, #tpu.memory_space<vmem>>, vector<1x1x8x128xf32>
    %73 = vector.shape_cast %72 : vector<1x1x8x128xf32> to vector<8x128xf32>
    %74 = arith.subf %71, %73 : vector<8x128xf32>
    %c0_104 = arith.constant 0 : index
    %c0_105 = arith.constant 0 : index
    %c0_106 = arith.constant 0 : index
    %c0_107 = arith.constant 0 : index
    %75 = vector.load %arg2[%c0_104, %c0_105, %c0_106, %c0_107] : memref<1x16x8x128xf32, #tpu.memory_space<vmem>>, vector<1x1x8x128xf32>
    %76 = vector.shape_cast %75 : vector<1x1x8x128xf32> to vector<8x128xf32>
    %77 = vector.shape_cast %4 : vector<8x128xf32> to vector<1x1x8x128xf32>
    tpu.vector_store %arg2[%c0_104, %c0_105, %c0_106, %c0_107], %77 {strides = array<i32>} : memref<1x16x8x128xf32, #tpu.memory_space<vmem>>, vector<1x1x8x128xf32>,
    %cst = arith.constant 9.375000e-02 : f32
    %78 = vector.broadcast %cst : f32 to vector<8x128xf32>
    %79 = arith.mulf %78, %4 : vector<8x128xf32>
    %cst_108 = arith.constant 9.062500e-01 : f32
    %80 = vector.broadcast %cst_108 : f32 to vector<8x128xf32>
    %81 = arith.mulf %80, %9 : vector<8x128xf32>
    %82 = arith.addf %79, %81 : vector<8x128xf32>
    %c0_109 = arith.constant 0 : index
    %c1_110 = arith.constant 1 : index
    %c0_111 = arith.constant 0 : index
    %c0_112 = arith.constant 0 : index
    %83 = vector.load %arg2[%c0_109, %c1_110, %c0_111, %c0_112] : memref<1x16x8x128xf32, #tpu.memory_space<vmem>>, vector<1x1x8x128xf32>
    %84 = vector.shape_cast %83 : vector<1x1x8x128xf32> to vector<8x128xf32>
    %85 = vector.shape_cast %82 : vector<8x128xf32> to vector<1x1x8x128xf32>
    tpu.vector_store %arg2[%c0_109, %c1_110, %c0_111, %c0_112], %85 {strides = array<i32>} : memref<1x16x8x128xf32, #tpu.memory_space<vmem>>, vector<1x1x8x128xf32>,
    %cst_113 = arith.constant 1.562500e-01 : f32
    %86 = vector.broadcast %cst_113 : f32 to vector<8x128xf32>
    %87 = arith.mulf %86, %9 : vector<8x128xf32>
    %cst_114 = arith.constant 8.437500e-01 : f32
    %88 = vector.broadcast %cst_114 : f32 to vector<8x128xf32>
    %89 = arith.mulf %88, %14 : vector<8x128xf32>
    %90 = arith.addf %87, %89 : vector<8x128xf32>
    %c0_115 = arith.constant 0 : index
    %c2_116 = arith.constant 2 : index
    %c0_117 = arith.constant 0 : index
    %c0_118 = arith.constant 0 : index
    %91 = vector.load %arg2[%c0_115, %c2_116, %c0_117, %c0_118] : memref<1x16x8x128xf32, #tpu.memory_space<vmem>>, vector<1x1x8x128xf32>
    %92 = vector.shape_cast %91 : vector<1x1x8x128xf32> to vector<8x128xf32>
    %93 = vector.shape_cast %90 : vector<8x128xf32> to vector<1x1x8x128xf32>
    tpu.vector_store %arg2[%c0_115, %c2_116, %c0_117, %c0_118], %93 {strides = array<i32>} : memref<1x16x8x128xf32, #tpu.memory_space<vmem>>, vector<1x1x8x128xf32>,
    %cst_119 = arith.constant 2.187500e-01 : f32
    %94 = vector.broadcast %cst_119 : f32 to vector<8x128xf32>
    %95 = arith.mulf %94, %14 : vector<8x128xf32>
    %cst_120 = arith.constant 7.812500e-01 : f32
    %96 = vector.broadcast %cst_120 : f32 to vector<8x128xf32>
    %97 = arith.mulf %96, %19 : vector<8x128xf32>
    %98 = arith.addf %95, %97 : vector<8x128xf32>
    %c0_121 = arith.constant 0 : index
    %c3_122 = arith.constant 3 : index
    %c0_123 = arith.constant 0 : index
    %c0_124 = arith.constant 0 : index
    %99 = vector.load %arg2[%c0_121, %c3_122, %c0_123, %c0_124] : memref<1x16x8x128xf32, #tpu.memory_space<vmem>>, vector<1x1x8x128xf32>
    %100 = vector.shape_cast %99 : vector<1x1x8x128xf32> to vector<8x128xf32>
    %101 = vector.shape_cast %98 : vector<8x128xf32> to vector<1x1x8x128xf32>
    tpu.vector_store %arg2[%c0_121, %c3_122, %c0_123, %c0_124], %101 {strides = array<i32>} : memref<1x16x8x128xf32, #tpu.memory_space<vmem>>, vector<1x1x8x128xf32>,
    %cst_125 = arith.constant 2.812500e-01 : f32
    %102 = vector.broadcast %cst_125 : f32 to vector<8x128xf32>
    %103 = arith.mulf %102, %19 : vector<8x128xf32>
    %cst_126 = arith.constant 7.187500e-01 : f32
    %104 = vector.broadcast %cst_126 : f32 to vector<8x128xf32>
    %105 = arith.mulf %104, %24 : vector<8x128xf32>
    %106 = arith.addf %103, %105 : vector<8x128xf32>
    %c0_127 = arith.constant 0 : index
    %c4_128 = arith.constant 4 : index
    %c0_129 = arith.constant 0 : index
    %c0_130 = arith.constant 0 : index
    %107 = vector.load %arg2[%c0_127, %c4_128, %c0_129, %c0_130] : memref<1x16x8x128xf32, #tpu.memory_space<vmem>>, vector<1x1x8x128xf32>
    %108 = vector.shape_cast %107 : vector<1x1x8x128xf32> to vector<8x128xf32>
    %109 = vector.shape_cast %106 : vector<8x128xf32> to vector<1x1x8x128xf32>
    tpu.vector_store %arg2[%c0_127, %c4_128, %c0_129, %c0_130], %109 {strides = array<i32>} : memref<1x16x8x128xf32, #tpu.memory_space<vmem>>, vector<1x1x8x128xf32>,
    %cst_131 = arith.constant 3.437500e-01 : f32
    %110 = vector.broadcast %cst_131 : f32 to vector<8x128xf32>
    %111 = arith.mulf %110, %24 : vector<8x128xf32>
    %cst_132 = arith.constant 6.562500e-01 : f32
    %112 = vector.broadcast %cst_132 : f32 to vector<8x128xf32>
    %113 = arith.mulf %112, %29 : vector<8x128xf32>
    %114 = arith.addf %111, %113 : vector<8x128xf32>
    %c0_133 = arith.constant 0 : index
    %c5_134 = arith.constant 5 : index
    %c0_135 = arith.constant 0 : index
    %c0_136 = arith.constant 0 : index
    %115 = vector.load %arg2[%c0_133, %c5_134, %c0_135, %c0_136] : memref<1x16x8x128xf32, #tpu.memory_space<vmem>>, vector<1x1x8x128xf32>
    %116 = vector.shape_cast %115 : vector<1x1x8x128xf32> to vector<8x128xf32>
    %117 = vector.shape_cast %114 : vector<8x128xf32> to vector<1x1x8x128xf32>
    tpu.vector_store %arg2[%c0_133, %c5_134, %c0_135, %c0_136], %117 {strides = array<i32>} : memref<1x16x8x128xf32, #tpu.memory_space<vmem>>, vector<1x1x8x128xf32>,
    %cst_137 = arith.constant 4.062500e-01 : f32
    %118 = vector.broadcast %cst_137 : f32 to vector<8x128xf32>
    %119 = arith.mulf %118, %29 : vector<8x128xf32>
    %cst_138 = arith.constant 5.937500e-01 : f32
    %120 = vector.broadcast %cst_138 : f32 to vector<8x128xf32>
    %121 = arith.mulf %120, %34 : vector<8x128xf32>
    %122 = arith.addf %119, %121 : vector<8x128xf32>
    %c0_139 = arith.constant 0 : index
    %c6_140 = arith.constant 6 : index
    %c0_141 = arith.constant 0 : index
    %c0_142 = arith.constant 0 : index
    %123 = vector.load %arg2[%c0_139, %c6_140, %c0_141, %c0_142] : memref<1x16x8x128xf32, #tpu.memory_space<vmem>>, vector<1x1x8x128xf32>
    %124 = vector.shape_cast %123 : vector<1x1x8x128xf32> to vector<8x128xf32>
    %125 = vector.shape_cast %122 : vector<8x128xf32> to vector<1x1x8x128xf32>
    tpu.vector_store %arg2[%c0_139, %c6_140, %c0_141, %c0_142], %125 {strides = array<i32>} : memref<1x16x8x128xf32, #tpu.memory_space<vmem>>, vector<1x1x8x128xf32>,
    %cst_143 = arith.constant 4.687500e-01 : f32
    %126 = vector.broadcast %cst_143 : f32 to vector<8x128xf32>
    %127 = arith.mulf %126, %34 : vector<8x128xf32>
    %cst_144 = arith.constant 5.312500e-01 : f32
    %128 = vector.broadcast %cst_144 : f32 to vector<8x128xf32>
    %129 = arith.mulf %128, %39 : vector<8x128xf32>
    %130 = arith.addf %127, %129 : vector<8x128xf32>
    %c0_145 = arith.constant 0 : index
    %c7_146 = arith.constant 7 : index
    %c0_147 = arith.constant 0 : index
    %c0_148 = arith.constant 0 : index
    %131 = vector.load %arg2[%c0_145, %c7_146, %c0_147, %c0_148] : memref<1x16x8x128xf32, #tpu.memory_space<vmem>>, vector<1x1x8x128xf32>
    %132 = vector.shape_cast %131 : vector<1x1x8x128xf32> to vector<8x128xf32>
    %133 = vector.shape_cast %130 : vector<8x128xf32> to vector<1x1x8x128xf32>
    tpu.vector_store %arg2[%c0_145, %c7_146, %c0_147, %c0_148], %133 {strides = array<i32>} : memref<1x16x8x128xf32, #tpu.memory_space<vmem>>, vector<1x1x8x128xf32>,
    %cst_149 = arith.constant 5.312500e-01 : f32
    %134 = vector.broadcast %cst_149 : f32 to vector<8x128xf32>
    %135 = arith.mulf %134, %39 : vector<8x128xf32>
    %cst_150 = arith.constant 4.687500e-01 : f32
    %136 = vector.broadcast %cst_150 : f32 to vector<8x128xf32>
    %137 = arith.mulf %136, %44 : vector<8x128xf32>
    %138 = arith.addf %135, %137 : vector<8x128xf32>
    %c0_151 = arith.constant 0 : index
    %c8_152 = arith.constant 8 : index
    %c0_153 = arith.constant 0 : index
    %c0_154 = arith.constant 0 : index
    %139 = vector.load %arg2[%c0_151, %c8_152, %c0_153, %c0_154] : memref<1x16x8x128xf32, #tpu.memory_space<vmem>>, vector<1x1x8x128xf32>
    %140 = vector.shape_cast %139 : vector<1x1x8x128xf32> to vector<8x128xf32>
    %141 = vector.shape_cast %138 : vector<8x128xf32> to vector<1x1x8x128xf32>
    tpu.vector_store %arg2[%c0_151, %c8_152, %c0_153, %c0_154], %141 {strides = array<i32>} : memref<1x16x8x128xf32, #tpu.memory_space<vmem>>, vector<1x1x8x128xf32>,
    %cst_155 = arith.constant 5.937500e-01 : f32
    %142 = vector.broadcast %cst_155 : f32 to vector<8x128xf32>
    %143 = arith.mulf %142, %44 : vector<8x128xf32>
    %cst_156 = arith.constant 4.062500e-01 : f32
    %144 = vector.broadcast %cst_156 : f32 to vector<8x128xf32>
    %145 = arith.mulf %144, %49 : vector<8x128xf32>
    %146 = arith.addf %143, %145 : vector<8x128xf32>
    %c0_157 = arith.constant 0 : index
    %c9_158 = arith.constant 9 : index
    %c0_159 = arith.constant 0 : index
    %c0_160 = arith.constant 0 : index
    %147 = vector.load %arg2[%c0_157, %c9_158, %c0_159, %c0_160] : memref<1x16x8x128xf32, #tpu.memory_space<vmem>>, vector<1x1x8x128xf32>
    %148 = vector.shape_cast %147 : vector<1x1x8x128xf32> to vector<8x128xf32>
    %149 = vector.shape_cast %146 : vector<8x128xf32> to vector<1x1x8x128xf32>
    tpu.vector_store %arg2[%c0_157, %c9_158, %c0_159, %c0_160], %149 {strides = array<i32>} : memref<1x16x8x128xf32, #tpu.memory_space<vmem>>, vector<1x1x8x128xf32>,
    %cst_161 = arith.constant 6.562500e-01 : f32
    %150 = vector.broadcast %cst_161 : f32 to vector<8x128xf32>
    %151 = arith.mulf %150, %49 : vector<8x128xf32>
    %cst_162 = arith.constant 3.437500e-01 : f32
    %152 = vector.broadcast %cst_162 : f32 to vector<8x128xf32>
    %153 = arith.mulf %152, %54 : vector<8x128xf32>
    %154 = arith.addf %151, %153 : vector<8x128xf32>
    %c0_163 = arith.constant 0 : index
    %c10_164 = arith.constant 10 : index
    %c0_165 = arith.constant 0 : index
    %c0_166 = arith.constant 0 : index
    %155 = vector.load %arg2[%c0_163, %c10_164, %c0_165, %c0_166] : memref<1x16x8x128xf32, #tpu.memory_space<vmem>>, vector<1x1x8x128xf32>
    %156 = vector.shape_cast %155 : vector<1x1x8x128xf32> to vector<8x128xf32>
    %157 = vector.shape_cast %154 : vector<8x128xf32> to vector<1x1x8x128xf32>
    tpu.vector_store %arg2[%c0_163, %c10_164, %c0_165, %c0_166], %157 {strides = array<i32>} : memref<1x16x8x128xf32, #tpu.memory_space<vmem>>, vector<1x1x8x128xf32>,
    %cst_167 = arith.constant 7.187500e-01 : f32
    %158 = vector.broadcast %cst_167 : f32 to vector<8x128xf32>
    %159 = arith.mulf %158, %54 : vector<8x128xf32>
    %cst_168 = arith.constant 2.812500e-01 : f32
    %160 = vector.broadcast %cst_168 : f32 to vector<8x128xf32>
    %161 = arith.mulf %160, %59 : vector<8x128xf32>
    %162 = arith.addf %159, %161 : vector<8x128xf32>
    %c0_169 = arith.constant 0 : index
    %c11_170 = arith.constant 11 : index
    %c0_171 = arith.constant 0 : index
    %c0_172 = arith.constant 0 : index
    %163 = vector.load %arg2[%c0_169, %c11_170, %c0_171, %c0_172] : memref<1x16x8x128xf32, #tpu.memory_space<vmem>>, vector<1x1x8x128xf32>
    %164 = vector.shape_cast %163 : vector<1x1x8x128xf32> to vector<8x128xf32>
    %165 = vector.shape_cast %162 : vector<8x128xf32> to vector<1x1x8x128xf32>
    tpu.vector_store %arg2[%c0_169, %c11_170, %c0_171, %c0_172], %165 {strides = array<i32>} : memref<1x16x8x128xf32, #tpu.memory_space<vmem>>, vector<1x1x8x128xf32>,
    %cst_173 = arith.constant 7.812500e-01 : f32
    %166 = vector.broadcast %cst_173 : f32 to vector<8x128xf32>
    %167 = arith.mulf %166, %59 : vector<8x128xf32>
    %cst_174 = arith.constant 2.187500e-01 : f32
    %168 = vector.broadcast %cst_174 : f32 to vector<8x128xf32>
    %169 = arith.mulf %168, %64 : vector<8x128xf32>
    %170 = arith.addf %167, %169 : vector<8x128xf32>
    %c0_175 = arith.constant 0 : index
    %c12_176 = arith.constant 12 : index
    %c0_177 = arith.constant 0 : index
    %c0_178 = arith.constant 0 : index
    %171 = vector.load %arg2[%c0_175, %c12_176, %c0_177, %c0_178] : memref<1x16x8x128xf32, #tpu.memory_space<vmem>>, vector<1x1x8x128xf32>
    %172 = vector.shape_cast %171 : vector<1x1x8x128xf32> to vector<8x128xf32>
    %173 = vector.shape_cast %170 : vector<8x128xf32> to vector<1x1x8x128xf32>
    tpu.vector_store %arg2[%c0_175, %c12_176, %c0_177, %c0_178], %173 {strides = array<i32>} : memref<1x16x8x128xf32, #tpu.memory_space<vmem>>, vector<1x1x8x128xf32>,
    %cst_179 = arith.constant 8.437500e-01 : f32
    %174 = vector.broadcast %cst_179 : f32 to vector<8x128xf32>
    %175 = arith.mulf %174, %64 : vector<8x128xf32>
    %cst_180 = arith.constant 1.562500e-01 : f32
    %176 = vector.broadcast %cst_180 : f32 to vector<8x128xf32>
    %177 = arith.mulf %176, %69 : vector<8x128xf32>
    %178 = arith.addf %175, %177 : vector<8x128xf32>
    %c0_181 = arith.constant 0 : index
    %c13_182 = arith.constant 13 : index
    %c0_183 = arith.constant 0 : index
    %c0_184 = arith.constant 0 : index
    %179 = vector.load %arg2[%c0_181, %c13_182, %c0_183, %c0_184] : memref<1x16x8x128xf32, #tpu.memory_space<vmem>>, vector<1x1x8x128xf32>
    %180 = vector.shape_cast %179 : vector<1x1x8x128xf32> to vector<8x128xf32>
    %181 = vector.shape_cast %178 : vector<8x128xf32> to vector<1x1x8x128xf32>
    tpu.vector_store %arg2[%c0_181, %c13_182, %c0_183, %c0_184], %181 {strides = array<i32>} : memref<1x16x8x128xf32, #tpu.memory_space<vmem>>, vector<1x1x8x128xf32>,
    %cst_185 = arith.constant 9.062500e-01 : f32
    %182 = vector.broadcast %cst_185 : f32 to vector<8x128xf32>
    %183 = arith.mulf %182, %69 : vector<8x128xf32>
    %cst_186 = arith.constant 9.375000e-02 : f32
    %184 = vector.broadcast %cst_186 : f32 to vector<8x128xf32>
    %185 = arith.mulf %184, %74 : vector<8x128xf32>
    %186 = arith.addf %183, %185 : vector<8x128xf32>
    %c0_187 = arith.constant 0 : index
    %c14_188 = arith.constant 14 : index
    %c0_189 = arith.constant 0 : index
    %c0_190 = arith.constant 0 : index
    %187 = vector.load %arg2[%c0_187, %c14_188, %c0_189, %c0_190] : memref<1x16x8x128xf32, #tpu.memory_space<vmem>>, vector<1x1x8x128xf32>
    %188 = vector.shape_cast %187 : vector<1x1x8x128xf32> to vector<8x128xf32>
    %189 = vector.shape_cast %186 : vector<8x128xf32> to vector<1x1x8x128xf32>
    tpu.vector_store %arg2[%c0_187, %c14_188, %c0_189, %c0_190], %189 {strides = array<i32>} : memref<1x16x8x128xf32, #tpu.memory_space<vmem>>, vector<1x1x8x128xf32>,
    %c0_191 = arith.constant 0 : index
    %c15_192 = arith.constant 15 : index
    %c0_193 = arith.constant 0 : index
    %c0_194 = arith.constant 0 : index
    %190 = vector.load %arg2[%c0_191, %c15_192, %c0_193, %c0_194] : memref<1x16x8x128xf32, #tpu.memory_space<vmem>>, vector<1x1x8x128xf32>
    %191 = vector.shape_cast %190 : vector<1x1x8x128xf32> to vector<8x128xf32>
    %192 = vector.shape_cast %74 : vector<8x128xf32> to vector<1x1x8x128xf32>
    tpu.vector_store %arg2[%c0_191, %c15_192, %c0_193, %c0_194], %192 {strides = array<i32>} : memref<1x16x8x128xf32, #tpu.memory_space<vmem>>, vector<1x1x8x128xf32>,
    return
  }
  func.func @transform_0(%arg0: i32) -> (i32, i32, i32, i32) {
    %c0_i32 = arith.constant 0 : i32
    %c0_i32_0 = arith.constant 0 : i32
    %c0_i32_1 = arith.constant 0 : i32
    %c0_i32_2 = arith.constant 0 : i32
    return %arg0, %c0_i32, %c0_i32_0, %c0_i32_1 : i32, i32, i32, i32
  }
  func.func @transform_1(%arg0: i32) -> (i32, i32, i32, i32) {
    %c0_i32 = arith.constant 0 : i32
    %c0_i32_0 = arith.constant 0 : i32
    %c0_i32_1 = arith.constant 0 : i32
    %c0_i32_2 = arith.constant 0 : i32
    return %arg0, %c0_i32, %c0_i32_0, %c0_i32_1 : i32, i32, i32, i32
  }
}

module attributes {stable_mosaic.version = 11 : i64} {
  func.func @kernel(%arg0: i32, %arg1: i32, %arg2: memref<1x1x136x128xbf16, #tpu.memory_space<vmem>>, %arg3: memref<1x1x128x128xbf16, #tpu.memory_space<vmem>>, %arg4: memref<1x1x128xf32, #tpu.memory_space<vmem>>, %arg5: memref<1x1x16x8x128xbf16, #tpu.memory_space<vmem>>) attributes {dimension_semantics = [#tpu.dimension_semantics<parallel>, #tpu.dimension_semantics<parallel>], iteration_bounds = array<i64: 2, 4>, scalar_prefetch = 0 : i64, scratch_operands = 0 : i64, tpu.core_type = #tpu.core_type<tc>, window_params = [{transform_indices = @transform_0, window_bounds = array<i64: 1, 1, 136, 128>}, {transform_indices = @transform_1, window_bounds = array<i64: 1, 1, 128, 128>}, {transform_indices = @transform_2, window_bounds = array<i64: 1, 1, 128>}, {transform_indices = @transform_3, window_bounds = array<i64: 1, 1, 16, 8, 128>}]} {
    %c0 = arith.constant 0 : index
    %c0_0 = arith.constant 0 : index
    %c0_1 = arith.constant 0 : index
    %0 = vector.load %arg4[%c0, %c0_0, %c0_1] : memref<1x1x128xf32, #tpu.memory_space<vmem>>, vector<1x1x128xf32>
    %1 = vector.shape_cast %0 : vector<1x1x128xf32> to vector<1x128xf32>
    %c0_2 = arith.constant 0 : index
    %c0_3 = arith.constant 0 : index
    %c0_4 = arith.constant 0 : index
    %c0_5 = arith.constant 0 : index
    %2 = vector.load %arg2[%c0_2, %c0_3, %c0_4, %c0_5] : memref<1x1x136x128xbf16, #tpu.memory_space<vmem>>, vector<1x1x128x128xbf16>
    %3 = vector.shape_cast %2 : vector<1x1x128x128xbf16> to vector<128x128xbf16>
    %c0_6 = arith.constant 0 : index
    %c0_7 = arith.constant 0 : index
    %c0_8 = arith.constant 0 : index
    %c0_9 = arith.constant 0 : index
    %4 = vector.load %arg3[%c0_6, %c0_7, %c0_8, %c0_9] : memref<1x1x128x128xbf16, #tpu.memory_space<vmem>>, vector<1x1x128x128xbf16>
    %5 = vector.shape_cast %4 : vector<1x1x128x128xbf16> to vector<128x128xbf16>
    %cst = arith.constant dense<0.000000e+00> : vector<128x128xf32>
    %6 = tpu.matmul %3, %5, %cst {dimension_numbers = #tpu.dot_dimension_numbers<[1], [0], [0], [1], [0, 0, 1, 1], [], []>} : vector<128x128xbf16>, vector<128x128xbf16>, vector<128x128xf32> -> vector<128x128xf32>
    %7 = vector.broadcast %1 : vector<1x128xf32> to vector<128x128xf32>
    %8 = arith.addf %6, %7 : vector<128x128xf32>
    %cst_10 = arith.constant 0.000000e+00 : f32
    %9 = vector.broadcast %cst_10 : f32 to vector<128x128xf32>
    %10 = arith.cmpf oge, %8, %9 : vector<128x128xf32>
    %cst_11 = arith.constant 2.500000e-01 : f32
    %11 = vector.broadcast %cst_11 : f32 to vector<128x128xf32>
    %12 = arith.mulf %11, %8 : vector<128x128xf32>
    %13 = arith.select %10, %8, %12 : vector<128x128xi1>, vector<128x128xf32>
    %14 = vector.shape_cast %13 : vector<128x128xf32> to vector<16x8x128xf32>
    %15 = arith.truncf %14 : vector<16x8x128xf32> to vector<16x8x128xbf16>
    %c0_12 = arith.constant 0 : index
    %c0_13 = arith.constant 0 : index
    %c0_14 = arith.constant 0 : index
    %c0_15 = arith.constant 0 : index
    %c0_16 = arith.constant 0 : index
    %16 = vector.load %arg5[%c0_12, %c0_13, %c0_14, %c0_15, %c0_16] : memref<1x1x16x8x128xbf16, #tpu.memory_space<vmem>>, vector<1x1x16x8x128xbf16>
    %17 = vector.shape_cast %16 : vector<1x1x16x8x128xbf16> to vector<16x8x128xbf16>
    %18 = vector.shape_cast %15 : vector<16x8x128xbf16> to vector<1x1x16x8x128xbf16>
    tpu.vector_store %arg5[%c0_12, %c0_13, %c0_14, %c0_15, %c0_16], %18 {strides = array<i32>} : memref<1x1x16x8x128xbf16, #tpu.memory_space<vmem>>, vector<1x1x16x8x128xbf16>,
    return
  }
  func.func @transform_0(%arg0: i32, %arg1: i32) -> (i32, i32, i32, i32) {
    %c0_i32 = arith.constant 0 : i32
    %c0_i32_0 = arith.constant 0 : i32
    %c0_i32_1 = arith.constant 0 : i32
    return %arg0, %arg1, %c0_i32, %c0_i32_0 : i32, i32, i32, i32
  }
  func.func @transform_1(%arg0: i32, %arg1: i32) -> (i32, i32, i32, i32) {
    %c0_i32 = arith.constant 0 : i32
    %c0_i32_0 = arith.constant 0 : i32
    %c0_i32_1 = arith.constant 0 : i32
    %c0_i32_2 = arith.constant 0 : i32
    return %arg0, %c0_i32, %c0_i32_0, %c0_i32_1 : i32, i32, i32, i32
  }
  func.func @transform_2(%arg0: i32, %arg1: i32) -> (i32, i32, i32) {
    %c0_i32 = arith.constant 0 : i32
    %c0_i32_0 = arith.constant 0 : i32
    %c0_i32_1 = arith.constant 0 : i32
    return %arg0, %c0_i32, %c0_i32_0 : i32, i32, i32
  }
  func.func @transform_3(%arg0: i32, %arg1: i32) -> (i32, i32, i32, i32, i32) {
    %c0_i32 = arith.constant 0 : i32
    %c0_i32_0 = arith.constant 0 : i32
    %c0_i32_1 = arith.constant 0 : i32
    %c0_i32_2 = arith.constant 0 : i32
    return %arg0, %arg1, %c0_i32, %c0_i32_0, %c0_i32_1 : i32, i32, i32, i32, i32
  }
}

module attributes {stable_mosaic.version = 11 : i64} {
  func.func @kernel(%arg0: i32, %arg1: i32, %arg2: memref<1x1x152x128xbf16, #tpu.memory_space<vmem>>, %arg3: memref<1x3x128x128xbf16, #tpu.memory_space<vmem>>, %arg4: memref<1x1x128xf32, #tpu.memory_space<vmem>>, %arg5: memref<1x1x16x8x128xbf16, #tpu.memory_space<vmem>>) attributes {dimension_semantics = [#tpu.dimension_semantics<parallel>, #tpu.dimension_semantics<parallel>], iteration_bounds = array<i64: 2, 4>, scalar_prefetch = 0 : i64, scratch_operands = 0 : i64, tpu.core_type = #tpu.core_type<tc>, window_params = [{transform_indices = @transform_0, window_bounds = array<i64: 1, 1, 152, 128>}, {transform_indices = @transform_1, window_bounds = array<i64: 1, 3, 128, 128>}, {transform_indices = @transform_2, window_bounds = array<i64: 1, 1, 128>}, {transform_indices = @transform_3, window_bounds = array<i64: 1, 1, 16, 8, 128>}]} {
    %c0 = arith.constant 0 : index
    %c0_0 = arith.constant 0 : index
    %c0_1 = arith.constant 0 : index
    %0 = vector.load %arg4[%c0, %c0_0, %c0_1] : memref<1x1x128xf32, #tpu.memory_space<vmem>>, vector<1x1x128xf32>
    %1 = vector.shape_cast %0 : vector<1x1x128xf32> to vector<1x128xf32>
    %c0_2 = arith.constant 0 : index
    %c0_3 = arith.constant 0 : index
    %c0_4 = arith.constant 0 : index
    %c0_5 = arith.constant 0 : index
    %2 = vector.load %arg2[%c0_2, %c0_3, %c0_4, %c0_5] : memref<1x1x152x128xbf16, #tpu.memory_space<vmem>>, vector<1x1x128x128xbf16>
    %3 = vector.shape_cast %2 : vector<1x1x128x128xbf16> to vector<128x128xbf16>
    %c0_6 = arith.constant 0 : index
    %c0_7 = arith.constant 0 : index
    %c0_8 = arith.constant 0 : index
    %c0_9 = arith.constant 0 : index
    %4 = vector.load %arg3[%c0_6, %c0_7, %c0_8, %c0_9] : memref<1x3x128x128xbf16, #tpu.memory_space<vmem>>, vector<1x1x128x128xbf16>
    %5 = vector.shape_cast %4 : vector<1x1x128x128xbf16> to vector<128x128xbf16>
    %cst = arith.constant dense<0.000000e+00> : vector<128x128xf32>
    %6 = tpu.matmul %3, %5, %cst {dimension_numbers = #tpu.dot_dimension_numbers<[1], [0], [0], [1], [0, 0, 1, 1], [], []>} : vector<128x128xbf16>, vector<128x128xbf16>, vector<128x128xf32> -> vector<128x128xf32>
    %c0_10 = arith.constant 0 : index
    %c0_11 = arith.constant 0 : index
    %c8 = arith.constant 8 : index
    %c0_12 = arith.constant 0 : index
    %7 = vector.load %arg2[%c0_10, %c0_11, %c8, %c0_12] : memref<1x1x152x128xbf16, #tpu.memory_space<vmem>>, vector<1x1x128x128xbf16>
    %8 = vector.shape_cast %7 : vector<1x1x128x128xbf16> to vector<128x128xbf16>
    %c0_13 = arith.constant 0 : index
    %c1 = arith.constant 1 : index
    %c0_14 = arith.constant 0 : index
    %c0_15 = arith.constant 0 : index
    %9 = vector.load %arg3[%c0_13, %c1, %c0_14, %c0_15] : memref<1x3x128x128xbf16, #tpu.memory_space<vmem>>, vector<1x1x128x128xbf16>
    %10 = vector.shape_cast %9 : vector<1x1x128x128xbf16> to vector<128x128xbf16>
    %cst_16 = arith.constant dense<0.000000e+00> : vector<128x128xf32>
    %11 = tpu.matmul %8, %10, %cst_16 {dimension_numbers = #tpu.dot_dimension_numbers<[1], [0], [0], [1], [0, 0, 1, 1], [], []>} : vector<128x128xbf16>, vector<128x128xbf16>, vector<128x128xf32> -> vector<128x128xf32>
    %12 = arith.addf %6, %11 : vector<128x128xf32>
    %c0_17 = arith.constant 0 : index
    %c0_18 = arith.constant 0 : index
    %c16 = arith.constant 16 : index
    %c0_19 = arith.constant 0 : index
    %13 = vector.load %arg2[%c0_17, %c0_18, %c16, %c0_19] : memref<1x1x152x128xbf16, #tpu.memory_space<vmem>>, vector<1x1x128x128xbf16>
    %14 = vector.shape_cast %13 : vector<1x1x128x128xbf16> to vector<128x128xbf16>
    %c0_20 = arith.constant 0 : index
    %c2 = arith.constant 2 : index
    %c0_21 = arith.constant 0 : index
    %c0_22 = arith.constant 0 : index
    %15 = vector.load %arg3[%c0_20, %c2, %c0_21, %c0_22] : memref<1x3x128x128xbf16, #tpu.memory_space<vmem>>, vector<1x1x128x128xbf16>
    %16 = vector.shape_cast %15 : vector<1x1x128x128xbf16> to vector<128x128xbf16>
    %cst_23 = arith.constant dense<0.000000e+00> : vector<128x128xf32>
    %17 = tpu.matmul %14, %16, %cst_23 {dimension_numbers = #tpu.dot_dimension_numbers<[1], [0], [0], [1], [0, 0, 1, 1], [], []>} : vector<128x128xbf16>, vector<128x128xbf16>, vector<128x128xf32> -> vector<128x128xf32>
    %18 = arith.addf %12, %17 : vector<128x128xf32>
    %19 = vector.broadcast %1 : vector<1x128xf32> to vector<128x128xf32>
    %20 = arith.addf %18, %19 : vector<128x128xf32>
    %21 = vector.shape_cast %20 : vector<128x128xf32> to vector<16x8x128xf32>
    %22 = arith.truncf %21 : vector<16x8x128xf32> to vector<16x8x128xbf16>
    %c0_24 = arith.constant 0 : index
    %c0_25 = arith.constant 0 : index
    %c0_26 = arith.constant 0 : index
    %c0_27 = arith.constant 0 : index
    %c0_28 = arith.constant 0 : index
    %23 = vector.load %arg5[%c0_24, %c0_25, %c0_26, %c0_27, %c0_28] : memref<1x1x16x8x128xbf16, #tpu.memory_space<vmem>>, vector<1x1x16x8x128xbf16>
    %24 = vector.shape_cast %23 : vector<1x1x16x8x128xbf16> to vector<16x8x128xbf16>
    %25 = vector.shape_cast %22 : vector<16x8x128xbf16> to vector<1x1x16x8x128xbf16>
    tpu.vector_store %arg5[%c0_24, %c0_25, %c0_26, %c0_27, %c0_28], %25 {strides = array<i32>} : memref<1x1x16x8x128xbf16, #tpu.memory_space<vmem>>, vector<1x1x16x8x128xbf16>,
    return
  }
  func.func @transform_0(%arg0: i32, %arg1: i32) -> (i32, i32, i32, i32) {
    %c0_i32 = arith.constant 0 : i32
    %c0_i32_0 = arith.constant 0 : i32
    %c0_i32_1 = arith.constant 0 : i32
    return %arg0, %arg1, %c0_i32, %c0_i32_0 : i32, i32, i32, i32
  }
  func.func @transform_1(%arg0: i32, %arg1: i32) -> (i32, i32, i32, i32) {
    %c0_i32 = arith.constant 0 : i32
    %c0_i32_0 = arith.constant 0 : i32
    %c0_i32_1 = arith.constant 0 : i32
    %c0_i32_2 = arith.constant 0 : i32
    return %arg0, %c0_i32, %c0_i32_0, %c0_i32_1 : i32, i32, i32, i32
  }
  func.func @transform_2(%arg0: i32, %arg1: i32) -> (i32, i32, i32) {
    %c0_i32 = arith.constant 0 : i32
    %c0_i32_0 = arith.constant 0 : i32
    %c0_i32_1 = arith.constant 0 : i32
    return %arg0, %c0_i32, %c0_i32_0 : i32, i32, i32
  }
  func.func @transform_3(%arg0: i32, %arg1: i32) -> (i32, i32, i32, i32, i32) {
    %c0_i32 = arith.constant 0 : i32
    %c0_i32_0 = arith.constant 0 : i32
    %c0_i32_1 = arith.constant 0 : i32
    %c0_i32_2 = arith.constant 0 : i32
    return %arg0, %arg1, %c0_i32, %c0_i32_0, %c0_i32_1 : i32, i32, i32, i32, i32
  }
}

module attributes {stable_mosaic.version = 11 : i64} {
  func.func @kernel(%arg0: i32, %arg1: i32, %arg2: memref<1x1x456x128xbf16, #tpu.memory_space<vmem>>, %arg3: memref<1x9x128x128xbf16, #tpu.memory_space<vmem>>, %arg4: memref<1x1x128xf32, #tpu.memory_space<vmem>>, %arg5: memref<1x1x8x16x128xbf16, #tpu.memory_space<vmem>>) attributes {dimension_semantics = [#tpu.dimension_semantics<parallel>, #tpu.dimension_semantics<parallel>], iteration_bounds = array<i64: 2, 4>, scalar_prefetch = 0 : i64, scratch_operands = 0 : i64, tpu.core_type = #tpu.core_type<tc>, window_params = [{transform_indices = @transform_0, window_bounds = array<i64: 1, 1, 456, 128>}, {transform_indices = @transform_1, window_bounds = array<i64: 1, 9, 128, 128>}, {transform_indices = @transform_2, window_bounds = array<i64: 1, 1, 128>}, {transform_indices = @transform_3, window_bounds = array<i64: 1, 1, 8, 16, 128>}]} {
    %c0 = arith.constant 0 : index
    %c0_0 = arith.constant 0 : index
    %c0_1 = arith.constant 0 : index
    %0 = vector.load %arg4[%c0, %c0_0, %c0_1] : memref<1x1x128xf32, #tpu.memory_space<vmem>>, vector<1x1x128xf32>
    %1 = vector.shape_cast %0 : vector<1x1x128xf32> to vector<1x128xf32>
    %c0_2 = arith.constant 0 : index
    %c0_3 = arith.constant 0 : index
    %c0_4 = arith.constant 0 : index
    %c0_5 = arith.constant 0 : index
    %2 = vector.load %arg2[%c0_2, %c0_3, %c0_4, %c0_5] : memref<1x1x456x128xbf16, #tpu.memory_space<vmem>>, vector<1x1x96x128xbf16>
    %3 = vector.shape_cast %2 : vector<1x1x96x128xbf16> to vector<96x128xbf16>
    %c0_6 = arith.constant 0 : index
    %c0_7 = arith.constant 0 : index
    %c0_8 = arith.constant 0 : index
    %c0_9 = arith.constant 0 : index
    %4 = vector.load %arg3[%c0_6, %c0_7, %c0_8, %c0_9] : memref<1x9x128x128xbf16, #tpu.memory_space<vmem>>, vector<1x1x128x128xbf16>
    %5 = vector.shape_cast %4 : vector<1x1x128x128xbf16> to vector<128x128xbf16>
    %cst = arith.constant dense<0.000000e+00> : vector<96x128xf32>
    %6 = tpu.matmul %3, %5, %cst {dimension_numbers = #tpu.dot_dimension_numbers<[1], [0], [0], [1], [0, 0, 1, 1], [], []>} : vector<96x128xbf16>, vector<128x128xbf16>, vector<96x128xf32> -> vector<96x128xf32>
    %c0_10 = arith.constant 0 : index
    %c0_11 = arith.constant 0 : index
    %c1 = arith.constant 1 : index
    %c0_12 = arith.constant 0 : index
    %7 = vector.load %arg2[%c0_10, %c0_11, %c1, %c0_12] : memref<1x1x456x128xbf16, #tpu.memory_space<vmem>>, vector<1x1x96x128xbf16>
    %8 = vector.shape_cast %7 : vector<1x1x96x128xbf16> to vector<96x128xbf16>
    %c0_13 = arith.constant 0 : index
    %c1_14 = arith.constant 1 : index
    %c0_15 = arith.constant 0 : index
    %c0_16 = arith.constant 0 : index
    %9 = vector.load %arg3[%c0_13, %c1_14, %c0_15, %c0_16] : memref<1x9x128x128xbf16, #tpu.memory_space<vmem>>, vector<1x1x128x128xbf16>
    %10 = vector.shape_cast %9 : vector<1x1x128x128xbf16> to vector<128x128xbf16>
    %cst_17 = arith.constant dense<0.000000e+00> : vector<96x128xf32>
    %11 = tpu.matmul %8, %10, %cst_17 {dimension_numbers = #tpu.dot_dimension_numbers<[1], [0], [0], [1], [0, 0, 1, 1], [], []>} : vector<96x128xbf16>, vector<128x128xbf16>, vector<96x128xf32> -> vector<96x128xf32>
    %12 = arith.addf %6, %11 : vector<96x128xf32>
    %c0_18 = arith.constant 0 : index
    %c0_19 = arith.constant 0 : index
    %c2 = arith.constant 2 : index
    %c0_20 = arith.constant 0 : index
    %13 = vector.load %arg2[%c0_18, %c0_19, %c2, %c0_20] : memref<1x1x456x128xbf16, #tpu.memory_space<vmem>>, vector<1x1x96x128xbf16>
    %14 = vector.shape_cast %13 : vector<1x1x96x128xbf16> to vector<96x128xbf16>
    %c0_21 = arith.constant 0 : index
    %c2_22 = arith.constant 2 : index
    %c0_23 = arith.constant 0 : index
    %c0_24 = arith.constant 0 : index
    %15 = vector.load %arg3[%c0_21, %c2_22, %c0_23, %c0_24] : memref<1x9x128x128xbf16, #tpu.memory_space<vmem>>, vector<1x1x128x128xbf16>
    %16 = vector.shape_cast %15 : vector<1x1x128x128xbf16> to vector<128x128xbf16>
    %cst_25 = arith.constant dense<0.000000e+00> : vector<96x128xf32>
    %17 = tpu.matmul %14, %16, %cst_25 {dimension_numbers = #tpu.dot_dimension_numbers<[1], [0], [0], [1], [0, 0, 1, 1], [], []>} : vector<96x128xbf16>, vector<128x128xbf16>, vector<96x128xf32> -> vector<96x128xf32>
    %18 = arith.addf %12, %17 : vector<96x128xf32>
    %c0_26 = arith.constant 0 : index
    %c0_27 = arith.constant 0 : index
    %c24 = arith.constant 24 : index
    %c0_28 = arith.constant 0 : index
    %19 = vector.load %arg2[%c0_26, %c0_27, %c24, %c0_28] : memref<1x1x456x128xbf16, #tpu.memory_space<vmem>>, vector<1x1x96x128xbf16>
    %20 = vector.shape_cast %19 : vector<1x1x96x128xbf16> to vector<96x128xbf16>
    %c0_29 = arith.constant 0 : index
    %c3 = arith.constant 3 : index
    %c0_30 = arith.constant 0 : index
    %c0_31 = arith.constant 0 : index
    %21 = vector.load %arg3[%c0_29, %c3, %c0_30, %c0_31] : memref<1x9x128x128xbf16, #tpu.memory_space<vmem>>, vector<1x1x128x128xbf16>
    %22 = vector.shape_cast %21 : vector<1x1x128x128xbf16> to vector<128x128xbf16>
    %cst_32 = arith.constant dense<0.000000e+00> : vector<96x128xf32>
    %23 = tpu.matmul %20, %22, %cst_32 {dimension_numbers = #tpu.dot_dimension_numbers<[1], [0], [0], [1], [0, 0, 1, 1], [], []>} : vector<96x128xbf16>, vector<128x128xbf16>, vector<96x128xf32> -> vector<96x128xf32>
    %24 = arith.addf %18, %23 : vector<96x128xf32>
    %c0_33 = arith.constant 0 : index
    %c0_34 = arith.constant 0 : index
    %c25 = arith.constant 25 : index
    %c0_35 = arith.constant 0 : index
    %25 = vector.load %arg2[%c0_33, %c0_34, %c25, %c0_35] : memref<1x1x456x128xbf16, #tpu.memory_space<vmem>>, vector<1x1x96x128xbf16>
    %26 = vector.shape_cast %25 : vector<1x1x96x128xbf16> to vector<96x128xbf16>
    %c0_36 = arith.constant 0 : index
    %c4 = arith.constant 4 : index
    %c0_37 = arith.constant 0 : index
    %c0_38 = arith.constant 0 : index
    %27 = vector.load %arg3[%c0_36, %c4, %c0_37, %c0_38] : memref<1x9x128x128xbf16, #tpu.memory_space<vmem>>, vector<1x1x128x128xbf16>
    %28 = vector.shape_cast %27 : vector<1x1x128x128xbf16> to vector<128x128xbf16>
    %cst_39 = arith.constant dense<0.000000e+00> : vector<96x128xf32>
    %29 = tpu.matmul %26, %28, %cst_39 {dimension_numbers = #tpu.dot_dimension_numbers<[1], [0], [0], [1], [0, 0, 1, 1], [], []>} : vector<96x128xbf16>, vector<128x128xbf16>, vector<96x128xf32> -> vector<96x128xf32>
    %30 = arith.addf %24, %29 : vector<96x128xf32>
    %c0_40 = arith.constant 0 : index
    %c0_41 = arith.constant 0 : index
    %c26 = arith.constant 26 : index
    %c0_42 = arith.constant 0 : index
    %31 = vector.load %arg2[%c0_40, %c0_41, %c26, %c0_42] : memref<1x1x456x128xbf16, #tpu.memory_space<vmem>>, vector<1x1x96x128xbf16>
    %32 = vector.shape_cast %31 : vector<1x1x96x128xbf16> to vector<96x128xbf16>
    %c0_43 = arith.constant 0 : index
    %c5 = arith.constant 5 : index
    %c0_44 = arith.constant 0 : index
    %c0_45 = arith.constant 0 : index
    %33 = vector.load %arg3[%c0_43, %c5, %c0_44, %c0_45] : memref<1x9x128x128xbf16, #tpu.memory_space<vmem>>, vector<1x1x128x128xbf16>
    %34 = vector.shape_cast %33 : vector<1x1x128x128xbf16> to vector<128x128xbf16>
    %cst_46 = arith.constant dense<0.000000e+00> : vector<96x128xf32>
    %35 = tpu.matmul %32, %34, %cst_46 {dimension_numbers = #tpu.dot_dimension_numbers<[1], [0], [0], [1], [0, 0, 1, 1], [], []>} : vector<96x128xbf16>, vector<128x128xbf16>, vector<96x128xf32> -> vector<96x128xf32>
    %36 = arith.addf %30, %35 : vector<96x128xf32>
    %c0_47 = arith.constant 0 : index
    %c0_48 = arith.constant 0 : index
    %c48 = arith.constant 48 : index
    %c0_49 = arith.constant 0 : index
    %37 = vector.load %arg2[%c0_47, %c0_48, %c48, %c0_49] : memref<1x1x456x128xbf16, #tpu.memory_space<vmem>>, vector<1x1x96x128xbf16>
    %38 = vector.shape_cast %37 : vector<1x1x96x128xbf16> to vector<96x128xbf16>
    %c0_50 = arith.constant 0 : index
    %c6 = arith.constant 6 : index
    %c0_51 = arith.constant 0 : index
    %c0_52 = arith.constant 0 : index
    %39 = vector.load %arg3[%c0_50, %c6, %c0_51, %c0_52] : memref<1x9x128x128xbf16, #tpu.memory_space<vmem>>, vector<1x1x128x128xbf16>
    %40 = vector.shape_cast %39 : vector<1x1x128x128xbf16> to vector<128x128xbf16>
    %cst_53 = arith.constant dense<0.000000e+00> : vector<96x128xf32>
    %41 = tpu.matmul %38, %40, %cst_53 {dimension_numbers = #tpu.dot_dimension_numbers<[1], [0], [0], [1], [0, 0, 1, 1], [], []>} : vector<96x128xbf16>, vector<128x128xbf16>, vector<96x128xf32> -> vector<96x128xf32>
    %42 = arith.addf %36, %41 : vector<96x128xf32>
    %c0_54 = arith.constant 0 : index
    %c0_55 = arith.constant 0 : index
    %c49 = arith.constant 49 : index
    %c0_56 = arith.constant 0 : index
    %43 = vector.load %arg2[%c0_54, %c0_55, %c49, %c0_56] : memref<1x1x456x128xbf16, #tpu.memory_space<vmem>>, vector<1x1x96x128xbf16>
    %44 = vector.shape_cast %43 : vector<1x1x96x128xbf16> to vector<96x128xbf16>
    %c0_57 = arith.constant 0 : index
    %c7 = arith.constant 7 : index
    %c0_58 = arith.constant 0 : index
    %c0_59 = arith.constant 0 : index
    %45 = vector.load %arg3[%c0_57, %c7, %c0_58, %c0_59] : memref<1x9x128x128xbf16, #tpu.memory_space<vmem>>, vector<1x1x128x128xbf16>
    %46 = vector.shape_cast %45 : vector<1x1x128x128xbf16> to vector<128x128xbf16>
    %cst_60 = arith.constant dense<0.000000e+00> : vector<96x128xf32>
    %47 = tpu.matmul %44, %46, %cst_60 {dimension_numbers = #tpu.dot_dimension_numbers<[1], [0], [0], [1], [0, 0, 1, 1], [], []>} : vector<96x128xbf16>, vector<128x128xbf16>, vector<96x128xf32> -> vector<96x128xf32>
    %48 = arith.addf %42, %47 : vector<96x128xf32>
    %c0_61 = arith.constant 0 : index
    %c0_62 = arith.constant 0 : index
    %c50 = arith.constant 50 : index
    %c0_63 = arith.constant 0 : index
    %49 = vector.load %arg2[%c0_61, %c0_62, %c50, %c0_63] : memref<1x1x456x128xbf16, #tpu.memory_space<vmem>>, vector<1x1x96x128xbf16>
    %50 = vector.shape_cast %49 : vector<1x1x96x128xbf16> to vector<96x128xbf16>
    %c0_64 = arith.constant 0 : index
    %c8 = arith.constant 8 : index
    %c0_65 = arith.constant 0 : index
    %c0_66 = arith.constant 0 : index
    %51 = vector.load %arg3[%c0_64, %c8, %c0_65, %c0_66] : memref<1x9x128x128xbf16, #tpu.memory_space<vmem>>, vector<1x1x128x128xbf16>
    %52 = vector.shape_cast %51 : vector<1x1x128x128xbf16> to vector<128x128xbf16>
    %cst_67 = arith.constant dense<0.000000e+00> : vector<96x128xf32>
    %53 = tpu.matmul %50, %52, %cst_67 {dimension_numbers = #tpu.dot_dimension_numbers<[1], [0], [0], [1], [0, 0, 1, 1], [], []>} : vector<96x128xbf16>, vector<128x128xbf16>, vector<96x128xf32> -> vector<96x128xf32>
    %54 = arith.addf %48, %53 : vector<96x128xf32>
    %55 = vector.broadcast %1 : vector<1x128xf32> to vector<96x128xf32>
    %56 = arith.addf %54, %55 : vector<96x128xf32>
    %57 = vector.shape_cast %56 : vector<96x128xf32> to vector<2x2x24x128xf32>
    %cst_68 = arith.constant dense<0xFF800000> : vector<2x24x128xf32>
    %58 = vector.multi_reduction <maximumf>, %57, %cst_68 [1] : vector<2x2x24x128xf32> to vector<2x24x128xf32>
    %59 = vector.extract_strided_slice %58 {offsets = [0, 0, 0], sizes = [2, 16, 128], strides = [1, 1, 1]} : vector<2x24x128xf32> to vector<2x16x128xf32>
    %60 = arith.truncf %59 : vector<2x16x128xf32> to vector<2x16x128xbf16>
    %c0_69 = arith.constant 0 : index
    %c0_70 = arith.constant 0 : index
    %c0_71 = arith.constant 0 : index
    %c0_72 = arith.constant 0 : index
    %c0_73 = arith.constant 0 : index
    %61 = vector.load %arg5[%c0_69, %c0_70, %c0_71, %c0_72, %c0_73] : memref<1x1x8x16x128xbf16, #tpu.memory_space<vmem>>, vector<1x1x2x16x128xbf16>
    %62 = vector.shape_cast %61 : vector<1x1x2x16x128xbf16> to vector<2x16x128xbf16>
    %63 = vector.shape_cast %60 : vector<2x16x128xbf16> to vector<1x1x2x16x128xbf16>
    tpu.vector_store %arg5[%c0_69, %c0_70, %c0_71, %c0_72, %c0_73], %63 {strides = array<i32>} : memref<1x1x8x16x128xbf16, #tpu.memory_space<vmem>>, vector<1x1x2x16x128xbf16>,
    %c0_74 = arith.constant 0 : index
    %c0_75 = arith.constant 0 : index
    %c96 = arith.constant 96 : index
    %c0_76 = arith.constant 0 : index
    %64 = vector.load %arg2[%c0_74, %c0_75, %c96, %c0_76] : memref<1x1x456x128xbf16, #tpu.memory_space<vmem>>, vector<1x1x96x128xbf16>
    %65 = vector.shape_cast %64 : vector<1x1x96x128xbf16> to vector<96x128xbf16>
    %c0_77 = arith.constant 0 : index
    %c0_78 = arith.constant 0 : index
    %c0_79 = arith.constant 0 : index
    %c0_80 = arith.constant 0 : index
    %66 = vector.load %arg3[%c0_77, %c0_78, %c0_79, %c0_80] : memref<1x9x128x128xbf16, #tpu.memory_space<vmem>>, vector<1x1x128x128xbf16>
    %67 = vector.shape_cast %66 : vector<1x1x128x128xbf16> to vector<128x128xbf16>
    %cst_81 = arith.constant dense<0.000000e+00> : vector<96x128xf32>
    %68 = tpu.matmul %65, %67, %cst_81 {dimension_numbers = #tpu.dot_dimension_numbers<[1], [0], [0], [1], [0, 0, 1, 1], [], []>} : vector<96x128xbf16>, vector<128x128xbf16>, vector<96x128xf32> -> vector<96x128xf32>
    %c0_82 = arith.constant 0 : index
    %c0_83 = arith.constant 0 : index
    %c97 = arith.constant 97 : index
    %c0_84 = arith.constant 0 : index
    %69 = vector.load %arg2[%c0_82, %c0_83, %c97, %c0_84] : memref<1x1x456x128xbf16, #tpu.memory_space<vmem>>, vector<1x1x96x128xbf16>
    %70 = vector.shape_cast %69 : vector<1x1x96x128xbf16> to vector<96x128xbf16>
    %c0_85 = arith.constant 0 : index
    %c1_86 = arith.constant 1 : index
    %c0_87 = arith.constant 0 : index
    %c0_88 = arith.constant 0 : index
    %71 = vector.load %arg3[%c0_85, %c1_86, %c0_87, %c0_88] : memref<1x9x128x128xbf16, #tpu.memory_space<vmem>>, vector<1x1x128x128xbf16>
    %72 = vector.shape_cast %71 : vector<1x1x128x128xbf16> to vector<128x128xbf16>
    %cst_89 = arith.constant dense<0.000000e+00> : vector<96x128xf32>
    %73 = tpu.matmul %70, %72, %cst_89 {dimension_numbers = #tpu.dot_dimension_numbers<[1], [0], [0], [1], [0, 0, 1, 1], [], []>} : vector<96x128xbf16>, vector<128x128xbf16>, vector<96x128xf32> -> vector<96x128xf32>
    %74 = arith.addf %68, %73 : vector<96x128xf32>
    %c0_90 = arith.constant 0 : index
    %c0_91 = arith.constant 0 : index
    %c98 = arith.constant 98 : index
    %c0_92 = arith.constant 0 : index
    %75 = vector.load %arg2[%c0_90, %c0_91, %c98, %c0_92] : memref<1x1x456x128xbf16, #tpu.memory_space<vmem>>, vector<1x1x96x128xbf16>
    %76 = vector.shape_cast %75 : vector<1x1x96x128xbf16> to vector<96x128xbf16>
    %c0_93 = arith.constant 0 : index
    %c2_94 = arith.constant 2 : index
    %c0_95 = arith.constant 0 : index
    %c0_96 = arith.constant 0 : index
    %77 = vector.load %arg3[%c0_93, %c2_94, %c0_95, %c0_96] : memref<1x9x128x128xbf16, #tpu.memory_space<vmem>>, vector<1x1x128x128xbf16>
    %78 = vector.shape_cast %77 : vector<1x1x128x128xbf16> to vector<128x128xbf16>
    %cst_97 = arith.constant dense<0.000000e+00> : vector<96x128xf32>
    %79 = tpu.matmul %76, %78, %cst_97 {dimension_numbers = #tpu.dot_dimension_numbers<[1], [0], [0], [1], [0, 0, 1, 1], [], []>} : vector<96x128xbf16>, vector<128x128xbf16>, vector<96x128xf32> -> vector<96x128xf32>
    %80 = arith.addf %74, %79 : vector<96x128xf32>
    %c0_98 = arith.constant 0 : index
    %c0_99 = arith.constant 0 : index
    %c120 = arith.constant 120 : index
    %c0_100 = arith.constant 0 : index
    %81 = vector.load %arg2[%c0_98, %c0_99, %c120, %c0_100] : memref<1x1x456x128xbf16, #tpu.memory_space<vmem>>, vector<1x1x96x128xbf16>
    %82 = vector.shape_cast %81 : vector<1x1x96x128xbf16> to vector<96x128xbf16>
    %c0_101 = arith.constant 0 : index
    %c3_102 = arith.constant 3 : index
    %c0_103 = arith.constant 0 : index
    %c0_104 = arith.constant 0 : index
    %83 = vector.load %arg3[%c0_101, %c3_102, %c0_103, %c0_104] : memref<1x9x128x128xbf16, #tpu.memory_space<vmem>>, vector<1x1x128x128xbf16>
    %84 = vector.shape_cast %83 : vector<1x1x128x128xbf16> to vector<128x128xbf16>
    %cst_105 = arith.constant dense<0.000000e+00> : vector<96x128xf32>
    %85 = tpu.matmul %82, %84, %cst_105 {dimension_numbers = #tpu.dot_dimension_numbers<[1], [0], [0], [1], [0, 0, 1, 1], [], []>} : vector<96x128xbf16>, vector<128x128xbf16>, vector<96x128xf32> -> vector<96x128xf32>
    %86 = arith.addf %80, %85 : vector<96x128xf32>
    %c0_106 = arith.constant 0 : index
    %c0_107 = arith.constant 0 : index
    %c121 = arith.constant 121 : index
    %c0_108 = arith.constant 0 : index
    %87 = vector.load %arg2[%c0_106, %c0_107, %c121, %c0_108] : memref<1x1x456x128xbf16, #tpu.memory_space<vmem>>, vector<1x1x96x128xbf16>
    %88 = vector.shape_cast %87 : vector<1x1x96x128xbf16> to vector<96x128xbf16>
    %c0_109 = arith.constant 0 : index
    %c4_110 = arith.constant 4 : index
    %c0_111 = arith.constant 0 : index
    %c0_112 = arith.constant 0 : index
    %89 = vector.load %arg3[%c0_109, %c4_110, %c0_111, %c0_112] : memref<1x9x128x128xbf16, #tpu.memory_space<vmem>>, vector<1x1x128x128xbf16>
    %90 = vector.shape_cast %89 : vector<1x1x128x128xbf16> to vector<128x128xbf16>
    %cst_113 = arith.constant dense<0.000000e+00> : vector<96x128xf32>
    %91 = tpu.matmul %88, %90, %cst_113 {dimension_numbers = #tpu.dot_dimension_numbers<[1], [0], [0], [1], [0, 0, 1, 1], [], []>} : vector<96x128xbf16>, vector<128x128xbf16>, vector<96x128xf32> -> vector<96x128xf32>
    %92 = arith.addf %86, %91 : vector<96x128xf32>
    %c0_114 = arith.constant 0 : index
    %c0_115 = arith.constant 0 : index
    %c122 = arith.constant 122 : index
    %c0_116 = arith.constant 0 : index
    %93 = vector.load %arg2[%c0_114, %c0_115, %c122, %c0_116] : memref<1x1x456x128xbf16, #tpu.memory_space<vmem>>, vector<1x1x96x128xbf16>
    %94 = vector.shape_cast %93 : vector<1x1x96x128xbf16> to vector<96x128xbf16>
    %c0_117 = arith.constant 0 : index
    %c5_118 = arith.constant 5 : index
    %c0_119 = arith.constant 0 : index
    %c0_120 = arith.constant 0 : index
    %95 = vector.load %arg3[%c0_117, %c5_118, %c0_119, %c0_120] : memref<1x9x128x128xbf16, #tpu.memory_space<vmem>>, vector<1x1x128x128xbf16>
    %96 = vector.shape_cast %95 : vector<1x1x128x128xbf16> to vector<128x128xbf16>
    %cst_121 = arith.constant dense<0.000000e+00> : vector<96x128xf32>
    %97 = tpu.matmul %94, %96, %cst_121 {dimension_numbers = #tpu.dot_dimension_numbers<[1], [0], [0], [1], [0, 0, 1, 1], [], []>} : vector<96x128xbf16>, vector<128x128xbf16>, vector<96x128xf32> -> vector<96x128xf32>
    %98 = arith.addf %92, %97 : vector<96x128xf32>
    %c0_122 = arith.constant 0 : index
    %c0_123 = arith.constant 0 : index
    %c144 = arith.constant 144 : index
    %c0_124 = arith.constant 0 : index
    %99 = vector.load %arg2[%c0_122, %c0_123, %c144, %c0_124] : memref<1x1x456x128xbf16, #tpu.memory_space<vmem>>, vector<1x1x96x128xbf16>
    %100 = vector.shape_cast %99 : vector<1x1x96x128xbf16> to vector<96x128xbf16>
    %c0_125 = arith.constant 0 : index
    %c6_126 = arith.constant 6 : index
    %c0_127 = arith.constant 0 : index
    %c0_128 = arith.constant 0 : index
    %101 = vector.load %arg3[%c0_125, %c6_126, %c0_127, %c0_128] : memref<1x9x128x128xbf16, #tpu.memory_space<vmem>>, vector<1x1x128x128xbf16>
    %102 = vector.shape_cast %101 : vector<1x1x128x128xbf16> to vector<128x128xbf16>
    %cst_129 = arith.constant dense<0.000000e+00> : vector<96x128xf32>
    %103 = tpu.matmul %100, %102, %cst_129 {dimension_numbers = #tpu.dot_dimension_numbers<[1], [0], [0], [1], [0, 0, 1, 1], [], []>} : vector<96x128xbf16>, vector<128x128xbf16>, vector<96x128xf32> -> vector<96x128xf32>
    %104 = arith.addf %98, %103 : vector<96x128xf32>
    %c0_130 = arith.constant 0 : index
    %c0_131 = arith.constant 0 : index
    %c145 = arith.constant 145 : index
    %c0_132 = arith.constant 0 : index
    %105 = vector.load %arg2[%c0_130, %c0_131, %c145, %c0_132] : memref<1x1x456x128xbf16, #tpu.memory_space<vmem>>, vector<1x1x96x128xbf16>
    %106 = vector.shape_cast %105 : vector<1x1x96x128xbf16> to vector<96x128xbf16>
    %c0_133 = arith.constant 0 : index
    %c7_134 = arith.constant 7 : index
    %c0_135 = arith.constant 0 : index
    %c0_136 = arith.constant 0 : index
    %107 = vector.load %arg3[%c0_133, %c7_134, %c0_135, %c0_136] : memref<1x9x128x128xbf16, #tpu.memory_space<vmem>>, vector<1x1x128x128xbf16>
    %108 = vector.shape_cast %107 : vector<1x1x128x128xbf16> to vector<128x128xbf16>
    %cst_137 = arith.constant dense<0.000000e+00> : vector<96x128xf32>
    %109 = tpu.matmul %106, %108, %cst_137 {dimension_numbers = #tpu.dot_dimension_numbers<[1], [0], [0], [1], [0, 0, 1, 1], [], []>} : vector<96x128xbf16>, vector<128x128xbf16>, vector<96x128xf32> -> vector<96x128xf32>
    %110 = arith.addf %104, %109 : vector<96x128xf32>
    %c0_138 = arith.constant 0 : index
    %c0_139 = arith.constant 0 : index
    %c146 = arith.constant 146 : index
    %c0_140 = arith.constant 0 : index
    %111 = vector.load %arg2[%c0_138, %c0_139, %c146, %c0_140] : memref<1x1x456x128xbf16, #tpu.memory_space<vmem>>, vector<1x1x96x128xbf16>
    %112 = vector.shape_cast %111 : vector<1x1x96x128xbf16> to vector<96x128xbf16>
    %c0_141 = arith.constant 0 : index
    %c8_142 = arith.constant 8 : index
    %c0_143 = arith.constant 0 : index
    %c0_144 = arith.constant 0 : index
    %113 = vector.load %arg3[%c0_141, %c8_142, %c0_143, %c0_144] : memref<1x9x128x128xbf16, #tpu.memory_space<vmem>>, vector<1x1x128x128xbf16>
    %114 = vector.shape_cast %113 : vector<1x1x128x128xbf16> to vector<128x128xbf16>
    %cst_145 = arith.constant dense<0.000000e+00> : vector<96x128xf32>
    %115 = tpu.matmul %112, %114, %cst_145 {dimension_numbers = #tpu.dot_dimension_numbers<[1], [0], [0], [1], [0, 0, 1, 1], [], []>} : vector<96x128xbf16>, vector<128x128xbf16>, vector<96x128xf32> -> vector<96x128xf32>
    %116 = arith.addf %110, %115 : vector<96x128xf32>
    %117 = vector.broadcast %1 : vector<1x128xf32> to vector<96x128xf32>
    %118 = arith.addf %116, %117 : vector<96x128xf32>
    %119 = vector.shape_cast %118 : vector<96x128xf32> to vector<2x2x24x128xf32>
    %cst_146 = arith.constant dense<0xFF800000> : vector<2x24x128xf32>
    %120 = vector.multi_reduction <maximumf>, %119, %cst_146 [1] : vector<2x2x24x128xf32> to vector<2x24x128xf32>
    %121 = vector.extract_strided_slice %120 {offsets = [0, 0, 0], sizes = [2, 16, 128], strides = [1, 1, 1]} : vector<2x24x128xf32> to vector<2x16x128xf32>
    %122 = arith.truncf %121 : vector<2x16x128xf32> to vector<2x16x128xbf16>
    %c0_147 = arith.constant 0 : index
    %c0_148 = arith.constant 0 : index
    %c2_149 = arith.constant 2 : index
    %c0_150 = arith.constant 0 : index
    %c0_151 = arith.constant 0 : index
    %123 = vector.load %arg5[%c0_147, %c0_148, %c2_149, %c0_150, %c0_151] : memref<1x1x8x16x128xbf16, #tpu.memory_space<vmem>>, vector<1x1x2x16x128xbf16>
    %124 = vector.shape_cast %123 : vector<1x1x2x16x128xbf16> to vector<2x16x128xbf16>
    %125 = vector.shape_cast %122 : vector<2x16x128xbf16> to vector<1x1x2x16x128xbf16>
    tpu.vector_store %arg5[%c0_147, %c0_148, %c2_149, %c0_150, %c0_151], %125 {strides = array<i32>} : memref<1x1x8x16x128xbf16, #tpu.memory_space<vmem>>, vector<1x1x2x16x128xbf16>,
    %c0_152 = arith.constant 0 : index
    %c0_153 = arith.constant 0 : index
    %c192 = arith.constant 192 : index
    %c0_154 = arith.constant 0 : index
    %126 = vector.load %arg2[%c0_152, %c0_153, %c192, %c0_154] : memref<1x1x456x128xbf16, #tpu.memory_space<vmem>>, vector<1x1x96x128xbf16>
    %127 = vector.shape_cast %126 : vector<1x1x96x128xbf16> to vector<96x128xbf16>
    %c0_155 = arith.constant 0 : index
    %c0_156 = arith.constant 0 : index
    %c0_157 = arith.constant 0 : index
    %c0_158 = arith.constant 0 : index
    %128 = vector.load %arg3[%c0_155, %c0_156, %c0_157, %c0_158] : memref<1x9x128x128xbf16, #tpu.memory_space<vmem>>, vector<1x1x128x128xbf16>
    %129 = vector.shape_cast %128 : vector<1x1x128x128xbf16> to vector<128x128xbf16>
    %cst_159 = arith.constant dense<0.000000e+00> : vector<96x128xf32>
    %130 = tpu.matmul %127, %129, %cst_159 {dimension_numbers = #tpu.dot_dimension_numbers<[1], [0], [0], [1], [0, 0, 1, 1], [], []>} : vector<96x128xbf16>, vector<128x128xbf16>, vector<96x128xf32> -> vector<96x128xf32>
    %c0_160 = arith.constant 0 : index
    %c0_161 = arith.constant 0 : index
    %c193 = arith.constant 193 : index
    %c0_162 = arith.constant 0 : index
    %131 = vector.load %arg2[%c0_160, %c0_161, %c193, %c0_162] : memref<1x1x456x128xbf16, #tpu.memory_space<vmem>>, vector<1x1x96x128xbf16>
    %132 = vector.shape_cast %131 : vector<1x1x96x128xbf16> to vector<96x128xbf16>
    %c0_163 = arith.constant 0 : index
    %c1_164 = arith.constant 1 : index
    %c0_165 = arith.constant 0 : index
    %c0_166 = arith.constant 0 : index
    %133 = vector.load %arg3[%c0_163, %c1_164, %c0_165, %c0_166] : memref<1x9x128x128xbf16, #tpu.memory_space<vmem>>, vector<1x1x128x128xbf16>
    %134 = vector.shape_cast %133 : vector<1x1x128x128xbf16> to vector<128x128xbf16>
    %cst_167 = arith.constant dense<0.000000e+00> : vector<96x128xf32>
    %135 = tpu.matmul %132, %134, %cst_167 {dimension_numbers = #tpu.dot_dimension_numbers<[1], [0], [0], [1], [0, 0, 1, 1], [], []>} : vector<96x128xbf16>, vector<128x128xbf16>, vector<96x128xf32> -> vector<96x128xf32>
    %136 = arith.addf %130, %135 : vector<96x128xf32>
    %c0_168 = arith.constant 0 : index
    %c0_169 = arith.constant 0 : index
    %c194 = arith.constant 194 : index
    %c0_170 = arith.constant 0 : index
    %137 = vector.load %arg2[%c0_168, %c0_169, %c194, %c0_170] : memref<1x1x456x128xbf16, #tpu.memory_space<vmem>>, vector<1x1x96x128xbf16>
    %138 = vector.shape_cast %137 : vector<1x1x96x128xbf16> to vector<96x128xbf16>
    %c0_171 = arith.constant 0 : index
    %c2_172 = arith.constant 2 : index
    %c0_173 = arith.constant 0 : index
    %c0_174 = arith.constant 0 : index
    %139 = vector.load %arg3[%c0_171, %c2_172, %c0_173, %c0_174] : memref<1x9x128x128xbf16, #tpu.memory_space<vmem>>, vector<1x1x128x128xbf16>
    %140 = vector.shape_cast %139 : vector<1x1x128x128xbf16> to vector<128x128xbf16>
    %cst_175 = arith.constant dense<0.000000e+00> : vector<96x128xf32>
    %141 = tpu.matmul %138, %140, %cst_175 {dimension_numbers = #tpu.dot_dimension_numbers<[1], [0], [0], [1], [0, 0, 1, 1], [], []>} : vector<96x128xbf16>, vector<128x128xbf16>, vector<96x128xf32> -> vector<96x128xf32>
    %142 = arith.addf %136, %141 : vector<96x128xf32>
    %c0_176 = arith.constant 0 : index
    %c0_177 = arith.constant 0 : index
    %c216 = arith.constant 216 : index
    %c0_178 = arith.constant 0 : index
    %143 = vector.load %arg2[%c0_176, %c0_177, %c216, %c0_178] : memref<1x1x456x128xbf16, #tpu.memory_space<vmem>>, vector<1x1x96x128xbf16>
    %144 = vector.shape_cast %143 : vector<1x1x96x128xbf16> to vector<96x128xbf16>
    %c0_179 = arith.constant 0 : index
    %c3_180 = arith.constant 3 : index
    %c0_181 = arith.constant 0 : index
    %c0_182 = arith.constant 0 : index
    %145 = vector.load %arg3[%c0_179, %c3_180, %c0_181, %c0_182] : memref<1x9x128x128xbf16, #tpu.memory_space<vmem>>, vector<1x1x128x128xbf16>
    %146 = vector.shape_cast %145 : vector<1x1x128x128xbf16> to vector<128x128xbf16>
    %cst_183 = arith.constant dense<0.000000e+00> : vector<96x128xf32>
    %147 = tpu.matmul %144, %146, %cst_183 {dimension_numbers = #tpu.dot_dimension_numbers<[1], [0], [0], [1], [0, 0, 1, 1], [], []>} : vector<96x128xbf16>, vector<128x128xbf16>, vector<96x128xf32> -> vector<96x128xf32>
    %148 = arith.addf %142, %147 : vector<96x128xf32>
    %c0_184 = arith.constant 0 : index
    %c0_185 = arith.constant 0 : index
    %c217 = arith.constant 217 : index
    %c0_186 = arith.constant 0 : index
    %149 = vector.load %arg2[%c0_184, %c0_185, %c217, %c0_186] : memref<1x1x456x128xbf16, #tpu.memory_space<vmem>>, vector<1x1x96x128xbf16>
    %150 = vector.shape_cast %149 : vector<1x1x96x128xbf16> to vector<96x128xbf16>
    %c0_187 = arith.constant 0 : index
    %c4_188 = arith.constant 4 : index
    %c0_189 = arith.constant 0 : index
    %c0_190 = arith.constant 0 : index
    %151 = vector.load %arg3[%c0_187, %c4_188, %c0_189, %c0_190] : memref<1x9x128x128xbf16, #tpu.memory_space<vmem>>, vector<1x1x128x128xbf16>
    %152 = vector.shape_cast %151 : vector<1x1x128x128xbf16> to vector<128x128xbf16>
    %cst_191 = arith.constant dense<0.000000e+00> : vector<96x128xf32>
    %153 = tpu.matmul %150, %152, %cst_191 {dimension_numbers = #tpu.dot_dimension_numbers<[1], [0], [0], [1], [0, 0, 1, 1], [], []>} : vector<96x128xbf16>, vector<128x128xbf16>, vector<96x128xf32> -> vector<96x128xf32>
    %154 = arith.addf %148, %153 : vector<96x128xf32>
    %c0_192 = arith.constant 0 : index
    %c0_193 = arith.constant 0 : index
    %c218 = arith.constant 218 : index
    %c0_194 = arith.constant 0 : index
    %155 = vector.load %arg2[%c0_192, %c0_193, %c218, %c0_194] : memref<1x1x456x128xbf16, #tpu.memory_space<vmem>>, vector<1x1x96x128xbf16>
    %156 = vector.shape_cast %155 : vector<1x1x96x128xbf16> to vector<96x128xbf16>
    %c0_195 = arith.constant 0 : index
    %c5_196 = arith.constant 5 : index
    %c0_197 = arith.constant 0 : index
    %c0_198 = arith.constant 0 : index
    %157 = vector.load %arg3[%c0_195, %c5_196, %c0_197, %c0_198] : memref<1x9x128x128xbf16, #tpu.memory_space<vmem>>, vector<1x1x128x128xbf16>
    %158 = vector.shape_cast %157 : vector<1x1x128x128xbf16> to vector<128x128xbf16>
    %cst_199 = arith.constant dense<0.000000e+00> : vector<96x128xf32>
    %159 = tpu.matmul %156, %158, %cst_199 {dimension_numbers = #tpu.dot_dimension_numbers<[1], [0], [0], [1], [0, 0, 1, 1], [], []>} : vector<96x128xbf16>, vector<128x128xbf16>, vector<96x128xf32> -> vector<96x128xf32>
    %160 = arith.addf %154, %159 : vector<96x128xf32>
    %c0_200 = arith.constant 0 : index
    %c0_201 = arith.constant 0 : index
    %c240 = arith.constant 240 : index
    %c0_202 = arith.constant 0 : index
    %161 = vector.load %arg2[%c0_200, %c0_201, %c240, %c0_202] : memref<1x1x456x128xbf16, #tpu.memory_space<vmem>>, vector<1x1x96x128xbf16>
    %162 = vector.shape_cast %161 : vector<1x1x96x128xbf16> to vector<96x128xbf16>
    %c0_203 = arith.constant 0 : index
    %c6_204 = arith.constant 6 : index
    %c0_205 = arith.constant 0 : index
    %c0_206 = arith.constant 0 : index
    %163 = vector.load %arg3[%c0_203, %c6_204, %c0_205, %c0_206] : memref<1x9x128x128xbf16, #tpu.memory_space<vmem>>, vector<1x1x128x128xbf16>
    %164 = vector.shape_cast %163 : vector<1x1x128x128xbf16> to vector<128x128xbf16>
    %cst_207 = arith.constant dense<0.000000e+00> : vector<96x128xf32>
    %165 = tpu.matmul %162, %164, %cst_207 {dimension_numbers = #tpu.dot_dimension_numbers<[1], [0], [0], [1], [0, 0, 1, 1], [], []>} : vector<96x128xbf16>, vector<128x128xbf16>, vector<96x128xf32> -> vector<96x128xf32>
    %166 = arith.addf %160, %165 : vector<96x128xf32>
    %c0_208 = arith.constant 0 : index
    %c0_209 = arith.constant 0 : index
    %c241 = arith.constant 241 : index
    %c0_210 = arith.constant 0 : index
    %167 = vector.load %arg2[%c0_208, %c0_209, %c241, %c0_210] : memref<1x1x456x128xbf16, #tpu.memory_space<vmem>>, vector<1x1x96x128xbf16>
    %168 = vector.shape_cast %167 : vector<1x1x96x128xbf16> to vector<96x128xbf16>
    %c0_211 = arith.constant 0 : index
    %c7_212 = arith.constant 7 : index
    %c0_213 = arith.constant 0 : index
    %c0_214 = arith.constant 0 : index
    %169 = vector.load %arg3[%c0_211, %c7_212, %c0_213, %c0_214] : memref<1x9x128x128xbf16, #tpu.memory_space<vmem>>, vector<1x1x128x128xbf16>
    %170 = vector.shape_cast %169 : vector<1x1x128x128xbf16> to vector<128x128xbf16>
    %cst_215 = arith.constant dense<0.000000e+00> : vector<96x128xf32>
    %171 = tpu.matmul %168, %170, %cst_215 {dimension_numbers = #tpu.dot_dimension_numbers<[1], [0], [0], [1], [0, 0, 1, 1], [], []>} : vector<96x128xbf16>, vector<128x128xbf16>, vector<96x128xf32> -> vector<96x128xf32>
    %172 = arith.addf %166, %171 : vector<96x128xf32>
    %c0_216 = arith.constant 0 : index
    %c0_217 = arith.constant 0 : index
    %c242 = arith.constant 242 : index
    %c0_218 = arith.constant 0 : index
    %173 = vector.load %arg2[%c0_216, %c0_217, %c242, %c0_218] : memref<1x1x456x128xbf16, #tpu.memory_space<vmem>>, vector<1x1x96x128xbf16>
    %174 = vector.shape_cast %173 : vector<1x1x96x128xbf16> to vector<96x128xbf16>
    %c0_219 = arith.constant 0 : index
    %c8_220 = arith.constant 8 : index
    %c0_221 = arith.constant 0 : index
    %c0_222 = arith.constant 0 : index
    %175 = vector.load %arg3[%c0_219, %c8_220, %c0_221, %c0_222] : memref<1x9x128x128xbf16, #tpu.memory_space<vmem>>, vector<1x1x128x128xbf16>
    %176 = vector.shape_cast %175 : vector<1x1x128x128xbf16> to vector<128x128xbf16>
    %cst_223 = arith.constant dense<0.000000e+00> : vector<96x128xf32>
    %177 = tpu.matmul %174, %176, %cst_223 {dimension_numbers = #tpu.dot_dimension_numbers<[1], [0], [0], [1], [0, 0, 1, 1], [], []>} : vector<96x128xbf16>, vector<128x128xbf16>, vector<96x128xf32> -> vector<96x128xf32>
    %178 = arith.addf %172, %177 : vector<96x128xf32>
    %179 = vector.broadcast %1 : vector<1x128xf32> to vector<96x128xf32>
    %180 = arith.addf %178, %179 : vector<96x128xf32>
    %181 = vector.shape_cast %180 : vector<96x128xf32> to vector<2x2x24x128xf32>
    %cst_224 = arith.constant dense<0xFF800000> : vector<2x24x128xf32>
    %182 = vector.multi_reduction <maximumf>, %181, %cst_224 [1] : vector<2x2x24x128xf32> to vector<2x24x128xf32>
    %183 = vector.extract_strided_slice %182 {offsets = [0, 0, 0], sizes = [2, 16, 128], strides = [1, 1, 1]} : vector<2x24x128xf32> to vector<2x16x128xf32>
    %184 = arith.truncf %183 : vector<2x16x128xf32> to vector<2x16x128xbf16>
    %c0_225 = arith.constant 0 : index
    %c0_226 = arith.constant 0 : index
    %c4_227 = arith.constant 4 : index
    %c0_228 = arith.constant 0 : index
    %c0_229 = arith.constant 0 : index
    %185 = vector.load %arg5[%c0_225, %c0_226, %c4_227, %c0_228, %c0_229] : memref<1x1x8x16x128xbf16, #tpu.memory_space<vmem>>, vector<1x1x2x16x128xbf16>
    %186 = vector.shape_cast %185 : vector<1x1x2x16x128xbf16> to vector<2x16x128xbf16>
    %187 = vector.shape_cast %184 : vector<2x16x128xbf16> to vector<1x1x2x16x128xbf16>
    tpu.vector_store %arg5[%c0_225, %c0_226, %c4_227, %c0_228, %c0_229], %187 {strides = array<i32>} : memref<1x1x8x16x128xbf16, #tpu.memory_space<vmem>>, vector<1x1x2x16x128xbf16>,
    %c0_230 = arith.constant 0 : index
    %c0_231 = arith.constant 0 : index
    %c288 = arith.constant 288 : index
    %c0_232 = arith.constant 0 : index
    %188 = vector.load %arg2[%c0_230, %c0_231, %c288, %c0_232] : memref<1x1x456x128xbf16, #tpu.memory_space<vmem>>, vector<1x1x96x128xbf16>
    %189 = vector.shape_cast %188 : vector<1x1x96x128xbf16> to vector<96x128xbf16>
    %c0_233 = arith.constant 0 : index
    %c0_234 = arith.constant 0 : index
    %c0_235 = arith.constant 0 : index
    %c0_236 = arith.constant 0 : index
    %190 = vector.load %arg3[%c0_233, %c0_234, %c0_235, %c0_236] : memref<1x9x128x128xbf16, #tpu.memory_space<vmem>>, vector<1x1x128x128xbf16>
    %191 = vector.shape_cast %190 : vector<1x1x128x128xbf16> to vector<128x128xbf16>
    %cst_237 = arith.constant dense<0.000000e+00> : vector<96x128xf32>
    %192 = tpu.matmul %189, %191, %cst_237 {dimension_numbers = #tpu.dot_dimension_numbers<[1], [0], [0], [1], [0, 0, 1, 1], [], []>} : vector<96x128xbf16>, vector<128x128xbf16>, vector<96x128xf32> -> vector<96x128xf32>
    %c0_238 = arith.constant 0 : index
    %c0_239 = arith.constant 0 : index
    %c289 = arith.constant 289 : index
    %c0_240 = arith.constant 0 : index
    %193 = vector.load %arg2[%c0_238, %c0_239, %c289, %c0_240] : memref<1x1x456x128xbf16, #tpu.memory_space<vmem>>, vector<1x1x96x128xbf16>
    %194 = vector.shape_cast %193 : vector<1x1x96x128xbf16> to vector<96x128xbf16>
    %c0_241 = arith.constant 0 : index
    %c1_242 = arith.constant 1 : index
    %c0_243 = arith.constant 0 : index
    %c0_244 = arith.constant 0 : index
    %195 = vector.load %arg3[%c0_241, %c1_242, %c0_243, %c0_244] : memref<1x9x128x128xbf16, #tpu.memory_space<vmem>>, vector<1x1x128x128xbf16>
    %196 = vector.shape_cast %195 : vector<1x1x128x128xbf16> to vector<128x128xbf16>
    %cst_245 = arith.constant dense<0.000000e+00> : vector<96x128xf32>
    %197 = tpu.matmul %194, %196, %cst_245 {dimension_numbers = #tpu.dot_dimension_numbers<[1], [0], [0], [1], [0, 0, 1, 1], [], []>} : vector<96x128xbf16>, vector<128x128xbf16>, vector<96x128xf32> -> vector<96x128xf32>
    %198 = arith.addf %192, %197 : vector<96x128xf32>
    %c0_246 = arith.constant 0 : index
    %c0_247 = arith.constant 0 : index
    %c290 = arith.constant 290 : index
    %c0_248 = arith.constant 0 : index
    %199 = vector.load %arg2[%c0_246, %c0_247, %c290, %c0_248] : memref<1x1x456x128xbf16, #tpu.memory_space<vmem>>, vector<1x1x96x128xbf16>
    %200 = vector.shape_cast %199 : vector<1x1x96x128xbf16> to vector<96x128xbf16>
    %c0_249 = arith.constant 0 : index
    %c2_250 = arith.constant 2 : index
    %c0_251 = arith.constant 0 : index
    %c0_252 = arith.constant 0 : index
    %201 = vector.load %arg3[%c0_249, %c2_250, %c0_251, %c0_252] : memref<1x9x128x128xbf16, #tpu.memory_space<vmem>>, vector<1x1x128x128xbf16>
    %202 = vector.shape_cast %201 : vector<1x1x128x128xbf16> to vector<128x128xbf16>
    %cst_253 = arith.constant dense<0.000000e+00> : vector<96x128xf32>
    %203 = tpu.matmul %200, %202, %cst_253 {dimension_numbers = #tpu.dot_dimension_numbers<[1], [0], [0], [1], [0, 0, 1, 1], [], []>} : vector<96x128xbf16>, vector<128x128xbf16>, vector<96x128xf32> -> vector<96x128xf32>
    %204 = arith.addf %198, %203 : vector<96x128xf32>
    %c0_254 = arith.constant 0 : index
    %c0_255 = arith.constant 0 : index
    %c312 = arith.constant 312 : index
    %c0_256 = arith.constant 0 : index
    %205 = vector.load %arg2[%c0_254, %c0_255, %c312, %c0_256] : memref<1x1x456x128xbf16, #tpu.memory_space<vmem>>, vector<1x1x96x128xbf16>
    %206 = vector.shape_cast %205 : vector<1x1x96x128xbf16> to vector<96x128xbf16>
    %c0_257 = arith.constant 0 : index
    %c3_258 = arith.constant 3 : index
    %c0_259 = arith.constant 0 : index
    %c0_260 = arith.constant 0 : index
    %207 = vector.load %arg3[%c0_257, %c3_258, %c0_259, %c0_260] : memref<1x9x128x128xbf16, #tpu.memory_space<vmem>>, vector<1x1x128x128xbf16>
    %208 = vector.shape_cast %207 : vector<1x1x128x128xbf16> to vector<128x128xbf16>
    %cst_261 = arith.constant dense<0.000000e+00> : vector<96x128xf32>
    %209 = tpu.matmul %206, %208, %cst_261 {dimension_numbers = #tpu.dot_dimension_numbers<[1], [0], [0], [1], [0, 0, 1, 1], [], []>} : vector<96x128xbf16>, vector<128x128xbf16>, vector<96x128xf32> -> vector<96x128xf32>
    %210 = arith.addf %204, %209 : vector<96x128xf32>
    %c0_262 = arith.constant 0 : index
    %c0_263 = arith.constant 0 : index
    %c313 = arith.constant 313 : index
    %c0_264 = arith.constant 0 : index
    %211 = vector.load %arg2[%c0_262, %c0_263, %c313, %c0_264] : memref<1x1x456x128xbf16, #tpu.memory_space<vmem>>, vector<1x1x96x128xbf16>
    %212 = vector.shape_cast %211 : vector<1x1x96x128xbf16> to vector<96x128xbf16>
    %c0_265 = arith.constant 0 : index
    %c4_266 = arith.constant 4 : index
    %c0_267 = arith.constant 0 : index
    %c0_268 = arith.constant 0 : index
    %213 = vector.load %arg3[%c0_265, %c4_266, %c0_267, %c0_268] : memref<1x9x128x128xbf16, #tpu.memory_space<vmem>>, vector<1x1x128x128xbf16>
    %214 = vector.shape_cast %213 : vector<1x1x128x128xbf16> to vector<128x128xbf16>
    %cst_269 = arith.constant dense<0.000000e+00> : vector<96x128xf32>
    %215 = tpu.matmul %212, %214, %cst_269 {dimension_numbers = #tpu.dot_dimension_numbers<[1], [0], [0], [1], [0, 0, 1, 1], [], []>} : vector<96x128xbf16>, vector<128x128xbf16>, vector<96x128xf32> -> vector<96x128xf32>
    %216 = arith.addf %210, %215 : vector<96x128xf32>
    %c0_270 = arith.constant 0 : index
    %c0_271 = arith.constant 0 : index
    %c314 = arith.constant 314 : index
    %c0_272 = arith.constant 0 : index
    %217 = vector.load %arg2[%c0_270, %c0_271, %c314, %c0_272] : memref<1x1x456x128xbf16, #tpu.memory_space<vmem>>, vector<1x1x96x128xbf16>
    %218 = vector.shape_cast %217 : vector<1x1x96x128xbf16> to vector<96x128xbf16>
    %c0_273 = arith.constant 0 : index
    %c5_274 = arith.constant 5 : index
    %c0_275 = arith.constant 0 : index
    %c0_276 = arith.constant 0 : index
    %219 = vector.load %arg3[%c0_273, %c5_274, %c0_275, %c0_276] : memref<1x9x128x128xbf16, #tpu.memory_space<vmem>>, vector<1x1x128x128xbf16>
    %220 = vector.shape_cast %219 : vector<1x1x128x128xbf16> to vector<128x128xbf16>
    %cst_277 = arith.constant dense<0.000000e+00> : vector<96x128xf32>
    %221 = tpu.matmul %218, %220, %cst_277 {dimension_numbers = #tpu.dot_dimension_numbers<[1], [0], [0], [1], [0, 0, 1, 1], [], []>} : vector<96x128xbf16>, vector<128x128xbf16>, vector<96x128xf32> -> vector<96x128xf32>
    %222 = arith.addf %216, %221 : vector<96x128xf32>
    %c0_278 = arith.constant 0 : index
    %c0_279 = arith.constant 0 : index
    %c336 = arith.constant 336 : index
    %c0_280 = arith.constant 0 : index
    %223 = vector.load %arg2[%c0_278, %c0_279, %c336, %c0_280] : memref<1x1x456x128xbf16, #tpu.memory_space<vmem>>, vector<1x1x96x128xbf16>
    %224 = vector.shape_cast %223 : vector<1x1x96x128xbf16> to vector<96x128xbf16>
    %c0_281 = arith.constant 0 : index
    %c6_282 = arith.constant 6 : index
    %c0_283 = arith.constant 0 : index
    %c0_284 = arith.constant 0 : index
    %225 = vector.load %arg3[%c0_281, %c6_282, %c0_283, %c0_284] : memref<1x9x128x128xbf16, #tpu.memory_space<vmem>>, vector<1x1x128x128xbf16>
    %226 = vector.shape_cast %225 : vector<1x1x128x128xbf16> to vector<128x128xbf16>
    %cst_285 = arith.constant dense<0.000000e+00> : vector<96x128xf32>
    %227 = tpu.matmul %224, %226, %cst_285 {dimension_numbers = #tpu.dot_dimension_numbers<[1], [0], [0], [1], [0, 0, 1, 1], [], []>} : vector<96x128xbf16>, vector<128x128xbf16>, vector<96x128xf32> -> vector<96x128xf32>
    %228 = arith.addf %222, %227 : vector<96x128xf32>
    %c0_286 = arith.constant 0 : index
    %c0_287 = arith.constant 0 : index
    %c337 = arith.constant 337 : index
    %c0_288 = arith.constant 0 : index
    %229 = vector.load %arg2[%c0_286, %c0_287, %c337, %c0_288] : memref<1x1x456x128xbf16, #tpu.memory_space<vmem>>, vector<1x1x96x128xbf16>
    %230 = vector.shape_cast %229 : vector<1x1x96x128xbf16> to vector<96x128xbf16>
    %c0_289 = arith.constant 0 : index
    %c7_290 = arith.constant 7 : index
    %c0_291 = arith.constant 0 : index
    %c0_292 = arith.constant 0 : index
    %231 = vector.load %arg3[%c0_289, %c7_290, %c0_291, %c0_292] : memref<1x9x128x128xbf16, #tpu.memory_space<vmem>>, vector<1x1x128x128xbf16>
    %232 = vector.shape_cast %231 : vector<1x1x128x128xbf16> to vector<128x128xbf16>
    %cst_293 = arith.constant dense<0.000000e+00> : vector<96x128xf32>
    %233 = tpu.matmul %230, %232, %cst_293 {dimension_numbers = #tpu.dot_dimension_numbers<[1], [0], [0], [1], [0, 0, 1, 1], [], []>} : vector<96x128xbf16>, vector<128x128xbf16>, vector<96x128xf32> -> vector<96x128xf32>
    %234 = arith.addf %228, %233 : vector<96x128xf32>
    %c0_294 = arith.constant 0 : index
    %c0_295 = arith.constant 0 : index
    %c338 = arith.constant 338 : index
    %c0_296 = arith.constant 0 : index
    %235 = vector.load %arg2[%c0_294, %c0_295, %c338, %c0_296] : memref<1x1x456x128xbf16, #tpu.memory_space<vmem>>, vector<1x1x96x128xbf16>
    %236 = vector.shape_cast %235 : vector<1x1x96x128xbf16> to vector<96x128xbf16>
    %c0_297 = arith.constant 0 : index
    %c8_298 = arith.constant 8 : index
    %c0_299 = arith.constant 0 : index
    %c0_300 = arith.constant 0 : index
    %237 = vector.load %arg3[%c0_297, %c8_298, %c0_299, %c0_300] : memref<1x9x128x128xbf16, #tpu.memory_space<vmem>>, vector<1x1x128x128xbf16>
    %238 = vector.shape_cast %237 : vector<1x1x128x128xbf16> to vector<128x128xbf16>
    %cst_301 = arith.constant dense<0.000000e+00> : vector<96x128xf32>
    %239 = tpu.matmul %236, %238, %cst_301 {dimension_numbers = #tpu.dot_dimension_numbers<[1], [0], [0], [1], [0, 0, 1, 1], [], []>} : vector<96x128xbf16>, vector<128x128xbf16>, vector<96x128xf32> -> vector<96x128xf32>
    %240 = arith.addf %234, %239 : vector<96x128xf32>
    %241 = vector.broadcast %1 : vector<1x128xf32> to vector<96x128xf32>
    %242 = arith.addf %240, %241 : vector<96x128xf32>
    %243 = vector.shape_cast %242 : vector<96x128xf32> to vector<2x2x24x128xf32>
    %cst_302 = arith.constant dense<0xFF800000> : vector<2x24x128xf32>
    %244 = vector.multi_reduction <maximumf>, %243, %cst_302 [1] : vector<2x2x24x128xf32> to vector<2x24x128xf32>
    %245 = vector.extract_strided_slice %244 {offsets = [0, 0, 0], sizes = [2, 16, 128], strides = [1, 1, 1]} : vector<2x24x128xf32> to vector<2x16x128xf32>
    %246 = arith.truncf %245 : vector<2x16x128xf32> to vector<2x16x128xbf16>
    %c0_303 = arith.constant 0 : index
    %c0_304 = arith.constant 0 : index
    %c6_305 = arith.constant 6 : index
    %c0_306 = arith.constant 0 : index
    %c0_307 = arith.constant 0 : index
    %247 = vector.load %arg5[%c0_303, %c0_304, %c6_305, %c0_306, %c0_307] : memref<1x1x8x16x128xbf16, #tpu.memory_space<vmem>>, vector<1x1x2x16x128xbf16>
    %248 = vector.shape_cast %247 : vector<1x1x2x16x128xbf16> to vector<2x16x128xbf16>
    %249 = vector.shape_cast %246 : vector<2x16x128xbf16> to vector<1x1x2x16x128xbf16>
    tpu.vector_store %arg5[%c0_303, %c0_304, %c6_305, %c0_306, %c0_307], %249 {strides = array<i32>} : memref<1x1x8x16x128xbf16, #tpu.memory_space<vmem>>, vector<1x1x2x16x128xbf16>,
    return
  }
  func.func @transform_0(%arg0: i32, %arg1: i32) -> (i32, i32, i32, i32) {
    %c0_i32 = arith.constant 0 : i32
    %c0_i32_0 = arith.constant 0 : i32
    %c0_i32_1 = arith.constant 0 : i32
    return %arg0, %arg1, %c0_i32, %c0_i32_0 : i32, i32, i32, i32
  }
  func.func @transform_1(%arg0: i32, %arg1: i32) -> (i32, i32, i32, i32) {
    %c0_i32 = arith.constant 0 : i32
    %c0_i32_0 = arith.constant 0 : i32
    %c0_i32_1 = arith.constant 0 : i32
    %c0_i32_2 = arith.constant 0 : i32
    return %arg0, %c0_i32, %c0_i32_0, %c0_i32_1 : i32, i32, i32, i32
  }
  func.func @transform_2(%arg0: i32, %arg1: i32) -> (i32, i32, i32) {
    %c0_i32 = arith.constant 0 : i32
    %c0_i32_0 = arith.constant 0 : i32
    %c0_i32_1 = arith.constant 0 : i32
    return %arg0, %c0_i32, %c0_i32_0 : i32, i32, i32
  }
  func.func @transform_3(%arg0: i32, %arg1: i32) -> (i32, i32, i32, i32, i32) {
    %c0_i32 = arith.constant 0 : i32
    %c0_i32_0 = arith.constant 0 : i32
    %c0_i32_1 = arith.constant 0 : i32
    %c0_i32_2 = arith.constant 0 : i32
    return %arg0, %arg1, %c0_i32, %c0_i32_0, %c0_i32_1 : i32, i32, i32, i32, i32
  }
}

module attributes {stable_mosaic.version = 11 : i64} {
  func.func @_pool_kernel(%arg0: i32, %arg1: memref<1x1x8x8x256xbf16, #tpu.memory_space<vmem>>, %arg2: memref<1x8x8x128xbf16, #tpu.memory_space<vmem>>) attributes {dimension_semantics = [#tpu.dimension_semantics<parallel>], iteration_bounds = array<i64: 8>, scalar_prefetch = 0 : i64, scratch_operands = 0 : i64, tpu.core_type = #tpu.core_type<tc>, window_params = [{transform_indices = @transform_0, window_bounds = array<i64: 1, 1, 8, 8, 256>}, {transform_indices = @transform_1, window_bounds = array<i64: 1, 8, 8, 128>}]} {
    %c0 = arith.constant 0 : index
    %c0_0 = arith.constant 0 : index
    %c0_1 = arith.constant 0 : index
    %c0_2 = arith.constant 0 : index
    %c0_3 = arith.constant 0 : index
    %0 = vector.load %arg1[%c0, %c0_0, %c0_1, %c0_2, %c0_3] : memref<1x1x8x8x256xbf16, #tpu.memory_space<vmem>>, vector<1x1x8x8x256xbf16>
    %1 = vector.shape_cast %0 : vector<1x1x8x8x256xbf16> to vector<8x8x256xbf16>
    %2 = vector.extract_strided_slice %1 {offsets = [0, 0, 0], sizes = [8, 8, 128], strides = [1, 1, 1]} : vector<8x8x256xbf16> to vector<8x8x128xbf16>
    %3 = vector.extract_strided_slice %1 {offsets = [0, 0, 128], sizes = [8, 8, 128], strides = [1, 1, 1]} : vector<8x8x256xbf16> to vector<8x8x128xbf16>
    %4 = arith.maximumf %2, %3 : vector<8x8x128xbf16>
    %c0_4 = arith.constant 0 : index
    %c0_5 = arith.constant 0 : index
    %c0_6 = arith.constant 0 : index
    %c0_7 = arith.constant 0 : index
    %5 = vector.load %arg2[%c0_4, %c0_5, %c0_6, %c0_7] : memref<1x8x8x128xbf16, #tpu.memory_space<vmem>>, vector<1x8x8x128xbf16>
    %6 = vector.shape_cast %5 : vector<1x8x8x128xbf16> to vector<8x8x128xbf16>
    %7 = vector.shape_cast %4 : vector<8x8x128xbf16> to vector<1x8x8x128xbf16>
    tpu.vector_store %arg2[%c0_4, %c0_5, %c0_6, %c0_7], %7 {strides = array<i32>} : memref<1x8x8x128xbf16, #tpu.memory_space<vmem>>, vector<1x8x8x128xbf16>,
    return
  }
  func.func @transform_0(%arg0: i32) -> (i32, i32, i32, i32, i32) {
    %c0_i32 = arith.constant 0 : i32
    %c0_i32_0 = arith.constant 0 : i32
    %c0_i32_1 = arith.constant 0 : i32
    %c0_i32_2 = arith.constant 0 : i32
    %c0_i32_3 = arith.constant 0 : i32
    return %arg0, %c0_i32, %c0_i32_0, %c0_i32_1, %c0_i32_2 : i32, i32, i32, i32, i32
  }
  func.func @transform_1(%arg0: i32) -> (i32, i32, i32, i32) {
    %c0_i32 = arith.constant 0 : i32
    %c0_i32_0 = arith.constant 0 : i32
    %c0_i32_1 = arith.constant 0 : i32
    %c0_i32_2 = arith.constant 0 : i32
    return %arg0, %c0_i32, %c0_i32_0, %c0_i32_1 : i32, i32, i32, i32
  }
}

module attributes {stable_mosaic.version = 11 : i64} {
  func.func @kernel(%arg0: i32, %arg1: i32, %arg2: memref<1x1x176x128xbf16, #tpu.memory_space<vmem>>, %arg3: memref<1x9x128x128xbf16, #tpu.memory_space<vmem>>, %arg4: memref<1x1x128xf32, #tpu.memory_space<vmem>>, %arg5: memref<1x1x4x8x128xbf16, #tpu.memory_space<vmem>>) attributes {dimension_semantics = [#tpu.dimension_semantics<parallel>, #tpu.dimension_semantics<parallel>], iteration_bounds = array<i64: 2, 4>, scalar_prefetch = 0 : i64, scratch_operands = 0 : i64, tpu.core_type = #tpu.core_type<tc>, window_params = [{transform_indices = @transform_0, window_bounds = array<i64: 1, 1, 176, 128>}, {transform_indices = @transform_1, window_bounds = array<i64: 1, 9, 128, 128>}, {transform_indices = @transform_2, window_bounds = array<i64: 1, 1, 128>}, {transform_indices = @transform_3, window_bounds = array<i64: 1, 1, 4, 8, 128>}]} {
    %c0 = arith.constant 0 : index
    %c0_0 = arith.constant 0 : index
    %c0_1 = arith.constant 0 : index
    %0 = vector.load %arg4[%c0, %c0_0, %c0_1] : memref<1x1x128xf32, #tpu.memory_space<vmem>>, vector<1x1x128xf32>
    %1 = vector.shape_cast %0 : vector<1x1x128xf32> to vector<1x128xf32>
    %c0_2 = arith.constant 0 : index
    %c0_3 = arith.constant 0 : index
    %c0_4 = arith.constant 0 : index
    %c0_5 = arith.constant 0 : index
    %2 = vector.load %arg2[%c0_2, %c0_3, %c0_4, %c0_5] : memref<1x1x176x128xbf16, #tpu.memory_space<vmem>>, vector<1x1x128x128xbf16>
    %3 = vector.shape_cast %2 : vector<1x1x128x128xbf16> to vector<128x128xbf16>
    %c0_6 = arith.constant 0 : index
    %c0_7 = arith.constant 0 : index
    %c0_8 = arith.constant 0 : index
    %c0_9 = arith.constant 0 : index
    %4 = vector.load %arg3[%c0_6, %c0_7, %c0_8, %c0_9] : memref<1x9x128x128xbf16, #tpu.memory_space<vmem>>, vector<1x1x128x128xbf16>
    %5 = vector.shape_cast %4 : vector<1x1x128x128xbf16> to vector<128x128xbf16>
    %cst = arith.constant dense<0.000000e+00> : vector<128x128xf32>
    %6 = tpu.matmul %3, %5, %cst {dimension_numbers = #tpu.dot_dimension_numbers<[1], [0], [0], [1], [0, 0, 1, 1], [], []>} : vector<128x128xbf16>, vector<128x128xbf16>, vector<128x128xf32> -> vector<128x128xf32>
    %c0_10 = arith.constant 0 : index
    %c0_11 = arith.constant 0 : index
    %c1 = arith.constant 1 : index
    %c0_12 = arith.constant 0 : index
    %7 = vector.load %arg2[%c0_10, %c0_11, %c1, %c0_12] : memref<1x1x176x128xbf16, #tpu.memory_space<vmem>>, vector<1x1x128x128xbf16>
    %8 = vector.shape_cast %7 : vector<1x1x128x128xbf16> to vector<128x128xbf16>
    %c0_13 = arith.constant 0 : index
    %c1_14 = arith.constant 1 : index
    %c0_15 = arith.constant 0 : index
    %c0_16 = arith.constant 0 : index
    %9 = vector.load %arg3[%c0_13, %c1_14, %c0_15, %c0_16] : memref<1x9x128x128xbf16, #tpu.memory_space<vmem>>, vector<1x1x128x128xbf16>
    %10 = vector.shape_cast %9 : vector<1x1x128x128xbf16> to vector<128x128xbf16>
    %cst_17 = arith.constant dense<0.000000e+00> : vector<128x128xf32>
    %11 = tpu.matmul %8, %10, %cst_17 {dimension_numbers = #tpu.dot_dimension_numbers<[1], [0], [0], [1], [0, 0, 1, 1], [], []>} : vector<128x128xbf16>, vector<128x128xbf16>, vector<128x128xf32> -> vector<128x128xf32>
    %12 = arith.addf %6, %11 : vector<128x128xf32>
    %c0_18 = arith.constant 0 : index
    %c0_19 = arith.constant 0 : index
    %c2 = arith.constant 2 : index
    %c0_20 = arith.constant 0 : index
    %13 = vector.load %arg2[%c0_18, %c0_19, %c2, %c0_20] : memref<1x1x176x128xbf16, #tpu.memory_space<vmem>>, vector<1x1x128x128xbf16>
    %14 = vector.shape_cast %13 : vector<1x1x128x128xbf16> to vector<128x128xbf16>
    %c0_21 = arith.constant 0 : index
    %c2_22 = arith.constant 2 : index
    %c0_23 = arith.constant 0 : index
    %c0_24 = arith.constant 0 : index
    %15 = vector.load %arg3[%c0_21, %c2_22, %c0_23, %c0_24] : memref<1x9x128x128xbf16, #tpu.memory_space<vmem>>, vector<1x1x128x128xbf16>
    %16 = vector.shape_cast %15 : vector<1x1x128x128xbf16> to vector<128x128xbf16>
    %cst_25 = arith.constant dense<0.000000e+00> : vector<128x128xf32>
    %17 = tpu.matmul %14, %16, %cst_25 {dimension_numbers = #tpu.dot_dimension_numbers<[1], [0], [0], [1], [0, 0, 1, 1], [], []>} : vector<128x128xbf16>, vector<128x128xbf16>, vector<128x128xf32> -> vector<128x128xf32>
    %18 = arith.addf %12, %17 : vector<128x128xf32>
    %c0_26 = arith.constant 0 : index
    %c0_27 = arith.constant 0 : index
    %c16 = arith.constant 16 : index
    %c0_28 = arith.constant 0 : index
    %19 = vector.load %arg2[%c0_26, %c0_27, %c16, %c0_28] : memref<1x1x176x128xbf16, #tpu.memory_space<vmem>>, vector<1x1x128x128xbf16>
    %20 = vector.shape_cast %19 : vector<1x1x128x128xbf16> to vector<128x128xbf16>
    %c0_29 = arith.constant 0 : index
    %c3 = arith.constant 3 : index
    %c0_30 = arith.constant 0 : index
    %c0_31 = arith.constant 0 : index
    %21 = vector.load %arg3[%c0_29, %c3, %c0_30, %c0_31] : memref<1x9x128x128xbf16, #tpu.memory_space<vmem>>, vector<1x1x128x128xbf16>
    %22 = vector.shape_cast %21 : vector<1x1x128x128xbf16> to vector<128x128xbf16>
    %cst_32 = arith.constant dense<0.000000e+00> : vector<128x128xf32>
    %23 = tpu.matmul %20, %22, %cst_32 {dimension_numbers = #tpu.dot_dimension_numbers<[1], [0], [0], [1], [0, 0, 1, 1], [], []>} : vector<128x128xbf16>, vector<128x128xbf16>, vector<128x128xf32> -> vector<128x128xf32>
    %24 = arith.addf %18, %23 : vector<128x128xf32>
    %c0_33 = arith.constant 0 : index
    %c0_34 = arith.constant 0 : index
    %c17 = arith.constant 17 : index
    %c0_35 = arith.constant 0 : index
    %25 = vector.load %arg2[%c0_33, %c0_34, %c17, %c0_35] : memref<1x1x176x128xbf16, #tpu.memory_space<vmem>>, vector<1x1x128x128xbf16>
    %26 = vector.shape_cast %25 : vector<1x1x128x128xbf16> to vector<128x128xbf16>
    %c0_36 = arith.constant 0 : index
    %c4 = arith.constant 4 : index
    %c0_37 = arith.constant 0 : index
    %c0_38 = arith.constant 0 : index
    %27 = vector.load %arg3[%c0_36, %c4, %c0_37, %c0_38] : memref<1x9x128x128xbf16, #tpu.memory_space<vmem>>, vector<1x1x128x128xbf16>
    %28 = vector.shape_cast %27 : vector<1x1x128x128xbf16> to vector<128x128xbf16>
    %cst_39 = arith.constant dense<0.000000e+00> : vector<128x128xf32>
    %29 = tpu.matmul %26, %28, %cst_39 {dimension_numbers = #tpu.dot_dimension_numbers<[1], [0], [0], [1], [0, 0, 1, 1], [], []>} : vector<128x128xbf16>, vector<128x128xbf16>, vector<128x128xf32> -> vector<128x128xf32>
    %30 = arith.addf %24, %29 : vector<128x128xf32>
    %c0_40 = arith.constant 0 : index
    %c0_41 = arith.constant 0 : index
    %c18 = arith.constant 18 : index
    %c0_42 = arith.constant 0 : index
    %31 = vector.load %arg2[%c0_40, %c0_41, %c18, %c0_42] : memref<1x1x176x128xbf16, #tpu.memory_space<vmem>>, vector<1x1x128x128xbf16>
    %32 = vector.shape_cast %31 : vector<1x1x128x128xbf16> to vector<128x128xbf16>
    %c0_43 = arith.constant 0 : index
    %c5 = arith.constant 5 : index
    %c0_44 = arith.constant 0 : index
    %c0_45 = arith.constant 0 : index
    %33 = vector.load %arg3[%c0_43, %c5, %c0_44, %c0_45] : memref<1x9x128x128xbf16, #tpu.memory_space<vmem>>, vector<1x1x128x128xbf16>
    %34 = vector.shape_cast %33 : vector<1x1x128x128xbf16> to vector<128x128xbf16>
    %cst_46 = arith.constant dense<0.000000e+00> : vector<128x128xf32>
    %35 = tpu.matmul %32, %34, %cst_46 {dimension_numbers = #tpu.dot_dimension_numbers<[1], [0], [0], [1], [0, 0, 1, 1], [], []>} : vector<128x128xbf16>, vector<128x128xbf16>, vector<128x128xf32> -> vector<128x128xf32>
    %36 = arith.addf %30, %35 : vector<128x128xf32>
    %c0_47 = arith.constant 0 : index
    %c0_48 = arith.constant 0 : index
    %c32 = arith.constant 32 : index
    %c0_49 = arith.constant 0 : index
    %37 = vector.load %arg2[%c0_47, %c0_48, %c32, %c0_49] : memref<1x1x176x128xbf16, #tpu.memory_space<vmem>>, vector<1x1x128x128xbf16>
    %38 = vector.shape_cast %37 : vector<1x1x128x128xbf16> to vector<128x128xbf16>
    %c0_50 = arith.constant 0 : index
    %c6 = arith.constant 6 : index
    %c0_51 = arith.constant 0 : index
    %c0_52 = arith.constant 0 : index
    %39 = vector.load %arg3[%c0_50, %c6, %c0_51, %c0_52] : memref<1x9x128x128xbf16, #tpu.memory_space<vmem>>, vector<1x1x128x128xbf16>
    %40 = vector.shape_cast %39 : vector<1x1x128x128xbf16> to vector<128x128xbf16>
    %cst_53 = arith.constant dense<0.000000e+00> : vector<128x128xf32>
    %41 = tpu.matmul %38, %40, %cst_53 {dimension_numbers = #tpu.dot_dimension_numbers<[1], [0], [0], [1], [0, 0, 1, 1], [], []>} : vector<128x128xbf16>, vector<128x128xbf16>, vector<128x128xf32> -> vector<128x128xf32>
    %42 = arith.addf %36, %41 : vector<128x128xf32>
    %c0_54 = arith.constant 0 : index
    %c0_55 = arith.constant 0 : index
    %c33 = arith.constant 33 : index
    %c0_56 = arith.constant 0 : index
    %43 = vector.load %arg2[%c0_54, %c0_55, %c33, %c0_56] : memref<1x1x176x128xbf16, #tpu.memory_space<vmem>>, vector<1x1x128x128xbf16>
    %44 = vector.shape_cast %43 : vector<1x1x128x128xbf16> to vector<128x128xbf16>
    %c0_57 = arith.constant 0 : index
    %c7 = arith.constant 7 : index
    %c0_58 = arith.constant 0 : index
    %c0_59 = arith.constant 0 : index
    %45 = vector.load %arg3[%c0_57, %c7, %c0_58, %c0_59] : memref<1x9x128x128xbf16, #tpu.memory_space<vmem>>, vector<1x1x128x128xbf16>
    %46 = vector.shape_cast %45 : vector<1x1x128x128xbf16> to vector<128x128xbf16>
    %cst_60 = arith.constant dense<0.000000e+00> : vector<128x128xf32>
    %47 = tpu.matmul %44, %46, %cst_60 {dimension_numbers = #tpu.dot_dimension_numbers<[1], [0], [0], [1], [0, 0, 1, 1], [], []>} : vector<128x128xbf16>, vector<128x128xbf16>, vector<128x128xf32> -> vector<128x128xf32>
    %48 = arith.addf %42, %47 : vector<128x128xf32>
    %c0_61 = arith.constant 0 : index
    %c0_62 = arith.constant 0 : index
    %c34 = arith.constant 34 : index
    %c0_63 = arith.constant 0 : index
    %49 = vector.load %arg2[%c0_61, %c0_62, %c34, %c0_63] : memref<1x1x176x128xbf16, #tpu.memory_space<vmem>>, vector<1x1x128x128xbf16>
    %50 = vector.shape_cast %49 : vector<1x1x128x128xbf16> to vector<128x128xbf16>
    %c0_64 = arith.constant 0 : index
    %c8 = arith.constant 8 : index
    %c0_65 = arith.constant 0 : index
    %c0_66 = arith.constant 0 : index
    %51 = vector.load %arg3[%c0_64, %c8, %c0_65, %c0_66] : memref<1x9x128x128xbf16, #tpu.memory_space<vmem>>, vector<1x1x128x128xbf16>
    %52 = vector.shape_cast %51 : vector<1x1x128x128xbf16> to vector<128x128xbf16>
    %cst_67 = arith.constant dense<0.000000e+00> : vector<128x128xf32>
    %53 = tpu.matmul %50, %52, %cst_67 {dimension_numbers = #tpu.dot_dimension_numbers<[1], [0], [0], [1], [0, 0, 1, 1], [], []>} : vector<128x128xbf16>, vector<128x128xbf16>, vector<128x128xf32> -> vector<128x128xf32>
    %54 = arith.addf %48, %53 : vector<128x128xf32>
    %55 = vector.broadcast %1 : vector<1x128xf32> to vector<128x128xf32>
    %56 = arith.addf %54, %55 : vector<128x128xf32>
    %57 = vector.shape_cast %56 : vector<128x128xf32> to vector<4x2x16x128xf32>
    %cst_68 = arith.constant dense<0xFF800000> : vector<4x16x128xf32>
    %58 = vector.multi_reduction <maximumf>, %57, %cst_68 [1] : vector<4x2x16x128xf32> to vector<4x16x128xf32>
    %59 = vector.extract_strided_slice %58 {offsets = [0, 0, 0], sizes = [4, 8, 128], strides = [1, 1, 1]} : vector<4x16x128xf32> to vector<4x8x128xf32>
    %60 = arith.truncf %59 : vector<4x8x128xf32> to vector<4x8x128xbf16>
    %c0_69 = arith.constant 0 : index
    %c0_70 = arith.constant 0 : index
    %c0_71 = arith.constant 0 : index
    %c0_72 = arith.constant 0 : index
    %c0_73 = arith.constant 0 : index
    %61 = vector.load %arg5[%c0_69, %c0_70, %c0_71, %c0_72, %c0_73] : memref<1x1x4x8x128xbf16, #tpu.memory_space<vmem>>, vector<1x1x4x8x128xbf16>
    %62 = vector.shape_cast %61 : vector<1x1x4x8x128xbf16> to vector<4x8x128xbf16>
    %63 = vector.shape_cast %60 : vector<4x8x128xbf16> to vector<1x1x4x8x128xbf16>
    tpu.vector_store %arg5[%c0_69, %c0_70, %c0_71, %c0_72, %c0_73], %63 {strides = array<i32>} : memref<1x1x4x8x128xbf16, #tpu.memory_space<vmem>>, vector<1x1x4x8x128xbf16>,
    return
  }
  func.func @transform_0(%arg0: i32, %arg1: i32) -> (i32, i32, i32, i32) {
    %c0_i32 = arith.constant 0 : i32
    %c0_i32_0 = arith.constant 0 : i32
    %c0_i32_1 = arith.constant 0 : i32
    return %arg0, %arg1, %c0_i32, %c0_i32_0 : i32, i32, i32, i32
  }
  func.func @transform_1(%arg0: i32, %arg1: i32) -> (i32, i32, i32, i32) {
    %c0_i32 = arith.constant 0 : i32
    %c0_i32_0 = arith.constant 0 : i32
    %c0_i32_1 = arith.constant 0 : i32
    %c0_i32_2 = arith.constant 0 : i32
    return %arg0, %c0_i32, %c0_i32_0, %c0_i32_1 : i32, i32, i32, i32
  }
  func.func @transform_2(%arg0: i32, %arg1: i32) -> (i32, i32, i32) {
    %c0_i32 = arith.constant 0 : i32
    %c0_i32_0 = arith.constant 0 : i32
    %c0_i32_1 = arith.constant 0 : i32
    return %arg0, %c0_i32, %c0_i32_0 : i32, i32, i32
  }
  func.func @transform_3(%arg0: i32, %arg1: i32) -> (i32, i32, i32, i32, i32) {
    %c0_i32 = arith.constant 0 : i32
    %c0_i32_0 = arith.constant 0 : i32
    %c0_i32_1 = arith.constant 0 : i32
    %c0_i32_2 = arith.constant 0 : i32
    return %arg0, %arg1, %c0_i32, %c0_i32_0, %c0_i32_1 : i32, i32, i32, i32, i32
  }
}

module attributes {stable_mosaic.version = 11 : i64} {
  func.func @_pool_kernel(%arg0: i32, %arg1: memref<1x1x4x4x256xbf16, #tpu.memory_space<vmem>>, %arg2: memref<1x4x4x128xbf16, #tpu.memory_space<vmem>>) attributes {dimension_semantics = [#tpu.dimension_semantics<parallel>], iteration_bounds = array<i64: 8>, scalar_prefetch = 0 : i64, scratch_operands = 0 : i64, tpu.core_type = #tpu.core_type<tc>, window_params = [{transform_indices = @transform_0, window_bounds = array<i64: 1, 1, 4, 4, 256>}, {transform_indices = @transform_1, window_bounds = array<i64: 1, 4, 4, 128>}]} {
    %c0 = arith.constant 0 : index
    %c0_0 = arith.constant 0 : index
    %c0_1 = arith.constant 0 : index
    %c0_2 = arith.constant 0 : index
    %c0_3 = arith.constant 0 : index
    %0 = vector.load %arg1[%c0, %c0_0, %c0_1, %c0_2, %c0_3] : memref<1x1x4x4x256xbf16, #tpu.memory_space<vmem>>, vector<1x1x4x4x256xbf16>
    %1 = vector.shape_cast %0 : vector<1x1x4x4x256xbf16> to vector<4x4x256xbf16>
    %2 = vector.extract_strided_slice %1 {offsets = [0, 0, 0], sizes = [4, 4, 128], strides = [1, 1, 1]} : vector<4x4x256xbf16> to vector<4x4x128xbf16>
    %3 = vector.extract_strided_slice %1 {offsets = [0, 0, 128], sizes = [4, 4, 128], strides = [1, 1, 1]} : vector<4x4x256xbf16> to vector<4x4x128xbf16>
    %4 = arith.maximumf %2, %3 : vector<4x4x128xbf16>
    %c0_4 = arith.constant 0 : index
    %c0_5 = arith.constant 0 : index
    %c0_6 = arith.constant 0 : index
    %c0_7 = arith.constant 0 : index
    %5 = vector.load %arg2[%c0_4, %c0_5, %c0_6, %c0_7] : memref<1x4x4x128xbf16, #tpu.memory_space<vmem>>, vector<1x4x4x128xbf16>
    %6 = vector.shape_cast %5 : vector<1x4x4x128xbf16> to vector<4x4x128xbf16>
    %7 = vector.shape_cast %4 : vector<4x4x128xbf16> to vector<1x4x4x128xbf16>
    tpu.vector_store %arg2[%c0_4, %c0_5, %c0_6, %c0_7], %7 {strides = array<i32>} : memref<1x4x4x128xbf16, #tpu.memory_space<vmem>>, vector<1x4x4x128xbf16>,
    return
  }
  func.func @transform_0(%arg0: i32) -> (i32, i32, i32, i32, i32) {
    %c0_i32 = arith.constant 0 : i32
    %c0_i32_0 = arith.constant 0 : i32
    %c0_i32_1 = arith.constant 0 : i32
    %c0_i32_2 = arith.constant 0 : i32
    %c0_i32_3 = arith.constant 0 : i32
    return %arg0, %c0_i32, %c0_i32_0, %c0_i32_1, %c0_i32_2 : i32, i32, i32, i32, i32
  }
  func.func @transform_1(%arg0: i32) -> (i32, i32, i32, i32) {
    %c0_i32 = arith.constant 0 : i32
    %c0_i32_0 = arith.constant 0 : i32
    %c0_i32_1 = arith.constant 0 : i32
    %c0_i32_2 = arith.constant 0 : i32
    return %arg0, %c0_i32, %c0_i32_0, %c0_i32_1 : i32, i32, i32, i32
  }
}

module attributes {stable_mosaic.version = 11 : i64} {
  func.func @kernel(%arg0: i32, %arg1: i32, %arg2: memref<1x1x56x128xbf16, #tpu.memory_space<vmem>>, %arg3: memref<1x9x128x128xbf16, #tpu.memory_space<vmem>>, %arg4: memref<1x1x128xf32, #tpu.memory_space<vmem>>, %arg5: memref<1x1x2x4x128xbf16, #tpu.memory_space<vmem>>) attributes {dimension_semantics = [#tpu.dimension_semantics<parallel>, #tpu.dimension_semantics<parallel>], iteration_bounds = array<i64: 1, 4>, scalar_prefetch = 0 : i64, scratch_operands = 0 : i64, tpu.core_type = #tpu.core_type<tc>, window_params = [{transform_indices = @transform_0, window_bounds = array<i64: 1, 1, 56, 128>}, {transform_indices = @transform_1, window_bounds = array<i64: 1, 9, 128, 128>}, {transform_indices = @transform_2, window_bounds = array<i64: 1, 1, 128>}, {transform_indices = @transform_3, window_bounds = array<i64: 1, 1, 2, 4, 128>}]} {
    %c0 = arith.constant 0 : index
    %c0_0 = arith.constant 0 : index
    %c0_1 = arith.constant 0 : index
    %0 = vector.load %arg4[%c0, %c0_0, %c0_1] : memref<1x1x128xf32, #tpu.memory_space<vmem>>, vector<1x1x128xf32>
    %1 = vector.shape_cast %0 : vector<1x1x128xf32> to vector<1x128xf32>
    %c0_2 = arith.constant 0 : index
    %c0_3 = arith.constant 0 : index
    %c0_4 = arith.constant 0 : index
    %c0_5 = arith.constant 0 : index
    %2 = vector.load %arg2[%c0_2, %c0_3, %c0_4, %c0_5] : memref<1x1x56x128xbf16, #tpu.memory_space<vmem>>, vector<1x1x32x128xbf16>
    %3 = vector.shape_cast %2 : vector<1x1x32x128xbf16> to vector<32x128xbf16>
    %c0_6 = arith.constant 0 : index
    %c0_7 = arith.constant 0 : index
    %c0_8 = arith.constant 0 : index
    %c0_9 = arith.constant 0 : index
    %4 = vector.load %arg3[%c0_6, %c0_7, %c0_8, %c0_9] : memref<1x9x128x128xbf16, #tpu.memory_space<vmem>>, vector<1x1x128x128xbf16>
    %5 = vector.shape_cast %4 : vector<1x1x128x128xbf16> to vector<128x128xbf16>
    %cst = arith.constant dense<0.000000e+00> : vector<32x128xf32>
    %6 = tpu.matmul %3, %5, %cst {dimension_numbers = #tpu.dot_dimension_numbers<[1], [0], [0], [1], [0, 0, 1, 1], [], []>} : vector<32x128xbf16>, vector<128x128xbf16>, vector<32x128xf32> -> vector<32x128xf32>
    %c0_10 = arith.constant 0 : index
    %c0_11 = arith.constant 0 : index
    %c1 = arith.constant 1 : index
    %c0_12 = arith.constant 0 : index
    %7 = vector.load %arg2[%c0_10, %c0_11, %c1, %c0_12] : memref<1x1x56x128xbf16, #tpu.memory_space<vmem>>, vector<1x1x32x128xbf16>
    %8 = vector.shape_cast %7 : vector<1x1x32x128xbf16> to vector<32x128xbf16>
    %c0_13 = arith.constant 0 : index
    %c1_14 = arith.constant 1 : index
    %c0_15 = arith.constant 0 : index
    %c0_16 = arith.constant 0 : index
    %9 = vector.load %arg3[%c0_13, %c1_14, %c0_15, %c0_16] : memref<1x9x128x128xbf16, #tpu.memory_space<vmem>>, vector<1x1x128x128xbf16>
    %10 = vector.shape_cast %9 : vector<1x1x128x128xbf16> to vector<128x128xbf16>
    %cst_17 = arith.constant dense<0.000000e+00> : vector<32x128xf32>
    %11 = tpu.matmul %8, %10, %cst_17 {dimension_numbers = #tpu.dot_dimension_numbers<[1], [0], [0], [1], [0, 0, 1, 1], [], []>} : vector<32x128xbf16>, vector<128x128xbf16>, vector<32x128xf32> -> vector<32x128xf32>
    %12 = arith.addf %6, %11 : vector<32x128xf32>
    %c0_18 = arith.constant 0 : index
    %c0_19 = arith.constant 0 : index
    %c2 = arith.constant 2 : index
    %c0_20 = arith.constant 0 : index
    %13 = vector.load %arg2[%c0_18, %c0_19, %c2, %c0_20] : memref<1x1x56x128xbf16, #tpu.memory_space<vmem>>, vector<1x1x32x128xbf16>
    %14 = vector.shape_cast %13 : vector<1x1x32x128xbf16> to vector<32x128xbf16>
    %c0_21 = arith.constant 0 : index
    %c2_22 = arith.constant 2 : index
    %c0_23 = arith.constant 0 : index
    %c0_24 = arith.constant 0 : index
    %15 = vector.load %arg3[%c0_21, %c2_22, %c0_23, %c0_24] : memref<1x9x128x128xbf16, #tpu.memory_space<vmem>>, vector<1x1x128x128xbf16>
    %16 = vector.shape_cast %15 : vector<1x1x128x128xbf16> to vector<128x128xbf16>
    %cst_25 = arith.constant dense<0.000000e+00> : vector<32x128xf32>
    %17 = tpu.matmul %14, %16, %cst_25 {dimension_numbers = #tpu.dot_dimension_numbers<[1], [0], [0], [1], [0, 0, 1, 1], [], []>} : vector<32x128xbf16>, vector<128x128xbf16>, vector<32x128xf32> -> vector<32x128xf32>
    %18 = arith.addf %12, %17 : vector<32x128xf32>
    %c0_26 = arith.constant 0 : index
    %c0_27 = arith.constant 0 : index
    %c8 = arith.constant 8 : index
    %c0_28 = arith.constant 0 : index
    %19 = vector.load %arg2[%c0_26, %c0_27, %c8, %c0_28] : memref<1x1x56x128xbf16, #tpu.memory_space<vmem>>, vector<1x1x32x128xbf16>
    %20 = vector.shape_cast %19 : vector<1x1x32x128xbf16> to vector<32x128xbf16>
    %c0_29 = arith.constant 0 : index
    %c3 = arith.constant 3 : index
    %c0_30 = arith.constant 0 : index
    %c0_31 = arith.constant 0 : index
    %21 = vector.load %arg3[%c0_29, %c3, %c0_30, %c0_31] : memref<1x9x128x128xbf16, #tpu.memory_space<vmem>>, vector<1x1x128x128xbf16>
    %22 = vector.shape_cast %21 : vector<1x1x128x128xbf16> to vector<128x128xbf16>
    %cst_32 = arith.constant dense<0.000000e+00> : vector<32x128xf32>
    %23 = tpu.matmul %20, %22, %cst_32 {dimension_numbers = #tpu.dot_dimension_numbers<[1], [0], [0], [1], [0, 0, 1, 1], [], []>} : vector<32x128xbf16>, vector<128x128xbf16>, vector<32x128xf32> -> vector<32x128xf32>
    %24 = arith.addf %18, %23 : vector<32x128xf32>
    %c0_33 = arith.constant 0 : index
    %c0_34 = arith.constant 0 : index
    %c9 = arith.constant 9 : index
    %c0_35 = arith.constant 0 : index
    %25 = vector.load %arg2[%c0_33, %c0_34, %c9, %c0_35] : memref<1x1x56x128xbf16, #tpu.memory_space<vmem>>, vector<1x1x32x128xbf16>
    %26 = vector.shape_cast %25 : vector<1x1x32x128xbf16> to vector<32x128xbf16>
    %c0_36 = arith.constant 0 : index
    %c4 = arith.constant 4 : index
    %c0_37 = arith.constant 0 : index
    %c0_38 = arith.constant 0 : index
    %27 = vector.load %arg3[%c0_36, %c4, %c0_37, %c0_38] : memref<1x9x128x128xbf16, #tpu.memory_space<vmem>>, vector<1x1x128x128xbf16>
    %28 = vector.shape_cast %27 : vector<1x1x128x128xbf16> to vector<128x128xbf16>
    %cst_39 = arith.constant dense<0.000000e+00> : vector<32x128xf32>
    %29 = tpu.matmul %26, %28, %cst_39 {dimension_numbers = #tpu.dot_dimension_numbers<[1], [0], [0], [1], [0, 0, 1, 1], [], []>} : vector<32x128xbf16>, vector<128x128xbf16>, vector<32x128xf32> -> vector<32x128xf32>
    %30 = arith.addf %24, %29 : vector<32x128xf32>
    %c0_40 = arith.constant 0 : index
    %c0_41 = arith.constant 0 : index
    %c10 = arith.constant 10 : index
    %c0_42 = arith.constant 0 : index
    %31 = vector.load %arg2[%c0_40, %c0_41, %c10, %c0_42] : memref<1x1x56x128xbf16, #tpu.memory_space<vmem>>, vector<1x1x32x128xbf16>
    %32 = vector.shape_cast %31 : vector<1x1x32x128xbf16> to vector<32x128xbf16>
    %c0_43 = arith.constant 0 : index
    %c5 = arith.constant 5 : index
    %c0_44 = arith.constant 0 : index
    %c0_45 = arith.constant 0 : index
    %33 = vector.load %arg3[%c0_43, %c5, %c0_44, %c0_45] : memref<1x9x128x128xbf16, #tpu.memory_space<vmem>>, vector<1x1x128x128xbf16>
    %34 = vector.shape_cast %33 : vector<1x1x128x128xbf16> to vector<128x128xbf16>
    %cst_46 = arith.constant dense<0.000000e+00> : vector<32x128xf32>
    %35 = tpu.matmul %32, %34, %cst_46 {dimension_numbers = #tpu.dot_dimension_numbers<[1], [0], [0], [1], [0, 0, 1, 1], [], []>} : vector<32x128xbf16>, vector<128x128xbf16>, vector<32x128xf32> -> vector<32x128xf32>
    %36 = arith.addf %30, %35 : vector<32x128xf32>
    %c0_47 = arith.constant 0 : index
    %c0_48 = arith.constant 0 : index
    %c16 = arith.constant 16 : index
    %c0_49 = arith.constant 0 : index
    %37 = vector.load %arg2[%c0_47, %c0_48, %c16, %c0_49] : memref<1x1x56x128xbf16, #tpu.memory_space<vmem>>, vector<1x1x32x128xbf16>
    %38 = vector.shape_cast %37 : vector<1x1x32x128xbf16> to vector<32x128xbf16>
    %c0_50 = arith.constant 0 : index
    %c6 = arith.constant 6 : index
    %c0_51 = arith.constant 0 : index
    %c0_52 = arith.constant 0 : index
    %39 = vector.load %arg3[%c0_50, %c6, %c0_51, %c0_52] : memref<1x9x128x128xbf16, #tpu.memory_space<vmem>>, vector<1x1x128x128xbf16>
    %40 = vector.shape_cast %39 : vector<1x1x128x128xbf16> to vector<128x128xbf16>
    %cst_53 = arith.constant dense<0.000000e+00> : vector<32x128xf32>
    %41 = tpu.matmul %38, %40, %cst_53 {dimension_numbers = #tpu.dot_dimension_numbers<[1], [0], [0], [1], [0, 0, 1, 1], [], []>} : vector<32x128xbf16>, vector<128x128xbf16>, vector<32x128xf32> -> vector<32x128xf32>
    %42 = arith.addf %36, %41 : vector<32x128xf32>
    %c0_54 = arith.constant 0 : index
    %c0_55 = arith.constant 0 : index
    %c17 = arith.constant 17 : index
    %c0_56 = arith.constant 0 : index
    %43 = vector.load %arg2[%c0_54, %c0_55, %c17, %c0_56] : memref<1x1x56x128xbf16, #tpu.memory_space<vmem>>, vector<1x1x32x128xbf16>
    %44 = vector.shape_cast %43 : vector<1x1x32x128xbf16> to vector<32x128xbf16>
    %c0_57 = arith.constant 0 : index
    %c7 = arith.constant 7 : index
    %c0_58 = arith.constant 0 : index
    %c0_59 = arith.constant 0 : index
    %45 = vector.load %arg3[%c0_57, %c7, %c0_58, %c0_59] : memref<1x9x128x128xbf16, #tpu.memory_space<vmem>>, vector<1x1x128x128xbf16>
    %46 = vector.shape_cast %45 : vector<1x1x128x128xbf16> to vector<128x128xbf16>
    %cst_60 = arith.constant dense<0.000000e+00> : vector<32x128xf32>
    %47 = tpu.matmul %44, %46, %cst_60 {dimension_numbers = #tpu.dot_dimension_numbers<[1], [0], [0], [1], [0, 0, 1, 1], [], []>} : vector<32x128xbf16>, vector<128x128xbf16>, vector<32x128xf32> -> vector<32x128xf32>
    %48 = arith.addf %42, %47 : vector<32x128xf32>
    %c0_61 = arith.constant 0 : index
    %c0_62 = arith.constant 0 : index
    %c18 = arith.constant 18 : index
    %c0_63 = arith.constant 0 : index
    %49 = vector.load %arg2[%c0_61, %c0_62, %c18, %c0_63] : memref<1x1x56x128xbf16, #tpu.memory_space<vmem>>, vector<1x1x32x128xbf16>
    %50 = vector.shape_cast %49 : vector<1x1x32x128xbf16> to vector<32x128xbf16>
    %c0_64 = arith.constant 0 : index
    %c8_65 = arith.constant 8 : index
    %c0_66 = arith.constant 0 : index
    %c0_67 = arith.constant 0 : index
    %51 = vector.load %arg3[%c0_64, %c8_65, %c0_66, %c0_67] : memref<1x9x128x128xbf16, #tpu.memory_space<vmem>>, vector<1x1x128x128xbf16>
    %52 = vector.shape_cast %51 : vector<1x1x128x128xbf16> to vector<128x128xbf16>
    %cst_68 = arith.constant dense<0.000000e+00> : vector<32x128xf32>
    %53 = tpu.matmul %50, %52, %cst_68 {dimension_numbers = #tpu.dot_dimension_numbers<[1], [0], [0], [1], [0, 0, 1, 1], [], []>} : vector<32x128xbf16>, vector<128x128xbf16>, vector<32x128xf32> -> vector<32x128xf32>
    %54 = arith.addf %48, %53 : vector<32x128xf32>
    %55 = vector.broadcast %1 : vector<1x128xf32> to vector<32x128xf32>
    %56 = arith.addf %54, %55 : vector<32x128xf32>
    %cst_69 = arith.constant 0.000000e+00 : f32
    %57 = vector.broadcast %cst_69 : f32 to vector<32x128xf32>
    %58 = arith.cmpf oge, %56, %57 : vector<32x128xf32>
    %cst_70 = arith.constant 2.500000e-01 : f32
    %59 = vector.broadcast %cst_70 : f32 to vector<32x128xf32>
    %60 = arith.mulf %59, %56 : vector<32x128xf32>
    %61 = arith.select %58, %56, %60 : vector<32x128xi1>, vector<32x128xf32>
    %62 = vector.shape_cast %61 : vector<32x128xf32> to vector<2x2x8x128xf32>
    %cst_71 = arith.constant dense<0xFF800000> : vector<2x8x128xf32>
    %63 = vector.multi_reduction <maximumf>, %62, %cst_71 [1] : vector<2x2x8x128xf32> to vector<2x8x128xf32>
    %64 = vector.extract_strided_slice %63 {offsets = [0, 0, 0], sizes = [2, 4, 128], strides = [1, 1, 1]} : vector<2x8x128xf32> to vector<2x4x128xf32>
    %65 = arith.truncf %64 : vector<2x4x128xf32> to vector<2x4x128xbf16>
    %c0_72 = arith.constant 0 : index
    %c0_73 = arith.constant 0 : index
    %c0_74 = arith.constant 0 : index
    %c0_75 = arith.constant 0 : index
    %c0_76 = arith.constant 0 : index
    %66 = vector.load %arg5[%c0_72, %c0_73, %c0_74, %c0_75, %c0_76] : memref<1x1x2x4x128xbf16, #tpu.memory_space<vmem>>, vector<1x1x2x4x128xbf16>
    %67 = vector.shape_cast %66 : vector<1x1x2x4x128xbf16> to vector<2x4x128xbf16>
    %68 = vector.shape_cast %65 : vector<2x4x128xbf16> to vector<1x1x2x4x128xbf16>
    tpu.vector_store %arg5[%c0_72, %c0_73, %c0_74, %c0_75, %c0_76], %68 {strides = array<i32>} : memref<1x1x2x4x128xbf16, #tpu.memory_space<vmem>>, vector<1x1x2x4x128xbf16>,
    return
  }
  func.func @transform_0(%arg0: i32, %arg1: i32) -> (i32, i32, i32, i32) {
    %c0_i32 = arith.constant 0 : i32
    %c0_i32_0 = arith.constant 0 : i32
    %c0_i32_1 = arith.constant 0 : i32
    return %arg0, %arg1, %c0_i32, %c0_i32_0 : i32, i32, i32, i32
  }
  func.func @transform_1(%arg0: i32, %arg1: i32) -> (i32, i32, i32, i32) {
    %c0_i32 = arith.constant 0 : i32
    %c0_i32_0 = arith.constant 0 : i32
    %c0_i32_1 = arith.constant 0 : i32
    %c0_i32_2 = arith.constant 0 : i32
    return %arg0, %c0_i32, %c0_i32_0, %c0_i32_1 : i32, i32, i32, i32
  }
  func.func @transform_2(%arg0: i32, %arg1: i32) -> (i32, i32, i32) {
    %c0_i32 = arith.constant 0 : i32
    %c0_i32_0 = arith.constant 0 : i32
    %c0_i32_1 = arith.constant 0 : i32
    return %arg0, %c0_i32, %c0_i32_0 : i32, i32, i32
  }
  func.func @transform_3(%arg0: i32, %arg1: i32) -> (i32, i32, i32, i32, i32) {
    %c0_i32 = arith.constant 0 : i32
    %c0_i32_0 = arith.constant 0 : i32
    %c0_i32_1 = arith.constant 0 : i32
    %c0_i32_2 = arith.constant 0 : i32
    return %arg0, %arg1, %c0_i32, %c0_i32_0, %c0_i32_1 : i32, i32, i32, i32, i32
  }
}

module attributes {stable_mosaic.version = 11 : i64} {
  func.func @_pool_kernel(%arg0: i32, %arg1: memref<1x1x2x2x256xbf16, #tpu.memory_space<vmem>>, %arg2: memref<1x2x2x128xbf16, #tpu.memory_space<vmem>>) attributes {dimension_semantics = [#tpu.dimension_semantics<parallel>], iteration_bounds = array<i64: 4>, scalar_prefetch = 0 : i64, scratch_operands = 0 : i64, tpu.core_type = #tpu.core_type<tc>, window_params = [{transform_indices = @transform_0, window_bounds = array<i64: 1, 1, 2, 2, 256>}, {transform_indices = @transform_1, window_bounds = array<i64: 1, 2, 2, 128>}]} {
    %c0 = arith.constant 0 : index
    %c0_0 = arith.constant 0 : index
    %c0_1 = arith.constant 0 : index
    %c0_2 = arith.constant 0 : index
    %c0_3 = arith.constant 0 : index
    %0 = vector.load %arg1[%c0, %c0_0, %c0_1, %c0_2, %c0_3] : memref<1x1x2x2x256xbf16, #tpu.memory_space<vmem>>, vector<1x1x2x2x256xbf16>
    %1 = vector.shape_cast %0 : vector<1x1x2x2x256xbf16> to vector<2x2x256xbf16>
    %2 = vector.extract_strided_slice %1 {offsets = [0, 0, 0], sizes = [2, 2, 128], strides = [1, 1, 1]} : vector<2x2x256xbf16> to vector<2x2x128xbf16>
    %3 = vector.extract_strided_slice %1 {offsets = [0, 0, 128], sizes = [2, 2, 128], strides = [1, 1, 1]} : vector<2x2x256xbf16> to vector<2x2x128xbf16>
    %4 = arith.maximumf %2, %3 : vector<2x2x128xbf16>
    %c0_4 = arith.constant 0 : index
    %c0_5 = arith.constant 0 : index
    %c0_6 = arith.constant 0 : index
    %c0_7 = arith.constant 0 : index
    %5 = vector.load %arg2[%c0_4, %c0_5, %c0_6, %c0_7] : memref<1x2x2x128xbf16, #tpu.memory_space<vmem>>, vector<1x2x2x128xbf16>
    %6 = vector.shape_cast %5 : vector<1x2x2x128xbf16> to vector<2x2x128xbf16>
    %7 = vector.shape_cast %4 : vector<2x2x128xbf16> to vector<1x2x2x128xbf16>
    tpu.vector_store %arg2[%c0_4, %c0_5, %c0_6, %c0_7], %7 {strides = array<i32>} : memref<1x2x2x128xbf16, #tpu.memory_space<vmem>>, vector<1x2x2x128xbf16>,
    return
  }
  func.func @transform_0(%arg0: i32) -> (i32, i32, i32, i32, i32) {
    %c0_i32 = arith.constant 0 : i32
    %c0_i32_0 = arith.constant 0 : i32
    %c0_i32_1 = arith.constant 0 : i32
    %c0_i32_2 = arith.constant 0 : i32
    %c0_i32_3 = arith.constant 0 : i32
    return %arg0, %c0_i32, %c0_i32_0, %c0_i32_1, %c0_i32_2 : i32, i32, i32, i32, i32
  }
  func.func @transform_1(%arg0: i32) -> (i32, i32, i32, i32) {
    %c0_i32 = arith.constant 0 : i32
    %c0_i32_0 = arith.constant 0 : i32
    %c0_i32_1 = arith.constant 0 : i32
    %c0_i32_2 = arith.constant 0 : i32
    return %arg0, %c0_i32, %c0_i32_0, %c0_i32_1 : i32, i32, i32, i32
  }
}

module attributes {stable_mosaic.version = 11 : i64} {
  func.func @kernel(%arg0: i32, %arg1: i32, %arg2: memref<1x1x40x128xbf16, #tpu.memory_space<vmem>>, %arg3: memref<1x9x128x128xbf16, #tpu.memory_space<vmem>>, %arg4: memref<1x1x128xf32, #tpu.memory_space<vmem>>, %arg5: memref<1x1x1x2x128xbf16, #tpu.memory_space<vmem>>) attributes {dimension_semantics = [#tpu.dimension_semantics<parallel>, #tpu.dimension_semantics<parallel>], iteration_bounds = array<i64: 1, 4>, scalar_prefetch = 0 : i64, scratch_operands = 0 : i64, tpu.core_type = #tpu.core_type<tc>, window_params = [{transform_indices = @transform_0, window_bounds = array<i64: 1, 1, 40, 128>}, {transform_indices = @transform_1, window_bounds = array<i64: 1, 9, 128, 128>}, {transform_indices = @transform_2, window_bounds = array<i64: 1, 1, 128>}, {transform_indices = @transform_3, window_bounds = array<i64: 1, 1, 1, 2, 128>}]} {
    %c0 = arith.constant 0 : index
    %c0_0 = arith.constant 0 : index
    %c0_1 = arith.constant 0 : index
    %0 = vector.load %arg4[%c0, %c0_0, %c0_1] : memref<1x1x128xf32, #tpu.memory_space<vmem>>, vector<1x1x128xf32>
    %1 = vector.shape_cast %0 : vector<1x1x128xf32> to vector<1x128xf32>
    %c0_2 = arith.constant 0 : index
    %c0_3 = arith.constant 0 : index
    %c0_4 = arith.constant 0 : index
    %c0_5 = arith.constant 0 : index
    %2 = vector.load %arg2[%c0_2, %c0_3, %c0_4, %c0_5] : memref<1x1x40x128xbf16, #tpu.memory_space<vmem>>, vector<1x1x16x128xbf16>
    %3 = vector.shape_cast %2 : vector<1x1x16x128xbf16> to vector<16x128xbf16>
    %c0_6 = arith.constant 0 : index
    %c0_7 = arith.constant 0 : index
    %c0_8 = arith.constant 0 : index
    %c0_9 = arith.constant 0 : index
    %4 = vector.load %arg3[%c0_6, %c0_7, %c0_8, %c0_9] : memref<1x9x128x128xbf16, #tpu.memory_space<vmem>>, vector<1x1x128x128xbf16>
    %5 = vector.shape_cast %4 : vector<1x1x128x128xbf16> to vector<128x128xbf16>
    %cst = arith.constant dense<0.000000e+00> : vector<16x128xf32>
    %6 = tpu.matmul %3, %5, %cst {dimension_numbers = #tpu.dot_dimension_numbers<[1], [0], [0], [1], [0, 0, 1, 1], [], []>} : vector<16x128xbf16>, vector<128x128xbf16>, vector<16x128xf32> -> vector<16x128xf32>
    %c0_10 = arith.constant 0 : index
    %c0_11 = arith.constant 0 : index
    %c1 = arith.constant 1 : index
    %c0_12 = arith.constant 0 : index
    %7 = vector.load %arg2[%c0_10, %c0_11, %c1, %c0_12] : memref<1x1x40x128xbf16, #tpu.memory_space<vmem>>, vector<1x1x16x128xbf16>
    %8 = vector.shape_cast %7 : vector<1x1x16x128xbf16> to vector<16x128xbf16>
    %c0_13 = arith.constant 0 : index
    %c1_14 = arith.constant 1 : index
    %c0_15 = arith.constant 0 : index
    %c0_16 = arith.constant 0 : index
    %9 = vector.load %arg3[%c0_13, %c1_14, %c0_15, %c0_16] : memref<1x9x128x128xbf16, #tpu.memory_space<vmem>>, vector<1x1x128x128xbf16>
    %10 = vector.shape_cast %9 : vector<1x1x128x128xbf16> to vector<128x128xbf16>
    %cst_17 = arith.constant dense<0.000000e+00> : vector<16x128xf32>
    %11 = tpu.matmul %8, %10, %cst_17 {dimension_numbers = #tpu.dot_dimension_numbers<[1], [0], [0], [1], [0, 0, 1, 1], [], []>} : vector<16x128xbf16>, vector<128x128xbf16>, vector<16x128xf32> -> vector<16x128xf32>
    %12 = arith.addf %6, %11 : vector<16x128xf32>
    %c0_18 = arith.constant 0 : index
    %c0_19 = arith.constant 0 : index
    %c2 = arith.constant 2 : index
    %c0_20 = arith.constant 0 : index
    %13 = vector.load %arg2[%c0_18, %c0_19, %c2, %c0_20] : memref<1x1x40x128xbf16, #tpu.memory_space<vmem>>, vector<1x1x16x128xbf16>
    %14 = vector.shape_cast %13 : vector<1x1x16x128xbf16> to vector<16x128xbf16>
    %c0_21 = arith.constant 0 : index
    %c2_22 = arith.constant 2 : index
    %c0_23 = arith.constant 0 : index
    %c0_24 = arith.constant 0 : index
    %15 = vector.load %arg3[%c0_21, %c2_22, %c0_23, %c0_24] : memref<1x9x128x128xbf16, #tpu.memory_space<vmem>>, vector<1x1x128x128xbf16>
    %16 = vector.shape_cast %15 : vector<1x1x128x128xbf16> to vector<128x128xbf16>
    %cst_25 = arith.constant dense<0.000000e+00> : vector<16x128xf32>
    %17 = tpu.matmul %14, %16, %cst_25 {dimension_numbers = #tpu.dot_dimension_numbers<[1], [0], [0], [1], [0, 0, 1, 1], [], []>} : vector<16x128xbf16>, vector<128x128xbf16>, vector<16x128xf32> -> vector<16x128xf32>
    %18 = arith.addf %12, %17 : vector<16x128xf32>
    %c0_26 = arith.constant 0 : index
    %c0_27 = arith.constant 0 : index
    %c8 = arith.constant 8 : index
    %c0_28 = arith.constant 0 : index
    %19 = vector.load %arg2[%c0_26, %c0_27, %c8, %c0_28] : memref<1x1x40x128xbf16, #tpu.memory_space<vmem>>, vector<1x1x16x128xbf16>
    %20 = vector.shape_cast %19 : vector<1x1x16x128xbf16> to vector<16x128xbf16>
    %c0_29 = arith.constant 0 : index
    %c3 = arith.constant 3 : index
    %c0_30 = arith.constant 0 : index
    %c0_31 = arith.constant 0 : index
    %21 = vector.load %arg3[%c0_29, %c3, %c0_30, %c0_31] : memref<1x9x128x128xbf16, #tpu.memory_space<vmem>>, vector<1x1x128x128xbf16>
    %22 = vector.shape_cast %21 : vector<1x1x128x128xbf16> to vector<128x128xbf16>
    %cst_32 = arith.constant dense<0.000000e+00> : vector<16x128xf32>
    %23 = tpu.matmul %20, %22, %cst_32 {dimension_numbers = #tpu.dot_dimension_numbers<[1], [0], [0], [1], [0, 0, 1, 1], [], []>} : vector<16x128xbf16>, vector<128x128xbf16>, vector<16x128xf32> -> vector<16x128xf32>
    %24 = arith.addf %18, %23 : vector<16x128xf32>
    %c0_33 = arith.constant 0 : index
    %c0_34 = arith.constant 0 : index
    %c9 = arith.constant 9 : index
    %c0_35 = arith.constant 0 : index
    %25 = vector.load %arg2[%c0_33, %c0_34, %c9, %c0_35] : memref<1x1x40x128xbf16, #tpu.memory_space<vmem>>, vector<1x1x16x128xbf16>
    %26 = vector.shape_cast %25 : vector<1x1x16x128xbf16> to vector<16x128xbf16>
    %c0_36 = arith.constant 0 : index
    %c4 = arith.constant 4 : index
    %c0_37 = arith.constant 0 : index
    %c0_38 = arith.constant 0 : index
    %27 = vector.load %arg3[%c0_36, %c4, %c0_37, %c0_38] : memref<1x9x128x128xbf16, #tpu.memory_space<vmem>>, vector<1x1x128x128xbf16>
    %28 = vector.shape_cast %27 : vector<1x1x128x128xbf16> to vector<128x128xbf16>
    %cst_39 = arith.constant dense<0.000000e+00> : vector<16x128xf32>
    %29 = tpu.matmul %26, %28, %cst_39 {dimension_numbers = #tpu.dot_dimension_numbers<[1], [0], [0], [1], [0, 0, 1, 1], [], []>} : vector<16x128xbf16>, vector<128x128xbf16>, vector<16x128xf32> -> vector<16x128xf32>
    %30 = arith.addf %24, %29 : vector<16x128xf32>
    %c0_40 = arith.constant 0 : index
    %c0_41 = arith.constant 0 : index
    %c10 = arith.constant 10 : index
    %c0_42 = arith.constant 0 : index
    %31 = vector.load %arg2[%c0_40, %c0_41, %c10, %c0_42] : memref<1x1x40x128xbf16, #tpu.memory_space<vmem>>, vector<1x1x16x128xbf16>
    %32 = vector.shape_cast %31 : vector<1x1x16x128xbf16> to vector<16x128xbf16>
    %c0_43 = arith.constant 0 : index
    %c5 = arith.constant 5 : index
    %c0_44 = arith.constant 0 : index
    %c0_45 = arith.constant 0 : index
    %33 = vector.load %arg3[%c0_43, %c5, %c0_44, %c0_45] : memref<1x9x128x128xbf16, #tpu.memory_space<vmem>>, vector<1x1x128x128xbf16>
    %34 = vector.shape_cast %33 : vector<1x1x128x128xbf16> to vector<128x128xbf16>
    %cst_46 = arith.constant dense<0.000000e+00> : vector<16x128xf32>
    %35 = tpu.matmul %32, %34, %cst_46 {dimension_numbers = #tpu.dot_dimension_numbers<[1], [0], [0], [1], [0, 0, 1, 1], [], []>} : vector<16x128xbf16>, vector<128x128xbf16>, vector<16x128xf32> -> vector<16x128xf32>
    %36 = arith.addf %30, %35 : vector<16x128xf32>
    %c0_47 = arith.constant 0 : index
    %c0_48 = arith.constant 0 : index
    %c16 = arith.constant 16 : index
    %c0_49 = arith.constant 0 : index
    %37 = vector.load %arg2[%c0_47, %c0_48, %c16, %c0_49] : memref<1x1x40x128xbf16, #tpu.memory_space<vmem>>, vector<1x1x16x128xbf16>
    %38 = vector.shape_cast %37 : vector<1x1x16x128xbf16> to vector<16x128xbf16>
    %c0_50 = arith.constant 0 : index
    %c6 = arith.constant 6 : index
    %c0_51 = arith.constant 0 : index
    %c0_52 = arith.constant 0 : index
    %39 = vector.load %arg3[%c0_50, %c6, %c0_51, %c0_52] : memref<1x9x128x128xbf16, #tpu.memory_space<vmem>>, vector<1x1x128x128xbf16>
    %40 = vector.shape_cast %39 : vector<1x1x128x128xbf16> to vector<128x128xbf16>
    %cst_53 = arith.constant dense<0.000000e+00> : vector<16x128xf32>
    %41 = tpu.matmul %38, %40, %cst_53 {dimension_numbers = #tpu.dot_dimension_numbers<[1], [0], [0], [1], [0, 0, 1, 1], [], []>} : vector<16x128xbf16>, vector<128x128xbf16>, vector<16x128xf32> -> vector<16x128xf32>
    %42 = arith.addf %36, %41 : vector<16x128xf32>
    %c0_54 = arith.constant 0 : index
    %c0_55 = arith.constant 0 : index
    %c17 = arith.constant 17 : index
    %c0_56 = arith.constant 0 : index
    %43 = vector.load %arg2[%c0_54, %c0_55, %c17, %c0_56] : memref<1x1x40x128xbf16, #tpu.memory_space<vmem>>, vector<1x1x16x128xbf16>
    %44 = vector.shape_cast %43 : vector<1x1x16x128xbf16> to vector<16x128xbf16>
    %c0_57 = arith.constant 0 : index
    %c7 = arith.constant 7 : index
    %c0_58 = arith.constant 0 : index
    %c0_59 = arith.constant 0 : index
    %45 = vector.load %arg3[%c0_57, %c7, %c0_58, %c0_59] : memref<1x9x128x128xbf16, #tpu.memory_space<vmem>>, vector<1x1x128x128xbf16>
    %46 = vector.shape_cast %45 : vector<1x1x128x128xbf16> to vector<128x128xbf16>
    %cst_60 = arith.constant dense<0.000000e+00> : vector<16x128xf32>
    %47 = tpu.matmul %44, %46, %cst_60 {dimension_numbers = #tpu.dot_dimension_numbers<[1], [0], [0], [1], [0, 0, 1, 1], [], []>} : vector<16x128xbf16>, vector<128x128xbf16>, vector<16x128xf32> -> vector<16x128xf32>
    %48 = arith.addf %42, %47 : vector<16x128xf32>
    %c0_61 = arith.constant 0 : index
    %c0_62 = arith.constant 0 : index
    %c18 = arith.constant 18 : index
    %c0_63 = arith.constant 0 : index
    %49 = vector.load %arg2[%c0_61, %c0_62, %c18, %c0_63] : memref<1x1x40x128xbf16, #tpu.memory_space<vmem>>, vector<1x1x16x128xbf16>
    %50 = vector.shape_cast %49 : vector<1x1x16x128xbf16> to vector<16x128xbf16>
    %c0_64 = arith.constant 0 : index
    %c8_65 = arith.constant 8 : index
    %c0_66 = arith.constant 0 : index
    %c0_67 = arith.constant 0 : index
    %51 = vector.load %arg3[%c0_64, %c8_65, %c0_66, %c0_67] : memref<1x9x128x128xbf16, #tpu.memory_space<vmem>>, vector<1x1x128x128xbf16>
    %52 = vector.shape_cast %51 : vector<1x1x128x128xbf16> to vector<128x128xbf16>
    %cst_68 = arith.constant dense<0.000000e+00> : vector<16x128xf32>
    %53 = tpu.matmul %50, %52, %cst_68 {dimension_numbers = #tpu.dot_dimension_numbers<[1], [0], [0], [1], [0, 0, 1, 1], [], []>} : vector<16x128xbf16>, vector<128x128xbf16>, vector<16x128xf32> -> vector<16x128xf32>
    %54 = arith.addf %48, %53 : vector<16x128xf32>
    %55 = vector.broadcast %1 : vector<1x128xf32> to vector<16x128xf32>
    %56 = arith.addf %54, %55 : vector<16x128xf32>
    %cst_69 = arith.constant 0.000000e+00 : f32
    %57 = vector.broadcast %cst_69 : f32 to vector<16x128xf32>
    %58 = arith.cmpf oge, %56, %57 : vector<16x128xf32>
    %cst_70 = arith.constant 2.500000e-01 : f32
    %59 = vector.broadcast %cst_70 : f32 to vector<16x128xf32>
    %60 = arith.mulf %59, %56 : vector<16x128xf32>
    %61 = arith.select %58, %56, %60 : vector<16x128xi1>, vector<16x128xf32>
    %62 = vector.shape_cast %61 : vector<16x128xf32> to vector<1x2x8x128xf32>
    %cst_71 = arith.constant dense<0xFF800000> : vector<1x8x128xf32>
    %63 = vector.multi_reduction <maximumf>, %62, %cst_71 [1] : vector<1x2x8x128xf32> to vector<1x8x128xf32>
    %64 = vector.extract_strided_slice %63 {offsets = [0, 0, 0], sizes = [1, 2, 128], strides = [1, 1, 1]} : vector<1x8x128xf32> to vector<1x2x128xf32>
    %65 = arith.truncf %64 : vector<1x2x128xf32> to vector<1x2x128xbf16>
    %c0_72 = arith.constant 0 : index
    %c0_73 = arith.constant 0 : index
    %c0_74 = arith.constant 0 : index
    %c0_75 = arith.constant 0 : index
    %c0_76 = arith.constant 0 : index
    %66 = vector.load %arg5[%c0_72, %c0_73, %c0_74, %c0_75, %c0_76] : memref<1x1x1x2x128xbf16, #tpu.memory_space<vmem>>, vector<1x1x1x2x128xbf16>
    %67 = vector.shape_cast %66 : vector<1x1x1x2x128xbf16> to vector<1x2x128xbf16>
    %68 = vector.shape_cast %65 : vector<1x2x128xbf16> to vector<1x1x1x2x128xbf16>
    tpu.vector_store %arg5[%c0_72, %c0_73, %c0_74, %c0_75, %c0_76], %68 {strides = array<i32>} : memref<1x1x1x2x128xbf16, #tpu.memory_space<vmem>>, vector<1x1x1x2x128xbf16>,
    return
  }
  func.func @transform_0(%arg0: i32, %arg1: i32) -> (i32, i32, i32, i32) {
    %c0_i32 = arith.constant 0 : i32
    %c0_i32_0 = arith.constant 0 : i32
    %c0_i32_1 = arith.constant 0 : i32
    return %arg0, %arg1, %c0_i32, %c0_i32_0 : i32, i32, i32, i32
  }
  func.func @transform_1(%arg0: i32, %arg1: i32) -> (i32, i32, i32, i32) {
    %c0_i32 = arith.constant 0 : i32
    %c0_i32_0 = arith.constant 0 : i32
    %c0_i32_1 = arith.constant 0 : i32
    %c0_i32_2 = arith.constant 0 : i32
    return %arg0, %c0_i32, %c0_i32_0, %c0_i32_1 : i32, i32, i32, i32
  }
  func.func @transform_2(%arg0: i32, %arg1: i32) -> (i32, i32, i32) {
    %c0_i32 = arith.constant 0 : i32
    %c0_i32_0 = arith.constant 0 : i32
    %c0_i32_1 = arith.constant 0 : i32
    return %arg0, %c0_i32, %c0_i32_0 : i32, i32, i32
  }
  func.func @transform_3(%arg0: i32, %arg1: i32) -> (i32, i32, i32, i32, i32) {
    %c0_i32 = arith.constant 0 : i32
    %c0_i32_0 = arith.constant 0 : i32
    %c0_i32_1 = arith.constant 0 : i32
    %c0_i32_2 = arith.constant 0 : i32
    return %arg0, %arg1, %c0_i32, %c0_i32_0, %c0_i32_1 : i32, i32, i32, i32, i32
  }
}

module attributes {stable_mosaic.version = 11 : i64} {
  func.func @_pool_kernel(%arg0: i32, %arg1: memref<1x2x1x1x256xbf16, #tpu.memory_space<vmem>>, %arg2: memref<1x1x1x128xbf16, #tpu.memory_space<vmem>>) attributes {dimension_semantics = [#tpu.dimension_semantics<parallel>], iteration_bounds = array<i64: 2>, scalar_prefetch = 0 : i64, scratch_operands = 0 : i64, tpu.core_type = #tpu.core_type<tc>, window_params = [{transform_indices = @transform_0, window_bounds = array<i64: 1, 2, 1, 1, 256>}, {transform_indices = @transform_1, window_bounds = array<i64: 1, 1, 1, 128>}]} {
    %c0 = arith.constant 0 : index
    %c0_0 = arith.constant 0 : index
    %c0_1 = arith.constant 0 : index
    %c0_2 = arith.constant 0 : index
    %c0_3 = arith.constant 0 : index
    %0 = vector.load %arg1[%c0, %c0_0, %c0_1, %c0_2, %c0_3] : memref<1x2x1x1x256xbf16, #tpu.memory_space<vmem>>, vector<1x1x1x1x256xbf16>
    %1 = vector.shape_cast %0 : vector<1x1x1x1x256xbf16> to vector<1x1x256xbf16>
    %c0_4 = arith.constant 0 : index
    %c1 = arith.constant 1 : index
    %c0_5 = arith.constant 0 : index
    %c0_6 = arith.constant 0 : index
    %c0_7 = arith.constant 0 : index
    %2 = vector.load %arg1[%c0_4, %c1, %c0_5, %c0_6, %c0_7] : memref<1x2x1x1x256xbf16, #tpu.memory_space<vmem>>, vector<1x1x1x1x256xbf16>
    %3 = vector.shape_cast %2 : vector<1x1x1x1x256xbf16> to vector<1x1x256xbf16>
    %4 = arith.maximumf %1, %3 : vector<1x1x256xbf16>
    %5 = vector.extract_strided_slice %4 {offsets = [0, 0, 0], sizes = [1, 1, 128], strides = [1, 1, 1]} : vector<1x1x256xbf16> to vector<1x1x128xbf16>
    %6 = vector.extract_strided_slice %4 {offsets = [0, 0, 128], sizes = [1, 1, 128], strides = [1, 1, 1]} : vector<1x1x256xbf16> to vector<1x1x128xbf16>
    %7 = arith.maximumf %5, %6 : vector<1x1x128xbf16>
    %c0_8 = arith.constant 0 : index
    %c0_9 = arith.constant 0 : index
    %c0_10 = arith.constant 0 : index
    %c0_11 = arith.constant 0 : index
    %8 = vector.load %arg2[%c0_8, %c0_9, %c0_10, %c0_11] : memref<1x1x1x128xbf16, #tpu.memory_space<vmem>>, vector<1x1x1x128xbf16>
    %9 = vector.shape_cast %8 : vector<1x1x1x128xbf16> to vector<1x1x128xbf16>
    %10 = vector.shape_cast %7 : vector<1x1x128xbf16> to vector<1x1x1x128xbf16>
    tpu.vector_store %arg2[%c0_8, %c0_9, %c0_10, %c0_11], %10 {strides = array<i32>} : memref<1x1x1x128xbf16, #tpu.memory_space<vmem>>, vector<1x1x1x128xbf16>,
    return
  }
  func.func @transform_0(%arg0: i32) -> (i32, i32, i32, i32, i32) {
    %c0_i32 = arith.constant 0 : i32
    %c0_i32_0 = arith.constant 0 : i32
    %c0_i32_1 = arith.constant 0 : i32
    %c0_i32_2 = arith.constant 0 : i32
    %c0_i32_3 = arith.constant 0 : i32
    return %arg0, %c0_i32, %c0_i32_0, %c0_i32_1, %c0_i32_2 : i32, i32, i32, i32, i32
  }
  func.func @transform_1(%arg0: i32) -> (i32, i32, i32, i32) {
    %c0_i32 = arith.constant 0 : i32
    %c0_i32_0 = arith.constant 0 : i32
    %c0_i32_1 = arith.constant 0 : i32
    %c0_i32_2 = arith.constant 0 : i32
    return %arg0, %c0_i32, %c0_i32_0, %c0_i32_1 : i32, i32, i32, i32
  }
}

module attributes {stable_mosaic.version = 11 : i64} {
  func.func @_fc_head_kernel(%arg0: memref<2x128xbf16, #tpu.memory_space<vmem>>, %arg1: memref<128x512xbf16, #tpu.memory_space<vmem>>, %arg2: memref<1x512xf32, #tpu.memory_space<vmem>>, %arg3: memref<512x128xbf16, #tpu.memory_space<vmem>>, %arg4: memref<1x128xf32, #tpu.memory_space<vmem>>, %arg5: memref<2x128xf32, #tpu.memory_space<vmem>>) attributes {dimension_semantics = [], scalar_prefetch = 0 : i64, scratch_operands = 0 : i64, tpu.core_type = #tpu.core_type<tc>} {
    %c0 = arith.constant 0 : index
    %c0_0 = arith.constant 0 : index
    %0 = vector.load %arg0[%c0, %c0_0] : memref<2x128xbf16, #tpu.memory_space<vmem>>, vector<2x128xbf16>
    %c0_1 = arith.constant 0 : index
    %c0_2 = arith.constant 0 : index
    %1 = vector.load %arg1[%c0_1, %c0_2] : memref<128x512xbf16, #tpu.memory_space<vmem>>, vector<128x512xbf16>
    %cst = arith.constant dense<0.000000e+00> : vector<2x512xf32>
    %2 = tpu.matmul %0, %1, %cst {dimension_numbers = #tpu.dot_dimension_numbers<[1], [0], [0], [1], [0, 0, 1, 1], [], []>} : vector<2x128xbf16>, vector<128x512xbf16>, vector<2x512xf32> -> vector<2x512xf32>
    %c0_3 = arith.constant 0 : index
    %c0_4 = arith.constant 0 : index
    %3 = vector.load %arg2[%c0_3, %c0_4] : memref<1x512xf32, #tpu.memory_space<vmem>>, vector<1x512xf32>
    %4 = vector.broadcast %3 : vector<1x512xf32> to vector<2x512xf32>
    %5 = arith.addf %2, %4 : vector<2x512xf32>
    %cst_5 = arith.constant 0.000000e+00 : f32
    %6 = vector.broadcast %cst_5 : f32 to vector<2x512xf32>
    %7 = arith.cmpf oge, %5, %6 : vector<2x512xf32>
    %cst_6 = arith.constant 2.500000e-01 : f32
    %8 = vector.broadcast %cst_6 : f32 to vector<2x512xf32>
    %9 = arith.mulf %8, %5 : vector<2x512xf32>
    %10 = arith.select %7, %5, %9 : vector<2x512xi1>, vector<2x512xf32>
    %11 = arith.truncf %10 : vector<2x512xf32> to vector<2x512xbf16>
    %c0_7 = arith.constant 0 : index
    %c0_8 = arith.constant 0 : index
    %12 = vector.load %arg3[%c0_7, %c0_8] : memref<512x128xbf16, #tpu.memory_space<vmem>>, vector<512x128xbf16>
    %cst_9 = arith.constant dense<0.000000e+00> : vector<2x128xf32>
    %13 = tpu.matmul %11, %12, %cst_9 {dimension_numbers = #tpu.dot_dimension_numbers<[1], [0], [0], [1], [0, 0, 1, 1], [], []>} : vector<2x512xbf16>, vector<512x128xbf16>, vector<2x128xf32> -> vector<2x128xf32>
    %c0_10 = arith.constant 0 : index
    %c0_11 = arith.constant 0 : index
    %14 = vector.load %arg4[%c0_10, %c0_11] : memref<1x128xf32, #tpu.memory_space<vmem>>, vector<1x128xf32>
    %15 = vector.broadcast %14 : vector<1x128xf32> to vector<2x128xf32>
    %16 = arith.addf %13, %15 : vector<2x128xf32>
    %c0_12 = arith.constant 0 : index
    %c0_13 = arith.constant 0 : index
    %17 = vector.load %arg5[%c0_12, %c0_13] : memref<2x128xf32, #tpu.memory_space<vmem>>, vector<2x128xf32>
    tpu.vector_store %arg5[%c0_12, %c0_13], %16 {strides = array<i32>} : memref<2x128xf32, #tpu.memory_space<vmem>>, vector<2x128xf32>,
    return
  }
}

</mosaic_0001>

<bundles_post_ra>
// kernel: hcn_forward.12
= control target key start
LH: loop header
LB: loop body
LE: loop exit
PB: predicated region body
PF: predicated region fallthrough
CT: control target
= control target key end

     0   :  { %s359_s6 = smov 0   ;;  %s412_s0 = inlined_call_operand.vmem [shape: f32[4,16,8,128], index: 0, kind: input, shape index: {}]   ;;  %s413_s1 = inlined_call_operand.vmem [shape: f32[4,16,8,128], index: 1, kind: output, shape index: {}]  }
   0x1 LB: > { %s290_s7 = sadd.s32 4294967295, %s347_s6   ;;  %p294_p0 = scmp.ge.s32.totalorder %s347_s6, 1  ;;  %s347_s6 = sphi %s359_s6, %s11_s6  }
   0x2   : > { %p87_p1 = scmp.lt.s32.totalorder %s347_s6, 5 }
   0x4   : > { %p88_p2 = pnand %p294_p0, %p87_p1 }
   0x5   : > { %p107_p3 = scmp.lt.s32.totalorder (!%p88_p2), %s290_s7, 3 }
   0x6   : > { %91 = sbr.rel (%p88_p2) target bundleno = 34 (0x22), region = 24 }
   0xb   : > { %s415_s7 = smov (!%p107_p3, %s290_s7), 3 }
   0xc   : > { %s331_s8 = sshll.u32 %s415_s7, 7 }
   0xd   : > { %s370_s11 = scalar_lea.vmem %s412_s0, %s331_s8  ;;  %s375_s14 = scalar_lea.vmem %s413_s1, %s331_s8 }
   0xe   : > { %v299_v0 = vld [vmem:[%s370_s11 + $0x8] sm:$0xff]  ;;  %v119_v1 = vld [vmem:[%s370_s11] sm:$0xff]  ;;  %v300_v2 = vld [vmem:[%s370_s11 + $0x10] sm:$0xff] }
   0xf   : > { %v120_v3 = vsub.f32 %v299_v0, %v119_v1  ;;  %v123_v4 = vsub.f32 %v300_v2, %v299_v0  ;;  %v301_v5 = vld [vmem:[%s370_s11 + $0x18] sm:$0xff]  ;;  %v302_v6 = vld [vmem:[%s370_s11 + $0x20] sm:$0xff]  ;;  %v303_v7 = vld [vmem:[%s370_s11 + $0x28] sm:$0xff] }
  0x10   : > { %v126_v8 = vsub.f32 %v301_v5, %v300_v2  ;;  %v129_v9 = vsub.f32 %v302_v6, %v301_v5  ;;  %v132_v10 = vsub.f32 %v303_v7, %v302_v6  ;;  %v304_v11 = vld [vmem:[%s370_s11 + $0x30] sm:$0xff]  ;;  %v305_v16 = vld [vmem:[%s370_s11 + $0x38] sm:$0xff]  ;;  %v306_v21 = vld [vmem:[%s370_s11 + $0x40] sm:$0xff] }
  0x11   : > { %163 = vst [vmem:[%s375_s14] sm:$0xff] %v120_v3  ;;  %v164_v12 = vmul.f32 0.09375, %v120_v3  ;;  %v165_v13 = vmul.f32 0.90625, %v123_v4  ;;  %v169_v14 = vmul.f32 0.15625, %v123_v4  ;;  %v135_v15 = vsub.f32 %v304_v11, %v303_v7  ;;  %v307_v22 = vld [vmem:[%s370_s11 + $0x48] sm:$0xff]  ;;  %v308_v27 = vld [vmem:[%s370_s11 + $0x50] sm:$0xff]  ;;  %v309_v28 = vld [vmem:[%s370_s11 + $0x58] sm:$0xff] }
  0x12   : > { %v170_v17 = vmul.f32 0.84375, %v126_v8  ;;  %v174_v18 = vmul.f32 0.21875, %v126_v8  ;;  %v175_v19 = vmul.f32 0.78125, %v129_v9  ;;  %v179_v20 = vmul.f32 0.28125, %v129_v9  ;;  %v310_v33 = vld [vmem:[%s370_s11 + $0x60] sm:$0xff]  ;;  %v311_v46 = vld [vmem:[%s370_s11 + $0x68] sm:$0xff] }
  0x13   : > { %v166_v23 = vadd.f32 %v165_v13, %v164_v12  ;;  %v180_v24 = vmul.f32 0.71875, %v132_v10  ;;  %v184_v25 = vmul.f32 0.34375, %v132_v10  ;;  %v185_v26 = vmul.f32 0.65625, %v135_v15  ;;  %v312_v51 = vld [vmem:[%s370_s11 + $0x70] sm:$0xff]  ;;  %v313_v52 = vld [vmem:[%s370_s11 + $0x78] sm:$0xff] }
  0x14   : > { %v171_v29 = vadd.f32 %v170_v17, %v169_v14  ;;  %v176_v30 = vadd.f32 %v175_v19, %v174_v18  ;;  %v138_v31 = vsub.f32 %v305_v16, %v304_v11  ;;  %v189_v32 = vmul.f32 0.40625, %v135_v15 }
  0x15   : > { %314 = vst [vmem:[%s375_s14 + $0x8] sm:$0xff] %v166_v23  ;;  %v181_v34 = vadd.f32 %v180_v24, %v179_v20  ;;  %v186_v35 = vadd.f32 %v185_v26, %v184_v25  ;;  %v141_v36 = vsub.f32 %v306_v21, %v305_v16  ;;  %v144_v37 = vsub.f32 %v307_v22, %v306_v21 }
  0x16   : > { %315 = vst [vmem:[%s375_s14 + $0x10] sm:$0xff] %v171_v29  ;;  %316 = vst [vmem:[%s375_s14 + $0x18] sm:$0xff] %v176_v30  ;;  %v190_v38 = vmul.f32 0.59375, %v138_v31  ;;  %v194_v39 = vmul.f32 0.46875, %v138_v31  ;;  %v147_v40 = vsub.f32 %v308_v27, %v307_v22  ;;  %v150_v41 = vsub.f32 %v309_v28, %v308_v27 }
  0x17   : > { %317 = vst [vmem:[%s375_s14 + $0x20] sm:$0xff] %v181_v34  ;;  %318 = vst [vmem:[%s375_s14 + $0x28] sm:$0xff] %v186_v35  ;;  %v195_v42 = vmul.f32 0.53125, %v141_v36  ;;  %v199_v43 = vmul.f32 0.46875, %v144_v37  ;;  %v203_v44 = vmul.f32 0.59375, %v144_v37  ;;  %v153_v45 = vsub.f32 %v310_v33, %v309_v28 }
  0x18   : > { %v191_v47 = vadd.f32 %v190_v38, %v189_v32  ;;  %v204_v48 = vmul.f32 0.40625, %v147_v40  ;;  %v208_v49 = vmul.f32 0.65625, %v147_v40  ;;  %v209_v50 = vmul.f32 0.34375, %v150_v41 }
  0x19   : > { %v196_v53 = vadd.f32 %v195_v42, %v194_v39  ;;  %v200_v54 = vadd.f32 %v199_v43, %v195_v42  ;;  %v213_v55 = vmul.f32 0.71875, %v150_v41  ;;  %v214_v56 = vmul.f32 0.28125, %v153_v45 }
  0x1a   : > { %319 = vst [vmem:[%s375_s14 + $0x30] sm:$0xff] %v191_v47  ;;  %v205_v57 = vadd.f32 %v204_v48, %v203_v44  ;;  %v210_v58 = vadd.f32 %v209_v50, %v208_v49  ;;  %v156_v59 = vsub.f32 %v311_v46, %v310_v33  ;;  %v218_v60 = vmul.f32 0.78125, %v153_v45 }
  0x1b   : > { %320 = vst [vmem:[%s375_s14 + $0x38] sm:$0xff] %v196_v53  ;;  %321 = vst [vmem:[%s375_s14 + $0x40] sm:$0xff] %v200_v54  ;;  %v215_v61 = vadd.f32 %v214_v56, %v213_v55  ;;  %v159_v62 = vsub.f32 %v312_v51, %v311_v46  ;;  %v162_v63 = vsub.f32 %v313_v52, %v312_v51 }
  0x1c   : > { %322 = vst [vmem:[%s375_s14 + $0x48] sm:$0xff] %v205_v57  ;;  %323 = vst [vmem:[%s375_s14 + $0x50] sm:$0xff] %v210_v58  ;;  %v219_v0 = vmul.f32 0.21875, %v156_v59  ;;  %v223_v1 = vmul.f32 0.84375, %v156_v59 }
  0x1d   : > { %324 = vst [vmem:[%s375_s14 + $0x58] sm:$0xff] %v215_v61  ;;  %v224_v2 = vmul.f32 0.15625, %v159_v62  ;;  %v228_v3 = vmul.f32 0.90625, %v159_v62  ;;  %v229_v4 = vmul.f32 0.09375, %v162_v63  ;;  %328 = vst [vmem:[%s375_s14 + $0x78] sm:$0xff] %v162_v63 }
  0x1e   : > { %v220_v5 = vadd.f32 %v219_v0, %v218_v60 }
  0x1f   : > { %v225_v6 = vadd.f32 %v224_v2, %v223_v1  ;;  %v230_v7 = vadd.f32 %v229_v4, %v228_v3 }
  0x20   : > { %325 = vst [vmem:[%s375_s14 + $0x60] sm:$0xff] %v220_v5 }
  0x21   : > { %326 = vst [vmem:[%s375_s14 + $0x68] sm:$0xff] %v225_v6  ;;  %327 = vst [vmem:[%s375_s14 + $0x70] sm:$0xff] %v230_v7 }
  0x22 PF: > { %s11_s6 = sadd.s32 1, %s347_s6  }
  0x23   : > { %p8_p4 = scmp.ge.s32.totalorder %s11_s6, 6  }
  0x25   :  { %10 = sbr.rel (!%p8_p4) target bundleno = 1 (0x1), region = 84 }

// kernel: hcn_forward.13
= control target key start
LH: loop header
LB: loop body
LE: loop exit
PB: predicated region body
PF: predicated region fallthrough
CT: control target
= control target key end

     0   :  { %s930_s12 = smov 0   ;;  %s932_s13 = smov 0   ;;  %s1054_s0 = inlined_call_operand.vmem [shape: bf16[2,4,136,128], index: 0, kind: input, shape index: {}]   ;;  %s1055_s1 = inlined_call_operand.vmem [shape: bf16[2,1,128,128], index: 1, kind: input, shape index: {}]   ;;  %s1056_s2 = inlined_call_operand.vmem [shape: f32[2,1,128], index: 2, kind: input, shape index: {}]   ;;  %s1057_s3 = inlined_call_operand.vmem [shape: bf16[2,4,16,8,128], index: 3, kind: output, shape index: {}]  }
   0x1   :  { %s934_s14 = smov 0   ;;  %s936_s15 = smov 0  }
   0x2   :  { %s938_s16 = smov 0  }
   0x3 LB: > { %s22_s17 = sadd.s32 1, %s900_s14  ;;  %s25_s18 = sadd.s32 1, %s904_s15  ;;  %s908_s16 = sphi %s938_s16, %s13_s16   ;;  %s904_s15 = sphi %s936_s15, %s1061_s15   ;;  %s900_s14 = sphi %s934_s14, %s1060_s14   ;;  %s896_s13 = sphi %s932_s13, %s1059_s13   ;;  %s892_s12 = sphi %s930_s12, %s1058_s12  }
   0x4   : > { %p23_p0 = scmp.ge.s32.totalorder %s22_s17, 4  ;;  %p674_p1 = scmp.ge.s32.totalorder %s908_s16, 1 }
   0x5   : > { %p175_p2 = scmp.lt.s32.totalorder %s908_s16, 9 }
   0x6   : > { %s1063_s17 = smov (%p23_p0, %s22_s17), 0  ;;  %s1065_s18 = smov (!%p23_p0, %s25_s18), %s904_s15 }
   0x7   : > { %p176_p3 = pnand %p674_p1, %p175_p2  ;;  %p27_p4 = scmp.ge.s32.totalorder %s1065_s18, 2 }
   0x8   : > { %p215_p5 = scmp.lt.s32.totalorder (!%p176_p3), %s896_s13, 1  ;;  %p217_p6 = scmp.lt.s32.totalorder (!%p176_p3), %s892_s12, 3 }
   0x9   : > { %s1067_s18 = smov (%p27_p4, %s1065_s18), 0  ;;  %179 = sbr.rel (%p176_p3) target bundleno = 266 (0x10a), region = 32 }
   0xe   : > { %s1069_s13 = smov (!%p215_p5, %s896_s13), 1  ;;  %s1071_s12 = smov (!%p217_p6, %s892_s12), 3 }
   0xf   : > { %s700_s19 = sshll.u32 %s1069_s13, 6  ;;  %s813_s20 = smul.u32 68, %s1069_s13 }
  0x10   : > { %s971_s23 = scalar_lea.vmem %s1055_s1, %s700_s19  ;;  %s812_s24 = smul.u32 17, %s1071_s12 }
  0x11   : > { %v854_v0 = vld [vmem:[%s971_s23 + $0x38] sm:$0xff]   ;;  %v855_v1 = vld [vmem:[%s971_s23 + $0x30] sm:$0xff]   ;;  %v856_v2 = vld [vmem:[%s971_s23 + $0x28] sm:$0xff]   ;;  %s231_s5 = scalar_lea.vmem %s1056_s2, %s1069_s13  ;;  %s678_s6 = sshll.u32 %s1071_s12, 4 }
  0x12   : > { %s221_s25 = sadd.s32 %s813_s20, %s812_s24  ;;  %764 = vmatprep.subr.bf16.mxu0 %v854_v0  ;;  %796 = vmatprep.subr.bf16.mxu1 %v854_v0  ;;  %v857_v3 = vld [vmem:[%s971_s23 + $0x20] sm:$0xff]   ;;  %v858_v6 = vld [vmem:[%s971_s23 + $0x18] sm:$0xff]   ;;  %v859_v7 = vld [vmem:[%s971_s23 + $0x10] sm:$0xff]   ;;  %s238_s7 = sadd.s32 %s700_s19, %s678_s6 }
  0x13   : > { %s675_s26 = sshll.u32 %s221_s25, 2  ;;  %765 = vmatpush3.bf16.msra.mxu0 %v854_v0  ;;  %804 = vmatpush3.bf16.msra.mxu1 %v854_v0  ;;  %v860_v8 = vld [vmem:[%s971_s23 + $0x8] sm:$0xff]   ;;  %v861_v9 = vld [vmem:[%s971_s23] sm:$0xff]   ;;  %s680_s8 = sshll.u32 %s238_s7, 2 }
  0x14   : > { %766 = vmatprep.subr.bf16.mxu0 %v855_v1  ;;  %797 = vmatprep.subr.bf16.mxu1 %v855_v1  ;;  %s980_s29 = scalar_lea.vmem %s1054_s0, %s675_s26  ;;  %v999_v16 = vld [vmem:[%s231_s5] ss:$0 sm:$0xff]  ;;  %s1015_s11 = scalar_lea.vmem %s1057_s3, %s680_s8 }
  0x15   : > { %v862_v4 = vld [vmem:[%s980_s29] sm:$0xff]   ;;  %v864_v10 = vld [vmem:[%s980_s29 + $0x8] sm:$0xff]   ;;  %v866_v12 = vld [vmem:[%s980_s29 + $0x10] sm:$0xff]  }
  0x16   : > { %v863_v5 = vld [vmem:[%s980_s29 + $0x20] sm:$0xff]   ;;  %780 = vmatprep.mubr.bf16.mxu0 %v862_v4  ;;  %v865_v11 = vld [vmem:[%s980_s29 + $0x28] sm:$0xff]   ;;  %v867_v13 = vld [vmem:[%s980_s29 + $0x30] sm:$0xff]  }
  0x17   : > { %767 = vmatpush3.bf16.msra.mxu0 %v855_v1  ;;  %805 = vmatpush3.bf16.msra.mxu1 %v855_v1  ;;  %v868_v14 = vld [vmem:[%s980_s29 + $0x18] sm:$0xff]  }
  0x18   : > { %768 = vmatprep.subr.bf16.mxu0 %v856_v2  ;;  %798 = vmatprep.subr.bf16.mxu1 %v856_v2  ;;  %v869_v15 = vld [vmem:[%s980_s29 + $0x38] sm:$0xff]  }
  0x19   : > { %788 = vmatprep.mubr.bf16.mxu1 %v863_v5 }
  0x1b   : > { %769 = vmatpush3.bf16.msra.mxu0 %v856_v2  ;;  %806 = vmatpush3.bf16.msra.mxu1 %v856_v2 }
  0x1c   : > { %770 = vmatprep.subr.bf16.mxu0 %v857_v3  ;;  %799 = vmatprep.subr.bf16.mxu1 %v857_v3 }
  0x1f   : > { %771 = vmatpush3.bf16.msra.mxu0 %v857_v3  ;;  %807 = vmatpush3.bf16.msra.mxu1 %v857_v3 }
  0x20   : > { %772 = vmatprep.subr.bf16.mxu0 %v858_v6  ;;  %800 = vmatprep.subr.bf16.mxu1 %v858_v6 }
  0x23   : > { %773 = vmatpush3.bf16.msra.mxu0 %v858_v6  ;;  %808 = vmatpush3.bf16.msra.mxu1 %v858_v6 }
  0x24   : > { %774 = vmatprep.subr.bf16.mxu0 %v859_v7  ;;  %801 = vmatprep.subr.bf16.mxu1 %v859_v7 }
  0x27   : > { %775 = vmatpush3.bf16.msra.mxu0 %v859_v7  ;;  %809 = vmatpush3.bf16.msra.mxu1 %v859_v7 }
  0x28   : > { %776 = vmatprep.subr.bf16.mxu0 %v860_v8  ;;  %802 = vmatprep.subr.bf16.mxu1 %v860_v8 }
  0x2b   : > { %777 = vmatpush3.bf16.msra.mxu0 %v860_v8  ;;  %810 = vmatpush3.bf16.msra.mxu1 %v860_v8 }
  0x2c   : > { %778 = vmatprep.subr.bf16.mxu0 %v861_v9  ;;  %803 = vmatprep.subr.bf16.mxu1 %v861_v9 }
  0x2f   : > { %779 = vmatpush3.bf16.msra.mxu0 %v861_v9  ;;  %811 = vmatpush3.bf16.msra.mxu1 %v861_v9 }
  0x32   : > { %781 = vmatmul.mubr.bf16.vlgmr.msra.gmra.mxu0 %v864_v10  ;;  %789 = vmatmul.mubr.bf16.vlgmr.msra.gmra.mxu1 %v865_v11 }
  0x33   : > { %784 = vmatprep.mubr.bf16.mxu0 %v866_v12  ;;  %792 = vmatprep.mubr.bf16.mxu1 %v867_v13 }
  0x3a   : > { %785 = vmatmul.mubr.bf16.gmra.mxu0 %v868_v14  ;;  %793 = vmatmul.mubr.bf16.gmra.mxu1 %v869_v15 }
  0xf2   : > { %v782_v17 = vpop.f32.mrf.mxu0  ;;  %v790_v18 = vpop.f32.mrf.mxu1 }
  0xf3   : > { %v420_v19 = vadd.f32 %v782_v17, %v999_v16  ;;  %v452_v20 = vadd.f32 %v790_v18, %v999_v16 }
  0xf4   : > { %v411_v21 = vpop.f32.mrf.mxu0  ;;  %v443_v22 = vpop.f32.mrf.mxu1 }
  0xf5   : > { %vm476_vm0 = vcmp.ge.f32.partialorder %v420_v19, 0.0  ;;  %v492_v23 = vmul.f32 0.25, %v420_v19  ;;  %vm484_vm1 = vcmp.ge.f32.partialorder %v452_v20, 0.0  ;;  %v500_v24 = vmul.f32 0.25, %v452_v20 }
  0xf6   : > { %v412_v25 = vadd.f32 %v999_v16, %v411_v21  ;;  %v444_v26 = vadd.f32 %v999_v16, %v443_v22  ;;  %v783_v27 = vpop.f32.mrf.mxu0  ;;  %v791_v28 = vpop.f32.mrf.mxu1 }
  0xf7   : > { %v423_v29 = vadd.f32 %v783_v27, %v999_v16  ;;  %v455_v30 = vadd.f32 %v791_v28, %v999_v16  ;;  %v508_v31 = vsel %vm476_vm0, %v420_v19, %v492_v23  ;;  %v516_v32 = vsel %vm484_vm1, %v452_v20, %v500_v24 }
  0xf8   : > { %vm474_vm2 = vcmp.ge.f32.partialorder %v412_v25, 0.0  ;;  %v490_v33 = vmul.f32 0.25, %v412_v25  ;;  %v414_v34 = vpop.f32.mrf.mxu0  ;;  %v446_v35 = vpop.f32.mrf.mxu1  ;;  %vm482_vm5 = vcmp.ge.f32.partialorder %v444_v26, 0.0  ;;  %v498_v38 = vmul.f32 0.25, %v444_v26 }
  0xf9   : > { %vm477_vm3 = vcmp.ge.f32.partialorder %v423_v29, 0.0  ;;  %v493_v36 = vmul.f32 0.25, %v423_v29  ;;  %vm485_vm4 = vcmp.ge.f32.partialorder %v455_v30, 0.0  ;;  %v501_v37 = vmul.f32 0.25, %v455_v30 }
  0xfa   : > { %v415_v39 = vadd.f32 %v999_v16, %v414_v34  ;;  %v447_v40 = vadd.f32 %v999_v16, %v446_v35  ;;  %v786_v41 = vpop.f32.mrf.mxu0  ;;  %v794_v42 = vpop.f32.mrf.mxu1  ;;  %v506_v53 = vsel %vm474_vm2, %v412_v25, %v490_v33  ;;  %v514_v58 = vsel %vm482_vm5, %v444_v26, %v498_v38 }
  0xfb   : > { %v509_v43 = vsel %vm477_vm3, %v423_v29, %v493_v36  ;;  %v517_v44 = vsel %vm485_vm4, %v455_v30, %v501_v37  ;;  %v436_v45 = vadd.f32 %v786_v41, %v999_v16  ;;  %v468_v46 = vadd.f32 %v794_v42, %v999_v16 }
  0xfc   : > { %v709_v47 = vpack.c.bf16 %v509_v43, %v508_v31  ;;  %v729_v48 = vpack.c.bf16 %v517_v44, %v516_v32  ;;  %vm475_vm6 = vcmp.ge.f32.partialorder %v415_v39, 0.0  ;;  %v491_v49 = vmul.f32 0.25, %v415_v39  ;;  %v427_v50 = vpop.f32.mrf.mxu0  ;;  %v459_v51 = vpop.f32.mrf.mxu1 }
  0xfd   : > { %vm483_vm7 = vcmp.ge.f32.partialorder %v447_v40, 0.0  ;;  %v499_v52 = vmul.f32 0.25, %v447_v40  ;;  %v428_v55 = vadd.f32 %v999_v16, %v427_v50  ;;  %v460_v61 = vadd.f32 %v999_v16, %v459_v51 }
  0xfe   : > { %741 = vst [vmem:[%s1015_s11 + $0x8] sm:$0xff] %v709_v47   ;;  %745 = vst [vmem:[%s1015_s11 + $0x28] sm:$0xff] %v729_v48   ;;  %v507_v54 = vsel %vm475_vm6, %v415_v39, %v491_v49  ;;  %v787_v56 = vpop.f32.mrf.mxu0  ;;  %v795_v57 = vpop.f32.mrf.mxu1  ;;  %vm480_vm8 = vcmp.ge.f32.partialorder %v436_v45, 0.0  ;;  %v496_v63 = vmul.f32 0.25, %v436_v45  ;;  %vm488_vm9 = vcmp.ge.f32.partialorder %v468_v46, 0.0 }
  0xff   : > { %v704_v59 = vpack.c.bf16 %v507_v54, %v506_v53  ;;  %v515_v60 = vsel %vm483_vm7, %v447_v40, %v499_v52  ;;  %v504_v2 = vmul.f32 0.25, %v468_v46  ;;  %vm478_vm10 = vcmp.ge.f32.partialorder %v428_v55, 0.0 }
 0x100   : > { %v724_v62 = vpack.c.bf16 %v515_v60, %v514_v58  ;;  %v430_v0 = vpop.f32.mrf.mxu0  ;;  %v462_v1 = vpop.f32.mrf.mxu1  ;;  %v439_v3 = vadd.f32 %v787_v56, %v999_v16  ;;  %v471_v4 = vadd.f32 %v795_v57, %v999_v16  ;;  %v494_v5 = vmul.f32 0.25, %v428_v55 }
 0x101   : > { %705 = vst [vmem:[%s1015_s11] sm:$0xff] %v704_v59   ;;  %vm486_vm11 = vcmp.ge.f32.partialorder %v460_v61, 0.0  ;;  %v431_v6 = vadd.f32 %v999_v16, %v430_v0  ;;  %v463_v7 = vadd.f32 %v999_v16, %v462_v1  ;;  %v502_v8 = vmul.f32 0.25, %v460_v61 }
 0x102   : > { %744 = vst [vmem:[%s1015_s11 + $0x20] sm:$0xff] %v724_v62   ;;  %vm481_vm12 = vcmp.ge.f32.partialorder %v439_v3, 0.0  ;;  %v497_v9 = vmul.f32 0.25, %v439_v3  ;;  %vm489_vm13 = vcmp.ge.f32.partialorder %v471_v4, 0.0  ;;  %v505_v10 = vmul.f32 0.25, %v471_v4 }
 0x103   : > { %vm479_vm14 = vcmp.ge.f32.partialorder %v431_v6, 0.0  ;;  %v495_v11 = vmul.f32 0.25, %v431_v6  ;;  %vm487_vm15 = vcmp.ge.f32.partialorder %v463_v7, 0.0  ;;  %v512_v12 = vsel %vm480_vm8, %v436_v45, %v496_v63 }
 0x104   : > { %v520_v13 = vsel %vm488_vm9, %v468_v46, %v504_v2  ;;  %v513_v14 = vsel %vm481_vm12, %v439_v3, %v497_v9  ;;  %v503_v15 = vmul.f32 0.25, %v463_v7  ;;  %v510_v16 = vsel %vm478_vm10, %v428_v55, %v494_v5 }
 0x105   : > { %v719_v17 = vpack.c.bf16 %v513_v14, %v512_v12  ;;  %v521_v18 = vsel %vm489_vm13, %v471_v4, %v505_v10  ;;  %v511_v19 = vsel %vm479_vm14, %v431_v6, %v495_v11  ;;  %v518_v20 = vsel %vm486_vm11, %v460_v61, %v502_v8 }
 0x106   : > { %v739_v21 = vpack.c.bf16 %v521_v18, %v520_v13  ;;  %v714_v22 = vpack.c.bf16 %v511_v19, %v510_v16  ;;  %v519_v23 = vsel %vm487_vm15, %v463_v7, %v503_v15 }
 0x107   : > { %743 = vst [vmem:[%s1015_s11 + $0x18] sm:$0xff] %v719_v17   ;;  %v734_v24 = vpack.c.bf16 %v519_v23, %v518_v20 }
 0x108   : > { %747 = vst [vmem:[%s1015_s11 + $0x38] sm:$0xff] %v739_v21   ;;  %742 = vst [vmem:[%s1015_s11 + $0x10] sm:$0xff] %v714_v22  }
 0x109   : > { %746 = vst [vmem:[%s1015_s11 + $0x30] sm:$0xff] %v734_v24  }
 0x10a PF: > { %s13_s16 = sadd.s32 1, %s908_s16   ;;  %s1058_s12 = smov %s900_s14 }
 0x10b   : > { %p10_p7 = scmp.ge.s32.totalorder %s13_s16, 10   ;;  %s1059_s13 = smov %s904_s15 }
 0x10c   : > { %s1060_s14 = smov %s1063_s17  ;;  %s1061_s15 = smov %s1067_s18 }
 0x10d   :  { %12 = sbr.rel (!%p10_p7) target bundleno = 3 (0x3), region = 68 }

// kernel: hcn_forward.14
= control target key start
LH: loop header
LB: loop body
LE: loop exit
PB: predicated region body
PF: predicated region fallthrough
CT: control target
= control target key end

     0   :  { %s1512_s12 = smov 0   ;;  %s1514_s13 = smov 0   ;;  %s1684_s0 = inlined_call_operand.vmem [shape: bf16[2,4,152,128], index: 0, kind: input, shape index: {}]   ;;  %s1685_s1 = inlined_call_operand.vmem [shape: bf16[2,3,128,128], index: 1, kind: input, shape index: {}]   ;;  %s1686_s2 = inlined_call_operand.vmem [shape: f32[2,1,128], index: 2, kind: input, shape index: {}]   ;;  %s1687_s3 = inlined_call_operand.vmem [shape: bf16[2,4,16,8,128], index: 3, kind: output, shape index: {}]  }
   0x1   :  { %s1516_s14 = smov 0   ;;  %s1518_s15 = smov 0  }
   0x2   :  { %s1520_s16 = smov 0  }
   0x3 LB: > { %s22_s17 = sadd.s32 1, %s1482_s14  ;;  %s25_s18 = sadd.s32 1, %s1486_s15  ;;  %s1490_s16 = sphi %s1520_s16, %s13_s16   ;;  %s1486_s15 = sphi %s1518_s15, %s1691_s15   ;;  %s1482_s14 = sphi %s1516_s14, %s1690_s14   ;;  %s1478_s13 = sphi %s1514_s13, %s1689_s13   ;;  %s1474_s12 = sphi %s1512_s12, %s1688_s12  }
   0x4   : > { %p23_p0 = scmp.ge.s32.totalorder %s22_s17, 4  ;;  %p1065_p1 = scmp.ge.s32.totalorder %s1490_s16, 1 }
   0x5   : > { %p175_p2 = scmp.lt.s32.totalorder %s1490_s16, 9 }
   0x6   : > { %s1693_s17 = smov (%p23_p0, %s22_s17), 0  ;;  %s1695_s18 = smov (!%p23_p0, %s25_s18), %s1486_s15 }
   0x7   : > { %p176_p3 = pnand %p1065_p1, %p175_p2  ;;  %p27_p4 = scmp.ge.s32.totalorder %s1695_s18, 2 }
   0x8   : > { %p215_p5 = scmp.lt.s32.totalorder (!%p176_p3), %s1478_s13, 1  ;;  %p217_p6 = scmp.lt.s32.totalorder (!%p176_p3), %s1474_s12, 3 }
   0x9   : > { %s1697_s18 = smov (%p27_p4, %s1695_s18), 0  ;;  %179 = sbr.rel (%p176_p3) target bundleno = 298 (0x12a), region = 32 }
   0xe   : > { %s1699_s13 = smov (!%p215_p5, %s1478_s13), 1  ;;  %s1701_s12 = smov (!%p217_p6, %s1474_s12), 3 }
   0xf   : > { %s1363_s19 = smul.u32 192, %s1699_s13  ;;  %s1068_s30 = sshll.u32 %s1701_s12, 4 }
  0x10   : > { %s1361_s23 = smul.u32 19, %s1701_s12  ;;  %s1069_s4 = sshll.u32 %s1699_s13, 6 }
  0x11   : > { %s1550_s22 = scalar_lea.vmem %s1685_s1, %s1363_s19  ;;  %s1362_s24 = smul.u32 76, %s1699_s13 }
  0x12   : > { %v1404_v0 = vld [vmem:[%s1550_s22 + $0x78] sm:$0xff]   ;;  %v1406_v2 = vld [vmem:[%s1550_s22 + $0x70] sm:$0xff]   ;;  %v1408_v4 = vld [vmem:[%s1550_s22 + $0x68] sm:$0xff]   ;;  %s231_s7 = scalar_lea.vmem %s1686_s2, %s1699_s13  ;;  %s238_s8 = sadd.s32 %s1069_s4, %s1068_s30 }
  0x13   : > { %v1405_v1 = vld [vmem:[%s1550_s22 + $0x38] sm:$0xff]   ;;  %1249 = vmatprep.subr.bf16.mxu0 %v1404_v0  ;;  %v1407_v3 = vld [vmem:[%s1550_s22 + $0x30] sm:$0xff]   ;;  %v1409_v5 = vld [vmem:[%s1550_s22 + $0x28] sm:$0xff]   ;;  %s221_s25 = sadd.s32 %s1362_s24, %s1361_s23  ;;  %s1070_s9 = sshll.u32 %s238_s8, 2 }
  0x14   : > { %1281 = vmatprep.subr.bf16.mxu1 %v1405_v1  ;;  %1250 = vmatpush3.bf16.msra.mxu0 %v1404_v0  ;;  %v1410_v6 = vld [vmem:[%s1550_s22 + $0x60] sm:$0xff]   ;;  %s1066_s26 = sshll.u32 %s221_s25, 2  ;;  %v1412_v8 = vld [vmem:[%s1550_s22 + $0x58] sm:$0xff]   ;;  %v1414_v10 = vld [vmem:[%s1550_s22 + $0x50] sm:$0xff]   ;;  %s1638_s12 = scalar_lea.vmem %s1687_s3, %s1070_s9 }
  0x15   : > { %1282 = vmatpush3.bf16.msra.mxu1 %v1405_v1  ;;  %1251 = vmatprep.subr.bf16.mxu0 %v1406_v2  ;;  %v1411_v7 = vld [vmem:[%s1550_s22 + $0x20] sm:$0xff]   ;;  %v1413_v9 = vld [vmem:[%s1550_s22 + $0x18] sm:$0xff]   ;;  %s1567_s29 = scalar_lea.vmem %s1684_s0, %s1066_s26  ;;  %v1415_v13 = vld [vmem:[%s1550_s22 + $0x10] sm:$0xff]  }
  0x16   : > { %1283 = vmatprep.subr.bf16.mxu1 %v1407_v3  ;;  %v244_v11 = vld [vmem:[%s1567_s29 + $0x4] sm:$0xf]  ;;  %v245_v12 = vld [vmem:[%s1567_s29 + $0x8] sm:$0xf]  ;;  %v243_v15 = vld [vmem:[%s1567_s29] sm:$0xf] }
  0x17   : > { %v1087_v14 = vcombine.low %v244_v11, %v245_v12  ;;  %v1103_v16 = vcombine.low %v243_v15, %v244_v11  ;;  %v1416_v17 = vld [vmem:[%s1550_s22 + $0x48] sm:$0xff]   ;;  %v1418_v19 = vld [vmem:[%s1550_s22 + $0x40] sm:$0xff]   ;;  %v247_v22 = vld [vmem:[%s1567_s29 + $0x10] sm:$0xf] }
  0x18   : > { %1252 = vmatpush3.bf16.msra.mxu0 %v1406_v2  ;;  %v1417_v18 = vld [vmem:[%s1550_s22 + $0x8] sm:$0xff]   ;;  %v1419_v20 = vld [vmem:[%s1550_s22] sm:$0xff]   ;;  %v1424_v23 = vld [vmem:[%s1550_s22 + $0xb8] sm:$0xff]  }
  0x19   : > { %1284 = vmatpush3.bf16.msra.mxu1 %v1407_v3  ;;  %1253 = vmatprep.subr.bf16.mxu0 %v1408_v4  ;;  %v246_v21 = vld [vmem:[%s1567_s29 + $0xc] sm:$0xf]  ;;  %v248_v24 = vld [vmem:[%s1567_s29 + $0x14] sm:$0xf]  ;;  %v249_v26 = vld [vmem:[%s1567_s29 + $0x18] sm:$0xf] }
  0x1a   : > { %1285 = vmatprep.subr.bf16.mxu1 %v1409_v5  ;;  %1265 = vmatprep.mubr.bf16.mxu0 %v1087_v14  ;;  %v1088_v25 = vcombine.low %v246_v21, %v247_v22  ;;  %v1104_v27 = vcombine.low %v245_v12, %v246_v21  ;;  %v1425_v28 = vld [vmem:[%s1550_s22 + $0xb0] sm:$0xff]   ;;  %v1089_v29 = vcombine.low %v248_v24, %v249_v26  ;;  %v250_v31 = vld [vmem:[%s1567_s29 + $0x1c] sm:$0xf]  ;;  %v251_v32 = vld [vmem:[%s1567_s29 + $0x20] sm:$0xf] }
  0x1b   : > { %1297 = vmatprep.mubr.bf16.mxu1 %v1103_v16  ;;  %v1105_v30 = vcombine.low %v247_v22, %v248_v24  ;;  %v1430_v33 = vld [vmem:[%s1550_s22 + $0xa8] sm:$0xff]   ;;  %v1090_v34 = vcombine.low %v250_v31, %v251_v32  ;;  %v252_v35 = vld [vmem:[%s1567_s29 + $0x24] sm:$0xf]  ;;  %v1106_v37 = vcombine.low %v249_v26, %v250_v31  ;;  %v255_v42 = vld [vmem:[%s1567_s29 + $0x30] sm:$0xf] }
  0x1c   : > { %1254 = vmatpush3.bf16.msra.mxu0 %v1408_v4  ;;  %v253_v36 = vld [vmem:[%s1567_s29 + $0x28] sm:$0xf]  ;;  %v1431_v38 = vld [vmem:[%s1550_s22 + $0xa0] sm:$0xff]   ;;  %v1107_v40 = vcombine.low %v251_v32, %v252_v35  ;;  %v254_v41 = vld [vmem:[%s1567_s29 + $0x2c] sm:$0xf] }
  0x1d   : > { %1286 = vmatpush3.bf16.msra.mxu1 %v1409_v5  ;;  %1255 = vmatprep.subr.bf16.mxu0 %v1410_v6  ;;  %v1091_v39 = vcombine.low %v252_v35, %v253_v36  ;;  %v1436_v43 = vld [vmem:[%s1550_s22 + $0x98] sm:$0xff]   ;;  %v1092_v44 = vcombine.low %v254_v41, %v255_v42  ;;  %v256_v45 = vld [vmem:[%s1567_s29 + $0x34] sm:$0xf]  ;;  %v1108_v47 = vcombine.low %v253_v36, %v254_v41  ;;  %v275_v52 = vld [vmem:[%s1567_s29 + $0x40] sm:$0xf] }
  0x1e   : > { %1287 = vmatprep.subr.bf16.mxu1 %v1411_v7  ;;  %v257_v46 = vld [vmem:[%s1567_s29 + $0x38] sm:$0xf]  ;;  %v1437_v48 = vld [vmem:[%s1550_s22 + $0x90] sm:$0xff]   ;;  %v1109_v50 = vcombine.low %v255_v42, %v256_v45  ;;  %v258_v51 = vld [vmem:[%s1567_s29 + $0x3c] sm:$0xf] }
  0x1f   : > { %v1093_v49 = vcombine.low %v256_v45, %v257_v46  ;;  %v1442_v53 = vld [vmem:[%s1550_s22 + $0x88] sm:$0xff]   ;;  %v1094_v54 = vcombine.low %v258_v51, %v275_v52  ;;  %v1110_v55 = vcombine.low %v257_v46, %v258_v51  ;;  %v1443_v56 = vld [vmem:[%s1550_s22 + $0x80] sm:$0xff]   ;;  %v1446_v59 = vld [vmem:[%s1567_s29 + $0x10] sm:$0xff]  }
  0x20   : > { %1256 = vmatpush3.bf16.msra.mxu0 %v1410_v6  ;;  %v1444_v57 = vld [vmem:[%s1567_s29 + $0x8] sm:$0xff]   ;;  %v1447_v60 = vld [vmem:[%s1567_s29 + $0x30] sm:$0xff]   ;;  %v1448_v61 = vld [vmem:[%s1567_s29 + $0x18] sm:$0xff]  }
  0x21   : > { %1288 = vmatpush3.bf16.msra.mxu1 %v1411_v7  ;;  %1257 = vmatprep.subr.bf16.mxu0 %v1412_v8  ;;  %v1445_v58 = vld [vmem:[%s1567_s29 + $0x28] sm:$0xff]   ;;  %v1449_v62 = vld [vmem:[%s1567_s29 + $0x38] sm:$0xff]   ;;  %v1450_v63 = vld [vmem:[%s1567_s29 + $0x20] sm:$0xff]  }
  0x22   : > { %1289 = vmatprep.subr.bf16.mxu1 %v1413_v9  ;;  %v1451_v0 = vld [vmem:[%s1567_s29 + $0x40] sm:$0xff]  }
  0x24   : > { %1258 = vmatpush3.bf16.msra.mxu0 %v1412_v8 }
  0x25   : > { %1290 = vmatpush3.bf16.msra.mxu1 %v1413_v9  ;;  %1259 = vmatprep.subr.bf16.mxu0 %v1414_v10 }
  0x26   : > { %1291 = vmatprep.subr.bf16.mxu1 %v1415_v13 }
  0x28   : > { %1260 = vmatpush3.bf16.msra.mxu0 %v1414_v10 }
  0x29   : > { %1292 = vmatpush3.bf16.msra.mxu1 %v1415_v13  ;;  %1261 = vmatprep.subr.bf16.mxu0 %v1416_v17 }
  0x2a   : > { %1293 = vmatprep.subr.bf16.mxu1 %v1417_v18 }
  0x2c   : > { %1262 = vmatpush3.bf16.msra.mxu0 %v1416_v17 }
  0x2d   : > { %1294 = vmatpush3.bf16.msra.mxu1 %v1417_v18  ;;  %1263 = vmatprep.subr.bf16.mxu0 %v1418_v19 }
  0x2e   : > { %1295 = vmatprep.subr.bf16.mxu1 %v1419_v20 }
  0x30   : > { %1264 = vmatpush3.bf16.msra.mxu0 %v1418_v19 }
  0x31   : > { %1296 = vmatpush3.bf16.msra.mxu1 %v1419_v20  ;;  %1313 = vmatprep.subr.bf16.mxu0 %v1424_v23 }
  0x32   : > { %1345 = vmatprep.subr.bf16.mxu1 %v1424_v23 }
  0x33   : > { %1266 = vmatmul.mubr.bf16.vlgmr.msra.gmra.mxu0 %v1088_v25 }
  0x34   : > { %1298 = vmatmul.mubr.bf16.vlgmr.msra.gmra.mxu1 %v1104_v27  ;;  %1314 = vmatpush3.bf16.msra.mxu0 %v1424_v23 }
  0x35   : > { %1353 = vmatpush3.bf16.msra.mxu1 %v1424_v23  ;;  %1315 = vmatprep.subr.bf16.mxu0 %v1425_v28 }
  0x36   : > { %1346 = vmatprep.subr.bf16.mxu1 %v1425_v28  ;;  %1269 = vmatprep.mubr.bf16.mxu0 %v1089_v29 }
  0x37   : > { %1301 = vmatprep.mubr.bf16.mxu1 %v1105_v30 }
  0x38   : > { %1316 = vmatpush3.bf16.msra.mxu0 %v1425_v28 }
  0x39   : > { %1354 = vmatpush3.bf16.msra.mxu1 %v1425_v28  ;;  %1317 = vmatprep.subr.bf16.mxu0 %v1430_v33 }
  0x3a   : > { %1347 = vmatprep.subr.bf16.mxu1 %v1430_v33 }
  0x3b   : > { %1270 = vmatmul.mubr.bf16.gmra.mxu0 %v1090_v34 }
  0x3c   : > { %1302 = vmatmul.mubr.bf16.gmra.mxu1 %v1106_v37  ;;  %1318 = vmatpush3.bf16.msra.mxu0 %v1430_v33 }
  0x3d   : > { %1355 = vmatpush3.bf16.msra.mxu1 %v1430_v33  ;;  %1319 = vmatprep.subr.bf16.mxu0 %v1431_v38 }
  0x3e   : > { %1348 = vmatprep.subr.bf16.mxu1 %v1431_v38  ;;  %1273 = vmatprep.mubr.bf16.mxu0 %v1091_v39 }
  0x3f   : > { %1305 = vmatprep.mubr.bf16.mxu1 %v1107_v40 }
  0x40   : > { %1320 = vmatpush3.bf16.msra.mxu0 %v1431_v38 }
  0x41   : > { %1356 = vmatpush3.bf16.msra.mxu1 %v1431_v38  ;;  %1321 = vmatprep.subr.bf16.mxu0 %v1436_v43 }
  0x42   : > { %1349 = vmatprep.subr.bf16.mxu1 %v1436_v43 }
  0x43   : > { %1274 = vmatmul.mubr.bf16.gmra.mxu0 %v1092_v44  ;;  %v1630_v44 = vld [vmem:[%s231_s7] ss:$0 sm:$0xff] }
  0x44   : > { %1306 = vmatmul.mubr.bf16.gmra.mxu1 %v1108_v47  ;;  %1322 = vmatpush3.bf16.msra.mxu0 %v1436_v43 }
  0x45   : > { %1357 = vmatpush3.bf16.msra.mxu1 %v1436_v43  ;;  %1323 = vmatprep.subr.bf16.mxu0 %v1437_v48 }
  0x46   : > { %1350 = vmatprep.subr.bf16.mxu1 %v1437_v48  ;;  %1277 = vmatprep.mubr.bf16.mxu0 %v1093_v49 }
  0x47   : > { %1309 = vmatprep.mubr.bf16.mxu1 %v1109_v50 }
  0x48   : > { %1324 = vmatpush3.bf16.msra.mxu0 %v1437_v48 }
  0x49   : > { %1358 = vmatpush3.bf16.msra.mxu1 %v1437_v48  ;;  %1325 = vmatprep.subr.bf16.mxu0 %v1442_v53 }
  0x4a   : > { %1351 = vmatprep.subr.bf16.mxu1 %v1442_v53 }
  0x4b   : > { %1278 = vmatmul.mubr.bf16.gmra.mxu0 %v1094_v54 }
  0x4c   : > { %1310 = vmatmul.mubr.bf16.gmra.mxu1 %v1110_v55  ;;  %1326 = vmatpush3.bf16.msra.mxu0 %v1442_v53 }
  0x4d   : > { %1359 = vmatpush3.bf16.msra.mxu1 %v1442_v53  ;;  %1327 = vmatprep.subr.bf16.mxu0 %v1443_v56 }
  0x4e   : > { %1352 = vmatprep.subr.bf16.mxu1 %v1443_v56  ;;  %1329 = vmatprep.mubr.bf16.mxu0 %v1444_v57 }
  0x4f   : > { %1337 = vmatprep.mubr.bf16.mxu1 %v1445_v58 }
  0x50   : > { %1328 = vmatpush3.bf16.msra.mxu0 %v1443_v56 }
  0x51   : > { %1360 = vmatpush3.bf16.msra.mxu1 %v1443_v56 }
  0x53   : > { %1330 = vmatmul.mubr.bf16.vlgmr.msra.gmra.mxu0 %v1446_v59 }
  0x54   : > { %1338 = vmatmul.mubr.bf16.vlgmr.msra.gmra.mxu1 %v1447_v60  ;;  %1333 = vmatprep.mubr.bf16.mxu0 %v1448_v61 }
  0x55   : > { %1341 = vmatprep.mubr.bf16.mxu1 %v1449_v62 }
  0x5b   : > { %1334 = vmatmul.mubr.bf16.gmra.mxu0 %v1450_v63 }
  0x5c   : > { %1342 = vmatmul.mubr.bf16.gmra.mxu1 %v1451_v0 }
  0xf3   : > { %v1267_v1 = vpop.f32.mrf.mxu0 }
  0xf4   : > { %v1299_v2 = vpop.f32.mrf.mxu1 }
  0xf5   : > { %v423_v3 = vpop.f32.mrf.mxu0  ;;  %v595_v34 = vadd.f32 %v1299_v2, %v1267_v1 }
  0xf6   : > { %v586_v4 = vpop.f32.mrf.mxu1 }
  0xf7   : > { %v1268_v5 = vpop.f32.mrf.mxu0  ;;  %v587_v38 = vadd.f32 %v586_v4, %v423_v3 }
  0xf8   : > { %v1300_v6 = vpop.f32.mrf.mxu1 }
  0xf9   : > { %v426_v7 = vpop.f32.mrf.mxu0  ;;  %v598_v39 = vadd.f32 %v1300_v6, %v1268_v5 }
  0xfa   : > { %v589_v8 = vpop.f32.mrf.mxu1 }
  0xfb   : > { %v1271_v9 = vpop.f32.mrf.mxu0  ;;  %v590_v47 = vadd.f32 %v589_v8, %v426_v7 }
  0xfc   : > { %v1303_v10 = vpop.f32.mrf.mxu1 }
  0xfd   : > { %v1608_v11 = vpop.f32.mrf.mxu0  ;;  %v611_v63 = vadd.f32 %v1303_v10, %v1271_v9 }
  0xfe   : > { %v1610_v12 = vpop.f32.mrf.mxu1 }
  0xff   : > { %v1612_v13 = vpop.f32.mrf.mxu0 }
 0x100   : > { %v1614_v14 = vpop.f32.mrf.mxu1 }
 0x101   : > { %v1616_v15 = vpop.f32.mrf.mxu0  ;;  %v614_v9 = vadd.f32 %v1614_v14, %v1612_v13 }
 0x102   : > { %v1618_v16 = vpop.f32.mrf.mxu1 }
 0x103   : > { %v1275_v17 = vpop.f32.mrf.mxu0 }
 0x104   : > { %v1307_v18 = vpop.f32.mrf.mxu1 }
 0x105   : > { %v455_v19 = vpop.f32.mrf.mxu0  ;;  %v627_v36 = vadd.f32 %v1307_v18, %v1275_v17  ;;  %v603_v17 = vadd.f32 %v1610_v12, %v1608_v11 }
 0x106   : > { %v618_v20 = vpop.f32.mrf.mxu1 }
 0x107   : > { %v1276_v21 = vpop.f32.mrf.mxu0  ;;  %v619_v42 = vadd.f32 %v618_v20, %v455_v19 }
 0x108   : > { %v1308_v22 = vpop.f32.mrf.mxu1 }
 0x109   : > { %v458_v23 = vpop.f32.mrf.mxu0  ;;  %v630_v43 = vadd.f32 %v1308_v22, %v1276_v21 }
 0x10a   : > { %v621_v24 = vpop.f32.mrf.mxu1 }
 0x10b   : > { %v1279_v25 = vpop.f32.mrf.mxu0  ;;  %v622_v51 = vadd.f32 %v621_v24, %v458_v23 }
 0x10c   : > { %v1311_v26 = vpop.f32.mrf.mxu1 }
 0x10d   : > { %v471_v27 = vpop.f32.mrf.mxu0  ;;  %v643_v4 = vadd.f32 %v1311_v26, %v1279_v25  ;;  %v606_v25 = vadd.f32 %v1618_v16, %v1616_v15 }
 0x10e   : > { %v634_v28 = vpop.f32.mrf.mxu1 }
 0x10f   : > { %v1280_v29 = vpop.f32.mrf.mxu0  ;;  %v635_v20 = vadd.f32 %v634_v28, %v471_v27 }
 0x110   : > { %v1312_v30 = vpop.f32.mrf.mxu1 }
 0x111   : > { %v1620_v31 = vpop.f32.mrf.mxu0  ;;  %v646_v21 = vadd.f32 %v1312_v30, %v1280_v29 }
 0x112   : > { %v1622_v32 = vpop.f32.mrf.mxu1 }
 0x113   : > { %v1331_v33 = vpop.f32.mrf.mxu0  ;;  %v638_v13 = vadd.f32 %v1622_v32, %v1620_v31 }
 0x114   : > { %v1339_v35 = vpop.f32.mrf.mxu1  ;;  %v877_v40 = vadd.f32 %v1331_v33, %v595_v34 }
 0x115   : > { %v812_v37 = vpop.f32.mrf.mxu0  ;;  %v885_v45 = vadd.f32 %v1339_v35, %v627_v36 }
 0x116   : > { %v844_v41 = vpop.f32.mrf.mxu1  ;;  %v875_v48 = vadd.f32 %v812_v37, %v587_v38  ;;  %v899_v55 = vadd.f32 %v1630_v44, %v877_v40 }
 0x117   : > { %v1332_v46 = vpop.f32.mrf.mxu0  ;;  %v883_v52 = vadd.f32 %v844_v41, %v619_v42  ;;  %v907_v59 = vadd.f32 %v1630_v44, %v885_v45 }
 0x118   : > { %v878_v49 = vadd.f32 %v1332_v46, %v598_v39  ;;  %v1340_v50 = vpop.f32.mrf.mxu1  ;;  %v897_v0 = vadd.f32 %v1630_v44, %v875_v48 }
 0x119   : > { %v886_v53 = vadd.f32 %v1340_v50, %v630_v43  ;;  %v815_v54 = vpop.f32.mrf.mxu0  ;;  %v905_v5 = vadd.f32 %v1630_v44, %v883_v52 }
 0x11a   : > { %v900_v56 = vadd.f32 %v1630_v44, %v878_v49  ;;  %v876_v57 = vadd.f32 %v815_v54, %v590_v47  ;;  %v847_v58 = vpop.f32.mrf.mxu1 }
 0x11b   : > { %v908_v60 = vadd.f32 %v1630_v44, %v886_v53  ;;  %v884_v61 = vadd.f32 %v847_v58, %v622_v51  ;;  %v1335_v62 = vpop.f32.mrf.mxu0 }
 0x11c   : > { %v1162_v1 = vpack.c.bf16 %v900_v56, %v899_v55  ;;  %v898_v2 = vadd.f32 %v1630_v44, %v876_v57  ;;  %v1343_v3 = vpop.f32.mrf.mxu1  ;;  %v881_v18 = vadd.f32 %v1335_v62, %v611_v63 }
 0x11d   : > { %v1182_v6 = vpack.c.bf16 %v908_v60, %v907_v59  ;;  %v906_v7 = vadd.f32 %v1630_v44, %v884_v61  ;;  %v828_v8 = vpop.f32.mrf.mxu0  ;;  %v889_v23 = vadd.f32 %v1343_v3, %v643_v4 }
 0x11e   : > { %1194 = vst [vmem:[%s1638_s12 + $0x8] sm:$0xff] %v1162_v1   ;;  %v1157_v10 = vpack.c.bf16 %v898_v2, %v897_v0  ;;  %v860_v19 = vpop.f32.mrf.mxu1  ;;  %v879_v26 = vadd.f32 %v828_v8, %v603_v17  ;;  %v903_v28 = vadd.f32 %v1630_v44, %v881_v18 }
 0x11f   : > { %1198 = vst [vmem:[%s1638_s12 + $0x28] sm:$0xff] %v1182_v6   ;;  %v1177_v22 = vpack.c.bf16 %v906_v7, %v905_v5  ;;  %v1336_v24 = vpop.f32.mrf.mxu0  ;;  %v887_v14 = vadd.f32 %v860_v19, %v635_v20  ;;  %v911_v16 = vadd.f32 %v1630_v44, %v889_v23 }
 0x120   : > { %1158 = vst [vmem:[%s1638_s12] sm:$0xff] %v1157_v10   ;;  %v882_v11 = vadd.f32 %v1336_v24, %v614_v9  ;;  %v1344_v12 = vpop.f32.mrf.mxu1  ;;  %v901_v31 = vadd.f32 %v1630_v44, %v879_v26 }
 0x121   : > { %1197 = vst [vmem:[%s1638_s12 + $0x20] sm:$0xff] %v1177_v22   ;;  %v890_v33 = vadd.f32 %v1344_v12, %v646_v21  ;;  %v831_v27 = vpop.f32.mrf.mxu0  ;;  %v909_v37 = vadd.f32 %v1630_v44, %v887_v14 }
 0x122   : > { %v904_v29 = vadd.f32 %v1630_v44, %v882_v11  ;;  %v880_v30 = vadd.f32 %v831_v27, %v606_v25  ;;  %v863_v15 = vpop.f32.mrf.mxu1 }
 0x123   : > { %v912_v34 = vadd.f32 %v1630_v44, %v890_v33  ;;  %v888_v35 = vadd.f32 %v863_v15, %v638_v13 }
 0x124   : > { %v1172_v32 = vpack.c.bf16 %v904_v29, %v903_v28  ;;  %v902_v36 = vadd.f32 %v1630_v44, %v880_v30 }
 0x125   : > { %v1192_v38 = vpack.c.bf16 %v912_v34, %v911_v16  ;;  %v910_v39 = vadd.f32 %v1630_v44, %v888_v35 }
 0x126   : > { %1196 = vst [vmem:[%s1638_s12 + $0x18] sm:$0xff] %v1172_v32   ;;  %v1167_v40 = vpack.c.bf16 %v902_v36, %v901_v31 }
 0x127   : > { %1200 = vst [vmem:[%s1638_s12 + $0x38] sm:$0xff] %v1192_v38   ;;  %v1187_v41 = vpack.c.bf16 %v910_v39, %v909_v37 }
 0x128   : > { %1195 = vst [vmem:[%s1638_s12 + $0x10] sm:$0xff] %v1167_v40  }
 0x129   : > { %1199 = vst [vmem:[%s1638_s12 + $0x30] sm:$0xff] %v1187_v41  }
 0x12a PF: > { %s13_s16 = sadd.s32 1, %s1490_s16   ;;  %s1688_s12 = smov %s1482_s14 }
 0x12b   : > { %p10_p7 = scmp.ge.s32.totalorder %s13_s16, 10   ;;  %s1689_s13 = smov %s1486_s15 }
 0x12c   : > { %s1690_s14 = smov %s1693_s17  ;;  %s1691_s15 = smov %s1697_s18 }
 0x12d   :  { %12 = sbr.rel (!%p10_p7) target bundleno = 3 (0x3), region = 70 }

// kernel: hcn_forward.16
= control target key start
LH: loop header
LB: loop body
LE: loop exit
PB: predicated region body
PF: predicated region fallthrough
CT: control target
= control target key end

     0   :  { %s286_s6 = smov 0   ;;  %s303_s0 = inlined_call_operand.vmem [shape: bf16[8,1,8,8,256], index: 0, kind: input, shape index: {}]   ;;  %s304_s1 = inlined_call_operand.vmem [shape: bf16[8,8,8,128], index: 1, kind: output, shape index: {}]  }
   0x1 LB: > { %s220_s7 = sadd.s32 4294967295, %s274_s6   ;;  %p224_p0 = scmp.ge.s32.totalorder %s274_s6, 1  ;;  %s274_s6 = sphi %s286_s6, %s11_s6  }
   0x2   : > { %p87_p1 = scmp.lt.s32.totalorder %s274_s6, 9 }
   0x4   : > { %p88_p2 = pnand %p224_p0, %p87_p1 }
   0x5   : > { %p107_p3 = scmp.lt.s32.totalorder (!%p88_p2), %s220_s7, 7 }
   0x6   : > { %91 = sbr.rel (%p88_p2) target bundleno = 25 (0x19), region = 24 }
   0xb   : > { %s306_s7 = smov (!%p107_p3, %s220_s7), 7 }
   0xc   : > { %s231_s8 = sshll.u32 %s306_s7, 6  ;;  %s232_s12 = sshll.u32 %s306_s7, 5 }
   0xd   : > { %s111_s11 = scalar_lea.vmem %s303_s0, %s231_s8  ;;  %s116_s15 = scalar_lea.vmem %s304_s1, %s232_s12 }
   0xe   : > { %v117_v0 = vld [vmem:[%s111_s11] sm:$0xff]  ;;  %v118_v1 = vld [vmem:[%s111_s11 + $0x8] sm:$0xff]  ;;  %v119_v2 = vld [vmem:[%s111_s11 + $0x10] sm:$0xff] }
   0xf   : > { %v133_v3 = vrot.slane %v117_v0, 4  ;;  %v134_v4 = vrot.slane %v118_v1, 4  ;;  %v120_v5 = vld [vmem:[%s111_s11 + $0x18] sm:$0xff]  ;;  %v135_v6 = vrot.slane %v119_v2, 4  ;;  %v121_v7 = vld [vmem:[%s111_s11 + $0x20] sm:$0xff]  ;;  %v122_v8 = vld [vmem:[%s111_s11 + $0x28] sm:$0xff] }
  0x10   : > { %v136_v9 = vrot.slane %v120_v5, 4  ;;  %v137_v10 = vrot.slane %v121_v7, 4  ;;  %v138_v11 = vrot.slane %v122_v8, 4  ;;  %v123_v12 = vld [vmem:[%s111_s11 + $0x30] sm:$0xff]  ;;  %v124_v13 = vld [vmem:[%s111_s11 + $0x38] sm:$0xff] }
  0x11   : > { %v149_v14 = vmax.bf16 %v133_v3, %v117_v0  ;;  %v150_v15 = vmax.bf16 %v134_v4, %v118_v1  ;;  %v151_v16 = vmax.bf16 %v135_v6, %v119_v2  ;;  %v139_v17 = vrot.slane %v123_v12, 4 }
  0x12   : > { %v152_v18 = vmax.bf16 %v136_v9, %v120_v5  ;;  %v153_v19 = vmax.bf16 %v137_v10, %v121_v7  ;;  %v154_v20 = vmax.bf16 %v138_v11, %v122_v8  ;;  %v140_v21 = vrot.slane %v124_v13, 4 }
  0x13   : > { %v253_v22 = vcombine.low %v149_v14, %v150_v15  ;;  %v155_v23 = vmax.bf16 %v139_v17, %v123_v12 }
  0x14   : > { %v254_v24 = vcombine.low %v151_v16, %v152_v18  ;;  %v256_v25 = vcombine.low %v153_v19, %v154_v20  ;;  %v156_v26 = vmax.bf16 %v140_v21, %v124_v13 }
  0x15   : > { %237 = vst [vmem:[%s116_s15] sm:$0xff] %v253_v22  }
  0x16   : > { %255 = vst [vmem:[%s116_s15 + $0x8] sm:$0xff] %v254_v24   ;;  %257 = vst [vmem:[%s116_s15 + $0x10] sm:$0xff] %v256_v25   ;;  %v258_v27 = vcombine.low %v155_v23, %v156_v26 }
  0x18   : > { %259 = vst [vmem:[%s116_s15 + $0x18] sm:$0xff] %v258_v27  }
  0x19 PF: > { %s11_s6 = sadd.s32 1, %s274_s6  }
  0x1a   : > { %p8_p4 = scmp.ge.s32.totalorder %s11_s6, 10  }
  0x1c   :  { %10 = sbr.rel (!%p8_p4) target bundleno = 1 (0x1), region = 54 }

// kernel: hcn_forward.18
= control target key start
LH: loop header
LB: loop body
LE: loop exit
PB: predicated region body
PF: predicated region fallthrough
CT: control target
= control target key end

     0   :  { %s235_s6 = smov 0   ;;  %s252_s0 = inlined_call_operand.vmem [shape: bf16[8,1,4,4,256], index: 0, kind: input, shape index: {}]   ;;  %s253_s1 = inlined_call_operand.vmem [shape: bf16[8,4,4,128], index: 1, kind: output, shape index: {}]  }
   0x1 LB: > { %s196_s7 = sadd.s32 4294967295, %s223_s6   ;;  %p200_p0 = scmp.ge.s32.totalorder %s223_s6, 1  ;;  %s223_s6 = sphi %s235_s6, %s11_s6  }
   0x2   : > { %p87_p1 = scmp.lt.s32.totalorder %s223_s6, 9 }
   0x4   : > { %p88_p2 = pnand %p200_p0, %p87_p1 }
   0x5   : > { %p107_p3 = scmp.lt.s32.totalorder (!%p88_p2), %s196_s7, 7 }
   0x6   : > { %91 = sbr.rel (%p88_p2) target bundleno = 21 (0x15), region = 24 }
   0xb   : > { %s255_s7 = smov (!%p107_p3, %s196_s7), 7 }
   0xc   : > { %s207_s8 = sshll.u32 %s255_s7, 4  ;;  %s208_s12 = sshll.u32 %s255_s7, 3 }
   0xd   : > { %s111_s11 = scalar_lea.vmem %s252_s0, %s207_s8  ;;  %s116_s15 = scalar_lea.vmem %s253_s1, %s208_s12 }
   0xe   : > { %v117_v0 = vld [vmem:[%s111_s11] sm:$0xf]  ;;  %v118_v1 = vld [vmem:[%s111_s11 + $0x4] sm:$0xf]  ;;  %v119_v2 = vld [vmem:[%s111_s11 + $0x8] sm:$0xf] }
   0xf   : > { %v125_v3 = vrot.slane %v117_v0, 2  ;;  %v126_v4 = vrot.slane %v118_v1, 2  ;;  %v127_v5 = vrot.slane %v119_v2, 2  ;;  %v120_v6 = vld [vmem:[%s111_s11 + $0xc] sm:$0xf] }
  0x10   : > { %v128_v7 = vrot.slane %v120_v6, 2 }
  0x11   : > { %v133_v8 = vmax.bf16 %v125_v3, %v117_v0  ;;  %v134_v9 = vmax.bf16 %v126_v4, %v118_v1  ;;  %v135_v10 = vmax.bf16 %v127_v5, %v119_v2 }
  0x12   : > { %v136_v11 = vmax.bf16 %v128_v7, %v120_v6 }
  0x13   : > { %137 = vst [vmem:[%s116_s15] sm:$0x3] %v133_v8  ;;  %138 = vst [vmem:[%s116_s15 + $0x2] sm:$0x3] %v134_v9 }
  0x14   : > { %139 = vst [vmem:[%s116_s15 + $0x4] sm:$0x3] %v135_v10  ;;  %140 = vst [vmem:[%s116_s15 + $0x6] sm:$0x3] %v136_v11 }
  0x15 PF: > { %s11_s6 = sadd.s32 1, %s223_s6  }
  0x16   : > { %p8_p4 = scmp.ge.s32.totalorder %s11_s6, 10  }
  0x18   :  { %10 = sbr.rel (!%p8_p4) target bundleno = 1 (0x1), region = 54 }

// kernel: hcn_forward.20
= control target key start
LH: loop header
LB: loop body
LE: loop exit
PB: predicated region body
PF: predicated region fallthrough
CT: control target
= control target key end

     0   :  { %s198_s6 = smov 0   ;;  %s218_s0 = inlined_call_operand.vmem [shape: bf16[4,1,2,2,256], index: 0, kind: input, shape index: {}]   ;;  %s219_s1 = inlined_call_operand.vmem [shape: bf16[4,2,2,128], index: 1, kind: output, shape index: {}]  }
   0x1 LB: > { %s177_s7 = sadd.s32 4294967295, %s200_s6   ;;  %p181_p0 = scmp.ge.s32.totalorder %s200_s6, 1  ;;  %s200_s6 = sphi %s198_s6, %s11_s6  }
   0x2   : > { %p86_p1 = scmp.lt.s32.totalorder %s200_s6, 5 }
   0x4   : > { %p87_p2 = pnand %p181_p0, %p86_p1 }
   0x5   : > { %p104_p3 = scmp.lt.s32.totalorder (!%p87_p2), %s177_s7, 3 }
   0x6   : > { %90 = sbr.rel (%p87_p2) target bundleno = 20 (0x14), region = 24 }
   0xb   : > { %s221_s7 = smov (!%p104_p3, %s177_s7), 3 }
   0xc   : > { %s182_s8 = sshll.u32 %s221_s7, 2  ;;  %s183_s12 = sshll.u32 %s221_s7, 1 }
   0xd   : > { %s107_s11 = scalar_lea.vmem %s218_s0, %s182_s8  ;;  %s111_s15 = scalar_lea.vmem %s219_s1, %s183_s12 }
   0xe   : > { %v112_v0 = vld [vmem:[%s107_s11] sm:$0x3]  ;;  %v113_v1 = vld [vmem:[%s107_s11 + $0x2] sm:$0x3] }
   0xf   : > { %v116_v2 = vrot.slane %v112_v0, 1  ;;  %v117_v3 = vrot.slane %v113_v1, 1 }
  0x11   : > { %v120_v4 = vmax.bf16 %v116_v2, %v112_v0  ;;  %v121_v5 = vmax.bf16 %v117_v3, %v113_v1 }
  0x13   : > { %122 = vst [vmem:[%s111_s15] sm:$0x1] %v120_v4  ;;  %123 = vst [vmem:[%s111_s15 + $0x1] sm:$0x1] %v121_v5 }
  0x14 PF: > { %s11_s6 = sadd.s32 1, %s200_s6  }
  0x15   : > { %p8_p4 = scmp.ge.s32.totalorder %s11_s6, 6  }
  0x17   :  { %10 = sbr.rel (!%p8_p4) target bundleno = 1 (0x1), region = 54 }

// kernel: hcn_forward.17
= control target key start
LH: loop header
LB: loop body
LE: loop exit
PB: predicated region body
PF: predicated region fallthrough
CT: control target
= control target key end

     0   :  { %s3398_s12 = smov 0   ;;  %s3400_s13 = smov 0   ;;  %s3809_s0 = inlined_call_operand.vmem [shape: bf16[2,4,176,128], index: 0, kind: input, shape index: {}]   ;;  %s3810_s1 = inlined_call_operand.vmem [shape: bf16[2,9,128,128], index: 1, kind: input, shape index: {}]   ;;  %s3811_s2 = inlined_call_operand.vmem [shape: f32[2,1,128], index: 2, kind: input, shape index: {}]   ;;  %s3812_s3 = inlined_call_operand.vmem [shape: bf16[2,4,4,8,128], index: 3, kind: output, shape index: {}]  }
   0x1   :  { %s3402_s14 = smov 0   ;;  %s3404_s15 = smov 0  }
   0x2   :  { %s3406_s16 = smov 0  }
   0x3 LB: > { %s22_s17 = sadd.s32 1, %s3368_s14  ;;  %s25_s18 = sadd.s32 1, %s3372_s15  ;;  %s3376_s16 = sphi %s3406_s16, %s13_s16   ;;  %s3372_s15 = sphi %s3404_s15, %s3816_s15   ;;  %s3368_s14 = sphi %s3402_s14, %s3815_s14   ;;  %s3364_s13 = sphi %s3400_s13, %s3814_s13   ;;  %s3360_s12 = sphi %s3398_s12, %s3813_s12  }
   0x4   : > { %p23_p0 = scmp.ge.s32.totalorder %s22_s17, 4  ;;  %p2463_p1 = scmp.ge.s32.totalorder %s3376_s16, 1 }
   0x5   : > { %p175_p2 = scmp.lt.s32.totalorder %s3376_s16, 9 }
   0x6   : > { %s3818_s17 = smov (%p23_p0, %s22_s17), 0  ;;  %s3820_s18 = smov (!%p23_p0, %s25_s18), %s3372_s15 }
   0x7   : > { %p176_p3 = pnand %p2463_p1, %p175_p2  ;;  %p27_p4 = scmp.ge.s32.totalorder %s3820_s18, 2 }
   0x8   : > { %p215_p5 = scmp.lt.s32.totalorder (!%p176_p3), %s3364_s13, 1  ;;  %p217_p6 = scmp.lt.s32.totalorder (!%p176_p3), %s3360_s12, 3 }
   0x9   : > { %s3822_s18 = smov (%p27_p4, %s3820_s18), 0  ;;  %179 = sbr.rel (%p176_p3) target bundleno = 392 (0x188), region = 32 }
   0xe   : > { %s3824_s13 = smov (!%p215_p5, %s3364_s13), 1  ;;  %s3826_s12 = smov (!%p217_p6, %s3360_s12), 3  ;;  %vm336_vm0 = vsmask.f32 7424  ;;  %vm716_vm1 = vcmask 1046528  }
   0xf   : > { %s3179_s19 = smul.u32 576, %s3824_s13  ;;  %s231_s5 = scalar_lea.vmem %s3811_s2, %s3824_s13 }
  0x10   : > { %s3177_s23 = smul.u32 22, %s3826_s12  ;;  %s2466_s6 = sshll.u32 %s3826_s12, 2 }
  0x11   : > { %s3436_s22 = scalar_lea.vmem %s3810_s1, %s3179_s19  ;;  %s3178_s24 = smul.u32 88, %s3824_s13 }
  0x12   : > { %v3220_v0 = vld [vmem:[%s3436_s22 + $0x78] sm:$0xff]   ;;  %v3222_v2 = vld [vmem:[%s3436_s22 + $0x70] sm:$0xff]   ;;  %v3224_v4 = vld [vmem:[%s3436_s22 + $0x68] sm:$0xff]   ;;  %s2467_s7 = sshll.u32 %s3824_s13, 4 }
  0x13   : > { %v3221_v1 = vld [vmem:[%s3436_s22 + $0x38] sm:$0xff]   ;;  %2873 = vmatprep.subr.bf16.mxu0 %v3220_v0  ;;  %v3223_v3 = vld [vmem:[%s3436_s22 + $0x30] sm:$0xff]   ;;  %v3225_v5 = vld [vmem:[%s3436_s22 + $0x28] sm:$0xff]   ;;  %s221_s25 = sadd.s32 %s3178_s24, %s3177_s23  ;;  %s238_s8 = sadd.s32 %s2467_s7, %s2466_s6 }
  0x14   : > { %2905 = vmatprep.subr.bf16.mxu1 %v3221_v1  ;;  %2874 = vmatpush3.bf16.msra.mxu0 %v3220_v0  ;;  %v3226_v6 = vld [vmem:[%s3436_s22 + $0x60] sm:$0xff]   ;;  %s2464_s26 = sshll.u32 %s221_s25, 2  ;;  %v3228_v8 = vld [vmem:[%s3436_s22 + $0x58] sm:$0xff]   ;;  %v3230_v10 = vld [vmem:[%s3436_s22 + $0x50] sm:$0xff]   ;;  %s2468_s9 = sshll.u32 %s238_s8, 2 }
  0x15   : > { %2906 = vmatpush3.bf16.msra.mxu1 %v3221_v1  ;;  %2875 = vmatprep.subr.bf16.mxu0 %v3222_v2  ;;  %v3227_v7 = vld [vmem:[%s3436_s22 + $0x20] sm:$0xff]   ;;  %v3229_v9 = vld [vmem:[%s3436_s22 + $0x18] sm:$0xff]   ;;  %s3453_s29 = scalar_lea.vmem %s3809_s0, %s2464_s26  ;;  %v3231_v11 = vld [vmem:[%s3436_s22 + $0x10] sm:$0xff]   ;;  %s240_s12 = scalar_lea.vmem %s3812_s3, %s2468_s9 }
  0x16   : > { %2907 = vmatprep.subr.bf16.mxu1 %v3223_v3  ;;  %v243_v12 = vld [vmem:[%s3453_s29] sm:$0xf]  ;;  %v3459_v13 = vld [vmem:[%s3453_s29 + $0x4] sm:$0xf]  ;;  %v3463_v15 = vld [vmem:[%s3453_s29 + $0x8] sm:$0xff]  }
  0x17   : > { %v2485_v14 = vcombine.low %v243_v12, %v3459_v13  ;;  %v3466_v16 = vld [vmem:[%s3453_s29 + $0x10] sm:$0xff]   ;;  %v345_v19 = vshll.u32 %v3463_v15, 16  ;;  %v3232_v20 = vld [vmem:[%s3436_s22 + $0x48] sm:$0xff]   ;;  %v3234_v24 = vld [vmem:[%s3436_s22 + $0x40] sm:$0xff]   ;;  %v349_v25 = vshrl.u32 %v3463_v15, 16 }
  0x18   : > { %2876 = vmatpush3.bf16.msra.mxu0 %v3222_v2  ;;  %v3233_v21 = vld [vmem:[%s3436_s22 + $0x8] sm:$0xff]   ;;  %v353_v26 = vshll.u32 %v3466_v16, 16  ;;  %v3475_v28 = vld [vmem:[%s3453_s29 + $0x18] sm:$0xff]   ;;  %v3235_v29 = vld [vmem:[%s3436_s22] sm:$0xff]   ;;  %v357_v31 = vshrl.u32 %v3466_v16, 16 }
  0x19   : > { %2908 = vmatpush3.bf16.msra.mxu1 %v3223_v3  ;;  %2877 = vmatprep.subr.bf16.mxu0 %v3224_v4  ;;  %v338_v17 = vshrl.u32 %v2485_v14, 16  ;;  %v340_v18 = vshll.u32 %v2485_v14, 16  ;;  %v347_v23 = vrot.slane %v345_v19, 1  ;;  %v361_v32 = vshll.u32 %v3475_v28, 16  ;;  %v3482_v35 = vld [vmem:[%s3453_s29 + $0x20] sm:$0xff]   ;;  %v3239_v36 = vld [vmem:[%s3436_s22 + $0xb8] sm:$0xff]  }
  0x1a   : > { %2909 = vmatprep.subr.bf16.mxu1 %v3225_v5  ;;  %2921 = vmatprep.mubr.bf16.mxu1 %v2485_v14  ;;  %v355_v34 = vrot.slane %v353_v26, 1  ;;  %v3240_v37 = vld [vmem:[%s3436_s22 + $0xf8] sm:$0xff]   ;;  %v3487_v40 = vld [vmem:[%s3453_s29 + $0x28] sm:$0xff]   ;;  %v365_v42 = vshrl.u32 %v3475_v28, 16  ;;  %v369_v43 = vshll.u32 %v3482_v35, 16  ;;  %v3241_v44 = vld [vmem:[%s3436_s22 + $0xb0] sm:$0xff]  }
  0x1b   : > { %v342_v22 = vrot.slane %v340_v18, 1  ;;  %v351_v33 = vor.u32 %v349_v25, %v347_v23  ;;  %v363_v39 = vrot.slane %v361_v32, 1  ;;  %v3242_v45 = vld [vmem:[%s3436_s22 + $0xf0] sm:$0xff]   ;;  %v373_v47 = vshrl.u32 %v3482_v35, 16  ;;  %v3245_v52 = vld [vmem:[%s3436_s22 + $0xa8] sm:$0xff]   ;;  %v3505_v56 = vld [vmem:[%s3453_s29 + $0x38] sm:$0xff]  }
  0x1c   : > { %2878 = vmatpush3.bf16.msra.mxu0 %v3224_v4  ;;  %v359_v38 = vor.u32 %v357_v31, %v355_v34  ;;  %v377_v48 = vshll.u32 %v3487_v40, 16  ;;  %v371_v50 = vrot.slane %v369_v43, 1  ;;  %v3499_v51 = vld [vmem:[%s3453_s29 + $0x30] sm:$0xff]   ;;  %v3246_v53 = vld [vmem:[%s3436_s22 + $0xe8] sm:$0xff]   ;;  %v381_v58 = vshrl.u32 %v3487_v40, 16  ;;  %v3247_v60 = vld [vmem:[%s3436_s22 + $0xa0] sm:$0xff]  }
  0x1d   : > { %2910 = vmatpush3.bf16.msra.mxu1 %v3225_v5  ;;  %2879 = vmatprep.subr.bf16.mxu0 %v3226_v6  ;;  %v343_v27 = vor.u32 %v342_v22, %v338_v17  ;;  %v356_v41 = vsel %vm336_vm0, %v351_v33, %v355_v34  ;;  %v367_v49 = vor.u32 %v365_v42, %v363_v39  ;;  %v385_v59 = vshll.u32 %v3499_v51, 16  ;;  %v3248_v61 = vld [vmem:[%s3436_s22 + $0xe0] sm:$0xff]   ;;  %v3251_v4 = vld [vmem:[%s3436_s22 + $0x98] sm:$0xff]   ;;  %v3253_v12 = vld [vmem:[%s3436_s22 + $0x90] sm:$0xff]  }
  0x1e   : > { %2911 = vmatprep.subr.bf16.mxu1 %v3227_v7  ;;  %v364_v46 = vsel %vm336_vm0, %v359_v38, %v363_v39  ;;  %v375_v54 = vor.u32 %v373_v47, %v371_v50  ;;  %v379_v55 = vrot.slane %v377_v48, 1  ;;  %v3513_v62 = vld [vmem:[%s3453_s29 + $0x40] ss:$0 sps:$4 sm:$0x11]   ;;  %v389_v0 = vshrl.u32 %v3499_v51, 16  ;;  %v3252_v5 = vld [vmem:[%s3436_s22 + $0xd8] sm:$0xff]  }
  0x1f   : > { %v348_v30 = vsel %vm336_vm0, %v343_v27, %v347_v23  ;;  %v372_v57 = vsel %vm336_vm0, %v367_v49, %v371_v50  ;;  %v393_v1 = vshll.u32 %v3505_v56, 16  ;;  %v387_v3 = vrot.slane %v385_v59, 1  ;;  %v3254_v14 = vld [vmem:[%s3436_s22 + $0xd0] sm:$0xff]   ;;  %v3258_v22 = vld [vmem:[%s3436_s22 + $0xc8] sm:$0xff]   ;;  %v3259_v25 = vld [vmem:[%s3436_s22 + $0x80] sm:$0xff]  }
  0x20   : > { %2880 = vmatpush3.bf16.msra.mxu0 %v3226_v6  ;;  %2889 = vmatprep.mubr.bf16.mxu0 %v348_v30  ;;  %v380_v63 = vsel %vm336_vm0, %v375_v54, %v379_v55  ;;  %v383_v2 = vor.u32 %v381_v58, %v379_v55  ;;  %v397_v6 = vshrl.u32 %v3505_v56, 16  ;;  %v3260_v26 = vld [vmem:[%s3436_s22 + $0xc0] sm:$0xff]   ;;  %v3264_v30 = vld [vmem:[%s3436_s22 + $0x138] sm:$0xff]   ;;  %v722_v32 = vrot.slane %v3475_v28, 1  ;;  %v3263_v34 = vld [vmem:[%s3453_s29 + $0x10] sm:$0xff]  }
  0x21   : > { %2912 = vmatpush3.bf16.msra.mxu1 %v3227_v7  ;;  %2881 = vmatprep.subr.bf16.mxu0 %v3228_v8  ;;  %v391_v7 = vor.u32 %v389_v0, %v387_v3  ;;  %v3265_v31 = vld [vmem:[%s3436_s22 + $0x178] sm:$0xff]   ;;  %v3270_v39 = vld [vmem:[%s3436_s22 + $0x128] sm:$0xff]   ;;  %v3269_v42 = vld [vmem:[%s3453_s29 + $0x20] sm:$0xff]   ;;  %v730_v58 = vrot.slane %v3505_v56, 1 }
  0x22   : > { %2913 = vmatprep.subr.bf16.mxu1 %v3229_v9  ;;  %v3268_v38 = vld [vmem:[%s3453_s29 + $0x18] sm:$0xff]   ;;  %v3272_v43 = vld [vmem:[%s3436_s22 + $0x120] sm:$0xff]   ;;  %v3274_v49 = vld [vmem:[%s3453_s29 + $0x28] sm:$0xff]  }
  0x23   : > { %v3273_v47 = vld [vmem:[%s3436_s22 + $0x160] sm:$0xff]   ;;  %v3567_v54 = vld [vmem:[%s3453_s29 + $0x10] sm:$0xff]   ;;  %v1411_v55 = vld [vmem:[%s3453_s29 + $0x8] sm:$0xe] }
  0x24   : > { %2882 = vmatpush3.bf16.msra.mxu0 %v3228_v8  ;;  %v395_v8 = vrot.slane %v393_v1, 1  ;;  %v3280_v0 = vld [vmem:[%s3453_s29 + $0x38] sm:$0xff]   ;;  %v1198_v1 = vshll.u32 %v3567_v54, 16 }
  0x25   : > { %2914 = vmatpush3.bf16.msra.mxu1 %v3229_v9  ;;  %2883 = vmatprep.subr.bf16.mxu0 %v3230_v10  ;;  %v401_v9 = vshll.u32 %v3513_v62, 16 }
  0x26   : > { %2915 = vmatprep.subr.bf16.mxu1 %v3231_v11  ;;  %v396_v17 = vsel %vm336_vm0, %v391_v7, %v395_v8  ;;  %v399_v19 = vor.u32 %v397_v6, %v395_v8  ;;  %v3282_v6 = vld [vmem:[%s3436_s22 + $0x108] sm:$0xff]   ;;  %v1202_v8 = vshrl.u32 %v3567_v54, 16 }
  0x27   : > { %v3283_v7 = vld [vmem:[%s3436_s22 + $0x148] sm:$0xff]  }
  0x28   : > { %2884 = vmatpush3.bf16.msra.mxu0 %v3230_v10  ;;  %v388_v10 = vsel %vm336_vm0, %v383_v2, %v387_v3 }
  0x29   : > { %2916 = vmatpush3.bf16.msra.mxu1 %v3231_v11  ;;  %2885 = vmatprep.subr.bf16.mxu0 %v3232_v20  ;;  %v695_v11 = vld [vmem:[%s3453_s29] sm:$0xe] }
  0x2a   : > { %2917 = vmatprep.subr.bf16.mxu1 %v3233_v21  ;;  %v2526_v18 = vcombine.low %v695_v11, %v3459_v13  ;;  %v1200_v11 = vrot.slane %v1198_v1, 1 }
  0x2c   : > { %2886 = vmatpush3.bf16.msra.mxu0 %v3232_v20  ;;  %v403_v20 = vrot.slane %v401_v9, 1  ;;  %v717_v23 = vrot.slane %v2526_v18, 1 }
  0x2d   : > { %2918 = vmatpush3.bf16.msra.mxu1 %v3233_v21  ;;  %2887 = vmatprep.subr.bf16.mxu0 %v3234_v24  ;;  %v3257_v21 = vld [vmem:[%s3436_s22 + $0x88] sm:$0xff]  }
  0x2e   : > { %2919 = vmatprep.subr.bf16.mxu1 %v3235_v29  ;;  %v404_v13 = vsel %vm336_vm0, %v399_v19, %v403_v20  ;;  %v3284_v19 = vld [vmem:[%s3436_s22 + $0x100] sm:$0xff]  }
  0x2f   : > { %v3285_v20 = vld [vmem:[%s3436_s22 + $0x140] sm:$0xff]  }
  0x30   : > { %2888 = vmatpush3.bf16.msra.mxu0 %v3234_v24  ;;  %v718_v24 = vrot.slane %v3463_v15, 1 }
  0x31   : > { %2920 = vmatpush3.bf16.msra.mxu1 %v3235_v29  ;;  %2937 = vmatprep.subr.bf16.mxu0 %v3239_v36  ;;  %v3262_v29 = vld [vmem:[%s3453_s29 + $0x8] sm:$0xff]  }
  0x32   : > { %2969 = vmatprep.subr.bf16.mxu1 %v3240_v37  ;;  %v719_v27 = vsel %vm716_vm1, %v717_v23, %v718_v24 }
  0x33   : > { %2890 = vmatmul.mubr.bf16.vlgmr.msra.gmra.mxu0 %v356_v41  ;;  %v3271_v41 = vld [vmem:[%s3436_s22 + $0x168] sm:$0xff]  }
  0x34   : > { %2922 = vmatmul.mubr.bf16.vlgmr.msra.gmra.mxu1 %v3463_v15  ;;  %2938 = vmatpush3.bf16.msra.mxu0 %v3239_v36  ;;  %v720_v15 = vrot.slane %v3466_v16, 1  ;;  %v3267_v36 = vld [vmem:[%s3436_s22 + $0x170] sm:$0xff]  }
  0x35   : > { %2970 = vmatpush3.bf16.msra.mxu1 %v3240_v37  ;;  %2939 = vmatprep.subr.bf16.mxu0 %v3241_v44 }
  0x36   : > { %2971 = vmatprep.subr.bf16.mxu1 %v3242_v45  ;;  %2893 = vmatprep.mubr.bf16.mxu0 %v364_v46  ;;  %v721_v33 = vsel %vm716_vm1, %v718_v24, %v720_v15  ;;  %v723_v37 = vsel %vm716_vm1, %v720_v15, %v722_v32  ;;  %v1113_v46 = vld [vmem:[%s3453_s29 + $0x8] sm:$0xf]  ;;  %v3291_v15 = vld [vmem:[%s3436_s22 + $0x1f8] sm:$0xff]  }
  0x37   : > { %2925 = vmatprep.mubr.bf16.mxu1 %v3466_v16  ;;  %v3266_v16 = vld [vmem:[%s3436_s22 + $0x130] sm:$0xff]   ;;  %v3598_v24 = vld [vmem:[%s3453_s29 + $0x28] sm:$0xff]  }
  0x38   : > { %2940 = vmatpush3.bf16.msra.mxu0 %v3241_v44  ;;  %v726_v44 = vrot.slane %v3487_v40, 1 }
  0x39   : > { %2972 = vmatpush3.bf16.msra.mxu1 %v3242_v45  ;;  %2941 = vmatprep.subr.bf16.mxu0 %v3245_v52 }
  0x3a   : > { %2973 = vmatprep.subr.bf16.mxu1 %v3246_v53 }
  0x3b   : > { %2894 = vmatmul.mubr.bf16.gmra.mxu0 %v372_v57  ;;  %v3275_v57 = vld [vmem:[%s3453_s29 + $0x30] sm:$0xff]  }
  0x3c   : > { %2926 = vmatmul.mubr.bf16.gmra.mxu1 %v3475_v28  ;;  %2942 = vmatpush3.bf16.msra.mxu0 %v3245_v52  ;;  %v724_v28 = vrot.slane %v3482_v35, 1  ;;  %v3276_v52 = vld [vmem:[%s3436_s22 + $0x118] sm:$0xff]  }
  0x3d   : > { %2974 = vmatpush3.bf16.msra.mxu1 %v3246_v53  ;;  %2943 = vmatprep.subr.bf16.mxu0 %v3247_v60  ;;  %v3277_v53 = vld [vmem:[%s3436_s22 + $0x158] sm:$0xff]  }
  0x3e   : > { %2975 = vmatprep.subr.bf16.mxu1 %v3248_v61  ;;  %2897 = vmatprep.mubr.bf16.mxu0 %v380_v63  ;;  %v725_v45 = vsel %vm716_vm1, %v722_v32, %v724_v28  ;;  %v727_v48 = vsel %vm716_vm1, %v724_v28, %v726_v44  ;;  %v3293_v28 = vld [vmem:[%s3436_s22 + $0x1f0] sm:$0xff]  }
  0x3f   : > { %2929 = vmatprep.mubr.bf16.mxu1 %v3482_v35  ;;  %v1114_v35 = vld [vmem:[%s3453_s29 + $0xc] sm:$0xf] }
  0x40   : > { %2944 = vmatpush3.bf16.msra.mxu0 %v3247_v60  ;;  %v2583_v50 = vcombine.low %v1113_v46, %v1114_v35  ;;  %v2616_v63 = vcombine.low %v1411_v55, %v1114_v35  ;;  %v1439_v35 = vrot.slane %v3598_v24, 1  ;;  %v3629_v55 = vld [vmem:[%s3453_s29 + $0x40] sm:$0xff]  }
  0x41   : > { %2976 = vmatpush3.bf16.msra.mxu1 %v3248_v61  ;;  %2945 = vmatprep.subr.bf16.mxu0 %v3251_v4  ;;  %v3279_v61 = vld [vmem:[%s3436_s22 + $0x150] sm:$0xff]   ;;  %v1246_v1 = vshll.u32 %v3629_v55, 16 }
  0x42   : > { %2977 = vmatprep.subr.bf16.mxu1 %v3252_v5  ;;  %v1193_v59 = vshll.u32 %v2583_v50, 16  ;;  %v1191_v2 = vshrl.u32 %v2583_v50, 16  ;;  %v1432_v9 = vrot.slane %v2616_v63, 1 }
  0x43   : > { %2898 = vmatmul.mubr.bf16.gmra.mxu0 %v388_v10  ;;  %v3281_v10 = vld [vmem:[%s3453_s29 + $0x40] sm:$0xff]  }
  0x44   : > { %2930 = vmatmul.mubr.bf16.gmra.mxu1 %v3487_v40  ;;  %2946 = vmatpush3.bf16.msra.mxu0 %v3251_v4  ;;  %v728_v40 = vrot.slane %v3499_v51, 1  ;;  %v1195_v3 = vrot.slane %v1193_v59, 1  ;;  %v732_v4 = vrot.slane %v3513_v62, 1  ;;  %v1828_v59 = vld [vmem:[%s3453_s29 + $0x10] sm:$0xf] }
  0x45   : > { %2978 = vmatpush3.bf16.msra.mxu1 %v3252_v5  ;;  %2947 = vmatprep.subr.bf16.mxu0 %v3253_v12  ;;  %v3580_v5 = vld [vmem:[%s3453_s29 + $0x18] sm:$0xff]  }
  0x46   : > { %2979 = vmatprep.subr.bf16.mxu1 %v3254_v14  ;;  %2901 = vmatprep.mubr.bf16.mxu0 %v396_v17  ;;  %v729_v60 = vsel %vm716_vm1, %v726_v44, %v728_v40  ;;  %v1196_v62 = vor.u32 %v1195_v3, %v1191_v2  ;;  %v1433_v17 = vrot.slane %v3567_v54, 1  ;;  %v1206_v18 = vshll.u32 %v3580_v5, 16 }
  0x47   : > { %2933 = vmatprep.mubr.bf16.mxu1 %v3499_v51  ;;  %v3278_v51 = vld [vmem:[%s3436_s22 + $0x110] sm:$0xff]  }
  0x48   : > { %2948 = vmatpush3.bf16.msra.mxu0 %v3253_v12  ;;  %v3587_v12 = vld [vmem:[%s3453_s29 + $0x20] sm:$0xff]  }
  0x49   : > { %2980 = vmatpush3.bf16.msra.mxu1 %v3254_v14  ;;  %2949 = vmatprep.subr.bf16.mxu0 %v3257_v21  ;;  %v733_v14 = vsel %vm716_vm1, %v730_v58, %v732_v4  ;;  %v1214_v23 = vshll.u32 %v3587_v12, 16 }
  0x4a   : > { %2981 = vmatprep.subr.bf16.mxu1 %v3258_v22 }
  0x4b   : > { %2902 = vmatmul.mubr.bf16.gmra.mxu0 %v404_v13  ;;  %v1204_v13 = vor.u32 %v1202_v8, %v1200_v11  ;;  %v1216_v32 = vrot.slane %v1214_v23, 1 }
  0x4c   : > { %2934 = vmatmul.mubr.bf16.gmra.mxu1 %v3505_v56  ;;  %2950 = vmatpush3.bf16.msra.mxu0 %v3257_v21  ;;  %v731_v56 = vsel %vm716_vm1, %v728_v40, %v730_v58  ;;  %v1201_v21 = vsel %vm336_vm0, %v1196_v62, %v1200_v11  ;;  %v3633_v58 = vld [vmem:[%s3453_s29 + $0x48] ss:$0 sps:$4 sm:$0x11]   ;;  %v1445_v11 = vrot.slane %v3629_v55, 1  ;;  %v3304_v62 = vld [vmem:[%s3436_s22 + $0x190] sm:$0xff]  }
  0x4d   : > { %2982 = vmatpush3.bf16.msra.mxu1 %v3258_v22  ;;  %2951 = vmatprep.subr.bf16.mxu0 %v3259_v25  ;;  %v1210_v22 = vshrl.u32 %v3580_v5, 16  ;;  %v1254_v8 = vshll.u32 %v3633_v58, 16 }
  0x4e   : > { %2983 = vmatprep.subr.bf16.mxu1 %v3260_v26  ;;  %2953 = vmatprep.mubr.bf16.mxu0 %v719_v27  ;;  %v1435_v27 = vrot.slane %v3580_v5, 1 }
  0x4f   : > { %2985 = vmatprep.mubr.bf16.mxu1 %v3262_v29  ;;  %v3290_v29 = vld [vmem:[%s3436_s22 + $0x1b8] sm:$0xff]  }
  0x50   : > { %2952 = vmatpush3.bf16.msra.mxu0 %v3259_v25  ;;  %v1434_v25 = vsel %vm716_vm1, %v1432_v9, %v1433_v17 }
  0x51   : > { %2984 = vmatpush3.bf16.msra.mxu1 %v3260_v26  ;;  %3001 = vmatprep.subr.bf16.mxu0 %v3264_v30  ;;  %v1208_v26 = vrot.slane %v1206_v18, 1 }
  0x52   : > { %3033 = vmatprep.subr.bf16.mxu1 %v3265_v31 }
  0x53   : > { %2954 = vmatmul.mubr.bf16.vlgmr.msra.gmra.mxu0 %v721_v33  ;;  %v1222_v33 = vshll.u32 %v3598_v24, 16 }
  0x54   : > { %2986 = vmatmul.mubr.bf16.vlgmr.msra.gmra.mxu1 %v3263_v34  ;;  %3002 = vmatpush3.bf16.msra.mxu0 %v3264_v30  ;;  %v3292_v30 = vld [vmem:[%s3436_s22 + $0x1b0] sm:$0xff]  }
  0x55   : > { %3034 = vmatpush3.bf16.msra.mxu1 %v3265_v31  ;;  %3003 = vmatprep.subr.bf16.mxu0 %v3266_v16  ;;  %v1212_v31 = vor.u32 %v1210_v22, %v1208_v26  ;;  %v3607_v34 = vld [vmem:[%s3453_s29 + $0x30] sm:$0xff]   ;;  %v1447_v22 = vrot.slane %v3633_v58, 1 }
  0x56   : > { %3035 = vmatprep.subr.bf16.mxu1 %v3267_v36  ;;  %2957 = vmatprep.mubr.bf16.mxu0 %v723_v37  ;;  %v1218_v37 = vshrl.u32 %v3587_v12, 16  ;;  %v1230_v44 = vshll.u32 %v3607_v34, 16  ;;  %v1234_v50 = vshrl.u32 %v3607_v34, 16 }
  0x57   : > { %2989 = vmatprep.mubr.bf16.mxu1 %v3268_v38  ;;  %v1436_v38 = vsel %vm716_vm1, %v1433_v17, %v1435_v27  ;;  %v3655_v17 = vld [vmem:[%s3453_s29 + $0x18] sm:$0xff]  }
  0x58   : > { %3004 = vmatpush3.bf16.msra.mxu0 %v3266_v16  ;;  %v1209_v16 = vsel %vm336_vm0, %v1204_v13, %v1208_v26  ;;  %v1220_v46 = vor.u32 %v1218_v37, %v1216_v32  ;;  %v1232_v54 = vrot.slane %v1230_v44, 1  ;;  %v3308_v13 = vld [vmem:[%s3436_s22 + $0x188] sm:$0xff]   ;;  %v1917_v37 = vshrl.u32 %v3655_v17, 16 }
  0x59   : > { %3036 = vmatpush3.bf16.msra.mxu1 %v3267_v36  ;;  %3005 = vmatprep.subr.bf16.mxu0 %v3270_v39  ;;  %v1437_v36 = vrot.slane %v3587_v12, 1 }
  0x5a   : > { %3037 = vmatprep.subr.bf16.mxu1 %v3271_v41  ;;  %v1236_v2 = vor.u32 %v1234_v50, %v1232_v54  ;;  %v3687_v50 = vld [vmem:[%s3453_s29 + $0x38] sm:$0xff]  }
  0x5b   : > { %2958 = vmatmul.mubr.bf16.gmra.mxu0 %v725_v45  ;;  %v1438_v45 = vsel %vm716_vm1, %v1435_v27, %v1437_v36 }
  0x5c   : > { %2990 = vmatmul.mubr.bf16.gmra.mxu1 %v3269_v42  ;;  %3006 = vmatpush3.bf16.msra.mxu0 %v3270_v39  ;;  %v3615_v39 = vld [vmem:[%s3453_s29 + $0x38] sm:$0xff]   ;;  %v1224_v42 = vrot.slane %v1222_v33, 1 }
  0x5d   : > { %3038 = vmatpush3.bf16.msra.mxu1 %v3271_v41  ;;  %3007 = vmatprep.subr.bf16.mxu0 %v3272_v43  ;;  %v1217_v41 = vsel %vm336_vm0, %v1212_v31, %v1216_v32  ;;  %v1238_v40 = vshll.u32 %v3615_v39, 16  ;;  %v1443_v5 = vrot.slane %v3615_v39, 1 }
  0x5e   : > { %3039 = vmatprep.subr.bf16.mxu1 %v3273_v47  ;;  %2961 = vmatprep.mubr.bf16.mxu0 %v727_v48  ;;  %v3297_v48 = vld [vmem:[%s3436_s22 + $0x1e8] sm:$0xff]  }
  0x5f   : > { %2993 = vmatprep.mubr.bf16.mxu1 %v3274_v49  ;;  %v1441_v49 = vrot.slane %v3607_v34, 1  ;;  %v1240_v3 = vrot.slane %v1238_v40, 1  ;;  %v3670_v34 = vld [vmem:[%s3453_s29 + $0x28] sm:$0xff]  }
  0x60   : > { %3008 = vmatpush3.bf16.msra.mxu0 %v3272_v43  ;;  %v1226_v43 = vshrl.u32 %v3598_v24, 16  ;;  %v1446_v24 = vsel %vm716_vm1, %v1443_v5, %v1445_v11 }
  0x61   : > { %3040 = vmatpush3.bf16.msra.mxu1 %v3273_v47  ;;  %3009 = vmatprep.subr.bf16.mxu0 %v3276_v52  ;;  %v3296_v47 = vld [vmem:[%s3436_s22 + $0x1a8] sm:$0xff]   ;;  %v1241_v12 = vsel %vm336_vm0, %v1236_v2, %v1240_v3 }
  0x62   : > { %3041 = vmatprep.subr.bf16.mxu1 %v3277_v53 }
  0x63   : > { %2962 = vmatmul.mubr.bf16.gmra.mxu0 %v729_v60  ;;  %v1440_v60 = vsel %vm716_vm1, %v1437_v36, %v1439_v35  ;;  %v3310_v36 = vld [vmem:[%s3436_s22 + $0x180] sm:$0xff]  }
  0x64   : > { %2994 = vmatmul.mubr.bf16.gmra.mxu1 %v3275_v57  ;;  %3010 = vmatpush3.bf16.msra.mxu0 %v3276_v52  ;;  %v3298_v52 = vld [vmem:[%s3436_s22 + $0x1a0] sm:$0xff]   ;;  %v1225_v57 = vsel %vm336_vm0, %v1220_v46, %v1224_v42  ;;  %v3317_v46 = vld [vmem:[%s3436_s22 + $0x238] sm:$0xff]  }
  0x65   : > { %3042 = vmatpush3.bf16.msra.mxu1 %v3277_v53  ;;  %3011 = vmatprep.subr.bf16.mxu0 %v3278_v51  ;;  %v1228_v53 = vor.u32 %v1226_v43, %v1224_v42  ;;  %v1929_v43 = vshll.u32 %v3670_v34, 16 }
  0x66   : > { %3043 = vmatprep.subr.bf16.mxu1 %v3279_v61  ;;  %2965 = vmatprep.mubr.bf16.mxu0 %v731_v56  ;;  %v1442_v56 = vsel %vm716_vm1, %v1439_v35, %v1441_v49  ;;  %v3683_v35 = vld [vmem:[%s3453_s29 + $0x30] sm:$0xff]  }
  0x67   : > { %2997 = vmatprep.mubr.bf16.mxu1 %v3280_v0  ;;  %v1233_v63 = vsel %vm336_vm0, %v1228_v53, %v1232_v54  ;;  %v1242_v0 = vshrl.u32 %v3615_v39, 16  ;;  %v3312_v39 = vld [vmem:[%s3453_s29 + $0x10] sm:$0xff]   ;;  %v1933_v53 = vshrl.u32 %v3670_v34, 16  ;;  %v1937_v54 = vshll.u32 %v3683_v35, 16 }
  0x68   : > { %3012 = vmatpush3.bf16.msra.mxu0 %v3278_v51  ;;  %v3638_v51 = vld [vmem:[%s3453_s29 + $0x14] sm:$0xf]  ;;  %v1941_v58 = vshrl.u32 %v3683_v35, 16 }
  0x69   : > { %3044 = vmatpush3.bf16.msra.mxu1 %v3279_v61  ;;  %3013 = vmatprep.subr.bf16.mxu0 %v3282_v6  ;;  %v3299_v61 = vld [vmem:[%s3436_s22 + $0x1e0] sm:$0xff]   ;;  %v2673_v4 = vcombine.low %v1828_v59, %v3638_v51  ;;  %v1244_v9 = vor.u32 %v1242_v0, %v1240_v3  ;;  %v1945_v59 = vshll.u32 %v3687_v50, 16  ;;  %v3703_v3 = vld [vmem:[%s3453_s29 + $0x48] sm:$0xff]  }
  0x6a   : > { %3045 = vmatprep.subr.bf16.mxu1 %v3283_v7  ;;  %v3699_v0 = vld [vmem:[%s3453_s29 + $0x40] sm:$0xff]  }
  0x6b   : > { %2966 = vmatmul.mubr.bf16.gmra.mxu0 %v733_v14  ;;  %v1250_v14 = vshrl.u32 %v3629_v55, 16  ;;  %v1908_v18 = vshll.u32 %v2673_v4, 16  ;;  %v1906_v26 = vshrl.u32 %v2673_v4, 16  ;;  %v3319_v55 = vld [vmem:[%s3453_s29 + $0x20] sm:$0xff]   ;;  %v1947_v2 = vrot.slane %v1945_v59, 1 }
  0x6c   : > { %2998 = vmatmul.mubr.bf16.gmra.mxu1 %v3281_v10  ;;  %3014 = vmatpush3.bf16.msra.mxu0 %v3282_v6  ;;  %v3302_v6 = vld [vmem:[%s3436_s22 + $0x198] sm:$0xff]   ;;  %v1248_v10 = vrot.slane %v1246_v1, 1  ;;  %v3321_v1 = vld [vmem:[%s3453_s29 + $0x28] sm:$0xff]  }
  0x6d   : > { %3046 = vmatpush3.bf16.msra.mxu1 %v3283_v7  ;;  %3015 = vmatprep.subr.bf16.mxu0 %v3284_v19  ;;  %v3303_v7 = vld [vmem:[%s3436_s22 + $0x1d8] sm:$0xff]   ;;  %v1910_v27 = vrot.slane %v1908_v18, 1  ;;  %v3715_v18 = vld [vmem:[%s3453_s29 + $0x50] ss:$0 sps:$4 sm:$0x11]  }
  0x6e   : > { %3047 = vmatprep.subr.bf16.mxu1 %v3285_v20  ;;  %3017 = vmatprep.mubr.bf16.mxu0 %v1201_v21  ;;  %v1256_v21 = vrot.slane %v1254_v8, 1  ;;  %v1249_v23 = vsel %vm336_vm0, %v1244_v9, %v1248_v10  ;;  %v3325_v8 = vld [vmem:[%s3453_s29 + $0x30] sm:$0xff]  }
  0x6f   : > { %3049 = vmatprep.mubr.bf16.mxu1 %v1434_v25  ;;  %v1252_v25 = vor.u32 %v1250_v14, %v1248_v10  ;;  %v1911_v32 = vor.u32 %v1910_v27, %v1906_v26  ;;  %v1957_v10 = vshrl.u32 %v3699_v0, 16  ;;  %v3329_v14 = vld [vmem:[%s3436_s22 + $0x218] sm:$0xff]   ;;  %v3331_v26 = vld [vmem:[%s3453_s29 + $0x40] sm:$0xff]  }
  0x70   : > { %3016 = vmatpush3.bf16.msra.mxu0 %v3284_v19  ;;  %v1444_v19 = vsel %vm716_vm1, %v1441_v49, %v1443_v5  ;;  %v1931_v49 = vrot.slane %v1929_v43, 1  ;;  %v3324_v5 = vld [vmem:[%s3436_s22 + $0x220] sm:$0xff]   ;;  %v2152_v43 = vrot.slane %v3670_v34, 1  ;;  %v2162_v34 = vrot.slane %v3715_v18, 1 }
  0x71   : > { %3048 = vmatpush3.bf16.msra.mxu1 %v3285_v20  ;;  %3065 = vmatprep.subr.bf16.mxu0 %v3290_v29  ;;  %v3305_v20 = vld [vmem:[%s3436_s22 + $0x1d0] sm:$0xff]   ;;  %v1257_v31 = vsel %vm336_vm0, %v1252_v25, %v1256_v21  ;;  %v1969_v25 = vshll.u32 %v3715_v18, 16 }
  0x72   : > { %3097 = vmatprep.subr.bf16.mxu1 %v3291_v15 }
  0x73   : > { %3018 = vmatmul.mubr.bf16.vlgmr.msra.gmra.mxu0 %v1209_v16  ;;  %v1448_v16 = vsel %vm716_vm1, %v1445_v11, %v1447_v22  ;;  %v1961_v11 = vshll.u32 %v3703_v3, 16  ;;  %v2126_v22 = vld [vmem:[%s3453_s29 + $0x10] sm:$0xe] }
  0x74   : > { %3050 = vmatmul.mubr.bf16.vlgmr.msra.gmra.mxu1 %v1436_v38  ;;  %3066 = vmatpush3.bf16.msra.mxu0 %v3290_v29  ;;  %v1913_v29 = vshll.u32 %v3655_v17, 16  ;;  %v2706_v27 = vcombine.low %v2126_v22, %v3638_v51  ;;  %v2154_v51 = vrot.slane %v3683_v35, 1 }
  0x75   : > { %3098 = vmatpush3.bf16.msra.mxu1 %v3291_v15  ;;  %3067 = vmatprep.subr.bf16.mxu0 %v3292_v30  ;;  %v3665_v15 = vld [vmem:[%s3453_s29 + $0x20] sm:$0xff]   ;;  %v1963_v21 = vrot.slane %v1961_v11, 1 }
  0x76   : > { %3099 = vmatprep.subr.bf16.mxu1 %v3293_v28  ;;  %3021 = vmatprep.mubr.bf16.mxu0 %v1217_v41  ;;  %v1915_v33 = vrot.slane %v1913_v29, 1  ;;  %v1921_v38 = vshll.u32 %v3665_v15, 16  ;;  %v1925_v42 = vshrl.u32 %v3665_v15, 16 }
  0x77   : > { %3053 = vmatprep.mubr.bf16.mxu1 %v1438_v45 }
  0x78   : > { %3068 = vmatpush3.bf16.msra.mxu0 %v3292_v30  ;;  %v3309_v30 = vld [vmem:[%s3436_s22 + $0x1c8] sm:$0xff]   ;;  %v1916_v41 = vsel %vm336_vm0, %v1911_v32, %v1915_v33  ;;  %v1919_v44 = vor.u32 %v1917_v37, %v1915_v33  ;;  %v1923_v45 = vrot.slane %v1921_v38, 1  ;;  %v2156_v37 = vrot.slane %v3687_v50, 1 }
  0x79   : > { %3100 = vmatpush3.bf16.msra.mxu1 %v3293_v28  ;;  %3069 = vmatprep.subr.bf16.mxu0 %v3296_v47  ;;  %v3311_v28 = vld [vmem:[%s3436_s22 + $0x1c0] sm:$0xff]   ;;  %v3335_v32 = vld [vmem:[%s3436_s22 + $0x208] sm:$0xff]  }
  0x7a   : > { %3101 = vmatprep.subr.bf16.mxu1 %v3297_v48  ;;  %v1924_v40 = vsel %vm336_vm0, %v1919_v44, %v1923_v45  ;;  %v3333_v33 = vld [vmem:[%s3453_s29 + $0x48] sm:$0xff]   ;;  %v2160_v44 = vrot.slane %v3703_v3, 1 }
  0x7b   : > { %3022 = vmatmul.mubr.bf16.gmra.mxu0 %v1225_v57 }
  0x7c   : > { %3054 = vmatmul.mubr.bf16.gmra.mxu1 %v1440_v60  ;;  %3070 = vmatpush3.bf16.msra.mxu0 %v3296_v47  ;;  %v3315_v47 = vld [vmem:[%s3453_s29 + $0x18] sm:$0xff]   ;;  %v1935_v60 = vor.u32 %v1933_v53, %v1931_v49 }
  0x7d   : > { %3102 = vmatpush3.bf16.msra.mxu1 %v3297_v48  ;;  %3071 = vmatprep.subr.bf16.mxu0 %v3298_v52  ;;  %v1927_v48 = vor.u32 %v1925_v42, %v1923_v45  ;;  %v2158_v42 = vrot.slane %v3699_v0, 1 }
  0x7e   : > { %3103 = vmatprep.subr.bf16.mxu1 %v3299_v61  ;;  %3025 = vmatprep.mubr.bf16.mxu0 %v1233_v63  ;;  %v3323_v63 = vld [vmem:[%s3436_s22 + $0x228] sm:$0xff]  }
  0x7f   : > { %3057 = vmatprep.mubr.bf16.mxu1 %v1442_v56  ;;  %v1932_v57 = vsel %vm336_vm0, %v1927_v48, %v1931_v49  ;;  %v2163_v48 = vsel %vm716_vm1, %v2160_v44, %v2162_v34 }
  0x80   : > { %3072 = vmatpush3.bf16.msra.mxu0 %v3298_v52  ;;  %v3318_v52 = vld [vmem:[%s3436_s22 + $0x230] sm:$0xff]  }
  0x81   : > { %3104 = vmatpush3.bf16.msra.mxu1 %v3299_v61  ;;  %3073 = vmatprep.subr.bf16.mxu0 %v3302_v6  ;;  %v1939_v61 = vrot.slane %v1937_v54, 1 }
  0x82   : > { %3105 = vmatprep.subr.bf16.mxu1 %v3303_v7 }
  0x83   : > { %3026 = vmatmul.mubr.bf16.gmra.mxu0 %v1241_v12  ;;  %v1943_v56 = vor.u32 %v1941_v58, %v1939_v61  ;;  %v1940_v4 = vsel %vm336_vm0, %v1935_v60, %v1939_v61 }
  0x84   : > { %3058 = vmatmul.mubr.bf16.gmra.mxu1 %v1444_v19  ;;  %3074 = vmatpush3.bf16.msra.mxu0 %v3302_v6  ;;  %v1949_v6 = vshrl.u32 %v3687_v50, 16  ;;  %v3327_v19 = vld [vmem:[%s3453_s29 + $0x38] sm:$0xff]  }
  0x85   : > { %3106 = vmatpush3.bf16.msra.mxu1 %v3303_v7  ;;  %3075 = vmatprep.subr.bf16.mxu0 %v3304_v62  ;;  %v1953_v7 = vshll.u32 %v3699_v0, 16  ;;  %v1948_v9 = vsel %vm336_vm0, %v1943_v56, %v1947_v2 }
  0x86   : > { %3107 = vmatprep.subr.bf16.mxu1 %v3305_v20  ;;  %3029 = vmatprep.mubr.bf16.mxu0 %v1249_v23  ;;  %v1951_v12 = vor.u32 %v1949_v6, %v1947_v2 }
  0x87   : > { %3061 = vmatprep.mubr.bf16.mxu1 %v1446_v24  ;;  %v3330_v24 = vld [vmem:[%s3436_s22 + $0x210] sm:$0xff]  }
  0x88   : > { %3076 = vmatpush3.bf16.msra.mxu0 %v3304_v62  ;;  %v1955_v62 = vrot.slane %v1953_v7, 1 }
  0x89   : > { %3108 = vmatpush3.bf16.msra.mxu1 %v3305_v20  ;;  %3077 = vmatprep.subr.bf16.mxu0 %v3308_v13 }
  0x8a   : > { %3109 = vmatprep.subr.bf16.mxu1 %v3309_v30  ;;  %v1959_v20 = vor.u32 %v1957_v10, %v1955_v62  ;;  %v1956_v23 = vsel %vm336_vm0, %v1951_v12, %v1955_v62 }
  0x8b   : > { %3030 = vmatmul.mubr.bf16.gmra.mxu0 %v1257_v31  ;;  %v1971_v31 = vrot.slane %v1969_v25, 1 }
  0x8c   : > { %3062 = vmatmul.mubr.bf16.gmra.mxu1 %v1448_v16  ;;  %3078 = vmatpush3.bf16.msra.mxu0 %v3308_v13  ;;  %v1965_v13 = vshrl.u32 %v3703_v3, 16  ;;  %v1964_v29 = vsel %vm336_vm0, %v1959_v20, %v1963_v21  ;;  %v2147_v16 = vrot.slane %v2706_v27, 1 }
  0x8d   : > { %3110 = vmatpush3.bf16.msra.mxu1 %v3309_v30  ;;  %3079 = vmatprep.subr.bf16.mxu0 %v3310_v36 }
  0x8e   : > { %3111 = vmatprep.subr.bf16.mxu1 %v3311_v28  ;;  %3081 = vmatprep.mubr.bf16.mxu0 %v3312_v39  ;;  %v1967_v30 = vor.u32 %v1965_v13, %v1963_v21 }
  0x8f   : > { %3113 = vmatprep.mubr.bf16.mxu1 %v1916_v41  ;;  %v2157_v41 = vsel %vm716_vm1, %v2154_v51, %v2156_v37 }
  0x90   : > { %3080 = vmatpush3.bf16.msra.mxu0 %v3310_v36  ;;  %v2148_v36 = vrot.slane %v3655_v17, 1  ;;  %v1972_v38 = vsel %vm336_vm0, %v1967_v30, %v1971_v31  ;;  %v2150_v17 = vrot.slane %v3665_v15, 1  ;;  %v2161_v15 = vsel %vm716_vm1, %v2158_v42, %v2160_v44 }
  0x91   : > { %3112 = vmatpush3.bf16.msra.mxu1 %v3311_v28  ;;  %3129 = vmatprep.subr.bf16.mxu0 %v3317_v46  ;;  %v3336_v28 = vld [vmem:[%s3436_s22 + $0x200] sm:$0xff]  }
  0x92   : > { %3161 = vmatprep.subr.bf16.mxu1 %v3317_v46  ;;  %v2149_v39 = vsel %vm716_vm1, %v2147_v16, %v2148_v36  ;;  %v2151_v45 = vsel %vm716_vm1, %v2148_v36, %v2150_v17  ;;  %v2153_v35 = vsel %vm716_vm1, %v2150_v17, %v2152_v43 }
  0x93   : > { %3082 = vmatmul.mubr.bf16.vlgmr.msra.gmra.mxu0 %v3315_v47  ;;  %v2155_v47 = vsel %vm716_vm1, %v2152_v43, %v2154_v51 }
  0x94   : > { %3114 = vmatmul.mubr.bf16.vlgmr.msra.gmra.mxu1 %v1924_v40  ;;  %3130 = vmatpush3.bf16.msra.mxu0 %v3317_v46 }
  0x95   : > { %3169 = vmatpush3.bf16.msra.mxu1 %v3317_v46  ;;  %3131 = vmatprep.subr.bf16.mxu0 %v3318_v52  ;;  %v2159_v46 = vsel %vm716_vm1, %v2156_v37, %v2158_v42 }
  0x96   : > { %3162 = vmatprep.subr.bf16.mxu1 %v3318_v52  ;;  %3085 = vmatprep.mubr.bf16.mxu0 %v3319_v55 }
  0x97   : > { %3117 = vmatprep.mubr.bf16.mxu1 %v1932_v57 }
  0x98   : > { %3132 = vmatpush3.bf16.msra.mxu0 %v3318_v52 }
  0x99   : > { %3170 = vmatpush3.bf16.msra.mxu1 %v3318_v52  ;;  %3133 = vmatprep.subr.bf16.mxu0 %v3323_v63 }
  0x9a   : > { %3163 = vmatprep.subr.bf16.mxu1 %v3323_v63 }
  0x9b   : > { %3086 = vmatmul.mubr.bf16.gmra.mxu0 %v3321_v1 }
  0x9c   : > { %3118 = vmatmul.mubr.bf16.gmra.mxu1 %v1940_v4  ;;  %3134 = vmatpush3.bf16.msra.mxu0 %v3323_v63 }
  0x9d   : > { %3171 = vmatpush3.bf16.msra.mxu1 %v3323_v63  ;;  %3135 = vmatprep.subr.bf16.mxu0 %v3324_v5 }
  0x9e   : > { %3164 = vmatprep.subr.bf16.mxu1 %v3324_v5  ;;  %3089 = vmatprep.mubr.bf16.mxu0 %v3325_v8 }
  0x9f   : > { %3121 = vmatprep.mubr.bf16.mxu1 %v1948_v9 }
  0xa0   : > { %3136 = vmatpush3.bf16.msra.mxu0 %v3324_v5 }
  0xa1   : > { %3172 = vmatpush3.bf16.msra.mxu1 %v3324_v5  ;;  %3137 = vmatprep.subr.bf16.mxu0 %v3329_v14 }
  0xa2   : > { %3165 = vmatprep.subr.bf16.mxu1 %v3329_v14 }
  0xa3   : > { %3090 = vmatmul.mubr.bf16.gmra.mxu0 %v3327_v19 }
  0xa4   : > { %3122 = vmatmul.mubr.bf16.gmra.mxu1 %v1956_v23  ;;  %3138 = vmatpush3.bf16.msra.mxu0 %v3329_v14 }
  0xa5   : > { %3173 = vmatpush3.bf16.msra.mxu1 %v3329_v14  ;;  %3139 = vmatprep.subr.bf16.mxu0 %v3330_v24 }
  0xa6   : > { %3166 = vmatprep.subr.bf16.mxu1 %v3330_v24  ;;  %3093 = vmatprep.mubr.bf16.mxu0 %v3331_v26 }
  0xa7   : > { %3125 = vmatprep.mubr.bf16.mxu1 %v1964_v29 }
  0xa8   : > { %3140 = vmatpush3.bf16.msra.mxu0 %v3330_v24 }
  0xa9   : > { %3174 = vmatpush3.bf16.msra.mxu1 %v3330_v24  ;;  %3141 = vmatprep.subr.bf16.mxu0 %v3335_v32 }
  0xaa   : > { %3167 = vmatprep.subr.bf16.mxu1 %v3335_v32 }
  0xab   : > { %3094 = vmatmul.mubr.bf16.gmra.mxu0 %v3333_v33 }
  0xac   : > { %3126 = vmatmul.mubr.bf16.gmra.mxu1 %v1972_v38  ;;  %3142 = vmatpush3.bf16.msra.mxu0 %v3335_v32 }
  0xad   : > { %3175 = vmatpush3.bf16.msra.mxu1 %v3335_v32  ;;  %3143 = vmatprep.subr.bf16.mxu0 %v3336_v28 }
  0xae   : > { %3168 = vmatprep.subr.bf16.mxu1 %v3336_v28  ;;  %3145 = vmatprep.mubr.bf16.mxu0 %v2149_v39 }
  0xaf   : > { %3153 = vmatprep.mubr.bf16.mxu1 %v2157_v41 }
  0xb0   : > { %3144 = vmatpush3.bf16.msra.mxu0 %v3336_v28 }
  0xb1   : > { %3176 = vmatpush3.bf16.msra.mxu1 %v3336_v28 }
  0xb3   : > { %3146 = vmatmul.mubr.bf16.vlgmr.msra.gmra.mxu0 %v2151_v45 }
  0xb4   : > { %3154 = vmatmul.mubr.bf16.vlgmr.msra.gmra.mxu1 %v2159_v46  ;;  %3149 = vmatprep.mubr.bf16.mxu0 %v2153_v35 }
  0xb5   : > { %3157 = vmatprep.mubr.bf16.mxu1 %v2161_v15 }
  0xbb   : > { %3150 = vmatmul.mubr.bf16.gmra.mxu0 %v2155_v47 }
  0xbc   : > { %3158 = vmatmul.mubr.bf16.gmra.mxu1 %v2163_v48 }
  0xf3   : > { %v2891_v49 = vpop.f32.mrf.mxu0 }
  0xf4   : > { %v2923_v50 = vpop.f32.mrf.mxu1 }
  0xf5   : > { %v648_v40 = vadd.f32 %v2923_v50, %v2891_v49  ;;  %v495_v52 = vpop.f32.mrf.mxu0 }
  0xf6   : > { %v640_v53 = vpop.f32.mrf.mxu1 }
  0xf7   : > { %v641_v54 = vadd.f32 %v640_v53, %v495_v52  ;;  %v2892_v55 = vpop.f32.mrf.mxu0 }
  0xf8   : > { %v2924_v57 = vpop.f32.mrf.mxu1 }
  0xf9   : > { %v498_v58 = vpop.f32.mrf.mxu0 }
  0xfa   : > { %v643_v59 = vpop.f32.mrf.mxu1 }
  0xfb   : > { %v2895_v60 = vpop.f32.mrf.mxu0 }
  0xfc   : > { %v2927_v61 = vpop.f32.mrf.mxu1 }
  0xfd   : > { %v662_v63 = vadd.f32 %v2927_v61, %v2895_v60  ;;  %v509_v0 = vpop.f32.mrf.mxu0 }
  0xfe   : > { %v654_v1 = vpop.f32.mrf.mxu1 }
  0xff   : > { %v655_v56 = vadd.f32 %v654_v1, %v509_v0  ;;  %v2896_v2 = vpop.f32.mrf.mxu0 }
 0x100   : > { %v2928_v3 = vpop.f32.mrf.mxu1 }
 0x101   : > { %v512_v4 = vpop.f32.mrf.mxu0 }
 0x102   : > { %v657_v5 = vpop.f32.mrf.mxu1 }
 0x103   : > { %v2899_v6 = vpop.f32.mrf.mxu0 }
 0x104   : > { %v2931_v7 = vpop.f32.mrf.mxu1 }
 0x105   : > { %v676_v8 = vadd.f32 %v2931_v7, %v2899_v6  ;;  %v523_v9 = vpop.f32.mrf.mxu0 }
 0x106   : > { %v668_v10 = vpop.f32.mrf.mxu1 }
 0x107   : > { %v669_v11 = vadd.f32 %v668_v10, %v523_v9  ;;  %v2900_v12 = vpop.f32.mrf.mxu0 }
 0x108   : > { %v2932_v62 = vpop.f32.mrf.mxu1 }
 0x109   : > { %v526_v14 = vpop.f32.mrf.mxu0 }
 0x10a   : > { %v671_v18 = vpop.f32.mrf.mxu1 }
 0x10b   : > { %v2903_v19 = vpop.f32.mrf.mxu0 }
 0x10c   : > { %v2935_v20 = vpop.f32.mrf.mxu1 }
 0x10d   : > { %v690_v21 = vadd.f32 %v2935_v20, %v2903_v19  ;;  %v537_v22 = vpop.f32.mrf.mxu0 }
 0x10e   : > { %v682_v23 = vpop.f32.mrf.mxu1 }
 0x10f   : > { %v683_v24 = vadd.f32 %v682_v23, %v537_v22  ;;  %v2904_v13 = vpop.f32.mrf.mxu0 }
 0x110   : > { %v2936_v25 = vpop.f32.mrf.mxu1 }
 0x111   : > { %v540_v26 = vpop.f32.mrf.mxu0 }
 0x112   : > { %v685_v27 = vpop.f32.mrf.mxu1 }
 0x113   : > { %v2955_v29 = vpop.f32.mrf.mxu0 }
 0x114   : > { %v880_v30 = vadd.f32 %v2955_v29, %v648_v40  ;;  %v2987_v31 = vpop.f32.mrf.mxu1 }
 0x115   : > { %v824_v32 = vpop.f32.mrf.mxu0 }
 0x116   : > { %v1106_v33 = vadd.f32 %v2987_v31, %v880_v30  ;;  %v879_v16 = vadd.f32 %v824_v32, %v641_v54  ;;  %v1050_v36 = vpop.f32.mrf.mxu1 }
 0x117   : > { %v2956_v51 = vpop.f32.mrf.mxu0 }
 0x118   : > { %v1105_v37 = vadd.f32 %v1050_v36, %v879_v16  ;;  %v2988_v38 = vpop.f32.mrf.mxu1 }
 0x119   : > { %v827_v28 = vpop.f32.mrf.mxu0 }
 0x11a   : > { %v1053_v39 = vpop.f32.mrf.mxu1 }
 0x11b   : > { %v2959_v41 = vpop.f32.mrf.mxu0 }
 0x11c   : > { %v882_v17 = vadd.f32 %v2959_v41, %v662_v63  ;;  %v2991_v42 = vpop.f32.mrf.mxu1 }
 0x11d   : > { %v838_v43 = vpop.f32.mrf.mxu0 }
 0x11e   : > { %v3746_v44 = vadd.f32 %v2991_v42, %v882_v17  ;;  %v881_v45 = vadd.f32 %v838_v43, %v655_v56  ;;  %v1064_v46 = vpop.f32.mrf.mxu1 }
 0x11f   : > { %v2960_v35 = vpop.f32.mrf.mxu0 }
 0x120   : > { %v3748_v15 = vadd.f32 %v1064_v46, %v881_v45  ;;  %v2992_v34 = vpop.f32.mrf.mxu1 }
 0x121   : > { %v841_v47 = vpop.f32.mrf.mxu0 }
 0x122   : > { %v1067_v48 = vpop.f32.mrf.mxu1 }
 0x123   : > { %v2963_v49 = vpop.f32.mrf.mxu0 }
 0x124   : > { %v884_v50 = vadd.f32 %v2963_v49, %v676_v8  ;;  %v2995_v40 = vpop.f32.mrf.mxu1 }
 0x125   : > { %v852_v52 = vpop.f32.mrf.mxu0 }
 0x126   : > { %v3750_v53 = vadd.f32 %v2995_v40, %v884_v50  ;;  %v883_v54 = vadd.f32 %v852_v52, %v669_v11  ;;  %v1078_v55 = vpop.f32.mrf.mxu1 }
 0x127   : > { %v2964_v57 = vpop.f32.mrf.mxu0 }
 0x128   : > { %v3752_v58 = vadd.f32 %v1078_v55, %v883_v54  ;;  %v2996_v59 = vpop.f32.mrf.mxu1 }
 0x129   : > { %v855_v60 = vpop.f32.mrf.mxu0 }
 0x12a   : > { %v1081_v61 = vpop.f32.mrf.mxu1 }
 0x12b   : > { %v2967_v63 = vpop.f32.mrf.mxu0 }
 0x12c   : > { %v886_v0 = vadd.f32 %v2967_v63, %v690_v21  ;;  %v2999_v1 = vpop.f32.mrf.mxu1 }
 0x12d   : > { %v866_v56 = vpop.f32.mrf.mxu0 }
 0x12e   : > { %v3754_v2 = vadd.f32 %v2999_v1, %v886_v0  ;;  %v885_v3 = vadd.f32 %v866_v56, %v683_v24  ;;  %v1092_v4 = vpop.f32.mrf.mxu1 }
 0x12f   : > { %v2968_v5 = vpop.f32.mrf.mxu0 }
 0x130   : > { %v3756_v6 = vadd.f32 %v1092_v4, %v885_v3  ;;  %v3000_v7 = vpop.f32.mrf.mxu1 }
 0x131   : > { %v869_v8 = vpop.f32.mrf.mxu0 }
 0x132   : > { %v1095_v9 = vpop.f32.mrf.mxu1 }
 0x133   : > { %v3019_v10 = vpop.f32.mrf.mxu0 }
 0x134   : > { %v1404_v11 = vadd.f32 %v3019_v10, %v1106_v33  ;;  %v3051_v12 = vpop.f32.mrf.mxu1 }
 0x135   : > { %v1348_v62 = vpop.f32.mrf.mxu0 }
 0x136   : > { %v1595_v14 = vadd.f32 %v3051_v12, %v1404_v11  ;;  %v1403_v18 = vadd.f32 %v1348_v62, %v1105_v37  ;;  %v1539_v19 = vpop.f32.mrf.mxu1 }
 0x137   : > { %v3020_v20 = vpop.f32.mrf.mxu0 }
 0x138   : > { %v3758_v21 = vadd.f32 %v1539_v19, %v1403_v18  ;;  %v3052_v22 = vpop.f32.mrf.mxu1 }
 0x139   : > { %v1351_v23 = vpop.f32.mrf.mxu0 }
 0x13a   : > { %v1542_v24 = vpop.f32.mrf.mxu1 }
 0x13b   : > { %v3023_v13 = vpop.f32.mrf.mxu0 }
 0x13c   : > { %v3760_v25 = vpop.f32.mrf.mxu1 }
 0x13d   : > { %v3762_v26 = vpop.f32.mrf.mxu0 }
 0x13e   : > { %v3764_v27 = vpop.f32.mrf.mxu1 }
 0x13f   : > { %v3024_v29 = vpop.f32.mrf.mxu0 }
 0x140   : > { %v3056_v30 = vpop.f32.mrf.mxu1 }
 0x141   : > { %v1365_v31 = vpop.f32.mrf.mxu0 }
 0x142   : > { %v1556_v32 = vpop.f32.mrf.mxu1 }
 0x143   : > { %v3027_v33 = vpop.f32.mrf.mxu0  ;;  %v1406_v32 = vadd.f32 %v3023_v13, %v3746_v44 }
 0x144   : > { %v3059_v16 = vpop.f32.mrf.mxu1  ;;  %v1408_v10 = vadd.f32 %v3027_v33, %v3750_v53 }
 0x145   : > { %v1376_v36 = vpop.f32.mrf.mxu0 }
 0x146   : > { %v1567_v51 = vpop.f32.mrf.mxu1  ;;  %v1407_v62 = vadd.f32 %v1376_v36, %v3752_v58  ;;  %v1599_v20 = vadd.f32 %v3059_v16, %v1408_v10  ;;  %v1405_v58 = vadd.f32 %v3762_v26, %v3748_v15 }
 0x147   : > { %v3028_v37 = vpop.f32.mrf.mxu0 }
 0x148   : > { %v3060_v38 = vpop.f32.mrf.mxu1  ;;  %v1598_v29 = vadd.f32 %v1567_v51, %v1407_v62  ;;  %v1596_v26 = vadd.f32 %v3764_v27, %v1405_v58 }
 0x149   : > { %v1379_v28 = vpop.f32.mrf.mxu0 }
 0x14a   : > { %v1570_v39 = vpop.f32.mrf.mxu1 }
 0x14b   : > { %v3031_v41 = vpop.f32.mrf.mxu0 }
 0x14c   : > { %v3063_v17 = vpop.f32.mrf.mxu1  ;;  %v1410_v53 = vadd.f32 %v3031_v41, %v3754_v2 }
 0x14d   : > { %v1390_v42 = vpop.f32.mrf.mxu0 }
 0x14e   : > { %v3766_v43 = vpop.f32.mrf.mxu1  ;;  %v1601_v41 = vadd.f32 %v3063_v17, %v1410_v53 }
 0x14f   : > { %v3032_v45 = vpop.f32.mrf.mxu0 }
 0x150   : > { %v3064_v46 = vpop.f32.mrf.mxu1 }
 0x151   : > { %v1393_v35 = vpop.f32.mrf.mxu0  ;;  %v2715_v46 = vld [vmem:[%s231_s5] ss:$0 sm:$0xff] }
 0x152   : > { %v1584_v34 = vpop.f32.mrf.mxu1 }
 0x153   : > { %v3083_v47 = vpop.f32.mrf.mxu0 }
 0x154   : > { %v3115_v48 = vpop.f32.mrf.mxu1  ;;  %v1821_v23 = vadd.f32 %v3083_v47, %v1595_v14  ;;  %v1409_v14 = vadd.f32 %v1390_v42, %v3756_v6 }
 0x155   : > { %v1765_v49 = vpop.f32.mrf.mxu0 }
 0x156   : > { %v2063_v50 = vpop.f32.mrf.mxu1  ;;  %v1820_v37 = vadd.f32 %v1765_v49, %v3758_v21  ;;  %v2119_v16 = vadd.f32 %v3115_v48, %v1821_v23  ;;  %v1597_v21 = vadd.f32 %v3760_v25, %v1406_v32  ;;  %v1600_v6 = vadd.f32 %v3766_v43, %v1409_v14 }
 0x157   : > { %v3084_v40 = vpop.f32.mrf.mxu0 }
 0x158   : > { %v3116_v52 = vpop.f32.mrf.mxu1  ;;  %v2118_v13 = vadd.f32 %v2063_v50, %v1820_v37 }
 0x159   : > { %v1768_v54 = vpop.f32.mrf.mxu0 }
 0x15a   : > { %v2066_v55 = vpop.f32.mrf.mxu1 }
 0x15b   : > { %v3087_v57 = vpop.f32.mrf.mxu0 }
 0x15c   : > { %v3768_v59 = vpop.f32.mrf.mxu1  ;;  %v1823_v34 = vadd.f32 %v3087_v57, %v1597_v21 }
 0x15d   : > { %v1779_v60 = vpop.f32.mrf.mxu0 }
 0x15e   : > { %v3770_v61 = vpop.f32.mrf.mxu1  ;;  %v1822_v50 = vadd.f32 %v1779_v60, %v1596_v26  ;;  %v2121_v27 = vadd.f32 %v3768_v59, %v1823_v34 }
 0x15f   : > { %v3088_v63 = vpop.f32.mrf.mxu0 }
 0x160   : > { %v3120_v0 = vpop.f32.mrf.mxu1 }
 0x161   : > { %v1782_v1 = vpop.f32.mrf.mxu0 }
 0x162   : > { %v2080_v56 = vpop.f32.mrf.mxu1 }
 0x163   : > { %v3091_v3 = vpop.f32.mrf.mxu0 }
 0x164   : > { %v3123_v4 = vpop.f32.mrf.mxu1  ;;  %v1825_v30 = vadd.f32 %v3091_v3, %v1599_v20 }
 0x165   : > { %v1793_v5 = vpop.f32.mrf.mxu0 }
 0x166   : > { %v2091_v7 = vpop.f32.mrf.mxu1  ;;  %v1824_v33 = vadd.f32 %v1793_v5, %v1598_v29  ;;  %v2123_v51 = vadd.f32 %v3123_v4, %v1825_v30  ;;  %v2120_v4 = vadd.f32 %v3770_v61, %v1822_v50 }
 0x167   : > { %v3092_v8 = vpop.f32.mrf.mxu0 }
 0x168   : > { %v3124_v9 = vpop.f32.mrf.mxu1  ;;  %v2122_v45 = vadd.f32 %v2091_v7, %v1824_v33 }
 0x169   : > { %v1796_v11 = vpop.f32.mrf.mxu0 }
 0x16a   : > { %v2094_v12 = vpop.f32.mrf.mxu1 }
 0x16b   : > { %v3095_v18 = vpop.f32.mrf.mxu0 }
 0x16c   : > { %v3127_v19 = vpop.f32.mrf.mxu1  ;;  %v1827_v42 = vadd.f32 %v3095_v18, %v1601_v41 }
 0x16d   : > { %v1807_v22 = vpop.f32.mrf.mxu0 }
 0x16e   : > { %v2105_v24 = vpop.f32.mrf.mxu1  ;;  %v1826_v54 = vadd.f32 %v1807_v22, %v1600_v6  ;;  %v2125_v56 = vadd.f32 %v3127_v19, %v1827_v42 }
 0x16f   : > { %v3096_v31 = vpop.f32.mrf.mxu0 }
 0x170   : > { %v3128_v38 = vpop.f32.mrf.mxu1  ;;  %v2124_v7 = vadd.f32 %v2105_v24, %v1826_v54 }
 0x171   : > { %v1810_v28 = vpop.f32.mrf.mxu0 }
 0x172   : > { %v2108_v36 = vpop.f32.mrf.mxu1 }
 0x173   : > { %v3147_v44 = vpop.f32.mrf.mxu0 }
 0x174   : > { %v2310_v39 = vadd.f32 %v3147_v44, %v2119_v16  ;;  %v3155_v2 = vpop.f32.mrf.mxu1 }
 0x175   : > { %v2314_v35 = vadd.f32 %v3155_v2, %v2123_v51  ;;  %v2254_v15 = vpop.f32.mrf.mxu0 }
 0x176   : > { %v2309_v47 = vadd.f32 %v2254_v15, %v2118_v13  ;;  %v2282_v48 = vpop.f32.mrf.mxu1  ;;  %v2324_v40 = vadd.f32 %v2715_v46, %v2310_v39 }
 0x177   : > { %v2313_v49 = vadd.f32 %v2282_v48, %v2122_v45  ;;  %v3148_v25 = vpop.f32.mrf.mxu0  ;;  %v2328_v55 = vadd.f32 %v2715_v46, %v2314_v35 }
 0x178   : > { %v2323_v52 = vadd.f32 %v2715_v46, %v2309_v47  ;;  %v3156_v17 = vpop.f32.mrf.mxu1 }
 0x179   : > { %v2327_v63 = vadd.f32 %v2715_v46, %v2313_v49  ;;  %v2257_v0 = vpop.f32.mrf.mxu0 }
 0x17a   : > { %v2331_v57 = vmax.f32 %v2323_v52, %v2324_v40  ;;  %v2285_v1 = vpop.f32.mrf.mxu1 }
 0x17b   : > { %v2333_v43 = vmax.f32 %v2327_v63, %v2328_v55  ;;  %v3151_v3 = vpop.f32.mrf.mxu0 }
 0x17c   : > { %v2312_v5 = vadd.f32 %v3151_v3, %v2121_v27  ;;  %v3159_v60 = vpop.f32.mrf.mxu1 }
 0x17d   : > { %v2316_v8 = vadd.f32 %v3159_v60, %v2125_v56  ;;  %v2268_v9 = vpop.f32.mrf.mxu0 }
 0x17e   : > { %v2311_v10 = vadd.f32 %v2268_v9, %v2120_v4  ;;  %v2296_v11 = vpop.f32.mrf.mxu1  ;;  %v2326_v59 = vadd.f32 %v2715_v46, %v2312_v5 }
 0x17f   : > { %v2315_v12 = vadd.f32 %v2296_v11, %v2124_v7  ;;  %v3152_v62 = vpop.f32.mrf.mxu0  ;;  %v2330_v22 = vadd.f32 %v2715_v46, %v2316_v8 }
 0x180   : > { %v2325_v18 = vadd.f32 %v2715_v46, %v2311_v10  ;;  %v3160_v20 = vpop.f32.mrf.mxu1 }
 0x181   : > { %v2329_v19 = vadd.f32 %v2715_v46, %v2315_v12  ;;  %v2271_v23 = vpop.f32.mrf.mxu0 }
 0x182   : > { %v2332_v29 = vmax.f32 %v2325_v18, %v2326_v59  ;;  %v2299_v30 = vpop.f32.mrf.mxu1 }
 0x183   : > { %v2334_v61 = vmax.f32 %v2329_v19, %v2330_v22 }
 0x184   : > { %v2721_v24 = vpack.c.bf16 %v2332_v29, %v2331_v57 }
 0x185   : > { %v2726_v31 = vpack.c.bf16 %v2334_v61, %v2333_v43 }
 0x186   : > { %2722 = vst [vmem:[%s240_s12] sm:$0xff] %v2721_v24  }
 0x187   : > { %2728 = vst [vmem:[%s240_s12 + $0x8] sm:$0xff] %v2726_v31  }
 0x188 PF: > { %s13_s16 = sadd.s32 1, %s3376_s16   ;;  %s3813_s12 = smov %s3368_s14 }
 0x189   : > { %p10_p7 = scmp.ge.s32.totalorder %s13_s16, 10   ;;  %s3814_s13 = smov %s3372_s15 }
 0x18a   : > { %s3815_s14 = smov %s3818_s17  ;;  %s3816_s15 = smov %s3822_s18 }
 0x18b   :  { %12 = sbr.rel (!%p10_p7) target bundleno = 3 (0x3), region = 76 }

// kernel: hcn_forward.19
= control target key start
LH: loop header
LB: loop body
LE: loop exit
PB: predicated region body
PF: predicated region fallthrough
CT: control target
= control target key end

     0   :  { %s2272_s12 = smov 0   ;;  %s2274_s13 = smov 0   ;;  %s2610_s0 = inlined_call_operand.vmem [shape: bf16[1,4,56,128], index: 0, kind: input, shape index: {}]   ;;  %s2611_s1 = inlined_call_operand.vmem [shape: bf16[1,9,128,128], index: 1, kind: input, shape index: {}]   ;;  %s2612_s2 = inlined_call_operand.vmem [shape: f32[1,1,128], index: 2, kind: input, shape index: {}]   ;;  %s2613_s3 = inlined_call_operand.vmem [shape: bf16[1,4,2,4,128], index: 3, kind: output, shape index: {}]  }
   0x1   :  { %s2276_s14 = smov 0  }
   0x2 LB: > { %s22_s15 = sadd.s32 1, %s2246_s13  ;;  %p1621_p0 = scmp.ge.s32.totalorder %s2250_s14, 1  ;;  %s2250_s14 = sphi %s2276_s14, %s13_s14   ;;  %s2246_s13 = sphi %s2274_s13, %s2615_s13   ;;  %s2242_s12 = sphi %s2272_s12, %s2614_s12  }
   0x3   : > { %p23_p1 = scmp.ge.s32.totalorder %s22_s15, 4  ;;  %p175_p2 = scmp.lt.s32.totalorder %s2250_s14, 5 }
   0x5   : > { %s2617_s15 = smov (%p23_p1, %s22_s15), 0  ;;  %p176_p3 = pnand %p1621_p0, %p175_p2 }
   0x6   : > { %p217_p4 = scmp.lt.s32.totalorder (!%p176_p3), %s2242_s12, 3 }
   0x7   : > { %179 = sbr.rel (%p176_p3) target bundleno = 384 (0x180), region = 32 }
   0xc   : > { %v2140_v0 = vld [vmem:[%s2611_s1 + $0x78] sm:$0xff]   ;;  %v2142_v2 = vld [vmem:[%s2611_s1 + $0x70] sm:$0xff]   ;;  %v2144_v4 = vld [vmem:[%s2611_s1 + $0x68] sm:$0xff]   ;;  %s2619_s12 = smov (!%p217_p4, %s2242_s12), 3  ;;  %vm294_vm0 = vsmask.f32 7424 }
   0xd   : > { %v2141_v1 = vld [vmem:[%s2611_s1 + $0x38] sm:$0xff]   ;;  %1935 = vmatprep.subr.bf16.mxu0 %v2140_v0  ;;  %v2143_v3 = vld [vmem:[%s2611_s1 + $0x30] sm:$0xff]   ;;  %v2145_v5 = vld [vmem:[%s2611_s1 + $0x28] sm:$0xff]   ;;  %s2115_s5 = smul.u32 28, %s2619_s12  ;;  %vm534_vm1 = vcmask 1046528  }
   0xe   : > { %1955 = vmatprep.subr.bf16.mxu1 %v2141_v1  ;;  %1936 = vmatpush3.bf16.msra.mxu0 %v2140_v0  ;;  %v2146_v6 = vld [vmem:[%s2611_s1 + $0x60] sm:$0xff]   ;;  %v2148_v8 = vld [vmem:[%s2611_s1 + $0x58] sm:$0xff]   ;;  %v2150_v10 = vld [vmem:[%s2611_s1 + $0x50] sm:$0xff]  }
   0xf   : > { %1956 = vmatpush3.bf16.msra.mxu1 %v2141_v1  ;;  %1937 = vmatprep.subr.bf16.mxu0 %v2142_v2  ;;  %v2147_v7 = vld [vmem:[%s2611_s1 + $0x20] sm:$0xff]   ;;  %v2149_v9 = vld [vmem:[%s2611_s1 + $0x18] sm:$0xff]   ;;  %s2326_s16 = scalar_lea.vmem %s2610_s0, %s2115_s5  ;;  %v2151_v14 = vld [vmem:[%s2611_s1 + $0x10] sm:$0xff]   ;;  %s1844_s5 = sshll.u32 %s2619_s12, 2 }
  0x10   : > { %1957 = vmatprep.subr.bf16.mxu1 %v2143_v3  ;;  %v243_v11 = vld [vmem:[%s2326_s16] sm:$0xf]  ;;  %v244_v12 = vld [vmem:[%s2326_s16 + $0x4] sm:$0xf]  ;;  %v245_v13 = vld [vmem:[%s2326_s16 + $0x8] sm:$0xf]  ;;  %s240_s8 = scalar_lea.vmem %s2613_s3, %s1844_s5 }
  0x11   : > { %v2338_v15 = vld [vmem:[%s2326_s16 + $0xc] sm:$0xf]  ;;  %v1641_v16 = vcombine.low %v243_v11, %v244_v12  ;;  %v2344_v18 = vld [vmem:[%s2326_s16 + $0x10] ss:$0 sps:$4 sm:$0x11]   ;;  %v2154_v29 = vld [vmem:[%s2611_s1 + $0x40] sm:$0xff]   ;;  %v1701_v39 = vcombine.low %v244_v12, %v245_v13 }
  0x12   : > { %1938 = vmatpush3.bf16.msra.mxu0 %v2142_v2  ;;  %v2341_v17 = vcombine.low %v245_v13, %v2338_v15  ;;  %v2152_v21 = vld [vmem:[%s2611_s1 + $0x48] sm:$0xff]   ;;  %v311_v28 = vshll.u32 %v2344_v18, 16  ;;  %v2155_v30 = vld [vmem:[%s2611_s1] sm:$0xff]   ;;  %v2159_v34 = vld [vmem:[%s2611_s1 + $0xb8] sm:$0xff]   ;;  %v538_v1 = vrot.slane %v2344_v18, 1 }
  0x13   : > { %1958 = vmatpush3.bf16.msra.mxu1 %v2143_v3  ;;  %1939 = vmatprep.subr.bf16.mxu0 %v2144_v4  ;;  %v296_v19 = vshrl.u32 %v1641_v16, 16  ;;  %v298_v20 = vshll.u32 %v1641_v16, 16  ;;  %v2153_v23 = vld [vmem:[%s2611_s1 + $0x8] sm:$0xff]   ;;  %v2160_v35 = vld [vmem:[%s2611_s1 + $0xf8] sm:$0xff]   ;;  %v2161_v37 = vld [vmem:[%s2611_s1 + $0xb0] sm:$0xff]  }
  0x14   : > { %1959 = vmatprep.subr.bf16.mxu1 %v2145_v5  ;;  %1971 = vmatprep.mubr.bf16.mxu1 %v1641_v16  ;;  %v303_v22 = vshll.u32 %v2341_v17, 16  ;;  %v307_v27 = vshrl.u32 %v2341_v17, 16  ;;  %v313_v33 = vrot.slane %v311_v28, 1  ;;  %v2162_v38 = vld [vmem:[%s2611_s1 + $0xf0] sm:$0xff]   ;;  %v513_v40 = vld [vmem:[%s2326_s16] sm:$0xe] }
  0x15   : > { %v300_v24 = vrot.slane %v298_v20, 1  ;;  %v2163_v41 = vld [vmem:[%s2611_s1 + $0xa8] sm:$0xff]   ;;  %v1676_v42 = vcombine.low %v513_v40, %v244_v12  ;;  %v536_v43 = vrot.slane %v2341_v17, 1  ;;  %v2165_v46 = vld [vmem:[%s2611_s1 + $0xa0] sm:$0xff]   ;;  %v2167_v49 = vld [vmem:[%s2611_s1 + $0x98] sm:$0xff]  }
  0x16   : > { %1940 = vmatpush3.bf16.msra.mxu0 %v2144_v4  ;;  %v305_v25 = vrot.slane %v303_v22, 1  ;;  %v2164_v44 = vld [vmem:[%s2611_s1 + $0xe8] sm:$0xff]   ;;  %v2166_v48 = vld [vmem:[%s2611_s1 + $0xe0] sm:$0xff]   ;;  %v2168_v50 = vld [vmem:[%s2611_s1 + $0xd8] sm:$0xff]  }
  0x17   : > { %1960 = vmatpush3.bf16.msra.mxu1 %v2145_v5  ;;  %1941 = vmatprep.subr.bf16.mxu0 %v2146_v6  ;;  %v301_v26 = vor.u32 %v300_v24, %v296_v19  ;;  %v535_v45 = vrot.slane %v1676_v42, 1  ;;  %v2169_v51 = vld [vmem:[%s2611_s1 + $0x90] sm:$0xff]   ;;  %v2171_v53 = vld [vmem:[%s2611_s1 + $0x88] sm:$0xff]   ;;  %v768_v55 = vld [vmem:[%s2326_s16 + $0x4] sm:$0xf]  ;;  %v539_v11 = vsel %vm534_vm1, %v536_v43, %v538_v1 }
  0x18   : > { %1961 = vmatprep.subr.bf16.mxu1 %v2147_v7  ;;  %v309_v32 = vor.u32 %v307_v27, %v305_v25  ;;  %v2170_v52 = vld [vmem:[%s2611_s1 + $0xd0] sm:$0xff]   ;;  %v2172_v54 = vld [vmem:[%s2611_s1 + $0xc8] sm:$0xff]   ;;  %v2173_v62 = vld [vmem:[%s2611_s1 + $0x80] sm:$0xff]  }
  0x19   : > { %v306_v31 = vsel %vm294_vm0, %v301_v26, %v305_v25  ;;  %v537_v47 = vsel %vm534_vm1, %v535_v45, %v536_v43  ;;  %v2411_v56 = vld [vmem:[%s2326_s16 + $0x8] sm:$0xf]  ;;  %v2414_v57 = vld [vmem:[%s2326_s16 + $0xc] sm:$0xf]  ;;  %v2417_v58 = vld [vmem:[%s2326_s16 + $0x10] sm:$0xf] }
  0x1a   : > { %1942 = vmatpush3.bf16.msra.mxu0 %v2146_v6  ;;  %1951 = vmatprep.mubr.bf16.mxu0 %v306_v31  ;;  %v314_v36 = vsel %vm294_vm0, %v309_v32, %v313_v33  ;;  %v1727_v59 = vcombine.low %v768_v55, %v2411_v56  ;;  %v2422_v60 = vcombine.low %v2414_v57, %v2417_v58  ;;  %v926_v63 = vld [vmem:[%s2326_s16 + $0x4] sm:$0xe]  ;;  %v2176_v2 = vld [vmem:[%s2611_s1 + $0x138] sm:$0xff]   ;;  %v2180_v16 = vld [vmem:[%s2611_s1 + $0x130] sm:$0xff]  }
  0x1b   : > { %1962 = vmatpush3.bf16.msra.mxu1 %v2147_v7  ;;  %1943 = vmatprep.subr.bf16.mxu0 %v2148_v8  ;;  %v2174_v0 = vld [vmem:[%s2611_s1 + $0xc0] sm:$0xff]   ;;  %v1754_v6 = vcombine.low %v926_v63, %v2411_v56  ;;  %v643_v7 = vld [vmem:[%s2326_s16 + $0x10] sm:$0xf]  ;;  %v2182_v19 = vld [vmem:[%s2611_s1 + $0x128] sm:$0xff]  }
  0x1c   : > { %1963 = vmatprep.subr.bf16.mxu1 %v2149_v9  ;;  %v806_v61 = vshll.u32 %v1727_v59, 16  ;;  %v804_v3 = vshrl.u32 %v1727_v59, 16  ;;  %v811_v5 = vshll.u32 %v2422_v60, 16  ;;  %v1702_v12 = vcombine.low %v2338_v15, %v643_v7  ;;  %v2183_v20 = vld [vmem:[%s2611_s1 + $0x168] sm:$0xff]   ;;  %v2185_v22 = vld [vmem:[%s2611_s1 + $0x160] sm:$0xff]   ;;  %v2187_v24 = vld [vmem:[%s2611_s1 + $0x158] sm:$0xff]  }
  0x1d   : > { %v947_v13 = vrot.slane %v1754_v6, 1  ;;  %v2188_v25 = vld [vmem:[%s2611_s1 + $0x110] sm:$0xff]   ;;  %v1180_v26 = vld [vmem:[%s2326_s16 + $0x8] sm:$0xf]  ;;  %v2481_v28 = vld [vmem:[%s2326_s16 + $0xc] sm:$0xf] }
  0x1e   : > { %1944 = vmatpush3.bf16.msra.mxu0 %v2148_v8  ;;  %v808_v4 = vrot.slane %v806_v61, 1  ;;  %v2179_v8 = vld [vmem:[%s2611_s1 + $0x178] sm:$0xff]   ;;  %v2196_v27 = vld [vmem:[%s2326_s16 + $0x14] ss:$0 sps:$4 sm:$0x11]   ;;  %v2190_v31 = vld [vmem:[%s2611_s1 + $0x108] sm:$0xff]  }
  0x1f   : > { %1964 = vmatpush3.bf16.msra.mxu1 %v2149_v9  ;;  %1945 = vmatprep.subr.bf16.mxu0 %v2150_v10  ;;  %v2191_v32 = vld [vmem:[%s2611_s1 + $0x148] sm:$0xff]   ;;  %v819_v33 = vshll.u32 %v2196_v27, 16  ;;  %v950_v45 = vrot.slane %v2196_v27, 1  ;;  %v2207_v61 = vld [vmem:[%s2611_s1 + $0x1d8] sm:$0xff]   ;;  %v2209_v63 = vld [vmem:[%s2611_s1 + $0x1d0] sm:$0xff]  }
  0x20   : > { %1965 = vmatprep.subr.bf16.mxu1 %v2151_v14  ;;  %v809_v9 = vor.u32 %v808_v4, %v804_v3  ;;  %v2202_v55 = vld [vmem:[%s2611_s1 + $0x1a8] sm:$0xff]   ;;  %v2219_v1 = vld [vmem:[%s2326_s16 + $0x18] ss:$0 sps:$4 sm:$0x11]   ;;  %v2212_v4 = vld [vmem:[%s2611_s1 + $0x180] sm:$0xff]  }
  0x21   : > { %v2203_v59 = vld [vmem:[%s2611_s1 + $0x1e8] sm:$0xff]   ;;  %v1231_v6 = vshll.u32 %v2219_v1, 16  ;;  %v2213_v7 = vld [vmem:[%s2611_s1 + $0x1c0] sm:$0xff]  }
  0x22   : > { %1946 = vmatpush3.bf16.msra.mxu0 %v2150_v10  ;;  %v2441_v10 = vrot.slane %v811_v5, 1  ;;  %v1338_v3 = vld [vmem:[%s2326_s16 + $0x8] sm:$0xe] }
  0x23   : > { %1966 = vmatpush3.bf16.msra.mxu1 %v2151_v14  ;;  %1947 = vmatprep.subr.bf16.mxu0 %v2152_v21  ;;  %v948_v14 = vrot.slane %v2422_v60, 1 }
  0x24   : > { %1967 = vmatprep.subr.bf16.mxu1 %v2153_v23  ;;  %v814_v18 = vsel %vm294_vm0, %v809_v9, %v2441_v10  ;;  %v1055_v9 = vld [vmem:[%s2326_s16 + $0x14] sm:$0xf] }
  0x25   : > { %v949_v15 = vsel %vm534_vm1, %v947_v13, %v948_v14 }
  0x26   : > { %1948 = vmatpush3.bf16.msra.mxu0 %v2152_v21  ;;  %v2184_v21 = vld [vmem:[%s2611_s1 + $0x120] sm:$0xff]  }
  0x27   : > { %1968 = vmatpush3.bf16.msra.mxu1 %v2153_v23  ;;  %1949 = vmatprep.subr.bf16.mxu0 %v2154_v29  ;;  %v2186_v23 = vld [vmem:[%s2611_s1 + $0x118] sm:$0xff]  }
  0x28   : > { %1969 = vmatprep.subr.bf16.mxu1 %v2155_v30 }
  0x2a   : > { %1950 = vmatpush3.bf16.msra.mxu0 %v2154_v29  ;;  %v2189_v29 = vld [vmem:[%s2611_s1 + $0x150] sm:$0xff]  }
  0x2b   : > { %1970 = vmatpush3.bf16.msra.mxu1 %v2155_v30  ;;  %1975 = vmatprep.subr.bf16.mxu0 %v2159_v34  ;;  %v1805_v30 = vcombine.low %v1180_v26, %v2481_v28 }
  0x2c   : > { %1995 = vmatprep.subr.bf16.mxu1 %v2160_v35 }
  0x2d   : > { %1952 = vmatmul.mubr.bf16.vlgmr.msra.gmra.mxu0 %v314_v36  ;;  %v1218_v36 = vshll.u32 %v1805_v30, 16 }
  0x2e   : > { %1972 = vmatmul.mubr.bf16.vlgmr.msra.gmra.mxu1 %v2341_v17  ;;  %1976 = vmatpush3.bf16.msra.mxu0 %v2159_v34  ;;  %v2181_v17 = vld [vmem:[%s2611_s1 + $0x170] sm:$0xff]   ;;  %v815_v34 = vshrl.u32 %v2422_v60, 16  ;;  %v2206_v60 = vld [vmem:[%s2611_s1 + $0x198] sm:$0xff]  }
  0x2f   : > { %1996 = vmatpush3.bf16.msra.mxu1 %v2160_v35  ;;  %1977 = vmatprep.subr.bf16.mxu0 %v2161_v37  ;;  %v2495_v35 = vld [vmem:[%s2326_s16 + $0x10] sm:$0xff]   ;;  %v1220_v42 = vrot.slane %v1218_v36, 1 }
  0x30   : > { %1997 = vmatprep.subr.bf16.mxu1 %v2162_v38  ;;  %2011 = vmatprep.mubr.bf16.mxu1 %v1701_v39  ;;  %v821_v39 = vrot.slane %v819_v33, 1  ;;  %v817_v40 = vor.u32 %v815_v34, %v2441_v10  ;;  %v1223_v43 = vshll.u32 %v2495_v35, 16  ;;  %v1227_v5 = vshrl.u32 %v2495_v35, 16  ;;  %v2216_v10 = vld [vmem:[%s2611_s1 + $0x238] sm:$0xff]  }
  0x31   : > { %1991 = vmatprep.mubr.bf16.mxu0 %v537_v47 }
  0x32   : > { %1978 = vmatpush3.bf16.msra.mxu0 %v2161_v37  ;;  %v2192_v37 = vld [vmem:[%s2611_s1 + $0x100] sm:$0xff]   ;;  %v822_v47 = vsel %vm294_vm0, %v817_v40, %v821_v39 }
  0x33   : > { %1998 = vmatpush3.bf16.msra.mxu1 %v2162_v38  ;;  %1979 = vmatprep.subr.bf16.mxu0 %v2163_v41  ;;  %v2193_v38 = vld [vmem:[%s2611_s1 + $0x140] sm:$0xff]  }
  0x34   : > { %1999 = vmatprep.subr.bf16.mxu1 %v2164_v44 }
  0x36   : > { %1980 = vmatpush3.bf16.msra.mxu0 %v2163_v41  ;;  %v1216_v41 = vshrl.u32 %v1805_v30, 16 }
  0x37   : > { %2000 = vmatpush3.bf16.msra.mxu1 %v2164_v44  ;;  %1981 = vmatprep.subr.bf16.mxu0 %v2165_v46  ;;  %v2197_v44 = vld [vmem:[%s2611_s1 + $0x1b8] sm:$0xff]  }
  0x38   : > { %2001 = vmatprep.subr.bf16.mxu1 %v2166_v48 }
  0x3a   : > { %1982 = vmatpush3.bf16.msra.mxu0 %v2165_v46  ;;  %v2199_v46 = vld [vmem:[%s2611_s1 + $0x1f8] sm:$0xff]  }
  0x3b   : > { %2002 = vmatpush3.bf16.msra.mxu1 %v2166_v48  ;;  %1983 = vmatprep.subr.bf16.mxu0 %v2167_v49  ;;  %v1221_v48 = vor.u32 %v1220_v42, %v1216_v41 }
  0x3c   : > { %2003 = vmatprep.subr.bf16.mxu1 %v2168_v50 }
  0x3e   : > { %1984 = vmatpush3.bf16.msra.mxu0 %v2167_v49  ;;  %v1225_v49 = vrot.slane %v1223_v43, 1 }
  0x3f   : > { %2004 = vmatpush3.bf16.msra.mxu1 %v2168_v50  ;;  %1985 = vmatprep.subr.bf16.mxu0 %v2169_v51  ;;  %v951_v50 = vsel %vm534_vm1, %v948_v14, %v950_v45  ;;  %v1360_v14 = vrot.slane %v2495_v35, 1 }
  0x40   : > { %2005 = vmatprep.subr.bf16.mxu1 %v2170_v52 }
  0x42   : > { %1986 = vmatpush3.bf16.msra.mxu0 %v2169_v51  ;;  %v2200_v51 = vld [vmem:[%s2611_s1 + $0x1b0] sm:$0xff]  }
  0x43   : > { %2006 = vmatpush3.bf16.msra.mxu1 %v2170_v52  ;;  %1987 = vmatprep.subr.bf16.mxu0 %v2171_v53  ;;  %v2201_v52 = vld [vmem:[%s2611_s1 + $0x1f0] sm:$0xff]  }
  0x44   : > { %2007 = vmatprep.subr.bf16.mxu1 %v2172_v54 }
  0x46   : > { %1988 = vmatpush3.bf16.msra.mxu0 %v2171_v53  ;;  %v1779_v53 = vcombine.low %v2411_v56, %v2414_v57  ;;  %v2204_v56 = vld [vmem:[%s2611_s1 + $0x1a0] sm:$0xff]  }
  0x47   : > { %2008 = vmatpush3.bf16.msra.mxu1 %v2172_v54  ;;  %1989 = vmatprep.subr.bf16.mxu0 %v2173_v62  ;;  %v1226_v54 = vsel %vm294_vm0, %v1221_v48, %v1225_v49  ;;  %v2205_v57 = vld [vmem:[%s2611_s1 + $0x1e0] sm:$0xff]  }
  0x48   : > { %2009 = vmatprep.subr.bf16.mxu1 %v2174_v0 }
  0x4a   : > { %1990 = vmatpush3.bf16.msra.mxu0 %v2173_v62  ;;  %v2208_v62 = vld [vmem:[%s2611_s1 + $0x190] sm:$0xff]  }
  0x4b   : > { %2010 = vmatpush3.bf16.msra.mxu1 %v2174_v0  ;;  %2015 = vmatprep.subr.bf16.mxu0 %v2176_v2  ;;  %v2210_v0 = vld [vmem:[%s2611_s1 + $0x188] sm:$0xff]  }
  0x4c   : > { %2035 = vmatprep.subr.bf16.mxu1 %v2179_v8 }
  0x4d   : > { %1992 = vmatmul.mubr.bf16.vlgmr.msra.gmra.mxu0 %v539_v11  ;;  %v1229_v11 = vor.u32 %v1227_v5, %v1225_v49 }
  0x4e   : > { %2016 = vmatpush3.bf16.msra.mxu0 %v2176_v2  ;;  %2012 = vmatmul.mubr.bf16.vlgmr.msra.gmra.mxu1 %v1702_v12  ;;  %v2211_v2 = vld [vmem:[%s2611_s1 + $0x1c8] sm:$0xff]   ;;  %v1233_v12 = vrot.slane %v1231_v6, 1 }
  0x4f   : > { %2036 = vmatpush3.bf16.msra.mxu1 %v2179_v8  ;;  %2017 = vmatprep.subr.bf16.mxu0 %v2180_v16  ;;  %v1832_v8 = vcombine.low %v1338_v3, %v2481_v28 }
  0x50   : > { %2037 = vmatprep.subr.bf16.mxu1 %v2181_v17  ;;  %2031 = vmatprep.mubr.bf16.mxu0 %v814_v18  ;;  %v2220_v18 = vld [vmem:[%s2611_s1 + $0x230] sm:$0xff]  }
  0x51   : > { %2051 = vmatprep.mubr.bf16.mxu1 %v949_v15  ;;  %v1359_v13 = vrot.slane %v1832_v8, 1 }
  0x52   : > { %2018 = vmatpush3.bf16.msra.mxu0 %v2180_v16  ;;  %v1780_v16 = vcombine.low %v2417_v58, %v1055_v9  ;;  %v2222_v58 = vld [vmem:[%s2611_s1 + $0x220] sm:$0xff]  }
  0x53   : > { %2038 = vmatpush3.bf16.msra.mxu1 %v2181_v17  ;;  %2019 = vmatprep.subr.bf16.mxu0 %v2182_v19  ;;  %v1234_v17 = vsel %vm294_vm0, %v1229_v11, %v1233_v12  ;;  %v1361_v15 = vsel %vm534_vm1, %v1359_v13, %v1360_v14 }
  0x54   : > { %2039 = vmatprep.subr.bf16.mxu1 %v2183_v20 }
  0x56   : > { %2020 = vmatpush3.bf16.msra.mxu0 %v2182_v19  ;;  %v2221_v19 = vld [vmem:[%s2611_s1 + $0x228] sm:$0xff]  }
  0x57   : > { %2040 = vmatpush3.bf16.msra.mxu1 %v2183_v20  ;;  %2021 = vmatprep.subr.bf16.mxu0 %v2184_v21  ;;  %v2223_v20 = vld [vmem:[%s2611_s1 + $0x218] sm:$0xff]  }
  0x58   : > { %2041 = vmatprep.subr.bf16.mxu1 %v2185_v22 }
  0x5a   : > { %2022 = vmatpush3.bf16.msra.mxu0 %v2184_v21  ;;  %v2224_v21 = vld [vmem:[%s2611_s1 + $0x210] sm:$0xff]  }
  0x5b   : > { %2042 = vmatpush3.bf16.msra.mxu1 %v2185_v22  ;;  %2023 = vmatprep.subr.bf16.mxu0 %v2186_v23  ;;  %v2225_v22 = vld [vmem:[%s2611_s1 + $0x208] sm:$0xff]  }
  0x5c   : > { %2043 = vmatprep.subr.bf16.mxu1 %v2187_v24 }
  0x5e   : > { %2024 = vmatpush3.bf16.msra.mxu0 %v2186_v23  ;;  %v2226_v23 = vld [vmem:[%s2611_s1 + $0x200] sm:$0xff]  }
  0x5f   : > { %2044 = vmatpush3.bf16.msra.mxu1 %v2187_v24  ;;  %2025 = vmatprep.subr.bf16.mxu0 %v2188_v25  ;;  %v1362_v24 = vrot.slane %v2219_v1, 1 }
  0x60   : > { %2045 = vmatprep.subr.bf16.mxu1 %v2189_v29 }
  0x62   : > { %2026 = vmatpush3.bf16.msra.mxu0 %v2188_v25  ;;  %v1363_v25 = vsel %vm534_vm1, %v1360_v14, %v1362_v24 }
  0x63   : > { %2046 = vmatpush3.bf16.msra.mxu1 %v2189_v29  ;;  %2027 = vmatprep.subr.bf16.mxu0 %v2190_v31 }
  0x64   : > { %2047 = vmatprep.subr.bf16.mxu1 %v2191_v32 }
  0x66   : > { %2028 = vmatpush3.bf16.msra.mxu0 %v2190_v31 }
  0x67   : > { %2048 = vmatpush3.bf16.msra.mxu1 %v2191_v32  ;;  %2029 = vmatprep.subr.bf16.mxu0 %v2192_v37 }
  0x68   : > { %2049 = vmatprep.subr.bf16.mxu1 %v2193_v38 }
  0x6a   : > { %2030 = vmatpush3.bf16.msra.mxu0 %v2192_v37 }
  0x6b   : > { %2050 = vmatpush3.bf16.msra.mxu1 %v2193_v38  ;;  %2055 = vmatprep.subr.bf16.mxu0 %v2197_v44 }
  0x6c   : > { %2075 = vmatprep.subr.bf16.mxu1 %v2199_v46 }
  0x6d   : > { %2032 = vmatmul.mubr.bf16.vlgmr.msra.gmra.mxu0 %v822_v47 }
  0x6e   : > { %2056 = vmatpush3.bf16.msra.mxu0 %v2197_v44  ;;  %2052 = vmatmul.mubr.bf16.vlgmr.msra.gmra.mxu1 %v951_v50 }
  0x6f   : > { %2076 = vmatpush3.bf16.msra.mxu1 %v2199_v46  ;;  %2057 = vmatprep.subr.bf16.mxu0 %v2200_v51 }
  0x70   : > { %2077 = vmatprep.subr.bf16.mxu1 %v2201_v52  ;;  %2071 = vmatprep.mubr.bf16.mxu0 %v1779_v53 }
  0x71   : > { %2091 = vmatprep.mubr.bf16.mxu1 %v1226_v54 }
  0x72   : > { %2058 = vmatpush3.bf16.msra.mxu0 %v2200_v51 }
  0x73   : > { %2078 = vmatpush3.bf16.msra.mxu1 %v2201_v52  ;;  %2059 = vmatprep.subr.bf16.mxu0 %v2202_v55 }
  0x74   : > { %2079 = vmatprep.subr.bf16.mxu1 %v2203_v59 }
  0x76   : > { %2060 = vmatpush3.bf16.msra.mxu0 %v2202_v55 }
  0x77   : > { %2080 = vmatpush3.bf16.msra.mxu1 %v2203_v59  ;;  %2061 = vmatprep.subr.bf16.mxu0 %v2204_v56 }
  0x78   : > { %2081 = vmatprep.subr.bf16.mxu1 %v2205_v57 }
  0x7a   : > { %2062 = vmatpush3.bf16.msra.mxu0 %v2204_v56 }
  0x7b   : > { %2082 = vmatpush3.bf16.msra.mxu1 %v2205_v57  ;;  %2063 = vmatprep.subr.bf16.mxu0 %v2206_v60 }
  0x7c   : > { %2083 = vmatprep.subr.bf16.mxu1 %v2207_v61 }
  0x7e   : > { %2064 = vmatpush3.bf16.msra.mxu0 %v2206_v60 }
  0x7f   : > { %2084 = vmatpush3.bf16.msra.mxu1 %v2207_v61  ;;  %2065 = vmatprep.subr.bf16.mxu0 %v2208_v62 }
  0x80   : > { %2085 = vmatprep.subr.bf16.mxu1 %v2209_v63 }
  0x82   : > { %2066 = vmatpush3.bf16.msra.mxu0 %v2208_v62 }
  0x83   : > { %2086 = vmatpush3.bf16.msra.mxu1 %v2209_v63  ;;  %2067 = vmatprep.subr.bf16.mxu0 %v2210_v0 }
  0x84   : > { %2087 = vmatprep.subr.bf16.mxu1 %v2211_v2 }
  0x86   : > { %2068 = vmatpush3.bf16.msra.mxu0 %v2210_v0 }
  0x87   : > { %2088 = vmatpush3.bf16.msra.mxu1 %v2211_v2  ;;  %2069 = vmatprep.subr.bf16.mxu0 %v2212_v4 }
  0x88   : > { %2089 = vmatprep.subr.bf16.mxu1 %v2213_v7 }
  0x8a   : > { %2070 = vmatpush3.bf16.msra.mxu0 %v2212_v4 }
  0x8b   : > { %2090 = vmatpush3.bf16.msra.mxu1 %v2213_v7  ;;  %2095 = vmatprep.subr.bf16.mxu0 %v2216_v10 }
  0x8d   : > { %2072 = vmatmul.mubr.bf16.vlgmr.msra.gmra.mxu0 %v1780_v16 }
  0x8e   : > { %2096 = vmatpush3.bf16.msra.mxu0 %v2216_v10  ;;  %2092 = vmatmul.mubr.bf16.vlgmr.msra.gmra.mxu1 %v1234_v17 }
  0x8f   : > { %2097 = vmatprep.subr.bf16.mxu0 %v2220_v18  ;;  %2111 = vmatprep.mubr.bf16.mxu0 %v1361_v15  ;;  %v1841_v15 = vld [vmem:[%s2612_s2] ss:$0 sm:$0xff] }
  0x92   : > { %2098 = vmatpush3.bf16.msra.mxu0 %v2220_v18 }
  0x93   : > { %2099 = vmatprep.subr.bf16.mxu0 %v2221_v19 }
  0x96   : > { %2100 = vmatpush3.bf16.msra.mxu0 %v2221_v19 }
  0x97   : > { %2101 = vmatprep.subr.bf16.mxu0 %v2222_v58 }
  0x9a   : > { %2102 = vmatpush3.bf16.msra.mxu0 %v2222_v58 }
  0x9b   : > { %2103 = vmatprep.subr.bf16.mxu0 %v2223_v20 }
  0x9e   : > { %2104 = vmatpush3.bf16.msra.mxu0 %v2223_v20 }
  0x9f   : > { %2105 = vmatprep.subr.bf16.mxu0 %v2224_v21 }
  0xa2   : > { %2106 = vmatpush3.bf16.msra.mxu0 %v2224_v21 }
  0xa3   : > { %2107 = vmatprep.subr.bf16.mxu0 %v2225_v22 }
  0xa6   : > { %2108 = vmatpush3.bf16.msra.mxu0 %v2225_v22 }
  0xa7   : > { %2109 = vmatprep.subr.bf16.mxu0 %v2226_v23 }
  0xaa   : > { %2110 = vmatpush3.bf16.msra.mxu0 %v2226_v23 }
  0xad   : > { %2112 = vmatmul.mubr.bf16.vlgmr.msra.gmra.mxu0 %v1363_v25 }
  0xed   : > { %v1953_v26 = vpop.f32.mrf.mxu0 }
  0xee   : > { %v1973_v28 = vpop.f32.mrf.mxu1 }
  0xef   : > { %v399_v27 = vpop.f32.mrf.mxu0  ;;  %v507_v46 = vadd.f32 %v1973_v28, %v1953_v26 }
  0xf0   : > { %v498_v30 = vpop.f32.mrf.mxu1 }
  0xf1   : > { %v1954_v29 = vpop.f32.mrf.mxu0  ;;  %v499_v48 = vadd.f32 %v498_v30, %v399_v27 }
  0xf2   : > { %v1974_v32 = vpop.f32.mrf.mxu1 }
  0xf3   : > { %v402_v31 = vpop.f32.mrf.mxu0  ;;  %v510_v51 = vadd.f32 %v1974_v32, %v1954_v29 }
  0xf4   : > { %v501_v34 = vpop.f32.mrf.mxu1 }
  0xf5   : > { %v502_v56 = vadd.f32 %v501_v34, %v402_v31 }
 0x10d   : > { %v1993_v33 = vpop.f32.mrf.mxu0 }
 0x10e   : > { %v2013_v36 = vpop.f32.mrf.mxu1  ;;  %v641_v49 = vadd.f32 %v1993_v33, %v507_v46 }
 0x10f   : > { %v624_v35 = vpop.f32.mrf.mxu0 }
 0x110   : > { %v749_v38 = vpop.f32.mrf.mxu1  ;;  %v639_v52 = vadd.f32 %v624_v35, %v499_v48  ;;  %v766_v55 = vadd.f32 %v2013_v36, %v641_v49 }
 0x111   : > { %v1994_v37 = vpop.f32.mrf.mxu0 }
 0x112   : > { %v2014_v40 = vpop.f32.mrf.mxu1  ;;  %v642_v59 = vadd.f32 %v1994_v37, %v510_v51  ;;  %v764_v57 = vadd.f32 %v749_v38, %v639_v52 }
 0x113   : > { %v627_v39 = vpop.f32.mrf.mxu0 }
 0x114   : > { %v752_v42 = vpop.f32.mrf.mxu1  ;;  %v640_v62 = vadd.f32 %v627_v39, %v502_v56  ;;  %v767_v0 = vadd.f32 %v2014_v40, %v642_v59 }
 0x116   : > { %v765_v5 = vadd.f32 %v752_v42, %v640_v62 }
 0x12d   : > { %v2033_v41 = vpop.f32.mrf.mxu0 }
 0x12e   : > { %v2053_v44 = vpop.f32.mrf.mxu1  ;;  %v924_v60 = vadd.f32 %v2033_v41, %v766_v55 }
 0x12f   : > { %v907_v43 = vpop.f32.mrf.mxu0 }
 0x130   : > { %v1036_v47 = vpop.f32.mrf.mxu1  ;;  %v922_v1 = vadd.f32 %v907_v43, %v764_v57  ;;  %v1053_v3 = vadd.f32 %v2053_v44, %v924_v60 }
 0x131   : > { %v2034_v45 = vpop.f32.mrf.mxu0 }
 0x132   : > { %v2054_v53 = vpop.f32.mrf.mxu1  ;;  %v925_v4 = vadd.f32 %v2034_v45, %v767_v0  ;;  %v1051_v7 = vadd.f32 %v1036_v47, %v922_v1 }
 0x133   : > { %v910_v50 = vpop.f32.mrf.mxu0 }
 0x134   : > { %v1039_v61 = vpop.f32.mrf.mxu1  ;;  %v923_v10 = vadd.f32 %v910_v50, %v765_v5  ;;  %v1054_v11 = vadd.f32 %v2054_v53, %v925_v4 }
 0x136   : > { %v1052_v18 = vadd.f32 %v1039_v61, %v923_v10 }
 0x14d   : > { %v2073_v54 = vpop.f32.mrf.mxu0 }
 0x14e   : > { %v2093_v2 = vpop.f32.mrf.mxu1  ;;  %v1178_v8 = vadd.f32 %v2073_v54, %v1053_v3 }
 0x14f   : > { %v1161_v63 = vpop.f32.mrf.mxu0 }
 0x150   : > { %v1319_v9 = vpop.f32.mrf.mxu1  ;;  %v1176_v12 = vadd.f32 %v1161_v63, %v1051_v7  ;;  %v1336_v14 = vadd.f32 %v2093_v2, %v1178_v8 }
 0x151   : > { %v2074_v6 = vpop.f32.mrf.mxu0 }
 0x152   : > { %v1179_v16 = vadd.f32 %v2074_v6, %v1054_v11  ;;  %v2094_v17 = vpop.f32.mrf.mxu1  ;;  %v1334_v58 = vadd.f32 %v1319_v9, %v1176_v12 }
 0x153   : > { %v1164_v13 = vpop.f32.mrf.mxu0 }
 0x154   : > { %v1177_v21 = vadd.f32 %v1164_v13, %v1052_v18  ;;  %v1337_v23 = vadd.f32 %v2094_v17, %v1179_v16  ;;  %v1322_v24 = vpop.f32.mrf.mxu1 }
 0x156   : > { %v1335_v29 = vadd.f32 %v1322_v24, %v1177_v21 }
 0x16d   : > { %v2113_v19 = vpop.f32.mrf.mxu0 }
 0x16e   : > { %v1465_v20 = vadd.f32 %v2113_v19, %v1336_v14 }
 0x16f   : > { %v1448_v22 = vpop.f32.mrf.mxu0 }
 0x170   : > { %v1475_v25 = vadd.f32 %v1841_v15, %v1465_v20  ;;  %v1463_v26 = vadd.f32 %v1448_v22, %v1334_v58 }
 0x171   : > { %v2114_v27 = vpop.f32.mrf.mxu0 }
 0x172   : > { %v1466_v28 = vadd.f32 %v2114_v27, %v1337_v23  ;;  %v1473_v30 = vadd.f32 %v1841_v15, %v1463_v26  ;;  %v1483_v32 = vmul.f32 0.25, %v1475_v25  ;;  %vm1479_vm2 = vcmp.ge.f32.partialorder %v1475_v25, 0.0 }
 0x173   : > { %v1451_v31 = vpop.f32.mrf.mxu0 }
 0x174   : > { %v1476_v33 = vadd.f32 %v1841_v15, %v1466_v28  ;;  %v1464_v34 = vadd.f32 %v1451_v31, %v1335_v29  ;;  %v1481_v36 = vmul.f32 0.25, %v1473_v30  ;;  %v1487_v38 = vsel %vm1479_vm2, %v1475_v25, %v1483_v32 }
 0x175   : > { %vm1477_vm4 = vcmp.ge.f32.partialorder %v1473_v30, 0.0 }
 0x176   : > { %vm1480_vm3 = vcmp.ge.f32.partialorder %v1476_v33, 0.0  ;;  %v1484_v35 = vmul.f32 0.25, %v1476_v33  ;;  %v1474_v37 = vadd.f32 %v1841_v15, %v1464_v34  ;;  %v1485_v42 = vsel %vm1477_vm4, %v1473_v30, %v1481_v36 }
 0x178   : > { %v1488_v39 = vsel %vm1480_vm3, %v1476_v33, %v1484_v35  ;;  %vm1478_vm5 = vcmp.ge.f32.partialorder %v1474_v37, 0.0  ;;  %v1482_v41 = vmul.f32 0.25, %v1474_v37 }
 0x179   : > { %v1490_v40 = vmax.f32 %v1487_v38, %v1488_v39 }
 0x17a   : > { %v1486_v44 = vsel %vm1478_vm5, %v1474_v37, %v1482_v41 }
 0x17b   : > { %v1492_v43 = vpack.c.bf16 %v1490_v40, %v1490_v40  ;;  %v1489_v45 = vmax.f32 %v1485_v42, %v1486_v44 }
 0x17d   : > { %1494 = vst [vmem:[%s240_s8 + $0x2] sm:$0x3] %v1492_v43  ;;  %v1491_v46 = vpack.c.bf16 %v1489_v45, %v1489_v45 }
 0x17f   : > { %1493 = vst [vmem:[%s240_s8] sm:$0x3] %v1491_v46 }
 0x180 PF: > { %s13_s14 = sadd.s32 1, %s2250_s14   ;;  %s2614_s12 = smov %s2246_s13 }
 0x181   : > { %p10_p5 = scmp.ge.s32.totalorder %s13_s14, 6   ;;  %s2615_s13 = smov %s2617_s15 }
 0x183   :  { %12 = sbr.rel (!%p10_p5) target bundleno = 2 (0x2), region = 76 }

// kernel: hcn_forward.22
= control target key start
LH: loop header
LB: loop body
LE: loop exit
PB: predicated region body
PF: predicated region fallthrough
CT: control target
= control target key end

     0   :  { %s192_s6 = smov 0   ;;  %s212_s0 = inlined_call_operand.vmem [shape: bf16[2,2,1,1,256], index: 0, kind: input, shape index: {}]   ;;  %s213_s1 = inlined_call_operand.vmem [shape: bf16[2,1,1,128], index: 1, kind: output, shape index: {}]  }
   0x1 LB: > { %s171_s7 = sadd.s32 4294967295, %s194_s6   ;;  %p175_p0 = scmp.ge.s32.totalorder %s194_s6, 1  ;;  %s194_s6 = sphi %s192_s6, %s11_s6  }
   0x2   : > { %p86_p1 = scmp.lt.s32.totalorder %s194_s6, 3 }
   0x4   : > { %p87_p2 = pnand %p175_p0, %p86_p1 }
   0x5   : > { %p103_p3 = scmp.lt.s32.totalorder (!%p87_p2), %s171_s7, 1 }
   0x6   : > { %90 = sbr.rel (%p87_p2) target bundleno = 23 (0x17), region = 24 }
   0xb   : > { %s215_s7 = smov (!%p103_p3, %s171_s7), 1  ;;  %vm118_vm0 = vcmask 1040384   ;;  %vm119_vm1 = vsmask.f32 256 }
   0xc   : > { %s176_s8 = sshll.u32 %s215_s7, 2  ;;  %s109_s14 = scalar_lea.vmem %s213_s1, %s215_s7  ;;  %vm120_vm2 = vmand %vm118_vm0, %vm119_vm1 }
   0xd   : > { %s106_s11 = scalar_lea.vmem %s212_s0, %s176_s8  ;;  %v121_v4 = vld [vmem:[%s109_s14] sm:$0x1] }
   0xe   : > { %v110_v0 = vld [vmem:[%s106_s11] sm:$0x3]  ;;  %v177_v1 = vld [vmem:[%s106_s11 + $0x2] sm:$0x3] }
   0xf   : > { %v113_v2 = vmax.bf16 %v177_v1, %v110_v0 }
  0x11   : > { %v115_v3 = vrot.slane %v113_v2, 1 }
  0x13   : > { %v117_v5 = vmax.bf16 %v115_v3, %v113_v2 }
  0x15   : > { %v122_v6 = vsel %vm120_vm2, %v117_v5, %v121_v4 }
  0x16   : > { %123 = vst [vmem:[%s109_s14] sm:$0x1] %v122_v6 }
  0x17 PF: > { %s11_s6 = sadd.s32 1, %s194_s6  }
  0x18   : > { %p8_p4 = scmp.ge.s32.totalorder %s11_s6, 4  }
  0x1a   :  { %10 = sbr.rel (!%p8_p4) target bundleno = 1 (0x1), region = 55 }

// kernel: hcn_forward.21
= control target key start
LH: loop header
LB: loop body
LE: loop exit
PB: predicated region body
PF: predicated region fallthrough
CT: control target
= control target key end

     0   :  { %s2079_s12 = smov 0   ;;  %s2081_s13 = smov 0   ;;  %s2474_s0 = inlined_call_operand.vmem [shape: bf16[1,4,40,128], index: 0, kind: input, shape index: {}]   ;;  %s2475_s1 = inlined_call_operand.vmem [shape: bf16[1,9,128,128], index: 1, kind: input, shape index: {}]   ;;  %s2476_s2 = inlined_call_operand.vmem [shape: f32[1,1,128], index: 2, kind: input, shape index: {}]   ;;  %s2477_s3 = inlined_call_operand.vmem [shape: bf16[1,4,1,2,128], index: 3, kind: output, shape index: {}]  }
   0x1   :  { %s2083_s14 = smov 0  }
   0x2 LB: > { %s22_s15 = sadd.s32 1, %s2051_s13  ;;  %p1446_p0 = scmp.ge.s32.totalorder %s2055_s14, 1  ;;  %s2055_s14 = sphi %s2083_s14, %s13_s14   ;;  %s2051_s13 = sphi %s2081_s13, %s2479_s13   ;;  %s2047_s12 = sphi %s2079_s12, %s2478_s12  }
   0x3   : > { %p23_p1 = scmp.ge.s32.totalorder %s22_s15, 4  ;;  %p175_p2 = scmp.lt.s32.totalorder %s2055_s14, 5 }
   0x5   : > { %s2481_s15 = smov (%p23_p1, %s22_s15), 0  ;;  %p176_p3 = pnand %p1446_p0, %p175_p2 }
   0x6   : > { %p215_p4 = scmp.lt.s32.totalorder (!%p176_p3), %s2047_s12, 3 }
   0x7   : > { %179 = sbr.rel (%p176_p3) target bundleno = 382 (0x17e), region = 32 }
   0xc   : > { %v1950_v0 = vld [vmem:[%s2475_s1 + $0x78] sm:$0xff]   ;;  %v2057_v1 = vmov 0.0   ;;  %v1952_v3 = vld [vmem:[%s2475_s1 + $0x70] sm:$0xff]   ;;  %vm2058_vm0 = vmmov 0   ;;  %s2483_s12 = smov (!%p215_p4, %s2047_s12), 3  ;;  %v1954_v5 = vld [vmem:[%s2475_s1 + $0x68] sm:$0xff]  }
   0xd   : > { %1743 = vmatprep.subr.bf16.mxu0 %v2057_v1  ;;  %1763 = vmatprep.subr.bf16.mxu1 %v2057_v1  ;;  %v1951_v2 = vld [vmem:[%s2475_s1 + $0x38] sm:$0xff]   ;;  %v1953_v4 = vld [vmem:[%s2475_s1 + $0x30] sm:$0xff]   ;;  %v1955_v6 = vld [vmem:[%s2475_s1 + $0x28] sm:$0xff]   ;;  %s1923_s28 = smul.u32 20, %s2483_s12  ;;  %vm283_vm1 = vsmask.f32 7424  ;;  %s236_s7 = scalar_lea.vmem %s2477_s3, %s2483_s12 }
   0xe   : > { %1744 = vmatpush3.bf16.msra.mxu0 %v1950_v0  ;;  %1759 = vmatprep.mubr.msk.bf16.mxu0 %vm2058_vm0, %v2057_v1  ;;  %v1956_v7 = vld [vmem:[%s2475_s1 + $0x60] sm:$0xff]   ;;  %v1958_v9 = vld [vmem:[%s2475_s1 + $0x58] sm:$0xff]   ;;  %v1960_v13 = vld [vmem:[%s2475_s1 + $0x50] sm:$0xff]   ;;  %vm497_vm2 = vcmask 1046528  }
   0xf   : > { %1764 = vmatpush3.bf16.msra.mxu1 %v1951_v2  ;;  %1745 = vmatprep.subr.bf16.mxu0 %v2057_v1  ;;  %v1957_v8 = vld [vmem:[%s2475_s1 + $0x20] sm:$0xff]   ;;  %s2139_s8 = scalar_lea.vmem %s2474_s0, %s1923_s28  ;;  %v1959_v10 = vld [vmem:[%s2475_s1 + $0x18] sm:$0xff]   ;;  %v1961_v16 = vld [vmem:[%s2475_s1 + $0x10] sm:$0xff]  }
  0x10   : > { %1765 = vmatprep.subr.bf16.mxu1 %v2057_v1  ;;  %1779 = vmatprep.mubr.msk.bf16.mxu1 %vm2058_vm0, %v2057_v1  ;;  %v239_v11 = vld [vmem:[%s2139_s8] sm:$0xf]  ;;  %v2151_v12 = vld [vmem:[%s2139_s8 + $0x4] sm:$0xf]  ;;  %v1962_v18 = vld [vmem:[%s2475_s1 + $0x48] sm:$0xff]  }
  0x11   : > { %v1464_v14 = vcombine.low %v239_v11, %v2151_v12  ;;  %v2158_v15 = vld [vmem:[%s2139_s8 + $0x8] ss:$0 sps:$4 sm:$0x11]   ;;  %v1964_v23 = vld [vmem:[%s2475_s1 + $0x40] sm:$0xff]   ;;  %v1968_v28 = vld [vmem:[%s2475_s1 + $0xb8] sm:$0xff]  }
  0x12   : > { %1746 = vmatpush3.bf16.msra.mxu0 %v1952_v3  ;;  %v292_v21 = vshll.u32 %v2158_v15, 16  ;;  %v1963_v22 = vld [vmem:[%s2475_s1 + $0x8] sm:$0xff]   ;;  %v1965_v24 = vld [vmem:[%s2475_s1] sm:$0xff]   ;;  %v1969_v29 = vld [vmem:[%s2475_s1 + $0xf8] sm:$0xff]   ;;  %v499_v52 = vrot.slane %v2158_v15, 1 }
  0x13   : > { %1766 = vmatpush3.bf16.msra.mxu1 %v1953_v4  ;;  %1747 = vmatprep.subr.bf16.mxu0 %v2057_v1  ;;  %v287_v17 = vshll.u32 %v1464_v14, 16  ;;  %v285_v19 = vshrl.u32 %v1464_v14, 16  ;;  %v1970_v30 = vld [vmem:[%s2475_s1 + $0xb0] sm:$0xff]   ;;  %v1972_v32 = vld [vmem:[%s2475_s1 + $0xa8] sm:$0xff]   ;;  %v1974_v34 = vld [vmem:[%s2475_s1 + $0xa0] sm:$0xff]  }
  0x14   : > { %1767 = vmatprep.subr.bf16.mxu1 %v2057_v1  ;;  %v294_v26 = vrot.slane %v292_v21, 1  ;;  %v1971_v31 = vld [vmem:[%s2475_s1 + $0xf0] sm:$0xff]   ;;  %v1973_v33 = vld [vmem:[%s2475_s1 + $0xe8] sm:$0xff]   ;;  %v1975_v35 = vld [vmem:[%s2475_s1 + $0xe0] sm:$0xff]  }
  0x15   : > { %v289_v20 = vrot.slane %v287_v17, 1  ;;  %v1976_v36 = vld [vmem:[%s2475_s1 + $0x98] sm:$0xff]   ;;  %v1978_v38 = vld [vmem:[%s2475_s1 + $0x90] sm:$0xff]   ;;  %v476_v40 = vld [vmem:[%s2139_s8] sm:$0xe] }
  0x16   : > { %1748 = vmatpush3.bf16.msra.mxu0 %v1954_v5  ;;  %v1977_v37 = vld [vmem:[%s2475_s1 + $0xd8] sm:$0xff]   ;;  %v1979_v39 = vld [vmem:[%s2475_s1 + $0xd0] sm:$0xff]   ;;  %v706_v41 = vld [vmem:[%s2139_s8 + $0x4] sm:$0xf]  ;;  %v1498_v46 = vcombine.low %v476_v40, %v2151_v12 }
  0x17   : > { %1768 = vmatpush3.bf16.msra.mxu1 %v1955_v6  ;;  %1749 = vmatprep.subr.bf16.mxu0 %v2057_v1  ;;  %v290_v25 = vor.u32 %v289_v20, %v285_v19  ;;  %v2237_v42 = vld [vmem:[%s2139_s8 + $0x8] sm:$0xf]  ;;  %v2242_v44 = vld [vmem:[%s2139_s8 + $0xc] ss:$0 sps:$4 sm:$0x11]   ;;  %v1982_v51 = vld [vmem:[%s2475_s1 + $0x80] sm:$0xff]  }
  0x18   : > { %1769 = vmatprep.subr.bf16.mxu1 %v2057_v1  ;;  %v1548_v43 = vcombine.low %v706_v41, %v2237_v42  ;;  %v1980_v45 = vld [vmem:[%s2475_s1 + $0x88] sm:$0xff]   ;;  %v742_v49 = vshll.u32 %v2242_v44, 16  ;;  %v1983_v55 = vld [vmem:[%s2475_s1 + $0xc0] sm:$0xff]   ;;  %v498_v56 = vrot.slane %v1498_v46, 1  ;;  %v1985_v61 = vld [vmem:[%s2475_s1 + $0x138] sm:$0xff]  }
  0x19   : > { %v295_v27 = vsel %vm283_vm1, %v290_v25, %v294_v26  ;;  %v1981_v50 = vld [vmem:[%s2475_s1 + $0xc8] sm:$0xff]   ;;  %v1987_v63 = vld [vmem:[%s2475_s1 + $0x178] sm:$0xff]   ;;  %v1988_v0 = vld [vmem:[%s2475_s1 + $0x130] sm:$0xff]  }
  0x1a   : > { %1750 = vmatpush3.bf16.msra.mxu0 %v1956_v7  ;;  %v735_v47 = vshrl.u32 %v1548_v43, 16  ;;  %v737_v48 = vshll.u32 %v1548_v43, 16  ;;  %v744_v54 = vrot.slane %v742_v49, 1  ;;  %v593_v58 = vld [vmem:[%s2139_s8 + $0x8] sm:$0xf]  ;;  %v500_v60 = vsel %vm497_vm2, %v498_v56, %v499_v52  ;;  %v1989_v2 = vld [vmem:[%s2475_s1 + $0x170] sm:$0xff]  }
  0x1b   : > { %1770 = vmatpush3.bf16.msra.mxu1 %v1957_v8  ;;  %1751 = vmatprep.subr.bf16.mxu0 %v2057_v1  ;;  %v1523_v62 = vcombine.low %v2151_v12, %v593_v58  ;;  %v1990_v3 = vld [vmem:[%s2475_s1 + $0x128] sm:$0xff]   ;;  %v2024_v8 = vld [vmem:[%s2139_s8 + $0x10] ss:$0 sps:$4 sm:$0x11]   ;;  %v838_v26 = vld [vmem:[%s2139_s8 + $0x4] sm:$0xe] }
  0x1c   : > { %1771 = vmatprep.subr.bf16.mxu1 %v2057_v1  ;;  %v739_v53 = vrot.slane %v737_v48, 1  ;;  %v1991_v4 = vld [vmem:[%s2475_s1 + $0x168] sm:$0xff]   ;;  %v1997_v25 = vld [vmem:[%s2475_s1 + $0x150] sm:$0xff]   ;;  %v2011_v43 = vld [vmem:[%s2475_s1 + $0x1a0] sm:$0xff]  }
  0x1d   : > { %v1067_v5 = vld [vmem:[%s2139_s8 + $0x8] sm:$0xf]  ;;  %v1068_v6 = vld [vmem:[%s2139_s8 + $0xc] sm:$0xf]  ;;  %v2014_v46 = vld [vmem:[%s2475_s1 + $0x1d8] sm:$0xff]  }
  0x1e   : > { %1752 = vmatpush3.bf16.msra.mxu0 %v1958_v9  ;;  %v740_v57 = vor.u32 %v739_v53, %v735_v47  ;;  %v1624_v7 = vcombine.low %v1067_v5, %v1068_v6  ;;  %v1992_v9 = vld [vmem:[%s2475_s1 + $0x120] sm:$0xff]   ;;  %v1199_v19 = vld [vmem:[%s2139_s8 + $0x8] sm:$0xe]  ;;  %v2015_v47 = vld [vmem:[%s2475_s1 + $0x190] sm:$0xff]  }
  0x1f   : > { %1772 = vmatpush3.bf16.msra.mxu1 %v1959_v10  ;;  %1753 = vmatprep.subr.bf16.mxu0 %v2057_v1  ;;  %v1993_v10 = vld [vmem:[%s2475_s1 + $0x160] sm:$0xff]   ;;  %v1650_v21 = vcombine.low %v1199_v19, %v1068_v6  ;;  %v2009_v40 = vld [vmem:[%s2475_s1 + $0x1a8] sm:$0xff]   ;;  %v2016_v48 = vld [vmem:[%s2475_s1 + $0x1d0] sm:$0xff]  }
  0x20   : > { %1773 = vmatprep.subr.bf16.mxu1 %v2057_v1  ;;  %v2265_v59 = vsel %vm283_vm1, %v740_v57, %v744_v54  ;;  %v1096_v11 = vshrl.u32 %v1624_v7, 16  ;;  %v1098_v12 = vshll.u32 %v1624_v7, 16  ;;  %v2010_v41 = vld [vmem:[%s2475_s1 + $0x1e8] sm:$0xff]   ;;  %v2020_v53 = vld [vmem:[%s2475_s1 + $0x1c0] sm:$0xff]   ;;  %v2025_v56 = vld [vmem:[%s2475_s1 + $0x230] sm:$0xff]  }
  0x21   : > { %v2017_v49 = vld [vmem:[%s2475_s1 + $0x188] sm:$0xff]   ;;  %v2027_v57 = vld [vmem:[%s2475_s1 + $0x220] sm:$0xff]   ;;  %v2028_v58 = vld [vmem:[%s2475_s1 + $0x218] sm:$0xff]  }
  0x22   : > { %1754 = vmatpush3.bf16.msra.mxu0 %v1960_v13  ;;  %v1103_v13 = vshll.u32 %v2024_v8, 16  ;;  %v954_v52 = vld [vmem:[%s2139_s8 + $0xc] sm:$0xf] }
  0x23   : > { %1774 = vmatpush3.bf16.msra.mxu1 %v1961_v16  ;;  %1755 = vmatprep.subr.bf16.mxu0 %v2057_v1  ;;  %v1994_v16 = vld [vmem:[%s2475_s1 + $0x118] sm:$0xff]   ;;  %v1599_v54 = vcombine.low %v2237_v42, %v954_v52 }
  0x24   : > { %1775 = vmatprep.subr.bf16.mxu1 %v2057_v1  ;;  %v1105_v15 = vrot.slane %v1103_v13, 1 }
  0x26   : > { %1756 = vmatpush3.bf16.msra.mxu0 %v1962_v18  ;;  %v1995_v18 = vld [vmem:[%s2475_s1 + $0x158] sm:$0xff]  }
  0x27   : > { %1776 = vmatpush3.bf16.msra.mxu1 %v1963_v22  ;;  %1757 = vmatprep.subr.bf16.mxu0 %v2057_v1  ;;  %v1221_v22 = vrot.slane %v2024_v8, 1 }
  0x28   : > { %1777 = vmatprep.subr.bf16.mxu1 %v2057_v1 }
  0x2a   : > { %1758 = vmatpush3.bf16.msra.mxu0 %v1964_v23  ;;  %v1996_v23 = vld [vmem:[%s2475_s1 + $0x110] sm:$0xff]  }
  0x2b   : > { %1778 = vmatpush3.bf16.msra.mxu1 %v1965_v24  ;;  %1783 = vmatprep.subr.bf16.mxu0 %v2057_v1  ;;  %v1220_v24 = vrot.slane %v1650_v21, 1 }
  0x2c   : > { %1803 = vmatprep.subr.bf16.mxu1 %v2057_v1 }
  0x2d   : > { %1760 = vmatmul.mubr.bf16.vlgmr.msra.gmra.mxu0 %v295_v27  ;;  %v2330_v27 = vsel %vm497_vm2, %v1220_v24, %v1221_v22 }
  0x2e   : > { %1780 = vmatmul.mubr.bf16.vlgmr.msra.gmra.mxu1 %v1464_v14  ;;  %1784 = vmatpush3.bf16.msra.mxu0 %v1968_v28  ;;  %v1100_v14 = vrot.slane %v1098_v12, 1  ;;  %v1998_v28 = vld [vmem:[%s2475_s1 + $0x108] sm:$0xff]  }
  0x2f   : > { %1804 = vmatpush3.bf16.msra.mxu1 %v1969_v29  ;;  %1785 = vmatprep.subr.bf16.mxu0 %v2057_v1  ;;  %v1999_v29 = vld [vmem:[%s2475_s1 + $0x148] sm:$0xff]  }
  0x30   : > { %1805 = vmatprep.subr.bf16.mxu1 %v2057_v1  ;;  %1799 = vmatprep.mubr.msk.bf16.mxu0 %vm2058_vm0, %v2057_v1  ;;  %v1101_v17 = vor.u32 %v1100_v14, %v1096_v11 }
  0x31   : > { %1819 = vmatprep.mubr.msk.bf16.mxu1 %vm2058_vm0, %v2057_v1 }
  0x32   : > { %1786 = vmatpush3.bf16.msra.mxu0 %v1970_v30  ;;  %v2318_v20 = vsel %vm283_vm1, %v1101_v17, %v1105_v15  ;;  %v1574_v30 = vcombine.low %v838_v26, %v2237_v42  ;;  %v2026_v42 = vld [vmem:[%s2475_s1 + $0x228] sm:$0xff]  }
  0x33   : > { %1806 = vmatpush3.bf16.msra.mxu1 %v1971_v31  ;;  %1787 = vmatprep.subr.bf16.mxu0 %v2057_v1  ;;  %v2000_v31 = vld [vmem:[%s2475_s1 + $0x100] sm:$0xff]  }
  0x34   : > { %1807 = vmatprep.subr.bf16.mxu1 %v2057_v1 }
  0x36   : > { %1788 = vmatpush3.bf16.msra.mxu0 %v1972_v32  ;;  %v2001_v32 = vld [vmem:[%s2475_s1 + $0x140] sm:$0xff]  }
  0x37   : > { %1808 = vmatpush3.bf16.msra.mxu1 %v1973_v33  ;;  %1789 = vmatprep.subr.bf16.mxu0 %v2057_v1  ;;  %v859_v33 = vrot.slane %v1574_v30, 1 }
  0x38   : > { %1809 = vmatprep.subr.bf16.mxu1 %v2057_v1 }
  0x3a   : > { %1790 = vmatpush3.bf16.msra.mxu0 %v1974_v34  ;;  %v860_v34 = vrot.slane %v2242_v44, 1  ;;  %v2012_v44 = vld [vmem:[%s2475_s1 + $0x1e0] sm:$0xff]  }
  0x3b   : > { %1810 = vmatpush3.bf16.msra.mxu1 %v1975_v35  ;;  %1791 = vmatprep.subr.bf16.mxu0 %v2057_v1  ;;  %v2004_v35 = vld [vmem:[%s2475_s1 + $0x1b8] sm:$0xff]  }
  0x3c   : > { %1811 = vmatprep.subr.bf16.mxu1 %v2057_v1 }
  0x3e   : > { %1792 = vmatpush3.bf16.msra.mxu0 %v1976_v36  ;;  %v861_v36 = vsel %vm497_vm2, %v859_v33, %v860_v34 }
  0x3f   : > { %1812 = vmatpush3.bf16.msra.mxu1 %v1977_v37  ;;  %1793 = vmatprep.subr.bf16.mxu0 %v2057_v1  ;;  %v2006_v37 = vld [vmem:[%s2475_s1 + $0x1f8] sm:$0xff]  }
  0x40   : > { %1813 = vmatprep.subr.bf16.mxu1 %v2057_v1 }
  0x42   : > { %1794 = vmatpush3.bf16.msra.mxu0 %v1978_v38  ;;  %v2007_v38 = vld [vmem:[%s2475_s1 + $0x1b0] sm:$0xff]  }
  0x43   : > { %1814 = vmatpush3.bf16.msra.mxu1 %v1979_v39  ;;  %1795 = vmatprep.subr.bf16.mxu0 %v2057_v1  ;;  %v2008_v39 = vld [vmem:[%s2475_s1 + $0x1f0] sm:$0xff]  }
  0x44   : > { %1815 = vmatprep.subr.bf16.mxu1 %v2057_v1 }
  0x46   : > { %1796 = vmatpush3.bf16.msra.mxu0 %v1980_v45  ;;  %v2013_v45 = vld [vmem:[%s2475_s1 + $0x198] sm:$0xff]  }
  0x47   : > { %1816 = vmatpush3.bf16.msra.mxu1 %v1981_v50  ;;  %1797 = vmatprep.subr.bf16.mxu0 %v2057_v1  ;;  %v2018_v50 = vld [vmem:[%s2475_s1 + $0x1c8] sm:$0xff]  }
  0x48   : > { %1817 = vmatprep.subr.bf16.mxu1 %v2057_v1 }
  0x4a   : > { %1798 = vmatpush3.bf16.msra.mxu0 %v1982_v51  ;;  %v2019_v51 = vld [vmem:[%s2475_s1 + $0x180] sm:$0xff]  }
  0x4b   : > { %1818 = vmatpush3.bf16.msra.mxu1 %v1983_v55  ;;  %1823 = vmatprep.subr.bf16.mxu0 %v2057_v1  ;;  %v2022_v55 = vld [vmem:[%s2475_s1 + $0x238] sm:$0xff]  }
  0x4c   : > { %1843 = vmatprep.subr.bf16.mxu1 %v2057_v1 }
  0x4d   : > { %1800 = vmatmul.mubr.bf16.vlgmr.msra.gmra.mxu0 %v500_v60  ;;  %v2030_v60 = vld [vmem:[%s2475_s1 + $0x208] sm:$0xff]  }
  0x4e   : > { %1824 = vmatpush3.bf16.msra.mxu0 %v1985_v61  ;;  %1820 = vmatmul.mubr.bf16.vlgmr.msra.gmra.mxu1 %v1523_v62  ;;  %v2031_v61 = vld [vmem:[%s2475_s1 + $0x200] sm:$0xff]  }
  0x4f   : > { %1844 = vmatpush3.bf16.msra.mxu1 %v1987_v63  ;;  %1825 = vmatprep.subr.bf16.mxu0 %v2057_v1 }
  0x50   : > { %1845 = vmatprep.subr.bf16.mxu1 %v2057_v1  ;;  %1839 = vmatprep.mubr.msk.bf16.mxu0 %vm2058_vm0, %v2057_v1 }
  0x51   : > { %1859 = vmatprep.mubr.msk.bf16.mxu1 %vm2058_vm0, %v2057_v1 }
  0x52   : > { %1826 = vmatpush3.bf16.msra.mxu0 %v1988_v0 }
  0x53   : > { %1846 = vmatpush3.bf16.msra.mxu1 %v1989_v2  ;;  %1827 = vmatprep.subr.bf16.mxu0 %v2057_v1 }
  0x54   : > { %1847 = vmatprep.subr.bf16.mxu1 %v2057_v1 }
  0x56   : > { %1828 = vmatpush3.bf16.msra.mxu0 %v1990_v3 }
  0x57   : > { %1848 = vmatpush3.bf16.msra.mxu1 %v1991_v4  ;;  %1829 = vmatprep.subr.bf16.mxu0 %v2057_v1 }
  0x58   : > { %1849 = vmatprep.subr.bf16.mxu1 %v2057_v1 }
  0x5a   : > { %1830 = vmatpush3.bf16.msra.mxu0 %v1992_v9 }
  0x5b   : > { %1850 = vmatpush3.bf16.msra.mxu1 %v1993_v10  ;;  %1831 = vmatprep.subr.bf16.mxu0 %v2057_v1 }
  0x5c   : > { %1851 = vmatprep.subr.bf16.mxu1 %v2057_v1 }
  0x5e   : > { %1832 = vmatpush3.bf16.msra.mxu0 %v1994_v16 }
  0x5f   : > { %1852 = vmatpush3.bf16.msra.mxu1 %v1995_v18  ;;  %1833 = vmatprep.subr.bf16.mxu0 %v2057_v1 }
  0x60   : > { %1853 = vmatprep.subr.bf16.mxu1 %v2057_v1 }
  0x62   : > { %1834 = vmatpush3.bf16.msra.mxu0 %v1996_v23 }
  0x63   : > { %1854 = vmatpush3.bf16.msra.mxu1 %v1997_v25  ;;  %1835 = vmatprep.subr.bf16.mxu0 %v2057_v1 }
  0x64   : > { %1855 = vmatprep.subr.bf16.mxu1 %v2057_v1 }
  0x66   : > { %1836 = vmatpush3.bf16.msra.mxu0 %v1998_v28 }
  0x67   : > { %1856 = vmatpush3.bf16.msra.mxu1 %v1999_v29  ;;  %1837 = vmatprep.subr.bf16.mxu0 %v2057_v1 }
  0x68   : > { %1857 = vmatprep.subr.bf16.mxu1 %v2057_v1 }
  0x6a   : > { %1838 = vmatpush3.bf16.msra.mxu0 %v2000_v31 }
  0x6b   : > { %1858 = vmatpush3.bf16.msra.mxu1 %v2001_v32  ;;  %1863 = vmatprep.subr.bf16.mxu0 %v2057_v1 }
  0x6c   : > { %1883 = vmatprep.subr.bf16.mxu1 %v2057_v1 }
  0x6d   : > { %1840 = vmatmul.mubr.bf16.vlgmr.msra.gmra.mxu0 %v2265_v59  ;;  %v2029_v59 = vld [vmem:[%s2475_s1 + $0x210] sm:$0xff]  }
  0x6e   : > { %1864 = vmatpush3.bf16.msra.mxu0 %v2004_v35  ;;  %1860 = vmatmul.mubr.bf16.vlgmr.msra.gmra.mxu1 %v861_v36 }
  0x6f   : > { %1884 = vmatpush3.bf16.msra.mxu1 %v2006_v37  ;;  %1865 = vmatprep.subr.bf16.mxu0 %v2057_v1 }
  0x70   : > { %1885 = vmatprep.subr.bf16.mxu1 %v2057_v1  ;;  %1879 = vmatprep.mubr.msk.bf16.mxu0 %vm2058_vm0, %v2057_v1 }
  0x71   : > { %1899 = vmatprep.mubr.msk.bf16.mxu1 %vm2058_vm0, %v2057_v1 }
  0x72   : > { %1866 = vmatpush3.bf16.msra.mxu0 %v2007_v38 }
  0x73   : > { %1886 = vmatpush3.bf16.msra.mxu1 %v2008_v39  ;;  %1867 = vmatprep.subr.bf16.mxu0 %v2057_v1 }
  0x74   : > { %1887 = vmatprep.subr.bf16.mxu1 %v2057_v1 }
  0x76   : > { %1868 = vmatpush3.bf16.msra.mxu0 %v2009_v40 }
  0x77   : > { %1888 = vmatpush3.bf16.msra.mxu1 %v2010_v41  ;;  %1869 = vmatprep.subr.bf16.mxu0 %v2057_v1 }
  0x78   : > { %1889 = vmatprep.subr.bf16.mxu1 %v2057_v1 }
  0x7a   : > { %1870 = vmatpush3.bf16.msra.mxu0 %v2011_v43 }
  0x7b   : > { %1890 = vmatpush3.bf16.msra.mxu1 %v2012_v44  ;;  %1871 = vmatprep.subr.bf16.mxu0 %v2057_v1  ;;  %v1659_v44 = vld [vmem:[%s2476_s2] ss:$0 sm:$0xff] }
  0x7c   : > { %1891 = vmatprep.subr.bf16.mxu1 %v2057_v1 }
  0x7e   : > { %1872 = vmatpush3.bf16.msra.mxu0 %v2013_v45 }
  0x7f   : > { %1892 = vmatpush3.bf16.msra.mxu1 %v2014_v46  ;;  %1873 = vmatprep.subr.bf16.mxu0 %v2057_v1 }
  0x80   : > { %1893 = vmatprep.subr.bf16.mxu1 %v2057_v1 }
  0x82   : > { %1874 = vmatpush3.bf16.msra.mxu0 %v2015_v47 }
  0x83   : > { %1894 = vmatpush3.bf16.msra.mxu1 %v2016_v48  ;;  %1875 = vmatprep.subr.bf16.mxu0 %v2057_v1 }
  0x84   : > { %1895 = vmatprep.subr.bf16.mxu1 %v2057_v1 }
  0x86   : > { %1876 = vmatpush3.bf16.msra.mxu0 %v2017_v49 }
  0x87   : > { %1896 = vmatpush3.bf16.msra.mxu1 %v2018_v50  ;;  %1877 = vmatprep.subr.bf16.mxu0 %v2057_v1 }
  0x88   : > { %1897 = vmatprep.subr.bf16.mxu1 %v2057_v1 }
  0x8a   : > { %1878 = vmatpush3.bf16.msra.mxu0 %v2019_v51 }
  0x8b   : > { %1898 = vmatpush3.bf16.msra.mxu1 %v2020_v53  ;;  %1903 = vmatprep.subr.bf16.mxu0 %v2057_v1 }
  0x8d   : > { %1880 = vmatmul.mubr.bf16.vlgmr.msra.gmra.mxu0 %v1599_v54 }
  0x8e   : > { %1904 = vmatpush3.bf16.msra.mxu0 %v2022_v55  ;;  %1900 = vmatmul.mubr.bf16.vlgmr.msra.gmra.mxu1 %v2318_v20 }
  0x8f   : > { %1905 = vmatprep.subr.bf16.mxu0 %v2057_v1  ;;  %1919 = vmatprep.mubr.msk.bf16.mxu0 %vm2058_vm0, %v2057_v1 }
  0x92   : > { %1906 = vmatpush3.bf16.msra.mxu0 %v2025_v56 }
  0x93   : > { %1907 = vmatprep.subr.bf16.mxu0 %v2057_v1 }
  0x96   : > { %1908 = vmatpush3.bf16.msra.mxu0 %v2026_v42 }
  0x97   : > { %1909 = vmatprep.subr.bf16.mxu0 %v2057_v1 }
  0x9a   : > { %1910 = vmatpush3.bf16.msra.mxu0 %v2027_v57 }
  0x9b   : > { %1911 = vmatprep.subr.bf16.mxu0 %v2057_v1 }
  0x9e   : > { %1912 = vmatpush3.bf16.msra.mxu0 %v2028_v58 }
  0x9f   : > { %1913 = vmatprep.subr.bf16.mxu0 %v2057_v1 }
  0xa2   : > { %1914 = vmatpush3.bf16.msra.mxu0 %v2029_v59 }
  0xa3   : > { %1915 = vmatprep.subr.bf16.mxu0 %v2057_v1 }
  0xa6   : > { %1916 = vmatpush3.bf16.msra.mxu0 %v2030_v60 }
  0xa7   : > { %1917 = vmatprep.subr.bf16.mxu0 %v2057_v1 }
  0xaa   : > { %1918 = vmatpush3.bf16.msra.mxu0 %v2031_v61 }
  0xad   : > { %1920 = vmatmul.mubr.bf16.vlgmr.msra.gmra.mxu0 %v2330_v27 }
  0xed   : > { %v379_v62 = vpop.f32.mrf.mxu0 }
  0xee   : > { %v469_v63 = vpop.f32.mrf.mxu1 }
  0xef   : > { %v470_v0 = vadd.f32 %v469_v63, %v379_v62  ;;  %v1761_v2 = vpop.f32.mrf.mxu0 }
  0xf0   : > { %v1781_v3 = vpop.f32.mrf.mxu1 }
  0xf1   : > { %v382_v4 = vpop.f32.mrf.mxu0 }
  0xf2   : > { %v472_v5 = vpop.f32.mrf.mxu1 }
  0xf3   : > { %v473_v6 = vadd.f32 %v472_v5, %v382_v4  ;;  %v1762_v7 = vpop.f32.mrf.mxu0 }
  0xf4   : > { %v1782_v8 = vpop.f32.mrf.mxu1 }
 0x10d   : > { %v584_v9 = vpop.f32.mrf.mxu0 }
 0x10e   : > { %v591_v10 = vadd.f32 %v584_v9, %v470_v0  ;;  %v697_v11 = vpop.f32.mrf.mxu1 }
 0x10f   : > { %v1801_v12 = vpop.f32.mrf.mxu0 }
 0x110   : > { %v704_v13 = vadd.f32 %v697_v11, %v591_v10  ;;  %v1821_v14 = vpop.f32.mrf.mxu1 }
 0x111   : > { %v587_v1 = vpop.f32.mrf.mxu0 }
 0x112   : > { %v592_v15 = vadd.f32 %v587_v1, %v473_v6  ;;  %v700_v16 = vpop.f32.mrf.mxu1 }
 0x113   : > { %v1802_v17 = vpop.f32.mrf.mxu0 }
 0x114   : > { %v705_v18 = vadd.f32 %v700_v16, %v592_v15  ;;  %v1822_v19 = vpop.f32.mrf.mxu1 }
 0x12d   : > { %v829_v20 = vpop.f32.mrf.mxu0 }
 0x12e   : > { %v945_v21 = vpop.f32.mrf.mxu1  ;;  %v836_v36 = vadd.f32 %v829_v20, %v704_v13 }
 0x12f   : > { %v1841_v22 = vpop.f32.mrf.mxu0 }
 0x130   : > { %v1861_v23 = vpop.f32.mrf.mxu1  ;;  %v952_v37 = vadd.f32 %v945_v21, %v836_v36 }
 0x131   : > { %v832_v24 = vpop.f32.mrf.mxu0 }
 0x132   : > { %v948_v25 = vpop.f32.mrf.mxu1  ;;  %v837_v38 = vadd.f32 %v832_v24, %v705_v18 }
 0x133   : > { %v1842_v26 = vpop.f32.mrf.mxu0 }
 0x134   : > { %v1862_v27 = vpop.f32.mrf.mxu1  ;;  %v953_v40 = vadd.f32 %v948_v25, %v837_v38 }
 0x14d   : > { %v1058_v28 = vpop.f32.mrf.mxu0 }
 0x14e   : > { %v1190_v29 = vpop.f32.mrf.mxu1  ;;  %v1065_v39 = vadd.f32 %v1058_v28, %v952_v37 }
 0x14f   : > { %v1881_v30 = vpop.f32.mrf.mxu0 }
 0x150   : > { %v1901_v31 = vpop.f32.mrf.mxu1  ;;  %v1197_v41 = vadd.f32 %v1190_v29, %v1065_v39 }
 0x151   : > { %v1061_v32 = vpop.f32.mrf.mxu0 }
 0x152   : > { %v1193_v33 = vpop.f32.mrf.mxu1  ;;  %v1066_v43 = vadd.f32 %v1061_v32, %v953_v40 }
 0x153   : > { %v1882_v34 = vpop.f32.mrf.mxu0 }
 0x154   : > { %v1902_v35 = vpop.f32.mrf.mxu1  ;;  %v1198_v48 = vadd.f32 %v1193_v33, %v1066_v43 }
 0x16d   : > { %v1306_v45 = vpop.f32.mrf.mxu0 }
 0x16e   : > { %v1313_v46 = vadd.f32 %v1306_v45, %v1197_v41 }
 0x16f   : > { %v1921_v47 = vpop.f32.mrf.mxu0 }
 0x170   : > { %v1321_v49 = vadd.f32 %v1659_v44, %v1313_v46 }
 0x171   : > { %v1309_v50 = vpop.f32.mrf.mxu0 }
 0x172   : > { %v1314_v51 = vadd.f32 %v1309_v50, %v1198_v48  ;;  %v1325_v53 = vmul.f32 0.25, %v1321_v49  ;;  %vm1323_vm3 = vcmp.ge.f32.partialorder %v1321_v49, 0.0 }
 0x173   : > { %v1922_v52 = vpop.f32.mrf.mxu0 }
 0x174   : > { %v1322_v54 = vadd.f32 %v1659_v44, %v1314_v51  ;;  %v1327_v56 = vsel %vm1323_vm3, %v1321_v49, %v1325_v53 }
 0x176   : > { %vm1324_vm4 = vcmp.ge.f32.partialorder %v1322_v54, 0.0  ;;  %v1326_v55 = vmul.f32 0.25, %v1322_v54 }
 0x178   : > { %v1328_v42 = vsel %vm1324_vm4, %v1322_v54, %v1326_v55 }
 0x179   : > { %v1329_v57 = vmax.f32 %v1327_v56, %v1328_v42 }
 0x17b   : > { %v1330_v58 = vpack.c.bf16 %v1329_v57, %v1329_v57 }
 0x17d   : > { %1331 = vst [vmem:[%s236_s7] sm:$0x1] %v1330_v58 }
 0x17e PF: > { %s13_s14 = sadd.s32 1, %s2055_s14   ;;  %s2478_s12 = smov %s2051_s13 }
 0x17f   : > { %p10_p5 = scmp.ge.s32.totalorder %s13_s14, 6   ;;  %s2479_s13 = smov %s2481_s15 }
 0x181   :  { %12 = sbr.rel (!%p10_p5) target bundleno = 2 (0x2), region = 76 }

// kernel: hcn_forward.23
= control target key start
LH: loop header
LB: loop body
LE: loop exit
PB: predicated region body
PF: predicated region fallthrough
CT: control target
= control target key end

     0   :  { %v906_v2 = vmov 0   ;;  %s1142_s0 = inlined_call_operand.vmem [shape: bf16[2,128], index: 0, kind: input, shape index: {}]   ;;  %s1143_s1 = inlined_call_operand.vmem [shape: bf16[128,512], index: 1, kind: input, shape index: {}]   ;;  %s1144_s2 = inlined_call_operand.vmem [shape: f32[1,512], index: 2, kind: input, shape index: {}]   ;;  %s1145_s3 = inlined_call_operand.vmem [shape: bf16[512,128], index: 3, kind: input, shape index: {}]   ;;  %s1146_s4 = inlined_call_operand.vmem [shape: f32[1,128], index: 4, kind: input, shape index: {}]   ;;  %s1147_s5 = inlined_call_operand.hbm [shape: f32[2,128], index: 5, kind: output, shape index: {}]  }
   0x1   :  { %v804_v0 = vld [vmem:[%s1143_s1 + $0xe4] ss:$16 sps:$4 sm:$0xff]   ;;  %v806_v1 = vld [vmem:[%s1143_s1 + $0xec] ss:$16 sps:$4 sm:$0xff]   ;;  %269 = vmatprep.mubr.bf16.mxu0 %v906_v2  ;;  %310 = vmatprep.mubr.bf16.mxu1 %v906_v2  ;;  %v808_v3 = vld [vmem:[%s1143_s1 + $0xe0] ss:$16 sps:$4 sm:$0xff]  }
   0x2   :  { %237 = vmatprep.subr.bf16.mxu0 %v804_v0  ;;  %v809_v4 = vld [vmem:[%s1143_s1 + $0xe8] ss:$16 sps:$4 sm:$0xff]   ;;  %278 = vmatprep.subr.bf16.mxu1 %v806_v1  ;;  %v810_v5 = vld [vmem:[%s1143_s1 + $0xc4] ss:$16 sps:$4 sm:$0xff]   ;;  %v812_v6 = vld [vmem:[%s1143_s1 + $0xcc] ss:$16 sps:$4 sm:$0xff]  }
   0x3   :  { %238 = vmatpush1.bf16.msra.mxu0 %v808_v3  ;;  %279 = vmatpush1.bf16.msra.mxu1 %v809_v4  ;;  %v814_v7 = vld [vmem:[%s1143_s1 + $0xc0] ss:$16 sps:$4 sm:$0xff]   ;;  %v815_v8 = vld [vmem:[%s1143_s1 + $0xc8] ss:$16 sps:$4 sm:$0xff]   ;;  %v816_v9 = vld [vmem:[%s1143_s1 + $0xa4] ss:$16 sps:$4 sm:$0xff]  }
   0x4   :  { %239 = vmatprep.subr.bf16.mxu0 %v810_v5  ;;  %280 = vmatprep.subr.bf16.mxu1 %v812_v6  ;;  %v818_v10 = vld [vmem:[%s1143_s1 + $0xac] ss:$16 sps:$4 sm:$0xff]   ;;  %v820_v11 = vld [vmem:[%s1143_s1 + $0xa0] ss:$16 sps:$4 sm:$0xff]   ;;  %v821_v12 = vld [vmem:[%s1143_s1 + $0xa8] ss:$16 sps:$4 sm:$0xff]  }
   0x5   :  { %v822_v13 = vld [vmem:[%s1143_s1 + $0x84] ss:$16 sps:$4 sm:$0xff]   ;;  %v824_v14 = vld [vmem:[%s1143_s1 + $0x8c] ss:$16 sps:$4 sm:$0xff]   ;;  %v826_v15 = vld [vmem:[%s1143_s1 + $0x80] ss:$16 sps:$4 sm:$0xff]  }
   0x6   :  { %v827_v16 = vld [vmem:[%s1143_s1 + $0x88] ss:$16 sps:$4 sm:$0xff]   ;;  %v828_v17 = vld [vmem:[%s1143_s1 + $0x64] ss:$16 sps:$4 sm:$0xff]   ;;  %v830_v18 = vld [vmem:[%s1143_s1 + $0x6c] ss:$16 sps:$4 sm:$0xff]  }
   0x7   :  { %240 = vmatpush1.bf16.msra.mxu0 %v814_v7  ;;  %281 = vmatpush1.bf16.msra.mxu1 %v815_v8  ;;  %v832_v19 = vld [vmem:[%s1143_s1 + $0x60] ss:$16 sps:$4 sm:$0xff]   ;;  %v833_v20 = vld [vmem:[%s1143_s1 + $0x68] ss:$16 sps:$4 sm:$0xff]   ;;  %v834_v21 = vld [vmem:[%s1143_s1 + $0x44] ss:$16 sps:$4 sm:$0xff]  }
   0x8   :  { %241 = vmatprep.subr.bf16.mxu0 %v816_v9  ;;  %282 = vmatprep.subr.bf16.mxu1 %v818_v10  ;;  %v836_v22 = vld [vmem:[%s1143_s1 + $0x4c] ss:$16 sps:$4 sm:$0xff]   ;;  %v838_v23 = vld [vmem:[%s1143_s1 + $0x40] ss:$16 sps:$4 sm:$0xff]   ;;  %v839_v24 = vld [vmem:[%s1143_s1 + $0x48] ss:$16 sps:$4 sm:$0xff]  }
   0x9   :  { %v840_v25 = vld [vmem:[%s1143_s1 + $0x24] ss:$16 sps:$4 sm:$0xff]   ;;  %v842_v26 = vld [vmem:[%s1143_s1 + $0x2c] ss:$16 sps:$4 sm:$0xff]   ;;  %v844_v27 = vld [vmem:[%s1143_s1 + $0x20] ss:$16 sps:$4 sm:$0xff]  }
   0xa   :  { %v845_v28 = vld [vmem:[%s1143_s1 + $0x28] ss:$16 sps:$4 sm:$0xff]   ;;  %v846_v29 = vld [vmem:[%s1143_s1 + $0x4] ss:$16 sps:$4 sm:$0xff]   ;;  %v848_v30 = vld [vmem:[%s1143_s1 + $0xc] ss:$16 sps:$4 sm:$0xff]  }
   0xb   :  { %242 = vmatpush1.bf16.msra.mxu0 %v820_v11  ;;  %283 = vmatpush1.bf16.msra.mxu1 %v821_v12  ;;  %v850_v31 = vld [vmem:[%s1143_s1] ss:$16 sps:$4 sm:$0xff]   ;;  %v851_v32 = vld [vmem:[%s1143_s1 + $0x8] ss:$16 sps:$4 sm:$0xff]  }
   0xc   :  { %243 = vmatprep.subr.bf16.mxu0 %v822_v13  ;;  %284 = vmatprep.subr.bf16.mxu1 %v824_v14  ;;  %v852_v33 = vld [vmem:[%s1145_s3 + $0x78] sm:$0xff]   ;;  %v22_v35 = vld [vmem:[%s1142_s0] sm:$0x1]  ;;  %v856_v38 = vld [vmem:[%s1145_s3 + $0x70] sm:$0xff]  }
   0xd   :  { %v853_v34 = vld [vmem:[%s1145_s3 + $0xf8] sm:$0xff]   ;;  %v857_v39 = vld [vmem:[%s1145_s3 + $0xf0] sm:$0xff]   ;;  %v860_v42 = vld [vmem:[%s1145_s3 + $0x68] sm:$0xff]  }
   0xe   :  { %v854_v36 = vld [vmem:[%s1145_s3 + $0x38] sm:$0xff]   ;;  %v858_v40 = vld [vmem:[%s1145_s3 + $0x30] sm:$0xff]   ;;  %v861_v43 = vld [vmem:[%s1145_s3 + $0xe8] sm:$0xff]  }
   0xf   :  { %244 = vmatpush1.bf16.msra.mxu0 %v826_v15  ;;  %285 = vmatpush1.bf16.msra.mxu1 %v827_v16  ;;  %v855_v37 = vld [vmem:[%s1145_s3 + $0xb8] sm:$0xff]   ;;  %v859_v41 = vld [vmem:[%s1145_s3 + $0xb0] sm:$0xff]   ;;  %v862_v44 = vld [vmem:[%s1145_s3 + $0x28] sm:$0xff]  }
  0x10   :  { %245 = vmatprep.subr.bf16.mxu0 %v828_v17  ;;  %286 = vmatprep.subr.bf16.mxu1 %v830_v18  ;;  %v863_v45 = vld [vmem:[%s1145_s3 + $0xa8] sm:$0xff]   ;;  %v864_v46 = vld [vmem:[%s1145_s3 + $0x60] sm:$0xff]   ;;  %v868_v50 = vld [vmem:[%s1145_s3 + $0x58] sm:$0xff]  }
  0x11   :  { %v865_v47 = vld [vmem:[%s1145_s3 + $0xe0] sm:$0xff]   ;;  %v869_v51 = vld [vmem:[%s1145_s3 + $0xd8] sm:$0xff]   ;;  %v872_v54 = vld [vmem:[%s1145_s3 + $0x50] sm:$0xff]  }
  0x12   :  { %v866_v48 = vld [vmem:[%s1145_s3 + $0x20] sm:$0xff]   ;;  %v870_v52 = vld [vmem:[%s1145_s3 + $0x18] sm:$0xff]   ;;  %v873_v55 = vld [vmem:[%s1145_s3 + $0xd0] sm:$0xff]  }
  0x13   :  { %246 = vmatpush1.bf16.msra.mxu0 %v832_v19  ;;  %287 = vmatpush1.bf16.msra.mxu1 %v833_v20  ;;  %v867_v49 = vld [vmem:[%s1145_s3 + $0xa0] sm:$0xff]   ;;  %v871_v53 = vld [vmem:[%s1145_s3 + $0x98] sm:$0xff]  }
  0x14   :  { %247 = vmatprep.subr.bf16.mxu0 %v834_v21  ;;  %288 = vmatprep.subr.bf16.mxu1 %v836_v22 }
  0x17   :  { %248 = vmatpush1.bf16.msra.mxu0 %v838_v23  ;;  %289 = vmatpush1.bf16.msra.mxu1 %v839_v24 }
  0x18   :  { %249 = vmatprep.subr.bf16.mxu0 %v840_v25  ;;  %290 = vmatprep.subr.bf16.mxu1 %v842_v26 }
  0x1b   :  { %250 = vmatpush1.bf16.msra.mxu0 %v844_v27  ;;  %291 = vmatpush1.bf16.msra.mxu1 %v845_v28 }
  0x1c   :  { %251 = vmatprep.subr.bf16.mxu0 %v846_v29  ;;  %292 = vmatprep.subr.bf16.mxu1 %v848_v30 }
  0x1f   :  { %252 = vmatpush1.bf16.msra.mxu0 %v850_v31  ;;  %293 = vmatpush1.bf16.msra.mxu1 %v851_v32 }
  0x20   :  { %758 = vmatprep.subr.bf16.mxu0 %v852_v33  ;;  %780 = vmatprep.subr.bf16.mxu1 %v853_v34 }
  0x22   :  { %270 = vmatmul.mubr.bf16.vlgmr.msra.gmra.mxu0 %v22_v35  ;;  %311 = vmatmul.mubr.bf16.vlgmr.msra.gmra.mxu1 %v22_v35 }
  0x23   :  { %759 = vmatpush3.bf16.msra.mxu0 %v854_v36  ;;  %781 = vmatpush3.bf16.msra.mxu1 %v855_v37 }
  0x24   :  { %760 = vmatprep.subr.bf16.mxu0 %v856_v38  ;;  %782 = vmatprep.subr.bf16.mxu1 %v857_v39 }
  0x27   :  { %761 = vmatpush3.bf16.msra.mxu0 %v858_v40  ;;  %783 = vmatpush3.bf16.msra.mxu1 %v859_v41 }
  0x28   :  { %762 = vmatprep.subr.bf16.mxu0 %v860_v42  ;;  %784 = vmatprep.subr.bf16.mxu1 %v861_v43 }
  0x2b   :  { %763 = vmatpush3.bf16.msra.mxu0 %v862_v44  ;;  %785 = vmatpush3.bf16.msra.mxu1 %v863_v45 }
  0x2c   :  { %764 = vmatprep.subr.bf16.mxu0 %v864_v46  ;;  %786 = vmatprep.subr.bf16.mxu1 %v865_v47 }
  0x2f   :  { %765 = vmatpush3.bf16.msra.mxu0 %v866_v48  ;;  %787 = vmatpush3.bf16.msra.mxu1 %v867_v49 }
  0x30   :  { %766 = vmatprep.subr.bf16.mxu0 %v868_v50  ;;  %788 = vmatprep.subr.bf16.mxu1 %v869_v51 }
  0x31   :  { %10 = vsyncpa [#allocation3], 0  ;;  %v874_v56 = vld [vmem:[%s1145_s3 + $0x10] sm:$0xff]   ;;  %v876_v58 = vld [vmem:[%s1145_s3 + $0x48] sm:$0xff]   ;;  %v57_v2 = vlaneseq  ;;  %s907_s0 = smov [#allocation2]  }
  0x32   :  { %v875_v57 = vld [vmem:[%s1145_s3 + $0x90] sm:$0xff]   ;;  %v877_v59 = vld [vmem:[%s1145_s3 + $0xc8] sm:$0xff]   ;;  %v880_v62 = vld [vmem:[%s1145_s3 + $0x40] sm:$0xff]   ;;  %s685_s20 = sshll.u32 %s907_s0, 4  ;;  %s686_s20 = int_to_ptr.vmem [resolvable:$true] %s685_s20 }
  0x33   :  { %767 = vmatpush3.bf16.msra.mxu0 %v870_v52  ;;  %789 = vmatpush3.bf16.msra.mxu1 %v871_v53  ;;  %v878_v60 = vld [vmem:[%s1145_s3 + $0x8] sm:$0xff]   ;;  %v881_v63 = vld [vmem:[%s1145_s3 + $0xc0] sm:$0xff]   ;;  %v58_v3 = vshrl.u32 %v57_v2, 7  ;;  %s884_s21 = scalar_lea.vmem %s686_s20, 32  ;;  %p889_p1 = scmp.lt.s32.totalorder %s686_s20, %s686_s20 }
  0x34   :  { %768 = vmatprep.subr.bf16.mxu0 %v872_v54  ;;  %790 = vmatprep.subr.bf16.mxu1 %v873_v55  ;;  %v879_v61 = vld [vmem:[%s1145_s3 + $0x88] sm:$0xff]   ;;  %v882_v0 = vld [vmem:[%s1145_s3] sm:$0xff]   ;;  %p885_p0 = scmp.ne.s32.totalorder %s686_s20, %s884_s21  ;;  %p890_p2 = scmp.lt.s32.totalorder %s884_s21, %s884_s21 }
  0x35   :  { %v883_v1 = vld [vmem:[%s1145_s3 + $0x80] sm:$0xff]   ;;  %v59_v4 = vsub.s32 0, %v58_v3  ;;  %v67_v5 = vsub.s32 2, %v58_v3  ;;  %v63_v7 = vsub.s32 1, %v58_v3  ;;  %v71_v8 = vsub.s32 3, %v58_v3 }
  0x36   :  { %v55_v6 = vld [vmem:[%s1144_s2] sm:$0xf]  ;;  %p891_p3 = por %p890_p2, %p889_p1 }
  0x37   :  { %769 = vmatpush3.bf16.msra.mxu0 %v874_v56  ;;  %791 = vmatpush3.bf16.msra.mxu1 %v875_v57  ;;  %v60_v9 = vrot.slane %v55_v6, %v59_v4  ;;  %v68_v10 = vrot.slane %v55_v6, %v67_v5  ;;  %v64_v13 = vrot.slane %v55_v6, %v63_v7  ;;  %v725_v39 = vld [vmem:[%s1146_s4] ss:$0 sm:$0xff] }
  0x38   :  { %770 = vmatprep.subr.bf16.mxu0 %v876_v58  ;;  %792 = vmatprep.subr.bf16.mxu1 %v877_v59  ;;  %v72_v14 = vrot.slane %v55_v6, %v71_v8  ;;  %p892_p4 = pnand %p891_p3, %p885_p0 }
  0x3b   :  { %771 = vmatpush3.bf16.msra.mxu0 %v878_v60  ;;  %793 = vmatpush3.bf16.msra.mxu1 %v879_v61 }
  0x3c   :  { %772 = vmatprep.subr.bf16.mxu0 %v880_v62  ;;  %794 = vmatprep.subr.bf16.mxu1 %v881_v63 }
  0x3f   :  { %773 = vmatpush3.bf16.msra.mxu0 %v882_v0  ;;  %795 = vmatpush3.bf16.msra.mxu1 %v883_v1 }
  0xe2   :  { %v271_v11 = vpop.f32.mrf.mxu0  ;;  %v312_v12 = vpop.f32.mrf.mxu1 }
  0xe3   :  { %v272_v15 = vadd.f32 %v271_v11, %v60_v9  ;;  %v313_v16 = vadd.f32 %v312_v12, %v68_v10 }
  0xe4   :  { %v273_v17 = vpop.f32.mrf.mxu0  ;;  %v314_v18 = vpop.f32.mrf.mxu1 }
  0xe5   :  { %v323_v19 = vmul.f32 0.25, %v272_v15  ;;  %vm319_vm0 = vcmp.ge.f32.partialorder %v272_v15, 0.0  ;;  %v325_v20 = vmul.f32 0.25, %v313_v16  ;;  %v274_v21 = vadd.f32 %v273_v17, %v64_v13 }
  0xe6   :  { %v315_v22 = vadd.f32 %v314_v18, %v72_v14  ;;  %v275_v23 = vpop.f32.mrf.mxu0  ;;  %v316_v24 = vpop.f32.mrf.mxu1  ;;  %vm321_vm1 = vcmp.ge.f32.partialorder %v313_v16, 0.0 }
  0xe7   :  { %vm320_vm2 = vcmp.ge.f32.partialorder %v274_v21, 0.0  ;;  %v324_v25 = vmul.f32 0.25, %v274_v21  ;;  %v327_v28 = vsel %vm319_vm0, %v272_v15, %v323_v19  ;;  %v329_v30 = vsel %vm321_vm1, %v313_v16, %v325_v20 }
  0xe8   :  { %v276_v26 = vpop.f32.mrf.mxu0  ;;  %v317_v27 = vpop.f32.mrf.mxu1  ;;  %vm322_vm3 = vcmp.ge.f32.partialorder %v315_v22, 0.0  ;;  %v326_v29 = vmul.f32 0.25, %v315_v22  ;;  %v331_v34 = vpack.c.bf16 %v327_v28, %v327_v28  ;;  %v333_v36 = vpack.c.bf16 %v329_v30, %v329_v30 }
  0xe9   :  { %v328_v31 = vsel %vm320_vm2, %v274_v21, %v324_v25 }
  0xea   :  { %v332_v32 = vpack.c.bf16 %v328_v31, %v328_v31  ;;  %v330_v33 = vsel %vm322_vm3, %v315_v22, %v326_v29 }
  0xeb   :  { %v334_v35 = vpack.c.bf16 %v330_v33, %v330_v33 }
  0xec   :  { %630 = vmatprep.mubr.bf16.mxu0 %v332_v32 }
  0xed   :  { %670 = vmatprep.mubr.bf16.mxu1 %v334_v35  ;;  %631 = vmatmul.mubr.bf16.vlgmr.msra.gmra.mxu0 %v331_v34 }
  0xee   :  { %671 = vmatmul.mubr.bf16.vlgmr.msra.gmra.mxu1 %v333_v36 }
 0x1ad   :  { %v774_v37 = vpop.f32.mrf.mxu0 }
 0x1ae   :  { %v796_v38 = vpop.f32.mrf.mxu1 }
 0x1af   :  { %v775_v40 = vpop.f32.mrf.mxu0 }
 0x1b0   :  { %v776_v41 = vadd.f32 %v775_v40, %v774_v37  ;;  %v797_v42 = vpop.f32.mrf.mxu1 }
 0x1b1   :  { %v777_v43 = vpop.f32.mrf.mxu0  ;;  %v798_v45 = vadd.f32 %v797_v42, %v796_v38 }
 0x1b2   :  { %v633_v44 = vadd.f32 %v776_v41, %v725_v39  ;;  %v799_v46 = vpop.f32.mrf.mxu1 }
 0x1b3   :  { %v778_v47 = vpop.f32.mrf.mxu0 }
 0x1b4   :  { %v800_v48 = vpop.f32.mrf.mxu1  ;;  %v673_v49 = vadd.f32 %v798_v45, %v633_v44 }
 0x1b6   :  { %678 = vst [vmem:[#allocation2] sm:$0x3] %v673_v49 }
 0x1b7   :  { %895 = shalt.err (!%p892_p4)
}
 0x1b8   :  { %688 = dma.vmem_to_hbm [thread:$0]  %s686_s20, 32, %s1147_s5, [#allocation3]  }
 0x1b9   :  { %904 = dma.done.wait [#allocation3], 32  }
 0x1ba   :  { %905 = vsyncadd [#allocation3], 4294967264 }
 0x1bb   :  { %692 = vsyncpa [#allocation3], 1 }

// kernel: hcn_forward.15
= control target key start
LH: loop header
LB: loop body
LE: loop exit
PB: predicated region body
PF: predicated region fallthrough
CT: control target
= control target key end

     0   :  { %s10835_s12 = smov 0   ;;  %s10837_s13 = smov 0   ;;  %s12403_s0 = inlined_call_operand.vmem [shape: bf16[2,4,456,128], index: 0, kind: input, shape index: {}]   ;;  %s12404_s1 = inlined_call_operand.vmem [shape: bf16[2,9,128,128], index: 1, kind: input, shape index: {}]   ;;  %s12405_s2 = inlined_call_operand.vmem [shape: f32[2,1,128], index: 2, kind: input, shape index: {}]   ;;  %s12406_s3 = inlined_call_operand.vmem [shape: bf16[2,4,8,16,128], index: 3, kind: output, shape index: {}]  }
   0x1   :  { %s10839_s14 = smov 0   ;;  %s10841_s15 = smov 0  }
   0x2   :  { %s10843_s16 = smov 0  }
   0x3 LB: > { %s22_s17 = sadd.s32 1, %s10805_s14  ;;  %s25_s18 = sadd.s32 1, %s10809_s15  ;;  %s10813_s16 = sphi %s10843_s16, %s13_s16   ;;  %s10809_s15 = sphi %s10841_s15, %s12410_s15   ;;  %s10805_s14 = sphi %s10839_s14, %s12409_s14   ;;  %s10801_s13 = sphi %s10837_s13, %s12408_s13   ;;  %s10797_s12 = sphi %s10835_s12, %s12407_s12  }
   0x4   : > { %p23_p0 = scmp.ge.s32.totalorder %s22_s17, 4  ;;  %p7742_p1 = scmp.ge.s32.totalorder %s10813_s16, 1 }
   0x5   : > { %p175_p2 = scmp.lt.s32.totalorder %s10813_s16, 9 }
   0x6   : > { %s12412_s17 = smov (%p23_p0, %s22_s17), 0  ;;  %s12414_s18 = smov (!%p23_p0, %s25_s18), %s10809_s15 }
   0x7   : > { %p176_p3 = pnand %p7742_p1, %p175_p2  ;;  %p27_p4 = scmp.ge.s32.totalorder %s12414_s18, 2 }
   0x8   : > { %p215_p5 = scmp.lt.s32.totalorder (!%p176_p3), %s10801_s13, 1  ;;  %p217_p6 = scmp.lt.s32.totalorder (!%p176_p3), %s10797_s12, 3 }
   0x9   : > { %s12416_s18 = smov (%p27_p4, %s12414_s18), 0  ;;  %179 = sbr.rel (%p176_p3) target bundleno = 821 (0x335), region = 32 }
   0xe   : > { %s12418_s13 = smov (!%p215_p5, %s10801_s13), 1  ;;  %s12420_s12 = smov (!%p217_p6, %s10797_s12), 3  ;;  %vm322_vm0 = vsmask.f32 7424  ;;  %vm658_vm1 = vcmask 1046528  }
   0xf   : > { %s10300_s19 = smul.u32 576, %s12418_s13  ;;  %s11606_s5 = scalar_lea.vmem %s12405_s2, %s12418_s13 }
  0x10   : > { %s10298_s23 = smul.u32 57, %s12420_s12  ;;  %s7745_s6 = sshll.u32 %s12420_s12, 4 }
  0x11   : > { %s10873_s22 = scalar_lea.vmem %s12404_s1, %s10300_s19  ;;  %s10299_s24 = smul.u32 228, %s12418_s13 }
  0x12   : > { %v10341_v0 = vld [vmem:[%s10873_s22 + $0x78] sm:$0xff]   ;;  %v10343_v2 = vld [vmem:[%s10873_s22 + $0x70] sm:$0xff]   ;;  %v10345_v4 = vld [vmem:[%s10873_s22 + $0x68] sm:$0xff]   ;;  %s7746_s7 = sshll.u32 %s12418_s13, 6 }
  0x13   : > { %v10342_v1 = vld [vmem:[%s10873_s22 + $0x38] sm:$0xff]   ;;  %9290 = vmatprep.subr.bf16.mxu0 %v10341_v0  ;;  %v10344_v3 = vld [vmem:[%s10873_s22 + $0x30] sm:$0xff]   ;;  %v10346_v5 = vld [vmem:[%s10873_s22 + $0x28] sm:$0xff]   ;;  %s221_s25 = sadd.s32 %s10299_s24, %s10298_s23  ;;  %s11663_s8 = sadd.s32 %s7746_s7, %s7745_s6 }
  0x14   : > { %9318 = vmatprep.subr.bf16.mxu1 %v10342_v1  ;;  %9291 = vmatpush3.bf16.msra.mxu0 %v10341_v0  ;;  %v10347_v6 = vld [vmem:[%s10873_s22 + $0x60] sm:$0xff]   ;;  %s7743_s26 = sshll.u32 %s221_s25, 2  ;;  %v10349_v8 = vld [vmem:[%s10873_s22 + $0x58] sm:$0xff]   ;;  %v10351_v10 = vld [vmem:[%s10873_s22 + $0x50] sm:$0xff]   ;;  %s7747_s9 = sshll.u32 %s11663_s8, 2 }
  0x15   : > { %9319 = vmatpush3.bf16.msra.mxu1 %v10342_v1  ;;  %9292 = vmatprep.subr.bf16.mxu0 %v10343_v2  ;;  %v10348_v7 = vld [vmem:[%s10873_s22 + $0x20] sm:$0xff]   ;;  %v10350_v9 = vld [vmem:[%s10873_s22 + $0x18] sm:$0xff]   ;;  %s10890_s29 = scalar_lea.vmem %s12403_s0, %s7743_s26  ;;  %v10352_v11 = vld [vmem:[%s10873_s22 + $0x10] sm:$0xff]   ;;  %s11712_s12 = scalar_lea.vmem %s12406_s3, %s7747_s9 }
  0x16   : > { %9320 = vmatprep.subr.bf16.mxu1 %v10344_v3  ;;  %v243_v12 = vld [vmem:[%s10890_s29] sm:$0xf]  ;;  %v10896_v13 = vld [vmem:[%s10890_s29 + $0x4] sm:$0xf]  ;;  %v10900_v15 = vld [vmem:[%s10890_s29 + $0x8] sm:$0xff]  }
  0x17   : > { %v7764_v14 = vcombine.low %v243_v12, %v10896_v13  ;;  %v10903_v16 = vld [vmem:[%s10890_s29 + $0x10] sm:$0xff]   ;;  %v331_v19 = vshll.u32 %v10900_v15, 16  ;;  %v10353_v20 = vld [vmem:[%s10873_s22 + $0x48] sm:$0xff]   ;;  %v335_v24 = vshrl.u32 %v10900_v15, 16  ;;  %v10355_v27 = vld [vmem:[%s10873_s22 + $0x40] sm:$0xff]  }
  0x18   : > { %9293 = vmatpush3.bf16.msra.mxu0 %v10343_v2  ;;  %v10354_v21 = vld [vmem:[%s10873_s22 + $0x8] sm:$0xff]   ;;  %v339_v25 = vshll.u32 %v10903_v16, 16  ;;  %v10356_v28 = vld [vmem:[%s10873_s22] sm:$0xff]   ;;  %v10914_v30 = vld [vmem:[%s10890_s29 + $0x18] sm:$0xff]   ;;  %v343_v31 = vshrl.u32 %v10903_v16, 16 }
  0x19   : > { %9321 = vmatpush3.bf16.msra.mxu1 %v10344_v3  ;;  %9294 = vmatprep.subr.bf16.mxu0 %v10345_v4  ;;  %v324_v17 = vshrl.u32 %v7764_v14, 16  ;;  %v326_v18 = vshll.u32 %v7764_v14, 16  ;;  %v333_v23 = vrot.slane %v331_v19, 1  ;;  %v10918_v34 = vld [vmem:[%s10890_s29 + $0x20] sm:$0xff]   ;;  %v10360_v35 = vld [vmem:[%s10873_s22 + $0xb8] sm:$0xff]   ;;  %v347_v36 = vshll.u32 %v10914_v30, 16 }
  0x1a   : > { %9322 = vmatprep.subr.bf16.mxu1 %v10346_v5  ;;  %9334 = vmatprep.mubr.bf16.mxu1 %v7764_v14  ;;  %v341_v33 = vrot.slane %v339_v25, 1  ;;  %v10361_v37 = vld [vmem:[%s10873_s22 + $0xf8] sm:$0xff]   ;;  %v351_v40 = vshrl.u32 %v10914_v30, 16  ;;  %v355_v42 = vshll.u32 %v10918_v34, 16  ;;  %v10927_v43 = vld [vmem:[%s10890_s29 + $0x28] sm:$0xff]   ;;  %v10362_v44 = vld [vmem:[%s10873_s22 + $0xb0] sm:$0xff]  }
  0x1b   : > { %v328_v22 = vrot.slane %v326_v18, 1  ;;  %v337_v32 = vor.u32 %v335_v24, %v333_v23  ;;  %v349_v39 = vrot.slane %v347_v36, 1  ;;  %v10363_v45 = vld [vmem:[%s10873_s22 + $0xf0] sm:$0xff]   ;;  %v359_v46 = vshrl.u32 %v10918_v34, 16  ;;  %v10364_v52 = vld [vmem:[%s10873_s22 + $0xa8] sm:$0xff]   ;;  %v10368_v60 = vld [vmem:[%s10873_s22 + $0xa0] sm:$0xff]  }
  0x1c   : > { %9295 = vmatpush3.bf16.msra.mxu0 %v10345_v4  ;;  %v345_v38 = vor.u32 %v343_v31, %v341_v33  ;;  %v363_v47 = vshll.u32 %v10927_v43, 16  ;;  %v10934_v48 = vld [vmem:[%s10890_s29 + $0x30] ss:$0 sps:$4 sm:$0x11]   ;;  %v357_v51 = vrot.slane %v355_v42, 1  ;;  %v10365_v53 = vld [vmem:[%s10873_s22 + $0xe8] sm:$0xff]  }
  0x1d   : > { %9323 = vmatpush3.bf16.msra.mxu1 %v10346_v5  ;;  %9296 = vmatprep.subr.bf16.mxu0 %v10347_v6  ;;  %v329_v26 = vor.u32 %v328_v22, %v324_v17  ;;  %v342_v41 = vsel %vm322_vm0, %v337_v32, %v341_v33  ;;  %v353_v50 = vor.u32 %v351_v40, %v349_v39  ;;  %v367_v57 = vshrl.u32 %v10927_v43, 16  ;;  %v637_v59 = vld [vmem:[%s10890_s29] sm:$0xe]  ;;  %v10370_v2 = vld [vmem:[%s10873_s22 + $0x98] sm:$0xff]   ;;  %v10377_v12 = vld [vmem:[%s10873_s22 + $0xc8] sm:$0xff]  }
  0x1e   : > { %9324 = vmatprep.subr.bf16.mxu1 %v10348_v7  ;;  %v350_v49 = vsel %vm322_vm0, %v345_v38, %v349_v39  ;;  %v361_v54 = vor.u32 %v359_v46, %v357_v51  ;;  %v365_v55 = vrot.slane %v363_v47, 1  ;;  %v371_v58 = vshll.u32 %v10934_v48, 16  ;;  %v10369_v61 = vld [vmem:[%s10873_s22 + $0xe0] sm:$0xff]   ;;  %v10371_v3 = vld [vmem:[%s10873_s22 + $0xd8] sm:$0xff]   ;;  %v1009_v22 = vld [vmem:[%s10890_s29 + $0xc] sm:$0xf] }
  0x1f   : > { %v334_v29 = vsel %vm322_vm0, %v329_v26, %v333_v23  ;;  %v358_v56 = vsel %vm322_vm0, %v353_v50, %v357_v51  ;;  %v7803_v63 = vcombine.low %v637_v59, %v10896_v13  ;;  %v660_v5 = vrot.slane %v10900_v15, 1  ;;  %v10378_v13 = vld [vmem:[%s10873_s22 + $0x80] sm:$0xff]   ;;  %v10383_v17 = vld [vmem:[%s10873_s22 + $0x138] sm:$0xff]   ;;  %v1010_v23 = vld [vmem:[%s10890_s29 + $0x10] sm:$0xf] }
  0x20   : > { %9297 = vmatpush3.bf16.msra.mxu0 %v10347_v6  ;;  %9306 = vmatprep.mubr.bf16.mxu0 %v334_v29  ;;  %v366_v62 = vsel %vm322_vm0, %v361_v54, %v365_v55  ;;  %v369_v0 = vor.u32 %v367_v57, %v365_v55  ;;  %v373_v1 = vrot.slane %v371_v58, 1  ;;  %v10379_v14 = vld [vmem:[%s10873_s22 + $0xc0] sm:$0xff]   ;;  %v10384_v18 = vld [vmem:[%s10873_s22 + $0x178] sm:$0xff]   ;;  %v10386_v24 = vld [vmem:[%s10873_s22 + $0x170] sm:$0xff]   ;;  %v668_v31 = vrot.slane %v10927_v43, 1 }
  0x21   : > { %9325 = vmatpush3.bf16.msra.mxu1 %v10348_v7  ;;  %9298 = vmatprep.subr.bf16.mxu0 %v10349_v8  ;;  %v659_v4 = vrot.slane %v7803_v63, 1  ;;  %v10374_v7 = vld [vmem:[%s10873_s22 + $0x90] sm:$0xff]   ;;  %v10389_v26 = vld [vmem:[%s10890_s29 + $0x1c] sm:$0xff]   ;;  %v10387_v29 = vld [vmem:[%s10873_s22 + $0x128] sm:$0xff]  }
  0x22   : > { %9326 = vmatprep.subr.bf16.mxu1 %v10350_v9  ;;  %v374_v6 = vsel %vm322_vm0, %v369_v0, %v373_v1  ;;  %v10382_v19 = vld [vmem:[%s10890_s29 + $0x14] sm:$0xff]   ;;  %v10390_v32 = vld [vmem:[%s10890_s29 + $0x24] sm:$0xff]   ;;  %v10395_v40 = vld [vmem:[%s10890_s29 + $0x2c] sm:$0xff]  }
  0x23   : > { %v10982_v33 = vld [vmem:[%s10890_s29 + $0x14] sm:$0xff]   ;;  %v10392_v38 = vld [vmem:[%s10873_s22 + $0x160] sm:$0xff]   ;;  %v11010_v1 = vld [vmem:[%s10890_s29 + $0x2c] sm:$0xff]  }
  0x24   : > { %9299 = vmatpush3.bf16.msra.mxu0 %v10349_v8  ;;  %v10375_v8 = vld [vmem:[%s10873_s22 + $0xd0] sm:$0xff]   ;;  %v10393_v46 = vld [vmem:[%s10873_s22 + $0x118] sm:$0xff]   ;;  %v10401_v0 = vld [vmem:[%s10873_s22 + $0x100] sm:$0xff]  }
  0x25   : > { %9327 = vmatpush3.bf16.msra.mxu1 %v10350_v9  ;;  %9300 = vmatprep.subr.bf16.mxu0 %v10351_v10  ;;  %v661_v9 = vsel %vm658_vm1, %v659_v4, %v660_v5  ;;  %v10394_v47 = vld [vmem:[%s10873_s22 + $0x158] sm:$0xff]   ;;  %v10397_v54 = vld [vmem:[%s10873_s22 + $0x110] sm:$0xff]  }
  0x26   : > { %9328 = vmatprep.subr.bf16.mxu1 %v10352_v11  ;;  %v10398_v55 = vld [vmem:[%s10873_s22 + $0x150] sm:$0xff]   ;;  %v10406_v59 = vld [vmem:[%s10890_s29 + $0x1c] sm:$0xff]  }
  0x27   : > { %v1088_v63 = vshll.u32 %v10406_v59, 16  ;;  %v1287_v4 = vrot.slane %v10406_v59, 1 }
  0x28   : > { %9301 = vmatpush3.bf16.msra.mxu0 %v10351_v10  ;;  %v10381_v10 = vld [vmem:[%s10890_s29 + $0xc] sm:$0xff]  }
  0x29   : > { %9329 = vmatpush3.bf16.msra.mxu1 %v10352_v11  ;;  %9302 = vmatprep.subr.bf16.mxu0 %v10353_v20  ;;  %v10376_v11 = vld [vmem:[%s10873_s22 + $0x88] sm:$0xff]  }
  0x2a   : > { %9330 = vmatprep.subr.bf16.mxu1 %v10354_v21 }
  0x2c   : > { %9303 = vmatpush3.bf16.msra.mxu0 %v10353_v20  ;;  %v664_v20 = vrot.slane %v10914_v30, 1 }
  0x2d   : > { %9331 = vmatpush3.bf16.msra.mxu1 %v10354_v21  ;;  %9304 = vmatprep.subr.bf16.mxu0 %v10355_v27 }
  0x2e   : > { %9332 = vmatprep.subr.bf16.mxu1 %v10356_v28 }
  0x30   : > { %9305 = vmatpush3.bf16.msra.mxu0 %v10355_v27  ;;  %v7858_v27 = vcombine.low %v1009_v22, %v1010_v23  ;;  %v10409_v22 = vld [vmem:[%s10873_s22 + $0x1b0] sm:$0xff]  }
  0x31   : > { %9333 = vmatpush3.bf16.msra.mxu1 %v10356_v28  ;;  %9346 = vmatprep.subr.bf16.mxu0 %v10360_v35  ;;  %v666_v28 = vrot.slane %v10918_v34, 1 }
  0x32   : > { %9374 = vmatprep.subr.bf16.mxu1 %v10361_v37 }
  0x33   : > { %9307 = vmatmul.mubr.bf16.vlgmr.msra.gmra.mxu0 %v342_v41  ;;  %v667_v36 = vsel %vm658_vm1, %v664_v20, %v666_v28  ;;  %v669_v39 = vsel %vm658_vm1, %v666_v28, %v668_v31  ;;  %v1073_v41 = vshrl.u32 %v7858_v27, 16 }
  0x34   : > { %9335 = vmatmul.mubr.bf16.vlgmr.msra.gmra.mxu1 %v10900_v15  ;;  %9347 = vmatpush3.bf16.msra.mxu0 %v10360_v35  ;;  %v662_v15 = vrot.slane %v10903_v16, 1  ;;  %v1075_v35 = vshll.u32 %v7858_v27, 16 }
  0x35   : > { %9375 = vmatpush3.bf16.msra.mxu1 %v10361_v37  ;;  %9348 = vmatprep.subr.bf16.mxu0 %v10362_v44  ;;  %v1263_v37 = vld [vmem:[%s10890_s29 + $0xc] sm:$0xe] }
  0x36   : > { %9376 = vmatprep.subr.bf16.mxu1 %v10363_v45  ;;  %9310 = vmatprep.mubr.bf16.mxu0 %v350_v49  ;;  %v663_v21 = vsel %vm658_vm1, %v660_v5, %v662_v15  ;;  %v665_v25 = vsel %vm658_vm1, %v662_v15, %v664_v20  ;;  %v1077_v42 = vrot.slane %v1075_v35, 1  ;;  %v10396_v49 = vld [vmem:[%s10890_s29 + $0x34] sm:$0xff]   ;;  %v1092_v5 = vshrl.u32 %v10406_v59, 16  ;;  %v11028_v20 = vld [vmem:[%s10890_s29 + $0x3c] ss:$0 sps:$4 sm:$0x11]  }
  0x37   : > { %9338 = vmatprep.mubr.bf16.mxu1 %v10903_v16  ;;  %v10385_v16 = vld [vmem:[%s10873_s22 + $0x130] sm:$0xff]   ;;  %v1634_v15 = vld [vmem:[%s10890_s29 + $0x18] sm:$0xf]  ;;  %v1120_v35 = vshll.u32 %v11028_v20, 16 }
  0x38   : > { %9349 = vmatpush3.bf16.msra.mxu0 %v10362_v44  ;;  %v670_v44 = vrot.slane %v10934_v48, 1  ;;  %v1078_v50 = vor.u32 %v1077_v42, %v1073_v41  ;;  %v1285_v48 = vrot.slane %v10982_v33, 1  ;;  %v10422_v59 = vld [vmem:[%s10873_s22 + $0x1d0] sm:$0xff]  }
  0x39   : > { %9377 = vmatpush3.bf16.msra.mxu1 %v10363_v45  ;;  %9350 = vmatprep.subr.bf16.mxu0 %v10364_v52  ;;  %v7889_v45 = vcombine.low %v1263_v37, %v1010_v23  ;;  %v10410_v23 = vld [vmem:[%s10873_s22 + $0x1f0] sm:$0xff]  }
  0x3a   : > { %9378 = vmatprep.subr.bf16.mxu1 %v10365_v53 }
  0x3b   : > { %9311 = vmatmul.mubr.bf16.gmra.mxu0 %v358_v56  ;;  %v10399_v56 = vld [vmem:[%s10873_s22 + $0x108] sm:$0xff]  }
  0x3c   : > { %9351 = vmatpush3.bf16.msra.mxu0 %v10364_v52  ;;  %9339 = vmatmul.mubr.bf16.gmra.mxu1 %v10914_v30  ;;  %v10388_v30 = vld [vmem:[%s10873_s22 + $0x168] sm:$0xff]   ;;  %v671_v52 = vsel %vm658_vm1, %v668_v31, %v670_v44  ;;  %v1122_v44 = vrot.slane %v1120_v35, 1 }
  0x3d   : > { %9379 = vmatpush3.bf16.msra.mxu1 %v10365_v53  ;;  %9352 = vmatprep.subr.bf16.mxu0 %v10368_v60  ;;  %v1284_v53 = vrot.slane %v7889_v45, 1  ;;  %v10414_v31 = vld [vmem:[%s10873_s22 + $0x1e8] sm:$0xff]  }
  0x3e   : > { %9380 = vmatprep.subr.bf16.mxu1 %v10369_v61  ;;  %9314 = vmatprep.mubr.bf16.mxu0 %v366_v62  ;;  %v1084_v62 = vshrl.u32 %v10982_v33, 16 }
  0x3f   : > { %9342 = vmatprep.mubr.bf16.mxu1 %v10918_v34  ;;  %v10391_v34 = vld [vmem:[%s10873_s22 + $0x120] sm:$0xff]   ;;  %v1286_v58 = vsel %vm658_vm1, %v1284_v53, %v1285_v48  ;;  %v1295_v53 = vrot.slane %v11028_v20, 1  ;;  %v10435_v20 = vld [vmem:[%s10873_s22 + $0x70] sm:$0xff]  }
  0x40   : > { %9353 = vmatpush3.bf16.msra.mxu0 %v10368_v60  ;;  %v10400_v60 = vld [vmem:[%s10873_s22 + $0x148] sm:$0xff]  }
  0x41   : > { %9381 = vmatpush3.bf16.msra.mxu1 %v10369_v61  ;;  %9354 = vmatprep.subr.bf16.mxu0 %v10370_v2  ;;  %v11005_v61 = vld [vmem:[%s10890_s29 + $0x24] sm:$0xff]  }
  0x42   : > { %9382 = vmatprep.subr.bf16.mxu1 %v10371_v3 }
  0x43   : > { %9315 = vmatmul.mubr.bf16.gmra.mxu0 %v374_v6 }
  0x44   : > { %9355 = vmatpush3.bf16.msra.mxu0 %v10370_v2  ;;  %9343 = vmatmul.mubr.bf16.gmra.mxu1 %v10927_v43  ;;  %v1080_v43 = vshll.u32 %v10982_v33, 16  ;;  %v10402_v2 = vld [vmem:[%s10873_s22 + $0x140] sm:$0xff]  }
  0x45   : > { %9383 = vmatpush3.bf16.msra.mxu1 %v10371_v3  ;;  %9356 = vmatprep.subr.bf16.mxu0 %v10374_v7  ;;  %v1096_v3 = vshll.u32 %v11005_v61, 16 }
  0x46   : > { %9384 = vmatprep.subr.bf16.mxu1 %v10375_v8  ;;  %9362 = vmatprep.mubr.bf16.mxu0 %v661_v9  ;;  %v1082_v51 = vrot.slane %v1080_v43, 1  ;;  %v10408_v9 = vld [vmem:[%s10873_s22 + $0x1f8] sm:$0xff]   ;;  %v10416_v43 = vld [vmem:[%s10873_s22 + $0x1e0] sm:$0xff]  }
  0x47   : > { %9390 = vmatprep.mubr.bf16.mxu1 %v10381_v10  ;;  %v1100_v10 = vshrl.u32 %v11005_v61, 16 }
  0x48   : > { %9357 = vmatpush3.bf16.msra.mxu0 %v10374_v7  ;;  %v1083_v57 = vsel %vm322_vm0, %v1078_v50, %v1082_v51  ;;  %v1086_v6 = vor.u32 %v1084_v62, %v1082_v51  ;;  %v1090_v7 = vrot.slane %v1088_v63, 1  ;;  %v10423_v63 = vld [vmem:[%s10873_s22 + $0x188] sm:$0xff]  }
  0x49   : > { %9385 = vmatpush3.bf16.msra.mxu1 %v10375_v8  ;;  %9358 = vmatprep.subr.bf16.mxu0 %v10376_v11  ;;  %v10407_v8 = vld [vmem:[%s10873_s22 + $0x1b8] sm:$0xff]  }
  0x4a   : > { %9386 = vmatprep.subr.bf16.mxu1 %v10377_v12 }
  0x4c   : > { %9359 = vmatpush3.bf16.msra.mxu0 %v10376_v11  ;;  %v1104_v11 = vshll.u32 %v11010_v1, 16 }
  0x4d   : > { %9387 = vmatpush3.bf16.msra.mxu1 %v10377_v12  ;;  %9360 = vmatprep.subr.bf16.mxu0 %v10378_v13  ;;  %v1289_v12 = vrot.slane %v11005_v61, 1  ;;  %v11063_v61 = vld [vmem:[%s10890_s29 + $0x28] sm:$0xff]  }
  0x4e   : > { %9388 = vmatprep.subr.bf16.mxu1 %v10379_v14  ;;  %v1106_v28 = vrot.slane %v1104_v11, 1  ;;  %v11080_v11 = vld [vmem:[%s10890_s29 + $0x38] sm:$0xff]  }
  0x50   : > { %9361 = vmatpush3.bf16.msra.mxu0 %v10378_v13  ;;  %v1098_v13 = vrot.slane %v1096_v3, 1  ;;  %v10425_v3 = vld [vmem:[%s10873_s22 + $0x180] sm:$0xff]  }
  0x51   : > { %9389 = vmatpush3.bf16.msra.mxu1 %v10379_v14  ;;  %9402 = vmatprep.subr.bf16.mxu0 %v10383_v17  ;;  %v11020_v14 = vld [vmem:[%s10890_s29 + $0x34] sm:$0xff]  }
  0x52   : > { %9430 = vmatprep.subr.bf16.mxu1 %v10384_v18  ;;  %v1102_v27 = vor.u32 %v1100_v10, %v1098_v13  ;;  %v1293_v41 = vrot.slane %v11020_v14, 1  ;;  %v1717_v10 = vshrl.u32 %v11063_v61, 16 }
  0x53   : > { %9363 = vmatmul.mubr.bf16.vlgmr.msra.gmra.mxu0 %v663_v21  ;;  %v1288_v21 = vsel %vm658_vm1, %v1285_v48, %v1287_v4  ;;  %v10420_v48 = vld [vmem:[%s10873_s22 + $0x1d8] sm:$0xff]  }
  0x54   : > { %9391 = vmatmul.mubr.bf16.vlgmr.msra.gmra.mxu1 %v10382_v19  ;;  %9403 = vmatpush3.bf16.msra.mxu0 %v10383_v17  ;;  %v1094_v17 = vor.u32 %v1092_v5, %v1090_v7  ;;  %v1091_v19 = vsel %vm322_vm0, %v1086_v6, %v1090_v7  ;;  %v10426_v5 = vld [vmem:[%s10873_s22 + $0x1c0] sm:$0xff]  }
  0x55   : > { %9431 = vmatpush3.bf16.msra.mxu1 %v10384_v18  ;;  %9404 = vmatprep.subr.bf16.mxu0 %v10385_v16  ;;  %v11024_v18 = vld [vmem:[%s10890_s29 + $0x1c] sm:$0xf] }
  0x56   : > { %9432 = vmatprep.subr.bf16.mxu1 %v10386_v24  ;;  %9366 = vmatprep.mubr.bf16.mxu0 %v665_v25  ;;  %v1108_v25 = vshrl.u32 %v11010_v1, 16 }
  0x57   : > { %9394 = vmatprep.mubr.bf16.mxu1 %v10389_v26  ;;  %v7944_v26 = vcombine.low %v1634_v15, %v11024_v18  ;;  %v11084_v15 = vld [vmem:[%s10890_s29 + $0x40] sm:$0xff]  }
  0x58   : > { %9405 = vmatpush3.bf16.msra.mxu0 %v10385_v16  ;;  %v1112_v16 = vshll.u32 %v11020_v14, 16 }
  0x59   : > { %9433 = vmatpush3.bf16.msra.mxu1 %v10386_v24  ;;  %9406 = vmatprep.subr.bf16.mxu0 %v10387_v29  ;;  %v1099_v24 = vsel %vm322_vm0, %v1094_v17, %v1098_v13  ;;  %v1700_v37 = vshll.u32 %v7944_v26, 16  ;;  %v1698_v45 = vshrl.u32 %v7944_v26, 16  ;;  %v10430_v13 = vld [vmem:[%s10890_s29 + $0x20] sm:$0xff]   ;;  %v10434_v17 = vld [vmem:[%s10873_s22 + $0x230] sm:$0xff]  }
  0x5a   : > { %9434 = vmatprep.subr.bf16.mxu1 %v10388_v30  ;;  %v1114_v33 = vrot.slane %v1112_v16, 1  ;;  %v11097_v26 = vld [vmem:[%s10890_s29 + $0x48] ss:$0 sps:$4 sm:$0x11]  }
  0x5b   : > { %9367 = vmatmul.mubr.bf16.gmra.mxu0 %v667_v36  ;;  %v1110_v36 = vor.u32 %v1108_v25, %v1106_v28  ;;  %v10436_v25 = vld [vmem:[%s10890_s29 + $0x28] sm:$0xff]  }
  0x5c   : > { %9407 = vmatpush3.bf16.msra.mxu0 %v10387_v29  ;;  %9395 = vmatmul.mubr.bf16.gmra.mxu1 %v10390_v32  ;;  %v10413_v29 = vld [vmem:[%s10873_s22 + $0x1a8] sm:$0xff]   ;;  %v1291_v32 = vrot.slane %v11010_v1, 1  ;;  %v11069_v1 = vld [vmem:[%s10890_s29 + $0x30] sm:$0xff]  }
  0x5d   : > { %9435 = vmatpush3.bf16.msra.mxu1 %v10388_v30  ;;  %9408 = vmatprep.subr.bf16.mxu0 %v10391_v34  ;;  %v1290_v30 = vsel %vm658_vm1, %v1287_v4, %v1289_v12  ;;  %v1721_v6 = vshll.u32 %v11069_v1, 16  ;;  %v1725_v16 = vshrl.u32 %v11069_v1, 16 }
  0x5e   : > { %9436 = vmatprep.subr.bf16.mxu1 %v10392_v38  ;;  %9370 = vmatprep.mubr.bf16.mxu0 %v669_v39  ;;  %v10415_v39 = vld [vmem:[%s10873_s22 + $0x1a0] sm:$0xff]   ;;  %v1292_v42 = vsel %vm658_vm1, %v1289_v12, %v1291_v32  ;;  %v1294_v51 = vsel %vm658_vm1, %v1291_v32, %v1293_v41  ;;  %v10438_v32 = vld [vmem:[%s10873_s22 + $0x228] sm:$0xff]  }
  0x5f   : > { %9398 = vmatprep.mubr.bf16.mxu1 %v10395_v40  ;;  %v1116_v40 = vshrl.u32 %v11020_v14, 16  ;;  %v1723_v14 = vrot.slane %v1721_v6, 1  ;;  %v11138_v6 = vld [vmem:[%s10890_s29 + $0x48] sm:$0xff]  }
  0x60   : > { %9409 = vmatpush3.bf16.msra.mxu0 %v10391_v34  ;;  %v11043_v34 = vld [vmem:[%s10890_s29 + $0x20] sm:$0xff]  }
  0x61   : > { %9437 = vmatpush3.bf16.msra.mxu1 %v10392_v38  ;;  %9410 = vmatprep.subr.bf16.mxu0 %v10393_v46  ;;  %v1107_v38 = vsel %vm322_vm0, %v1102_v27, %v1106_v28  ;;  %v1118_v50 = vor.u32 %v1116_v40, %v1114_v33  ;;  %v1709_v4 = vshrl.u32 %v11043_v34, 16 }
  0x62   : > { %9438 = vmatprep.subr.bf16.mxu1 %v10394_v47 }
  0x63   : > { %9371 = vmatmul.mubr.bf16.gmra.mxu0 %v671_v52  ;;  %v10419_v52 = vld [vmem:[%s10873_s22 + $0x198] sm:$0xff]  }
  0x64   : > { %9411 = vmatpush3.bf16.msra.mxu0 %v10393_v46  ;;  %9399 = vmatmul.mubr.bf16.gmra.mxu1 %v10396_v49  ;;  %v1115_v46 = vsel %vm322_vm0, %v1110_v36, %v1114_v33  ;;  %v1705_v49 = vshll.u32 %v11043_v34, 16  ;;  %v1727_v33 = vor.u32 %v1725_v16, %v1723_v14  ;;  %v10439_v36 = vld [vmem:[%s10873_s22 + $0x68] sm:$0xff]   ;;  %v1914_v16 = vrot.slane %v11069_v1, 1  ;;  %v10463_v1 = vld [vmem:[%s10873_s22 + $0xb0] sm:$0xff]  }
  0x65   : > { %9439 = vmatpush3.bf16.msra.mxu1 %v10394_v47  ;;  %9412 = vmatprep.subr.bf16.mxu0 %v10397_v54  ;;  %v1702_v47 = vrot.slane %v1700_v37, 1  ;;  %v11109_v37 = vld [vmem:[%s10890_s29 + $0x38] sm:$0xff]  }
  0x66   : > { %9440 = vmatprep.subr.bf16.mxu1 %v10398_v55  ;;  %9418 = vmatprep.mubr.bf16.mxu0 %v1083_v57  ;;  %v1707_v57 = vrot.slane %v1705_v49, 1 }
  0x67   : > { %9446 = vmatprep.mubr.bf16.mxu1 %v1286_v58  ;;  %v1296_v58 = vsel %vm658_vm1, %v1293_v41, %v1295_v53  ;;  %v1888_v41 = vld [vmem:[%s10890_s29 + $0x18] sm:$0xe] }
  0x68   : > { %9413 = vmatpush3.bf16.msra.mxu0 %v10397_v54  ;;  %v1123_v54 = vsel %vm322_vm0, %v1118_v50, %v1122_v44  ;;  %v1711_v12 = vor.u32 %v1709_v4, %v1707_v57  ;;  %v10443_v44 = vld [vmem:[%s10873_s22 + $0x60] sm:$0xff]   ;;  %v7975_v50 = vcombine.low %v1888_v41, %v11024_v18 }
  0x69   : > { %9441 = vmatpush3.bf16.msra.mxu1 %v10398_v55  ;;  %9414 = vmatprep.subr.bf16.mxu0 %v10399_v56  ;;  %v10421_v55 = vld [vmem:[%s10873_s22 + $0x190] sm:$0xff]   ;;  %v10445_v18 = vld [vmem:[%s10890_s29 + $0x40] sm:$0xff]  }
  0x6a   : > { %9442 = vmatprep.subr.bf16.mxu1 %v10400_v60  ;;  %v11134_v4 = vld [vmem:[%s10890_s29 + $0x40] sm:$0xff]  }
  0x6c   : > { %9415 = vmatpush3.bf16.msra.mxu0 %v10399_v56  ;;  %v1703_v56 = vor.u32 %v1702_v47, %v1698_v45  ;;  %v1741_v45 = vshrl.u32 %v11084_v15, 16  ;;  %v10444_v47 = vld [vmem:[%s10890_s29 + $0x38] sm:$0xff]  }
  0x6d   : > { %9443 = vmatpush3.bf16.msra.mxu1 %v10400_v60  ;;  %9416 = vmatprep.subr.bf16.mxu0 %v10401_v0  ;;  %v10427_v60 = vld [vmem:[%s10890_s29 + $0x18] sm:$0xff]  }
  0x6e   : > { %9444 = vmatprep.subr.bf16.mxu1 %v10402_v2  ;;  %v1708_v62 = vsel %vm322_vm0, %v1703_v56, %v1707_v57  ;;  %v1910_v57 = vrot.slane %v11043_v34, 1 }
  0x70   : > { %9417 = vmatpush3.bf16.msra.mxu0 %v10401_v0  ;;  %v10424_v0 = vld [vmem:[%s10873_s22 + $0x1c8] sm:$0xff]  }
  0x71   : > { %9445 = vmatpush3.bf16.msra.mxu1 %v10402_v2  ;;  %9458 = vmatprep.subr.bf16.mxu0 %v10407_v8  ;;  %v1713_v2 = vshll.u32 %v11063_v61, 16 }
  0x72   : > { %9486 = vmatprep.subr.bf16.mxu1 %v10408_v9 }
  0x73   : > { %9419 = vmatmul.mubr.bf16.vlgmr.msra.gmra.mxu0 %v1091_v19  ;;  %v1715_v7 = vrot.slane %v1713_v2, 1  ;;  %v2099_v19 = vld [vmem:[%s10890_s29 + $0x30] sm:$0xf]  ;;  %v10452_v2 = vld [vmem:[%s10873_s22 + $0x208] sm:$0xff]  }
  0x74   : > { %9447 = vmatmul.mubr.bf16.vlgmr.msra.gmra.mxu1 %v1288_v21  ;;  %9459 = vmatpush3.bf16.msra.mxu0 %v10407_v8  ;;  %v10432_v8 = vld [vmem:[%s10873_s22 + $0x238] sm:$0xff]  }
  0x75   : > { %9487 = vmatpush3.bf16.msra.mxu1 %v10408_v9  ;;  %9460 = vmatprep.subr.bf16.mxu0 %v10409_v22  ;;  %v10433_v9 = vld [vmem:[%s10873_s22 + $0x78] sm:$0xff]   ;;  %v1719_v21 = vor.u32 %v1717_v10, %v1715_v7  ;;  %v10455_v10 = vld [vmem:[%s10873_s22 + $0x40] sm:$0xff]  }
  0x76   : > { %9488 = vmatprep.subr.bf16.mxu1 %v10410_v23  ;;  %9422 = vmatprep.mubr.bf16.mxu0 %v1099_v24  ;;  %v1729_v24 = vshll.u32 %v11080_v11, 16 }
  0x77   : > { %9450 = vmatprep.mubr.bf16.mxu1 %v1290_v30  ;;  %v1724_v28 = vsel %vm322_vm0, %v1719_v21, %v1723_v14  ;;  %v1737_v30 = vshll.u32 %v11084_v15, 16  ;;  %v2197_v14 = vshrl.u32 %v11134_v4, 16  ;;  %v10460_v21 = vld [vmem:[%s10873_s22 + $0x38] sm:$0xff]  }
  0x78   : > { %9461 = vmatpush3.bf16.msra.mxu0 %v10409_v22  ;;  %v11090_v22 = vld [vmem:[%s10890_s29 + $0x34] sm:$0xf]  ;;  %v1731_v35 = vrot.slane %v1729_v24, 1 }
  0x79   : > { %9489 = vmatpush3.bf16.msra.mxu1 %v10410_v23  ;;  %9462 = vmatprep.subr.bf16.mxu0 %v10413_v29  ;;  %v1716_v23 = vsel %vm322_vm0, %v1711_v12, %v1715_v7  ;;  %v11100_v27 = vcombine.low %v2099_v19, %v11090_v22  ;;  %v1739_v40 = vrot.slane %v1737_v30, 1  ;;  %v10454_v7 = vld [vmem:[%s10873_s22 + $0x200] sm:$0xff]   ;;  %v1912_v12 = vrot.slane %v11063_v61, 1 }
  0x7a   : > { %9490 = vmatprep.subr.bf16.mxu1 %v10414_v31 }
  0x7b   : > { %9423 = vmatmul.mubr.bf16.gmra.mxu0 %v1107_v38  ;;  %v2180_v38 = vshll.u32 %v11100_v27, 16  ;;  %v2178_v49 = vshrl.u32 %v11100_v27, 16  ;;  %v1913_v24 = vsel %vm658_vm1, %v1910_v57, %v1912_v12 }
  0x7c   : > { %9463 = vmatpush3.bf16.msra.mxu0 %v10413_v29  ;;  %9451 = vmatmul.mubr.bf16.gmra.mxu1 %v1292_v42  ;;  %v1733_v29 = vshrl.u32 %v11080_v11, 16  ;;  %v1732_v42 = vsel %vm322_vm0, %v1727_v33, %v1731_v35  ;;  %v1916_v33 = vrot.slane %v11080_v11, 1 }
  0x7d   : > { %9491 = vmatpush3.bf16.msra.mxu1 %v10414_v31  ;;  %9464 = vmatprep.subr.bf16.mxu0 %v10415_v39  ;;  %v10437_v31 = vld [vmem:[%s10890_s29 + $0x30] sm:$0xff]  }
  0x7e   : > { %9492 = vmatprep.subr.bf16.mxu1 %v10416_v43  ;;  %9426 = vmatprep.mubr.bf16.mxu0 %v1115_v46  ;;  %v1745_v46 = vshll.u32 %v11097_v26, 16 }
  0x7f   : > { %9454 = vmatprep.mubr.bf16.mxu1 %v1294_v51  ;;  %v2182_v51 = vrot.slane %v2180_v38, 1 }
  0x80   : > { %9465 = vmatpush3.bf16.msra.mxu0 %v10415_v39  ;;  %v1735_v39 = vor.u32 %v1733_v29, %v1731_v35  ;;  %v1747_v56 = vrot.slane %v1745_v46, 1  ;;  %v11156_v29 = vld [vmem:[%s10890_s29 + $0x58] sm:$0xff]   ;;  %v1915_v35 = vsel %vm658_vm1, %v1912_v12, %v1914_v16  ;;  %v10483_v12 = vld [vmem:[%s10873_s22 + $0xf0] sm:$0xff]  }
  0x81   : > { %9493 = vmatpush3.bf16.msra.mxu1 %v10416_v43  ;;  %9466 = vmatprep.subr.bf16.mxu0 %v10419_v52  ;;  %v10442_v43 = vld [vmem:[%s10873_s22 + $0x220] sm:$0xff]   ;;  %v2221_v46 = vshrl.u32 %v11156_v29, 16 }
  0x82   : > { %9494 = vmatprep.subr.bf16.mxu1 %v10420_v48  ;;  %v1740_v53 = vsel %vm322_vm0, %v1735_v39, %v1739_v40  ;;  %v11167_v39 = vld [vmem:[%s10890_s29 + $0x60] ss:$0 sps:$4 sm:$0x11]  }
  0x83   : > { %9427 = vmatmul.mubr.bf16.gmra.mxu0 %v1123_v54  ;;  %v10447_v54 = vld [vmem:[%s10873_s22 + $0x58] sm:$0xff]  }
  0x84   : > { %9467 = vmatpush3.bf16.msra.mxu0 %v10419_v52  ;;  %9455 = vmatmul.mubr.bf16.gmra.mxu1 %v1296_v58  ;;  %v2185_v52 = vshll.u32 %v11109_v37, 16  ;;  %v1909_v58 = vrot.slane %v7975_v50, 1 }
  0x85   : > { %9495 = vmatpush3.bf16.msra.mxu1 %v10420_v48  ;;  %9468 = vmatprep.subr.bf16.mxu0 %v10421_v55  ;;  %v10446_v48 = vld [vmem:[%s10873_s22 + $0x218] sm:$0xff]  }
  0x86   : > { %9496 = vmatprep.subr.bf16.mxu1 %v10422_v59  ;;  %9474 = vmatprep.mubr.bf16.mxu0 %v10427_v60  ;;  %v2187_v60 = vrot.slane %v2185_v52, 1  ;;  %v1911_v34 = vsel %vm658_vm1, %v1909_v58, %v1910_v57  ;;  %v10470_v57 = vld [vmem:[%s10873_s22 + $0x18] sm:$0xff]  }
  0x87   : > { %9502 = vmatprep.mubr.bf16.mxu1 %v1708_v62 }
  0x88   : > { %9469 = vmatpush3.bf16.msra.mxu0 %v10421_v55  ;;  %v1743_v55 = vor.u32 %v1741_v45, %v1739_v40  ;;  %v10467_v45 = vld [vmem:[%s10873_s22 + $0x20] sm:$0xff]  }
  0x89   : > { %9497 = vmatpush3.bf16.msra.mxu1 %v10422_v59  ;;  %9470 = vmatprep.subr.bf16.mxu0 %v10423_v63  ;;  %v2183_v59 = vor.u32 %v2182_v51, %v2178_v49  ;;  %v2225_v51 = vshll.u32 %v11167_v39, 16 }
  0x8a   : > { %9498 = vmatprep.subr.bf16.mxu1 %v10424_v0  ;;  %v1748_v62 = vsel %vm322_vm0, %v1743_v55, %v1747_v56 }
  0x8b   : > { %v2227_v58 = vrot.slane %v2225_v51, 1  ;;  %v10496_v51 = vld [vmem:[%s10873_s22 + $0x100] sm:$0xff]  }
  0x8c   : > { %9471 = vmatpush3.bf16.msra.mxu0 %v10423_v63  ;;  %v10450_v63 = vld [vmem:[%s10873_s22 + $0x210] sm:$0xff]  }
  0x8d   : > { %9499 = vmatpush3.bf16.msra.mxu1 %v10424_v0  ;;  %9472 = vmatprep.subr.bf16.mxu0 %v10425_v3  ;;  %v10451_v0 = vld [vmem:[%s10873_s22 + $0x50] sm:$0xff]  }
  0x8e   : > { %9500 = vmatprep.subr.bf16.mxu1 %v10426_v5 }
  0x90   : > { %9473 = vmatpush3.bf16.msra.mxu0 %v10425_v3  ;;  %v2188_v3 = vsel %vm322_vm0, %v2183_v59, %v2187_v60  ;;  %v10471_v59 = vld [vmem:[%s10873_s22 + $0x98] sm:$0xff]  }
  0x91   : > { %9501 = vmatpush3.bf16.msra.mxu1 %v10426_v5  ;;  %9514 = vmatprep.subr.bf16.mxu0 %v10432_v8  ;;  %v10453_v5 = vld [vmem:[%s10873_s22 + $0x48] sm:$0xff]  }
  0x92   : > { %9542 = vmatprep.subr.bf16.mxu1 %v10433_v9 }
  0x93   : > { %9475 = vmatmul.mubr.bf16.vlgmr.msra.gmra.mxu0 %v10430_v13  ;;  %v2201_v13 = vshll.u32 %v11138_v6, 16 }
  0x94   : > { %9503 = vmatmul.mubr.bf16.vlgmr.msra.gmra.mxu1 %v1716_v23  ;;  %9515 = vmatpush3.bf16.msra.mxu0 %v10432_v8  ;;  %v2189_v8 = vshrl.u32 %v11109_v37, 16  ;;  %v10461_v23 = vld [vmem:[%s10873_s22 + $0xb8] sm:$0xff]  }
  0x95   : > { %9543 = vmatpush3.bf16.msra.mxu1 %v10433_v9  ;;  %9516 = vmatprep.subr.bf16.mxu0 %v10434_v17  ;;  %v2193_v9 = vshll.u32 %v11134_v4, 16  ;;  %v2203_v61 = vrot.slane %v2201_v13, 1  ;;  %v2860_v13 = vld [vmem:[%s10890_s29 + $0x3c] sm:$0xf] }
  0x96   : > { %9544 = vmatprep.subr.bf16.mxu1 %v10435_v20  ;;  %9478 = vmatprep.mubr.bf16.mxu0 %v10436_v25  ;;  %v2191_v19 = vor.u32 %v2189_v8, %v2187_v60  ;;  %v2512_v60 = vrot.slane %v11109_v37, 1  ;;  %v2514_v8 = vrot.slane %v11134_v4, 1 }
  0x97   : > { %9506 = vmatprep.mubr.bf16.mxu1 %v1724_v28 }
  0x98   : > { %9517 = vmatpush3.bf16.msra.mxu0 %v10434_v17  ;;  %v11148_v17 = vld [vmem:[%s10890_s29 + $0x50] sm:$0xff]  }
  0x99   : > { %9545 = vmatpush3.bf16.msra.mxu1 %v10435_v20  ;;  %9518 = vmatprep.subr.bf16.mxu0 %v10438_v32  ;;  %v2195_v20 = vrot.slane %v2193_v9, 1  ;;  %v2209_v28 = vshll.u32 %v11148_v17, 16  ;;  %v2213_v38 = vshrl.u32 %v11148_v17, 16  ;;  %v10481_v9 = vld [vmem:[%s10873_s22 + $0xf8] sm:$0xff]  }
  0x9a   : > { %9546 = vmatprep.subr.bf16.mxu1 %v10439_v36 }
  0x9b   : > { %9479 = vmatmul.mubr.bf16.gmra.mxu0 %v10437_v31  ;;  %v2199_v25 = vor.u32 %v2197_v14, %v2195_v20  ;;  %v2196_v30 = vsel %vm322_vm0, %v2191_v19, %v2195_v20  ;;  %v10462_v31 = vld [vmem:[%s10873_s22 + $0x30] sm:$0xff]   ;;  %v2211_v41 = vrot.slane %v2209_v28, 1  ;;  %v2515_v14 = vsel %vm658_vm1, %v2512_v60, %v2514_v8  ;;  %v11205_v19 = vld [vmem:[%s10890_s29 + $0x40] sm:$0xf] }
  0x9c   : > { %9519 = vmatpush3.bf16.msra.mxu0 %v10438_v32  ;;  %9507 = vmatmul.mubr.bf16.gmra.mxu1 %v1732_v42  ;;  %v2205_v32 = vshrl.u32 %v11138_v6, 16  ;;  %v2217_v42 = vshll.u32 %v11156_v29, 16  ;;  %v10484_v20 = vld [vmem:[%s10873_s22 + $0x130] sm:$0xff]  }
  0x9d   : > { %9547 = vmatpush3.bf16.msra.mxu1 %v10439_v36  ;;  %9520 = vmatprep.subr.bf16.mxu0 %v10442_v43  ;;  %v10464_v36 = vld [vmem:[%s10873_s22 + $0x28] sm:$0xff]   ;;  %v2204_v40 = vsel %vm322_vm0, %v2199_v25, %v2203_v61  ;;  %v2215_v49 = vor.u32 %v2213_v38, %v2211_v41  ;;  %v2522_v38 = vrot.slane %v11167_v39, 1  ;;  %v10492_v39 = vld [vmem:[%s10873_s22 + $0x110] sm:$0xff]  }
  0x9e   : > { %9548 = vmatprep.subr.bf16.mxu1 %v10443_v44  ;;  %9482 = vmatprep.mubr.bf16.mxu0 %v10444_v47  ;;  %v2207_v11 = vor.u32 %v2205_v32, %v2203_v61  ;;  %v1917_v47 = vsel %vm658_vm1, %v1914_v16, %v1916_v33  ;;  %v2219_v50 = vrot.slane %v2217_v42, 1  ;;  %v10485_v16 = vld [vmem:[%s10873_s22 + $0xe8] sm:$0xff]   ;;  %v2518_v61 = vrot.slane %v11148_v17, 1  ;;  %v10488_v32 = vld [vmem:[%s10873_s22 + $0x120] sm:$0xff]  }
  0x9f   : > { %9510 = vmatprep.mubr.bf16.mxu1 %v1740_v53  ;;  %v2491_v53 = vld [vmem:[%s10890_s29 + $0x30] sm:$0xe]  ;;  %v11217_v25 = vld [vmem:[%s10890_s29 + $0x44] sm:$0xff]  }
  0xa0   : > { %9521 = vmatpush3.bf16.msra.mxu0 %v10442_v43  ;;  %v10465_v43 = vld [vmem:[%s10873_s22 + $0xa8] sm:$0xff]   ;;  %v2212_v52 = vsel %vm322_vm0, %v2207_v11, %v2211_v41  ;;  %v2220_v55 = vsel %vm322_vm0, %v2215_v49, %v2219_v50  ;;  %v8044_v56 = vcombine.low %v2491_v53, %v11090_v22  ;;  %v10491_v11 = vld [vmem:[%s10873_s22 + $0xd0] sm:$0xff]  }
  0xa1   : > { %9549 = vmatpush3.bf16.msra.mxu1 %v10443_v44  ;;  %9522 = vmatprep.subr.bf16.mxu0 %v10446_v48  ;;  %v1918_v44 = vrot.slane %v11084_v15, 1  ;;  %v10468_v15 = vld [vmem:[%s10873_s22 + $0xa0] sm:$0xff]   ;;  %v11242_v49 = vld [vmem:[%s10890_s29 + $0x54] sm:$0xff]  }
  0xa2   : > { %9550 = vmatprep.subr.bf16.mxu1 %v10447_v54  ;;  %v2946_v53 = vshll.u32 %v11242_v49, 16 }
  0xa3   : > { %9483 = vmatmul.mubr.bf16.gmra.mxu0 %v10445_v18  ;;  %v2223_v18 = vor.u32 %v2221_v46, %v2219_v50  ;;  %v10494_v46 = vld [vmem:[%s10873_s22 + $0x108] sm:$0xff]  }
  0xa4   : > { %9523 = vmatpush3.bf16.msra.mxu0 %v10446_v48  ;;  %9511 = vmatmul.mubr.bf16.gmra.mxu1 %v1748_v62  ;;  %v1919_v48 = vsel %vm658_vm1, %v1916_v33, %v1918_v44  ;;  %v10473_v62 = vld [vmem:[%s10873_s22 + $0x10] sm:$0xff]  }
  0xa5   : > { %9551 = vmatpush3.bf16.msra.mxu1 %v10447_v54  ;;  %9524 = vmatprep.subr.bf16.mxu0 %v10450_v63  ;;  %v1920_v54 = vrot.slane %v11097_v26, 1  ;;  %v2228_v22 = vsel %vm322_vm0, %v2223_v18, %v2227_v58  ;;  %v11256_v18 = vld [vmem:[%s10890_s29 + $0x64] sm:$0xff]  }
  0xa6   : > { %9552 = vmatprep.subr.bf16.mxu1 %v10451_v0  ;;  %9530 = vmatprep.mubr.bf16.mxu0 %v1911_v34 }
  0xa7   : > { %9558 = vmatprep.mubr.bf16.mxu1 %v2188_v3  ;;  %v1921_v26 = vsel %vm658_vm1, %v1918_v44, %v1920_v54  ;;  %v10477_v3 = vld [vmem:[%s10873_s22 + $0x88] sm:$0xff]  }
  0xa8   : > { %9525 = vmatpush3.bf16.msra.mxu0 %v10450_v63  ;;  %v2511_v63 = vrot.slane %v8044_v56, 1  ;;  %v10493_v44 = vld [vmem:[%s10873_s22 + $0xc8] sm:$0xff]   ;;  %v11252_v56 = vld [vmem:[%s10890_s29 + $0x5c] sm:$0xff]  }
  0xa9   : > { %9553 = vmatpush3.bf16.msra.mxu1 %v10451_v0  ;;  %9526 = vmatprep.subr.bf16.mxu0 %v10452_v2  ;;  %v10474_v0 = vld [vmem:[%s10873_s22 + $0x90] sm:$0xff]  }
  0xaa   : > { %9554 = vmatprep.subr.bf16.mxu1 %v10453_v5  ;;  %v2513_v34 = vsel %vm658_vm1, %v2511_v63, %v2512_v60  ;;  %v2950_v63 = vshrl.u32 %v11242_v49, 16 }
  0xac   : > { %9527 = vmatpush3.bf16.msra.mxu0 %v10452_v2  ;;  %v10476_v2 = vld [vmem:[%s10873_s22 + $0x8] sm:$0xff]  }
  0xad   : > { %9555 = vmatpush3.bf16.msra.mxu1 %v10453_v5  ;;  %9528 = vmatprep.subr.bf16.mxu0 %v10454_v7  ;;  %v10478_v5 = vld [vmem:[%s10873_s22] sm:$0xff]  }
  0xae   : > { %9556 = vmatprep.subr.bf16.mxu1 %v10455_v10 }
  0xb0   : > { %9529 = vmatpush3.bf16.msra.mxu0 %v10454_v7  ;;  %v10479_v7 = vld [vmem:[%s10873_s22 + $0x80] sm:$0xff]  }
  0xb1   : > { %9557 = vmatpush3.bf16.msra.mxu1 %v10455_v10  ;;  %9570 = vmatprep.subr.bf16.mxu0 %v10460_v21  ;;  %v10482_v10 = vld [vmem:[%s10873_s22 + $0x138] sm:$0xff]  }
  0xb2   : > { %9598 = vmatprep.subr.bf16.mxu1 %v10461_v23 }
  0xb3   : > { %9531 = vmatmul.mubr.bf16.vlgmr.msra.gmra.mxu0 %v1913_v24  ;;  %v10486_v24 = vld [vmem:[%s10873_s22 + $0x128] sm:$0xff]  }
  0xb4   : > { %9559 = vmatmul.mubr.bf16.vlgmr.msra.gmra.mxu1 %v2196_v30  ;;  %9571 = vmatpush3.bf16.msra.mxu0 %v10460_v21 }
  0xb5   : > { %9599 = vmatpush3.bf16.msra.mxu1 %v10461_v23  ;;  %9572 = vmatprep.subr.bf16.mxu0 %v10462_v31  ;;  %v8099_v23 = vcombine.low %v2860_v13, %v11205_v19 }
  0xb6   : > { %9600 = vmatprep.subr.bf16.mxu1 %v10463_v1  ;;  %9534 = vmatprep.mubr.bf16.mxu0 %v1915_v35  ;;  %v2930_v35 = vshll.u32 %v11217_v25, 16 }
  0xb7   : > { %9562 = vmatprep.mubr.bf16.mxu1 %v2204_v40  ;;  %v2925_v28 = vshll.u32 %v8099_v23, 16 }
  0xb8   : > { %9573 = vmatpush3.bf16.msra.mxu0 %v10462_v31  ;;  %v10487_v31 = vld [vmem:[%s10873_s22 + $0xe0] sm:$0xff]   ;;  %v2932_v41 = vrot.slane %v2930_v35, 1 }
  0xb9   : > { %9601 = vmatpush3.bf16.msra.mxu1 %v10463_v1  ;;  %9574 = vmatprep.subr.bf16.mxu0 %v10464_v36  ;;  %v2927_v33 = vrot.slane %v2925_v28, 1  ;;  %v3113_v28 = vld [vmem:[%s10890_s29 + $0x3c] sm:$0xe]  ;;  %v10513_v35 = vld [vmem:[%s10873_s22 + $0x1a0] sm:$0xff]  }
  0xba   : > { %9602 = vmatprep.subr.bf16.mxu1 %v10465_v43 }
  0xbb   : > { %9535 = vmatmul.mubr.bf16.gmra.mxu0 %v1917_v47  ;;  %v10495_v47 = vld [vmem:[%s10873_s22 + $0xc0] sm:$0xff]  }
  0xbc   : > { %9575 = vmatpush3.bf16.msra.mxu0 %v10464_v36  ;;  %9563 = vmatmul.mubr.bf16.gmra.mxu1 %v2212_v52  ;;  %v10489_v36 = vld [vmem:[%s10873_s22 + $0xd8] sm:$0xff]  }
  0xbd   : > { %9603 = vmatpush3.bf16.msra.mxu1 %v10465_v43  ;;  %9576 = vmatprep.subr.bf16.mxu0 %v10467_v45  ;;  %v10497_v43 = vld [vmem:[%s10890_s29 + $0x3c] sm:$0xff]  }
  0xbe   : > { %9604 = vmatprep.subr.bf16.mxu1 %v10468_v15  ;;  %9538 = vmatprep.mubr.bf16.mxu0 %v1919_v48  ;;  %v10500_v48 = vld [vmem:[%s10890_s29 + $0x44] sm:$0xff]  }
  0xbf   : > { %9566 = vmatprep.mubr.bf16.mxu1 %v2220_v55  ;;  %v10502_v55 = vld [vmem:[%s10873_s22 + $0x178] sm:$0xff]  }
  0xc0   : > { %9577 = vmatpush3.bf16.msra.mxu0 %v10467_v45  ;;  %v11237_v45 = vld [vmem:[%s10890_s29 + $0x4c] sm:$0xff]  }
  0xc1   : > { %9605 = vmatpush3.bf16.msra.mxu1 %v10468_v15  ;;  %9578 = vmatprep.subr.bf16.mxu0 %v10470_v57  ;;  %v2938_v50 = vshll.u32 %v11237_v45, 16  ;;  %v2942_v52 = vshrl.u32 %v11237_v45, 16 }
  0xc2   : > { %9606 = vmatprep.subr.bf16.mxu1 %v10471_v59 }
  0xc3   : > { %9539 = vmatmul.mubr.bf16.gmra.mxu0 %v1921_v26  ;;  %v2940_v54 = vrot.slane %v2938_v50, 1  ;;  %v10504_v26 = vld [vmem:[%s10873_s22 + $0x170] sm:$0xff]  }
  0xc4   : > { %9579 = vmatpush3.bf16.msra.mxu0 %v10470_v57  ;;  %9567 = vmatmul.mubr.bf16.gmra.mxu1 %v2228_v22  ;;  %v10503_v57 = vld [vmem:[%s10873_s22 + $0x1b8] sm:$0xff]   ;;  %v2954_v22 = vshll.u32 %v11252_v56, 16 }
  0xc5   : > { %9607 = vmatpush3.bf16.msra.mxu1 %v10471_v59  ;;  %9580 = vmatprep.subr.bf16.mxu0 %v10473_v62  ;;  %v2944_v58 = vor.u32 %v2942_v52, %v2940_v54  ;;  %v2948_v59 = vrot.slane %v2946_v53, 1  ;;  %v10520_v53 = vld [vmem:[%s10873_s22 + $0x150] sm:$0xff]  }
  0xc6   : > { %9608 = vmatprep.subr.bf16.mxu1 %v10474_v0  ;;  %9586 = vmatprep.mubr.bf16.mxu0 %v11100_v27  ;;  %v2516_v27 = vrot.slane %v11138_v6, 1  ;;  %v2956_v13 = vrot.slane %v2954_v22, 1 }
  0xc7   : > { %9614 = vmatprep.mubr.bf16.mxu1 %v2513_v34 }
  0xc8   : > { %9581 = vmatpush3.bf16.msra.mxu0 %v10473_v62  ;;  %v2517_v21 = vsel %vm658_vm1, %v2514_v8, %v2516_v27  ;;  %v2519_v30 = vsel %vm658_vm1, %v2516_v27, %v2518_v61  ;;  %v10505_v62 = vld [vmem:[%s10873_s22 + $0x1b0] sm:$0xff]   ;;  %v2958_v8 = vshrl.u32 %v11252_v56, 16  ;;  %v2952_v27 = vor.u32 %v2950_v63, %v2948_v59  ;;  %v10522_v63 = vld [vmem:[%s10873_s22 + $0x148] sm:$0xff]  }
  0xc9   : > { %9609 = vmatpush3.bf16.msra.mxu1 %v10474_v0  ;;  %9582 = vmatprep.subr.bf16.mxu0 %v10476_v2  ;;  %v10506_v0 = vld [vmem:[%s10890_s29 + $0x4c] sm:$0xff]  }
  0xca   : > { %9610 = vmatprep.subr.bf16.mxu1 %v10477_v3 }
  0xcc   : > { %9583 = vmatpush3.bf16.msra.mxu0 %v10476_v2  ;;  %v2962_v2 = vshll.u32 %v11256_v18, 16 }
  0xcd   : > { %9611 = vmatpush3.bf16.msra.mxu1 %v10477_v3  ;;  %9584 = vmatprep.subr.bf16.mxu0 %v10478_v5  ;;  %v11266_v3 = vld [vmem:[%s10890_s29 + $0x6c] ss:$0 sps:$4 sm:$0x11]  }
  0xce   : > { %9612 = vmatprep.subr.bf16.mxu1 %v10479_v7 }
  0xd0   : > { %9585 = vmatpush3.bf16.msra.mxu0 %v10478_v5 }
  0xd1   : > { %9613 = vmatpush3.bf16.msra.mxu1 %v10479_v7  ;;  %9626 = vmatprep.subr.bf16.mxu0 %v10481_v9  ;;  %v2949_v7 = vsel %vm322_vm0, %v2944_v58, %v2948_v59 }
  0xd2   : > { %9654 = vmatprep.subr.bf16.mxu1 %v10482_v10 }
  0xd3   : > { %9587 = vmatmul.mubr.bf16.vlgmr.msra.gmra.mxu0 %v11109_v37  ;;  %v2520_v37 = vrot.slane %v11156_v29, 1 }
  0xd4   : > { %9615 = vmatmul.mubr.bf16.vlgmr.msra.gmra.mxu1 %v2515_v14  ;;  %9627 = vmatpush3.bf16.msra.mxu0 %v10481_v9 }
  0xd5   : > { %9655 = vmatpush3.bf16.msra.mxu1 %v10482_v10  ;;  %9628 = vmatprep.subr.bf16.mxu0 %v10483_v12  ;;  %v2521_v1 = vsel %vm658_vm1, %v2518_v61, %v2520_v37  ;;  %v2523_v42 = vsel %vm658_vm1, %v2520_v37, %v2522_v38  ;;  %v10507_v10 = vld [vmem:[%s10890_s29 + $0x54] sm:$0xff]   ;;  %v2964_v61 = vrot.slane %v2962_v2, 1  ;;  %v2960_v37 = vor.u32 %v2958_v8, %v2956_v13 }
  0xd6   : > { %9656 = vmatprep.subr.bf16.mxu1 %v10484_v20  ;;  %9590 = vmatprep.mubr.bf16.mxu0 %v11134_v4  ;;  %v2923_v4 = vshrl.u32 %v8099_v23, 16  ;;  %v3136_v8 = vrot.slane %v11237_v45, 1  ;;  %v10531_v45 = vld [vmem:[%s10873_s22 + $0x1f0] sm:$0xff]  }
  0xd7   : > { %9618 = vmatprep.mubr.bf16.mxu1 %v2517_v21 }
  0xd8   : > { %9629 = vmatpush3.bf16.msra.mxu0 %v10483_v12  ;;  %v2928_v40 = vor.u32 %v2927_v33, %v2923_v4  ;;  %v10508_v12 = vld [vmem:[%s10873_s22 + $0x168] sm:$0xff]   ;;  %v2966_v4 = vshrl.u32 %v11256_v18, 16 }
  0xd9   : > { %9657 = vmatpush3.bf16.msra.mxu1 %v10484_v20  ;;  %9630 = vmatprep.subr.bf16.mxu0 %v10485_v16  ;;  %v10509_v20 = vld [vmem:[%s10873_s22 + $0x1a8] sm:$0xff]  }
  0xda   : > { %9658 = vmatprep.subr.bf16.mxu1 %v10486_v24 }
  0xdb   : > { %9591 = vmatmul.mubr.bf16.gmra.mxu0 %v11138_v6  ;;  %v10490_v6 = vld [vmem:[%s10873_s22 + $0x118] sm:$0xff]  }
  0xdc   : > { %9631 = vmatpush3.bf16.msra.mxu0 %v10485_v16  ;;  %9619 = vmatmul.mubr.bf16.gmra.mxu1 %v2519_v30  ;;  %v10512_v16 = vld [vmem:[%s10873_s22 + $0x160] sm:$0xff]  }
  0xdd   : > { %9659 = vmatpush3.bf16.msra.mxu1 %v10486_v24  ;;  %9632 = vmatprep.subr.bf16.mxu0 %v10487_v31 }
  0xde   : > { %9660 = vmatprep.subr.bf16.mxu1 %v10488_v32  ;;  %9594 = vmatprep.mubr.bf16.mxu0 %v11148_v17  ;;  %v2933_v17 = vsel %vm322_vm0, %v2928_v40, %v2932_v41 }
  0xdf   : > { %9622 = vmatprep.mubr.bf16.mxu1 %v2521_v1  ;;  %v2970_v1 = vshll.u32 %v11266_v3, 16 }
  0xe0   : > { %9633 = vmatpush3.bf16.msra.mxu0 %v10487_v31 }
  0xe1   : > { %9661 = vmatpush3.bf16.msra.mxu1 %v10488_v32  ;;  %9634 = vmatprep.subr.bf16.mxu0 %v10489_v36  ;;  %v2957_v32 = vsel %vm322_vm0, %v2952_v27, %v2956_v13  ;;  %v3138_v27 = vrot.slane %v11242_v49, 1  ;;  %v3482_v13 = vld [vmem:[%s10890_s29 + $0x48] sm:$0xf] }
  0xe2   : > { %9662 = vmatprep.subr.bf16.mxu1 %v10490_v6 }
  0xe3   : > { %9595 = vmatmul.mubr.bf16.gmra.mxu0 %v11156_v29  ;;  %v2934_v29 = vshrl.u32 %v11217_v25, 16  ;;  %v3139_v49 = vsel %vm658_vm1, %v3136_v8, %v3138_v27 }
  0xe4   : > { %9635 = vmatpush3.bf16.msra.mxu0 %v10489_v36  ;;  %9623 = vmatmul.mubr.bf16.gmra.mxu1 %v2523_v42  ;;  %v10514_v36 = vld [vmem:[%s10890_s29 + $0x5c] sm:$0xff]  }
  0xe5   : > { %9663 = vmatpush3.bf16.msra.mxu1 %v10490_v6  ;;  %9636 = vmatprep.subr.bf16.mxu0 %v10491_v11  ;;  %v2936_v15 = vor.u32 %v2934_v29, %v2932_v41  ;;  %v8130_v6 = vcombine.low %v3113_v28, %v11205_v19  ;;  %v2965_v41 = vsel %vm322_vm0, %v2960_v37, %v2964_v61  ;;  %v10515_v29 = vld [vmem:[%s10890_s29 + $0x64] sm:$0xff]   ;;  %v10535_v37 = vld [vmem:[%s10890_s29 + $0x58] sm:$0xff]  }
  0xe6   : > { %9664 = vmatprep.subr.bf16.mxu1 %v10492_v39  ;;  %9642 = vmatprep.mubr.bf16.mxu0 %v10497_v43  ;;  %v2968_v43 = vor.u32 %v2966_v4, %v2964_v61  ;;  %v10532_v61 = vld [vmem:[%s10873_s22 + $0x230] sm:$0xff]   ;;  %v3140_v4 = vrot.slane %v11252_v56, 1 }
  0xe7   : > { %9670 = vmatprep.mubr.bf16.mxu1 %v2933_v17  ;;  %v2941_v60 = vsel %vm322_vm0, %v2936_v15, %v2940_v54  ;;  %v2972_v17 = vrot.slane %v2970_v1, 1  ;;  %v3133_v50 = vrot.slane %v8130_v6, 1  ;;  %v10534_v6 = vld [vmem:[%s10873_s22 + $0x228] sm:$0xff]  }
  0xe8   : > { %9637 = vmatpush3.bf16.msra.mxu0 %v10491_v11 }
  0xe9   : > { %9665 = vmatpush3.bf16.msra.mxu1 %v10492_v39  ;;  %9638 = vmatprep.subr.bf16.mxu0 %v10493_v44  ;;  %v10516_v39 = vld [vmem:[%s10873_s22 + $0x158] sm:$0xff]   ;;  %v2973_v54 = vsel %vm322_vm0, %v2968_v43, %v2972_v17  ;;  %v11338_v43 = vld [vmem:[%s10890_s29 + $0x50] sm:$0xff]  }
  0xea   : > { %9666 = vmatprep.subr.bf16.mxu1 %v10494_v46 }
  0xec   : > { %9639 = vmatpush3.bf16.msra.mxu0 %v10493_v44 }
  0xed   : > { %9667 = vmatpush3.bf16.msra.mxu1 %v10494_v46  ;;  %9640 = vmatprep.subr.bf16.mxu0 %v10495_v47  ;;  %v10517_v46 = vld [vmem:[%s10873_s22 + $0x198] sm:$0xff]  }
  0xee   : > { %9668 = vmatprep.subr.bf16.mxu1 %v10496_v51 }
  0xf0   : > { %9641 = vmatpush3.bf16.msra.mxu0 %v10495_v47 }
  0xf1   : > { %9669 = vmatpush3.bf16.msra.mxu1 %v10496_v51  ;;  %9682 = vmatprep.subr.bf16.mxu0 %v10502_v55  ;;  %v3134_v51 = vrot.slane %v11217_v25, 1  ;;  %v10527_v25 = vld [vmem:[%s10890_s29 + $0x48] sm:$0xff]  }
  0xf2   : > { %9710 = vmatprep.subr.bf16.mxu1 %v10503_v57 }
  0xf3   : > { %v9308_v34 = vpop.f32.mrf.mxu0  ;;  %9643 = vmatmul.mubr.bf16.vlgmr.msra.gmra.mxu0 %v10500_v48  ;;  %v3135_v59 = vsel %vm658_vm1, %v3133_v50, %v3134_v51  ;;  %v3735_v50 = vld [vmem:[%s10890_s29 + $0x48] sm:$0xe] }
  0xf4   : > { %v9336_v5 = vpop.f32.mrf.mxu1  ;;  %9671 = vmatmul.mubr.bf16.vlgmr.msra.gmra.mxu1 %v2941_v60  ;;  %9683 = vmatpush3.bf16.msra.mxu0 %v10502_v55 }
  0xf5   : > { %9711 = vmatpush3.bf16.msra.mxu1 %v10503_v57  ;;  %v463_v9 = vpop.f32.mrf.mxu0  ;;  %9684 = vmatprep.subr.bf16.mxu0 %v10504_v26  ;;  %v10521_v57 = vld [vmem:[%s10873_s22 + $0x190] sm:$0xff]   ;;  %v10524_v5 = vld [vmem:[%s10873_s22 + $0x140] sm:$0xff]  }
  0xf6   : > { %v594_v14 = vpop.f32.mrf.mxu1  ;;  %9712 = vmatprep.subr.bf16.mxu1 %v10505_v62  ;;  %9646 = vmatprep.mubr.bf16.mxu0 %v10506_v0  ;;  %v10523_v0 = vld [vmem:[%s10873_s22 + $0x188] sm:$0xff]  }
  0xf7   : > { %v11273_v21 = vadd.f32 %v594_v14, %v463_v9  ;;  %v9309_v23 = vpop.f32.mrf.mxu0  ;;  %9674 = vmatprep.mubr.bf16.mxu1 %v2949_v7  ;;  %v10525_v7 = vld [vmem:[%s10873_s22 + $0x180] sm:$0xff]   ;;  %v10529_v9 = vld [vmem:[%s10873_s22 + $0x1f8] sm:$0xff]   ;;  %v3137_v14 = vsel %vm658_vm1, %v3134_v51, %v3136_v8 }
  0xf8   : > { %v9337_v24 = vpop.f32.mrf.mxu1  ;;  %9685 = vmatpush3.bf16.msra.mxu0 %v10504_v26 }
  0xf9   : > { %v11277_v30 = vadd.f32 %v9337_v24, %v9309_v23  ;;  %9713 = vmatpush3.bf16.msra.mxu1 %v10505_v62  ;;  %v11279_v31 = vpop.f32.mrf.mxu0  ;;  %9686 = vmatprep.subr.bf16.mxu0 %v10508_v12 }
  0xfa   : > { %v11284_v33 = vpop.f32.mrf.mxu1  ;;  %9714 = vmatprep.subr.bf16.mxu1 %v10509_v20 }
  0xfb   : > { %9647 = vmatmul.mubr.bf16.gmra.mxu0 %v10507_v10  ;;  %v9312_v38 = vpop.f32.mrf.mxu0  ;;  %v10528_v10 = vld [vmem:[%s10890_s29 + $0x50] sm:$0xff]  }
  0xfc   : > { %9687 = vmatpush3.bf16.msra.mxu0 %v10508_v12  ;;  %9675 = vmatmul.mubr.bf16.gmra.mxu1 %v2957_v32  ;;  %v9340_v40 = vpop.f32.mrf.mxu1  ;;  %v10530_v12 = vld [vmem:[%s10873_s22 + $0x238] sm:$0xff]  }
  0xfd   : > { %9715 = vmatpush3.bf16.msra.mxu1 %v10509_v20  ;;  %v11290_v42 = vadd.f32 %v9340_v40, %v9312_v38  ;;  %9688 = vmatprep.subr.bf16.mxu0 %v10512_v16  ;;  %v478_v11 = vpop.f32.mrf.mxu0  ;;  %v11319_v20 = vld [vmem:[%s10890_s29 + $0x4c] sm:$0xf]  ;;  %v10536_v40 = vld [vmem:[%s10890_s29 + $0x60] sm:$0xff]  }
  0xfe   : > { %9716 = vmatprep.subr.bf16.mxu1 %v10513_v35  ;;  %v609_v44 = vpop.f32.mrf.mxu1  ;;  %9650 = vmatprep.mubr.bf16.mxu0 %v10514_v36  ;;  %v8185_v28 = vcombine.low %v3482_v13, %v11319_v20  ;;  %v10543_v13 = vld [vmem:[%s10873_s22 + $0x1d0] sm:$0xff]  }
  0xff   : > { %v11294_v19 = vadd.f32 %v609_v44, %v478_v11  ;;  %v9313_v47 = vpop.f32.mrf.mxu0  ;;  %9678 = vmatprep.mubr.bf16.mxu1 %v2965_v41  ;;  %v3142_v41 = vrot.slane %v11256_v18, 1 }
 0x100   : > { %9689 = vmatpush3.bf16.msra.mxu0 %v10512_v16  ;;  %v9341_v52 = vpop.f32.mrf.mxu1  ;;  %v3547_v56 = vshll.u32 %v8185_v28, 16 }
 0x101   : > { %9717 = vmatpush3.bf16.msra.mxu1 %v10513_v35  ;;  %v11299_v15 = vadd.f32 %v9341_v52, %v9313_v47  ;;  %9690 = vmatprep.subr.bf16.mxu0 %v10516_v39  ;;  %v481_v48 = vpop.f32.mrf.mxu0  ;;  %v10533_v35 = vld [vmem:[%s10873_s22 + $0x1e8] sm:$0xff]   ;;  %v10538_v47 = vld [vmem:[%s10873_s22 + $0x220] sm:$0xff]  }
 0x102   : > { %9718 = vmatprep.subr.bf16.mxu1 %v10517_v46  ;;  %v612_v55 = vpop.f32.mrf.mxu1 }
 0x103   : > { %9651 = vmatmul.mubr.bf16.gmra.mxu0 %v10515_v29  ;;  %v9316_v58 = vpop.f32.mrf.mxu0  ;;  %v3144_v29 = vrot.slane %v11266_v3, 1  ;;  %v3549_v55 = vrot.slane %v3547_v56, 1  ;;  %v3552_v3 = vshll.u32 %v11338_v43, 16 }
 0x104   : > { %9691 = vmatpush3.bf16.msra.mxu0 %v10516_v39  ;;  %9679 = vmatmul.mubr.bf16.gmra.mxu1 %v2973_v54  ;;  %v9344_v60 = vpop.f32.mrf.mxu1  ;;  %v10537_v39 = vld [vmem:[%s10873_s22 + $0x1e0] sm:$0xff]   ;;  %v3143_v54 = vsel %vm658_vm1, %v3140_v4, %v3142_v41 }
 0x105   : > { %9719 = vmatpush3.bf16.msra.mxu1 %v10517_v46  ;;  %v11305_v26 = vadd.f32 %v9344_v60, %v9316_v58  ;;  %9692 = vmatprep.subr.bf16.mxu0 %v10520_v53  ;;  %v493_v62 = vpop.f32.mrf.mxu0  ;;  %v3141_v46 = vsel %vm658_vm1, %v3138_v27, %v3140_v4  ;;  %v10539_v60 = vld [vmem:[%s10873_s22 + $0x1d8] sm:$0xff]  }
 0x106   : > { %9720 = vmatprep.subr.bf16.mxu1 %v10521_v57  ;;  %v624_v22 = vpop.f32.mrf.mxu1  ;;  %9698 = vmatprep.mubr.bf16.mxu0 %v3135_v59  ;;  %v8216_v59 = vcombine.low %v3735_v50, %v11319_v20  ;;  %v10553_v50 = vld [vmem:[%s10873_s22 + $0x78] sm:$0xff]  }
 0x107   : > { %v9317_v34 = vpop.f32.mrf.mxu0  ;;  %9726 = vmatprep.mubr.bf16.mxu1 %v10527_v25 }
 0x108   : > { %9693 = vmatpush3.bf16.msra.mxu0 %v10520_v53  ;;  %v9345_v2 = vpop.f32.mrf.mxu1  ;;  %v10541_v53 = vld [vmem:[%s10890_s29 + $0x68] sm:$0xff]   ;;  %v3145_v34 = vsel %vm658_vm1, %v3142_v41, %v3144_v29 }
 0x109   : > { %9721 = vmatpush3.bf16.msra.mxu1 %v10521_v57  ;;  %9694 = vmatprep.subr.bf16.mxu0 %v10522_v63  ;;  %v11321_v23 = vpop.f32.mrf.mxu0  ;;  %v10542_v2 = vld [vmem:[%s10890_s29 + $0x70] sm:$0xff]  }
 0x10a   : > { %9722 = vmatprep.subr.bf16.mxu1 %v10523_v0  ;;  %v11324_v16 = vpop.f32.mrf.mxu1 }
 0x10c   : > { %9695 = vmatpush3.bf16.msra.mxu0 %v10522_v63 }
 0x10d   : > { %9723 = vmatpush3.bf16.msra.mxu1 %v10523_v0  ;;  %9696 = vmatprep.subr.bf16.mxu0 %v10524_v5  ;;  %v10540_v0 = vld [vmem:[%s10873_s22 + $0x218] sm:$0xff]  }
 0x10e   : > { %9724 = vmatprep.subr.bf16.mxu1 %v10525_v7 }
 0x110   : > { %9697 = vmatpush3.bf16.msra.mxu0 %v10524_v5 }
 0x111   : > { %9725 = vmatpush3.bf16.msra.mxu1 %v10525_v7  ;;  %9738 = vmatprep.subr.bf16.mxu0 %v10529_v9  ;;  %v3554_v7 = vrot.slane %v3552_v3, 1  ;;  %v11404_v3 = vld [vmem:[%s10890_s29 + $0x70] sm:$0xff]  }
 0x112   : > { %9766 = vmatprep.subr.bf16.mxu1 %v10530_v12 }
 0x113   : > { %v9364_v24 = vpop.f32.mrf.mxu0  ;;  %9699 = vmatmul.mubr.bf16.vlgmr.msra.gmra.mxu0 %v3137_v14 }
 0x114   : > { %v9392_v32 = vpop.f32.mrf.mxu1  ;;  %9727 = vmatmul.mubr.bf16.vlgmr.msra.gmra.mxu1 %v10528_v10  ;;  %9739 = vmatpush3.bf16.msra.mxu0 %v10529_v9  ;;  %v3755_v10 = vrot.slane %v8216_v59, 1 }
 0x115   : > { %9767 = vmatpush3.bf16.msra.mxu1 %v10530_v12  ;;  %v760_v1 = vpop.f32.mrf.mxu0  ;;  %9740 = vmatprep.subr.bf16.mxu0 %v10531_v45  ;;  %v3756_v12 = vrot.slane %v11338_v43, 1  ;;  %v11380_v32 = vld [vmem:[%s10890_s29 + $0x58] sm:$0xff]  }
 0x116   : > { %v803_v36 = vadd.f32 %v760_v1, %v11273_v21  ;;  %v958_v38 = vpop.f32.mrf.mxu1  ;;  %9768 = vmatprep.subr.bf16.mxu1 %v10532_v61  ;;  %9702 = vmatprep.mubr.bf16.mxu0 %v3139_v49  ;;  %v10546_v1 = vld [vmem:[%s10873_s22 + $0x208] sm:$0xff]   ;;  %v3560_v41 = vshll.u32 %v11380_v32, 16  ;;  %v3758_v29 = vrot.slane %v11380_v32, 1 }
 0x117   : > { %v9365_v11 = vpop.f32.mrf.mxu0  ;;  %9730 = vmatprep.mubr.bf16.mxu1 %v10535_v37 }
 0x118   : > { %v11340_v17 = vadd.f32 %v958_v38, %v803_v36  ;;  %v805_v21 = vadd.f32 %v9365_v11, %v11277_v30  ;;  %v9393_v44 = vpop.f32.mrf.mxu1  ;;  %9741 = vmatpush3.bf16.msra.mxu0 %v10531_v45  ;;  %v3545_v30 = vshrl.u32 %v8185_v28, 16  ;;  %v10544_v45 = vld [vmem:[%s10873_s22 + $0x210] sm:$0xff]   ;;  %v3757_v28 = vsel %vm658_vm1, %v3755_v10, %v3756_v12  ;;  %v10547_v11 = vld [vmem:[%s10873_s22 + $0x1c0] sm:$0xff]  }
 0x119   : > { %9769 = vmatpush3.bf16.msra.mxu1 %v10532_v61  ;;  %v11346_v18 = vpop.f32.mrf.mxu0  ;;  %9742 = vmatprep.subr.bf16.mxu0 %v10533_v35  ;;  %v10545_v61 = vld [vmem:[%s10873_s22 + $0x1c8] sm:$0xff]  }
 0x11a   : > { %v11349_v51 = vadd.f32 %v9393_v44, %v805_v21  ;;  %v11351_v52 = vpop.f32.mrf.mxu1  ;;  %9770 = vmatprep.subr.bf16.mxu1 %v10534_v6  ;;  %v3550_v5 = vor.u32 %v3549_v55, %v3545_v30  ;;  %v11394_v21 = vld [vmem:[%s10890_s29 + $0x68] sm:$0xff]   ;;  %v3564_v44 = vshrl.u32 %v11380_v32, 16 }
 0x11b   : > { %v9368_v48 = vpop.f32.mrf.mxu0  ;;  %9703 = vmatmul.mubr.bf16.gmra.mxu0 %v3141_v46 }
 0x11c   : > { %v807_v57 = vadd.f32 %v9368_v48, %v11290_v42  ;;  %9743 = vmatpush3.bf16.msra.mxu0 %v10533_v35  ;;  %v9396_v58 = vpop.f32.mrf.mxu1  ;;  %9731 = vmatmul.mubr.bf16.gmra.mxu1 %v10536_v40  ;;  %v3555_v24 = vsel %vm322_vm0, %v3550_v5, %v3554_v7  ;;  %v3556_v40 = vshrl.u32 %v11338_v43, 16  ;;  %v3580_v43 = vshrl.u32 %v11394_v21, 16 }
 0x11d   : > { %9771 = vmatpush3.bf16.msra.mxu1 %v10534_v6  ;;  %v775_v25 = vpop.f32.mrf.mxu0  ;;  %9744 = vmatprep.subr.bf16.mxu0 %v10537_v39 }
 0x11e   : > { %v806_v62 = vadd.f32 %v775_v25, %v11294_v19  ;;  %v11360_v63 = vadd.f32 %v9396_v58, %v807_v57  ;;  %v973_v22 = vpop.f32.mrf.mxu1  ;;  %9772 = vmatprep.subr.bf16.mxu1 %v10538_v47  ;;  %9706 = vmatprep.mubr.bf16.mxu0 %v3143_v54  ;;  %v3558_v46 = vor.u32 %v3556_v40, %v3554_v7  ;;  %v3576_v54 = vshll.u32 %v11394_v21, 16  ;;  %v3940_v58 = vld [vmem:[%s10890_s29 + $0x60] sm:$0xf]  ;;  %v11409_v25 = vld [vmem:[%s10890_s29 + $0x64] sm:$0xf] }
 0x11f   : > { %v9369_v42 = vpop.f32.mrf.mxu0  ;;  %9734 = vmatprep.mubr.bf16.mxu1 %v10541_v53  ;;  %v10554_v53 = vld [vmem:[%s10873_s22 + $0x38] sm:$0xff]  }
 0x120   : > { %v808_v8 = vadd.f32 %v9369_v42, %v11299_v15  ;;  %v11366_v9 = vadd.f32 %v973_v22, %v806_v62  ;;  %9745 = vmatpush3.bf16.msra.mxu0 %v10537_v39  ;;  %v9397_v19 = vpop.f32.mrf.mxu1  ;;  %v10548_v39 = vld [vmem:[%s10873_s22 + $0x200] sm:$0xff]   ;;  %v3759_v62 = vsel %vm658_vm1, %v3756_v12, %v3758_v29  ;;  %v10555_v22 = vld [vmem:[%s10873_s22 + $0x70] sm:$0xff]   ;;  %v3578_v12 = vrot.slane %v3576_v54, 1 }
 0x121   : > { %9773 = vmatpush3.bf16.msra.mxu1 %v10538_v47  ;;  %v778_v27 = vpop.f32.mrf.mxu0  ;;  %9746 = vmatprep.subr.bf16.mxu0 %v10539_v60  ;;  %v3562_v47 = vrot.slane %v3560_v41, 1  ;;  %v10556_v42 = vld [vmem:[%s10873_s22 + $0x30] sm:$0xff]  }
 0x122   : > { %v11370_v14 = vadd.f32 %v9397_v19, %v808_v8  ;;  %v976_v20 = vpop.f32.mrf.mxu1  ;;  %9774 = vmatprep.subr.bf16.mxu1 %v10540_v0  ;;  %v11427_v8 = vcombine.low %v3940_v58, %v11409_v25  ;;  %v3582_v32 = vor.u32 %v3580_v43, %v3578_v12 }
 0x123   : > { %v9372_v15 = vpop.f32.mrf.mxu0  ;;  %9707 = vmatmul.mubr.bf16.gmra.mxu0 %v3145_v34  ;;  %v3566_v57 = vor.u32 %v3564_v44, %v3562_v47  ;;  %v3563_v59 = vsel %vm322_vm0, %v3558_v46, %v3562_v47  ;;  %v3584_v34 = vshll.u32 %v11404_v3, 16  ;;  %v10559_v20 = vld [vmem:[%s10873_s22 + $0x68] sm:$0xff]  }
 0x124   : > { %v810_v49 = vadd.f32 %v9372_v15, %v11305_v26  ;;  %9747 = vmatpush3.bf16.msra.mxu0 %v10539_v60  ;;  %v9400_v37 = vpop.f32.mrf.mxu1  ;;  %9735 = vmatmul.mubr.bf16.gmra.mxu1 %v10542_v2  ;;  %v11386_v26 = vld [vmem:[%s10890_s29 + $0x60] sm:$0xff]   ;;  %v11422_v2 = vld [vmem:[%s10890_s29 + $0x78] ss:$0 sps:$4 sm:$0x11]   ;;  %v3762_v15 = vrot.slane %v11394_v21, 1  ;;  %v4019_v46 = vshrl.u32 %v11427_v8, 16 }
 0x125   : > { %9775 = vmatpush3.bf16.msra.mxu1 %v10540_v0  ;;  %v790_v4 = vpop.f32.mrf.mxu0  ;;  %9748 = vmatprep.subr.bf16.mxu0 %v10543_v13  ;;  %v3568_v56 = vshll.u32 %v11386_v26, 16  ;;  %v3572_v30 = vshrl.u32 %v11386_v26, 16  ;;  %v3760_v55 = vrot.slane %v11386_v26, 1 }
 0x126   : > { %v11383_v35 = vadd.f32 %v9400_v37, %v810_v49  ;;  %v988_v36 = vpop.f32.mrf.mxu1  ;;  %9776 = vmatprep.subr.bf16.mxu1 %v10544_v45  ;;  %9754 = vmatprep.mubr.bf16.mxu0 %v3555_v24  ;;  %v3586_v49 = vrot.slane %v3584_v34, 1  ;;  %v3588_v37 = vshrl.u32 %v11404_v3, 16  ;;  %v11438_v4 = vld [vmem:[%s10890_s29 + $0x68] sm:$0xff]  }
 0x127   : > { %v9373_v38 = vpop.f32.mrf.mxu0  ;;  %9782 = vmatprep.mubr.bf16.mxu1 %v3757_v28  ;;  %v3570_v48 = vrot.slane %v3568_v56, 1  ;;  %v3761_v27 = vsel %vm658_vm1, %v3758_v29, %v3760_v55  ;;  %v3763_v41 = vsel %vm658_vm1, %v3760_v55, %v3762_v15  ;;  %v10562_v56 = vld [vmem:[%s10873_s22 + $0x20] sm:$0xff]   ;;  %v4026_v29 = vshll.u32 %v11438_v4, 16 }
 0x128   : > { %9749 = vmatpush3.bf16.msra.mxu0 %v10543_v13  ;;  %v9401_v6 = vpop.f32.mrf.mxu1  ;;  %v3592_v38 = vshll.u32 %v11422_v2, 16  ;;  %v3587_v44 = vsel %vm322_vm0, %v3582_v32, %v3586_v49  ;;  %v11488_v32 = vld [vmem:[%s10890_s29 + $0x78] sm:$0xff]  }
 0x129   : > { %9777 = vmatpush3.bf16.msra.mxu1 %v10544_v45  ;;  %9750 = vmatprep.subr.bf16.mxu0 %v10545_v61  ;;  %v11411_v60 = vpop.f32.mrf.mxu0  ;;  %v3571_v7 = vsel %vm322_vm0, %v3566_v57, %v3570_v48  ;;  %v3574_v10 = vor.u32 %v3572_v30, %v3570_v48  ;;  %v10560_v45 = vld [vmem:[%s10873_s22 + $0x28] sm:$0xff]   ;;  %v3764_v6 = vrot.slane %v11404_v3, 1  ;;  %v3590_v30 = vor.u32 %v3588_v37, %v3586_v49  ;;  %v10565_v3 = vld [vmem:[%s10873_s22 + $0x58] sm:$0xff]  }
 0x12a   : > { %9778 = vmatprep.subr.bf16.mxu1 %v10546_v1  ;;  %v11417_v0 = vpop.f32.mrf.mxu1  ;;  %v3594_v48 = vrot.slane %v3592_v38, 1  ;;  %v3766_v57 = vrot.slane %v11422_v2, 1  ;;  %v10570_v49 = vld [vmem:[%s10873_s22 + $0x8] sm:$0xff]   ;;  %v4030_v38 = vshrl.u32 %v11438_v4, 16 }
 0x12b   : > { %v3765_v54 = vsel %vm658_vm1, %v3762_v15, %v3764_v6 }
 0x12c   : > { %9751 = vmatpush3.bf16.msra.mxu0 %v10545_v61  ;;  %v3767_v43 = vsel %vm658_vm1, %v3764_v6, %v3766_v57  ;;  %v10578_v57 = vld [vmem:[%s10873_s22 + $0xb0] sm:$0xff]  }
 0x12d   : > { %9779 = vmatpush3.bf16.msra.mxu1 %v10546_v1  ;;  %9752 = vmatprep.subr.bf16.mxu0 %v10547_v11  ;;  %v4021_v1 = vshll.u32 %v11427_v8, 16 }
 0x12e   : > { %9780 = vmatprep.subr.bf16.mxu1 %v10548_v39 }
 0x12f   : > { %v4023_v47 = vrot.slane %v4021_v1, 1 }
 0x130   : > { %9753 = vmatpush3.bf16.msra.mxu0 %v10547_v11  ;;  %v10561_v11 = vld [vmem:[%s10873_s22 + $0x60] sm:$0xff]  }
 0x131   : > { %9781 = vmatpush3.bf16.msra.mxu1 %v10548_v39  ;;  %9794 = vmatprep.subr.bf16.mxu0 %v10553_v50 }
 0x132   : > { %9822 = vmatprep.subr.bf16.mxu1 %v10554_v53 }
 0x133   : > { %v9420_v5 = vpop.f32.mrf.mxu0  ;;  %9755 = vmatmul.mubr.bf16.vlgmr.msra.gmra.mxu0 %v3563_v59 }
 0x134   : > { %v9448_v19 = vpop.f32.mrf.mxu1  ;;  %9783 = vmatmul.mubr.bf16.vlgmr.msra.gmra.mxu1 %v3759_v62  ;;  %9795 = vmatpush3.bf16.msra.mxu0 %v10553_v50 }
 0x135   : > { %9823 = vmatpush3.bf16.msra.mxu1 %v10554_v53  ;;  %v1212_v13 = vpop.f32.mrf.mxu0  ;;  %9796 = vmatprep.subr.bf16.mxu0 %v10555_v22  ;;  %v10567_v19 = vld [vmem:[%s10873_s22 + $0x50] sm:$0xff]  }
 0x136   : > { %v1255_v61 = vadd.f32 %v1212_v13, %v11340_v17  ;;  %v1385_v24 = vpop.f32.mrf.mxu1  ;;  %9824 = vmatprep.subr.bf16.mxu1 %v10556_v42  ;;  %9758 = vmatprep.mubr.bf16.mxu0 %v3571_v7  ;;  %v3579_v17 = vsel %vm322_vm0, %v3574_v10, %v3578_v12  ;;  %v3595_v7 = vsel %vm322_vm0, %v3590_v30, %v3594_v48  ;;  %v4046_v48 = vshrl.u32 %v11488_v32, 16 }
 0x137   : > { %v11435_v28 = vpop.f32.mrf.mxu0  ;;  %9786 = vmatprep.mubr.bf16.mxu1 %v3761_v27  ;;  %v10568_v27 = vld [vmem:[%s10873_s22 + $0x10] sm:$0xff]  }
 0x138   : > { %v11441_v36 = vadd.f32 %v1385_v24, %v1255_v61  ;;  %v11443_v26 = vpop.f32.mrf.mxu1  ;;  %9797 = vmatpush3.bf16.msra.mxu0 %v10555_v22  ;;  %v4024_v22 = vor.u32 %v4023_v47, %v4019_v46  ;;  %v10569_v61 = vld [vmem:[%s10873_s22 + $0x48] sm:$0xff]   ;;  %v10576_v46 = vld [vmem:[%s10873_s22 + $0xb8] sm:$0xff]  }
 0x139   : > { %9825 = vmatpush3.bf16.msra.mxu1 %v10556_v42  ;;  %v11448_v40 = vpop.f32.mrf.mxu0  ;;  %9798 = vmatprep.subr.bf16.mxu0 %v10559_v20  ;;  %v4028_v42 = vrot.slane %v4026_v29, 1  ;;  %v10577_v47 = vld [vmem:[%s10873_s22 + $0xf8] sm:$0xff]  }
 0x13a   : > { %v11452_v39 = vpop.f32.mrf.mxu1  ;;  %9826 = vmatprep.subr.bf16.mxu1 %v10560_v45 }
 0x13b   : > { %v9424_v21 = vpop.f32.mrf.mxu0  ;;  %9759 = vmatmul.mubr.bf16.gmra.mxu0 %v3579_v17  ;;  %v10571_v17 = vld [vmem:[%s10873_s22 + $0x40] sm:$0xff]  }
 0x13c   : > { %v1259_v50 = vadd.f32 %v9424_v21, %v11360_v63  ;;  %9799 = vmatpush3.bf16.msra.mxu0 %v10559_v20  ;;  %v9452_v53 = vpop.f32.mrf.mxu1  ;;  %9787 = vmatmul.mubr.bf16.gmra.mxu1 %v3763_v41  ;;  %v10566_v63 = vld [vmem:[%s10873_s22 + $0x18] sm:$0xff]   ;;  %v10572_v41 = vld [vmem:[%s10873_s22] sm:$0xff]  }
 0x13d   : > { %9827 = vmatpush3.bf16.msra.mxu1 %v10560_v45  ;;  %v11460_v55 = vpop.f32.mrf.mxu0  ;;  %9800 = vmatprep.subr.bf16.mxu0 %v10561_v11  ;;  %v11482_v45 = vld [vmem:[%s10890_s29 + $0x70] sm:$0xff]  }
 0x13e   : > { %v11464_v58 = vadd.f32 %v9452_v53, %v1259_v50  ;;  %v11466_v59 = vpop.f32.mrf.mxu1  ;;  %9828 = vmatprep.subr.bf16.mxu1 %v10562_v56  ;;  %9762 = vmatprep.mubr.bf16.mxu0 %v3587_v44  ;;  %v4034_v6 = vshll.u32 %v11482_v45, 16  ;;  %v11497_v44 = vld [vmem:[%s10890_s29 + $0x80] sm:$0xff]   ;;  %v11502_v53 = vld [vmem:[%s10890_s29 + $0x88] sm:$0xff]  }
 0x13f   : > { %v9425_v62 = vpop.f32.mrf.mxu0  ;;  %9790 = vmatprep.mubr.bf16.mxu1 %v3765_v54  ;;  %v4050_v54 = vshll.u32 %v11497_v44, 16 }
 0x140   : > { %v1260_v34 = vadd.f32 %v9425_v62, %v11370_v14  ;;  %9801 = vmatpush3.bf16.msra.mxu0 %v10561_v11  ;;  %v9453_v5 = vpop.f32.mrf.mxu1  ;;  %v4029_v14 = vsel %vm322_vm0, %v4024_v22, %v4028_v42  ;;  %v4038_v11 = vshrl.u32 %v11482_v45, 16  ;;  %v4036_v21 = vrot.slane %v4034_v6, 1  ;;  %v10579_v62 = vld [vmem:[%s10873_s22 + $0xf0] sm:$0xff]   ;;  %v4332_v6 = vld [vmem:[%s10890_s29 + $0x60] sm:$0xe] }
 0x141   : > { %9829 = vmatpush3.bf16.msra.mxu1 %v10562_v56  ;;  %v1230_v2 = vpop.f32.mrf.mxu0  ;;  %9802 = vmatprep.subr.bf16.mxu0 %v10565_v3  ;;  %v4032_v56 = vor.u32 %v4030_v38, %v4028_v42  ;;  %v11514_v22 = vld [vmem:[%s10890_s29 + $0x90] ss:$0 sps:$4 sm:$0x11]  }
 0x142   : > { %v11473_v10 = vadd.f32 %v9453_v5, %v1260_v34  ;;  %v1403_v12 = vpop.f32.mrf.mxu1  ;;  %9830 = vmatprep.subr.bf16.mxu1 %v10566_v63  ;;  %v4040_v29 = vor.u32 %v4038_v11, %v4036_v21  ;;  %v4054_v5 = vshrl.u32 %v11497_v44, 16  ;;  %v4066_v38 = vshll.u32 %v11514_v22, 16  ;;  %v10584_v11 = vld [vmem:[%s10873_s22 + $0xa0] sm:$0xff]  }
 0x143   : > { %v11476_v13 = vpop.f32.mrf.mxu0  ;;  %9763 = vmatmul.mubr.bf16.gmra.mxu0 %v3595_v7  ;;  %v4037_v30 = vsel %vm322_vm0, %v4032_v56, %v4036_v21  ;;  %v4058_v7 = vshll.u32 %v11502_v53, 16  ;;  %v4052_v12 = vrot.slane %v4050_v54, 1  ;;  %v10585_v56 = vld [vmem:[%s10873_s22 + $0xe0] sm:$0xff]   ;;  %v10586_v54 = vld [vmem:[%s10873_s22 + $0x98] sm:$0xff]  }
 0x144   : > { %9803 = vmatpush3.bf16.msra.mxu0 %v10565_v3  ;;  %v11479_v20 = vpop.f32.mrf.mxu1  ;;  %9791 = vmatmul.mubr.bf16.gmra.mxu1 %v3767_v43  ;;  %v10580_v43 = vld [vmem:[%s10873_s22 + $0xa8] sm:$0xff]  }
 0x145   : > { %9831 = vmatpush3.bf16.msra.mxu1 %v10566_v63  ;;  %v1242_v15 = vpop.f32.mrf.mxu0  ;;  %9804 = vmatprep.subr.bf16.mxu0 %v10567_v19 }
 0x146   : > { %v1415_v24 = vpop.f32.mrf.mxu1  ;;  %9832 = vmatprep.subr.bf16.mxu1 %v10568_v27  ;;  %9810 = vmatprep.mubr.bf16.mxu0 %v4029_v14  ;;  %v10581_v14 = vld [vmem:[%s10873_s22 + $0xe8] sm:$0xff]  }
 0x147   : > { %v9429_v37 = vpop.f32.mrf.mxu0  ;;  %9838 = vmatprep.mubr.bf16.mxu1 %v11427_v8  ;;  %v4042_v8 = vshll.u32 %v11488_v32, 16  ;;  %v4056_v24 = vor.u32 %v4054_v5, %v4052_v12 }
 0x148   : > { %9805 = vmatpush3.bf16.msra.mxu0 %v10567_v19  ;;  %v9457_v1 = vpop.f32.mrf.mxu1 }
 0x149   : > { %9833 = vmatpush3.bf16.msra.mxu1 %v10568_v27  ;;  %9806 = vmatprep.subr.bf16.mxu0 %v10569_v61  ;;  %v4044_v50 = vrot.slane %v4042_v8, 1  ;;  %v11507_v3 = vpop.f32.mrf.mxu0 }
 0x14a   : > { %9834 = vmatprep.subr.bf16.mxu1 %v10570_v49  ;;  %v11510_v63 = vpop.f32.mrf.mxu1 }
 0x14b   : > { %v4045_v34 = vsel %vm322_vm0, %v4040_v29, %v4044_v50  ;;  %v4048_v19 = vor.u32 %v4046_v48, %v4044_v50 }
 0x14c   : > { %9807 = vmatpush3.bf16.msra.mxu0 %v10569_v61 }
 0x14d   : > { %9835 = vmatpush3.bf16.msra.mxu1 %v10570_v49  ;;  %9808 = vmatprep.subr.bf16.mxu0 %v10571_v17  ;;  %v4060_v49 = vrot.slane %v4058_v7, 1  ;;  %v4053_v1 = vsel %vm322_vm0, %v4048_v19, %v4052_v12  ;;  %v10591_v12 = vld [vmem:[%s10873_s22 + $0xd0] sm:$0xff]  }
 0x14e   : > { %9836 = vmatprep.subr.bf16.mxu1 %v10572_v41 }
 0x150   : > { %9809 = vmatpush3.bf16.msra.mxu0 %v10571_v17  ;;  %v4062_v17 = vshrl.u32 %v11502_v53, 16 }
 0x151   : > { %9837 = vmatpush3.bf16.msra.mxu1 %v10572_v41  ;;  %9850 = vmatprep.subr.bf16.mxu0 %v10576_v46 }
 0x152   : > { %9878 = vmatprep.subr.bf16.mxu1 %v10577_v47  ;;  %v4064_v50 = vor.u32 %v4062_v17, %v4060_v49  ;;  %v10592_v17 = vld [vmem:[%s10873_s22 + $0x88] sm:$0xff]  }
 0x153   : > { %v9476_v42 = vpop.f32.mrf.mxu0  ;;  %9811 = vmatmul.mubr.bf16.vlgmr.msra.gmra.mxu0 %v4037_v30  ;;  %v4068_v30 = vrot.slane %v4066_v38, 1 }
 0x154   : > { %v9504_v2 = vpop.f32.mrf.mxu1  ;;  %9839 = vmatmul.mubr.bf16.vlgmr.msra.gmra.mxu1 %v11438_v4  ;;  %9851 = vmatpush3.bf16.msra.mxu0 %v10576_v46  ;;  %v4061_v46 = vsel %vm322_vm0, %v4056_v24, %v4060_v49 }
 0x155   : > { %9879 = vmatpush3.bf16.msra.mxu1 %v10577_v47  ;;  %v11521_v27 = vpop.f32.mrf.mxu0  ;;  %9852 = vmatprep.subr.bf16.mxu0 %v10578_v57  ;;  %v8288_v47 = vcombine.low %v4332_v6, %v11409_v25  ;;  %v4069_v7 = vsel %vm322_vm0, %v4064_v50, %v4068_v30  ;;  %v10593_v6 = vld [vmem:[%s10873_s22 + $0xc8] sm:$0xff]   ;;  %v10595_v30 = vld [vmem:[%s10873_s22 + $0xc0] sm:$0xff]  }
 0x156   : > { %v11524_v15 = vpop.f32.mrf.mxu1  ;;  %9880 = vmatprep.subr.bf16.mxu1 %v10579_v62  ;;  %9814 = vmatprep.mubr.bf16.mxu0 %v4045_v34  ;;  %v4353_v34 = vrot.slane %v11438_v4, 1  ;;  %v10597_v4 = vld [vmem:[%s10890_s29 + $0x6c] sm:$0xff]  }
 0x157   : > { %v11526_v61 = vpop.f32.mrf.mxu0  ;;  %9842 = vmatprep.mubr.bf16.mxu1 %v11482_v45  ;;  %v4352_v42 = vrot.slane %v8288_v47, 1  ;;  %v10594_v47 = vld [vmem:[%s10873_s22 + $0x80] sm:$0xff]  }
 0x158   : > { %v11529_v37 = vpop.f32.mrf.mxu1  ;;  %9853 = vmatpush3.bf16.msra.mxu0 %v10578_v57 }
 0x159   : > { %9881 = vmatpush3.bf16.msra.mxu1 %v10579_v62  ;;  %v11535_v41 = vpop.f32.mrf.mxu0  ;;  %9854 = vmatprep.subr.bf16.mxu0 %v10580_v43  ;;  %v10587_v62 = vld [vmem:[%s10873_s22 + $0xd8] sm:$0xff]   ;;  %v4354_v24 = vsel %vm658_vm1, %v4352_v42, %v4353_v34 }
 0x15a   : > { %v11538_v8 = vpop.f32.mrf.mxu1  ;;  %9882 = vmatprep.subr.bf16.mxu1 %v10581_v14  ;;  %v10598_v42 = vld [vmem:[%s10890_s29 + $0x74] sm:$0xff]  }
 0x15b   : > { %v11541_v21 = vpop.f32.mrf.mxu0  ;;  %9815 = vmatmul.mubr.bf16.gmra.mxu0 %v4053_v1 }
 0x15c   : > { %9855 = vmatpush3.bf16.msra.mxu0 %v10580_v43  ;;  %v11545_v29 = vpop.f32.mrf.mxu1  ;;  %9843 = vmatmul.mubr.bf16.gmra.mxu1 %v11488_v32  ;;  %v10590_v43 = vld [vmem:[%s10873_s22 + $0x90] sm:$0xff]  }
 0x15d   : > { %9883 = vmatpush3.bf16.msra.mxu1 %v10581_v14  ;;  %v11548_v48 = vpop.f32.mrf.mxu0  ;;  %9856 = vmatprep.subr.bf16.mxu0 %v10584_v11 }
 0x15e   : > { %v11551_v57 = vpop.f32.mrf.mxu1  ;;  %9884 = vmatprep.subr.bf16.mxu1 %v10585_v56  ;;  %9818 = vmatprep.mubr.bf16.mxu0 %v4061_v46 }
 0x15f   : > { %v11554_v25 = vpop.f32.mrf.mxu0  ;;  %9846 = vmatprep.mubr.bf16.mxu1 %v11497_v44 }
 0x160   : > { %9857 = vmatpush3.bf16.msra.mxu0 %v10584_v11  ;;  %v11558_v5 = vpop.f32.mrf.mxu1 }
 0x161   : > { %9885 = vmatpush3.bf16.msra.mxu1 %v10585_v56  ;;  %v1601_v2 = vpop.f32.mrf.mxu0  ;;  %9858 = vmatprep.subr.bf16.mxu0 %v10586_v54  ;;  %v598_v56 = vadd.f32 %v11284_v33, %v11279_v31  ;;  %v10599_v31 = vld [vmem:[%s10873_s22 + $0x138] sm:$0xff]  }
 0x162   : > { %v1855_v19 = vpop.f32.mrf.mxu1  ;;  %9886 = vmatprep.subr.bf16.mxu1 %v10587_v62  ;;  %v4701_v2 = vld [vmem:[%s10890_s29 + $0x6c] sm:$0xf] }
 0x163   : > { %v11563_v14 = vpop.f32.mrf.mxu0  ;;  %9819 = vmatmul.mubr.bf16.gmra.mxu0 %v4069_v7  ;;  %v804_v50 = vadd.f32 %v11346_v18, %v598_v56  ;;  %v10600_v7 = vld [vmem:[%s10873_s22 + $0x178] sm:$0xff]   ;;  %v4357_v18 = vrot.slane %v11488_v32, 1  ;;  %v1258_v32 = vadd.f32 %v11460_v55, %v11366_v9  ;;  %v627_v9 = vadd.f32 %v11324_v16, %v11321_v23  ;;  %v10603_v16 = vld [vmem:[%s10873_s22 + $0x128] sm:$0xff]  }
 0x164   : > { %9859 = vmatpush3.bf16.msra.mxu0 %v10586_v54  ;;  %v11567_v49 = vpop.f32.mrf.mxu1  ;;  %9847 = vmatmul.mubr.bf16.gmra.mxu1 %v11502_v53  ;;  %v1257_v54 = vadd.f32 %v11435_v28, %v11349_v51  ;;  %v4359_v23 = vrot.slane %v11497_v44, 1 }
 0x165   : > { %9887 = vmatpush3.bf16.msra.mxu1 %v10587_v62  ;;  %v1613_v1 = vpop.f32.mrf.mxu0  ;;  %9860 = vmatprep.subr.bf16.mxu0 %v10590_v43  ;;  %v4355_v62 = vrot.slane %v11482_v45, 1  ;;  %v1002_v33 = vadd.f32 %v11351_v52, %v804_v50  ;;  %v1626_v45 = vadd.f32 %v11521_v27, %v11441_v36  ;;  %v11592_v52 = vld [vmem:[%s10890_s29 + $0x70] sm:$0xf]  ;;  %v1262_v50 = vadd.f32 %v11476_v13, %v11383_v35 }
 0x166   : > { %v1867_v38 = vpop.f32.mrf.mxu1  ;;  %9888 = vmatprep.subr.bf16.mxu1 %v10591_v12  ;;  %9866 = vmatprep.mubr.bf16.mxu0 %v4354_v24  ;;  %v1430_v51 = vadd.f32 %v11443_v26, %v1257_v54  ;;  %v10601_v26 = vld [vmem:[%s10873_s22 + $0x130] sm:$0xff]   ;;  %v10607_v54 = vld [vmem:[%s10873_s22 + $0x120] sm:$0xff]  }
 0x167   : > { %v9485_v11 = vpop.f32.mrf.mxu0  ;;  %9894 = vmatprep.mubr.bf16.mxu1 %v10597_v4  ;;  %v1256_v28 = vadd.f32 %v11448_v40, %v1002_v33  ;;  %v10602_v36 = vld [vmem:[%s10873_s22 + $0x170] sm:$0xff]   ;;  %v4358_v27 = vsel %vm658_vm1, %v4355_v62, %v4357_v18  ;;  %v1880_v4 = vadd.f32 %v11524_v15, %v1626_v45  ;;  %v1431_v38 = vadd.f32 %v11466_v59, %v1258_v32  ;;  %v4954_v59 = vld [vmem:[%s10890_s29 + $0x6c] sm:$0xe] }
 0x168   : > { %9861 = vmatpush3.bf16.msra.mxu0 %v10590_v43  ;;  %v9513_v46 = vpop.f32.mrf.mxu1  ;;  %v4356_v43 = vsel %vm658_vm1, %v4353_v34, %v4355_v62  ;;  %v1628_v40 = vadd.f32 %v11526_v61, %v1430_v51  ;;  %v10605_v34 = vld [vmem:[%s10890_s29 + $0x7c] sm:$0xff]   ;;  %v11615_v61 = vcombine.low %v4701_v2, %v11592_v52  ;;  %v4361_v15 = vrot.slane %v11502_v53, 1  ;;  %v11639_v62 = vld [vmem:[%s10890_s29 + $0x74] sm:$0xff]  }
 0x169   : > { %9889 = vmatpush3.bf16.msra.mxu1 %v10591_v12  ;;  %9862 = vmatprep.subr.bf16.mxu0 %v10592_v17  ;;  %v11596_v19 = vpop.f32.mrf.mxu0  ;;  %v1429_v24 = vadd.f32 %v11452_v39, %v1256_v28  ;;  %v10604_v39 = vld [vmem:[%s10873_s22 + $0x168] sm:$0xff]   ;;  %v10614_v53 = vld [vmem:[%s10873_s22 + $0x150] sm:$0xff]  }
 0x16a   : > { %9890 = vmatprep.subr.bf16.mxu1 %v10593_v6  ;;  %v11600_v12 = vpop.f32.mrf.mxu1  ;;  %v1882_v44 = vadd.f32 %v11529_v37, %v1628_v40  ;;  %v4766_v37 = vshll.u32 %v11615_v61, 16  ;;  %v4362_v2 = vsel %vm658_vm1, %v4359_v23, %v4361_v15  ;;  %v4771_v40 = vshll.u32 %v11639_v62, 16 }
 0x16b   : > { %v1627_v56 = vadd.f32 %v11535_v41, %v1429_v24  ;;  %v1629_v41 = vadd.f32 %v11548_v48, %v1431_v38  ;;  %v8374_v48 = vcombine.low %v4954_v59, %v11592_v52  ;;  %v1435_v52 = vadd.f32 %v11479_v20, %v1262_v50 }
 0x16c   : > { %9863 = vmatpush3.bf16.msra.mxu0 %v10592_v17  ;;  %v809_v17 = vadd.f32 %v11411_v60, %v627_v9  ;;  %v10606_v60 = vld [vmem:[%s10890_s29 + $0x84] sm:$0xff]   ;;  %v11688_v38 = vrot.slane %v4771_v40, 1 }
 0x16d   : > { %9891 = vmatpush3.bf16.msra.mxu1 %v10593_v6  ;;  %9864 = vmatprep.subr.bf16.mxu0 %v10594_v47  ;;  %v11624_v6 = vld [vmem:[%s11606_s5] ss:$0 sm:$0xff]  ;;  %v1881_v51 = vadd.f32 %v11538_v8, %v1627_v56  ;;  %v1631_v8 = vadd.f32 %v11554_v25, %v11473_v10  ;;  %v4363_v10 = vrot.slane %v11514_v22, 1  ;;  %v10609_v25 = vld [vmem:[%s10873_s22 + $0x118] sm:$0xff]   ;;  %v10613_v22 = vld [vmem:[%s10873_s22 + $0x110] sm:$0xff]  }
 0x16e   : > { %9892 = vmatprep.subr.bf16.mxu1 %v10595_v30  ;;  %v1007_v35 = vadd.f32 %v11417_v0, %v809_v17  ;;  %v10611_v0 = vld [vmem:[%s10890_s29 + $0x8c] sm:$0xff]   ;;  %v10617_v40 = vld [vmem:[%s10873_s22 + $0x100] sm:$0xff]  }
 0x170   : > { %9865 = vmatpush3.bf16.msra.mxu0 %v10594_v47 }
 0x171   : > { %9893 = vmatpush3.bf16.msra.mxu1 %v10595_v30  ;;  %9906 = vmatprep.subr.bf16.mxu0 %v10599_v31 }
 0x172   : > { %9934 = vmatprep.subr.bf16.mxu1 %v10600_v7 }
 0x173   : > { %v9532_v55 = vpop.f32.mrf.mxu0  ;;  %9867 = vmatmul.mubr.bf16.vlgmr.msra.gmra.mxu0 %v4356_v43  ;;  %v4764_v43 = vshrl.u32 %v11615_v61, 16  ;;  %v1633_v61 = vadd.f32 %v11563_v14, %v1435_v52 }
 0x174   : > { %v9560_v1 = vpop.f32.mrf.mxu1  ;;  %9895 = vmatmul.mubr.bf16.vlgmr.msra.gmra.mxu1 %v10598_v42  ;;  %9907 = vmatpush3.bf16.msra.mxu0 %v10599_v31  ;;  %v4360_v42 = vsel %vm658_vm1, %v4357_v18, %v4359_v23  ;;  %v4974_v23 = vrot.slane %v8374_v48, 1 }
 0x175   : > { %9935 = vmatpush3.bf16.msra.mxu1 %v10600_v7  ;;  %v2010_v11 = vpop.f32.mrf.mxu0  ;;  %9908 = vmatprep.subr.bf16.mxu0 %v10601_v26  ;;  %v10608_v7 = vld [vmem:[%s10873_s22 + $0x160] sm:$0xff]   ;;  %v10612_v1 = vld [vmem:[%s10890_s29 + $0x94] sm:$0xff]   ;;  %v1887_v59 = vadd.f32 %v11567_v49, %v1633_v61 }
 0x176   : > { %v2053_v46 = vadd.f32 %v2010_v11, %v1880_v4  ;;  %v11630_v47 = vpop.f32.mrf.mxu1  ;;  %9936 = vmatprep.subr.bf16.mxu1 %v10602_v36  ;;  %9870 = vmatprep.mubr.bf16.mxu0 %v4358_v27  ;;  %v1261_v27 = vadd.f32 %v11507_v3, %v1007_v35  ;;  %v4975_v3 = vrot.slane %v11639_v62, 1  ;;  %v1885_v11 = vadd.f32 %v11558_v5, %v1631_v8  ;;  %v10623_v61 = vld [vmem:[%s10873_s22 + $0x1b8] sm:$0xff]  }
 0x177   : > { %v9533_v30 = vpop.f32.mrf.mxu0  ;;  %9898 = vmatprep.mubr.bf16.mxu1 %v10605_v34  ;;  %v1630_v5 = vadd.f32 %v11541_v21, %v11464_v58  ;;  %v4775_v21 = vshrl.u32 %v11639_v62, 16 }
 0x178   : > { %v2055_v31 = vadd.f32 %v9533_v30, %v1882_v44  ;;  %v11643_v33 = vpop.f32.mrf.mxu1  ;;  %9909 = vmatpush3.bf16.msra.mxu0 %v10601_v26  ;;  %v11654_v28 = vadd.f32 %v11624_v6, %v2053_v46  ;;  %v4768_v26 = vrot.slane %v4766_v37, 1  ;;  %v4364_v44 = vsel %vm658_vm1, %v4361_v15, %v4363_v10  ;;  %v11705_v37 = vld [vmem:[%s10890_s29 + $0x7c] sm:$0xff]   ;;  %v10615_v15 = vld [vmem:[%s10873_s22 + $0x108] sm:$0xff]  }
 0x179   : > { %9937 = vmatpush3.bf16.msra.mxu1 %v10602_v36  ;;  %v2013_v13 = vpop.f32.mrf.mxu0  ;;  %9910 = vmatprep.subr.bf16.mxu0 %v10603_v16  ;;  %v1883_v36 = vadd.f32 %v11551_v57, %v1629_v41  ;;  %v10610_v57 = vld [vmem:[%s10873_s22 + $0x158] sm:$0xff]   ;;  %v1434_v46 = vadd.f32 %v11510_v63, %v1261_v27  ;;  %v4976_v49 = vsel %vm658_vm1, %v4974_v23, %v4975_v3  ;;  %v11739_v10 = vld [vmem:[%s10890_s29 + $0x8c] sm:$0xff]  }
 0x17a   : > { %v11657_v45 = vadd.f32 %v11624_v6, %v2055_v31  ;;  %v11659_v18 = vpop.f32.mrf.mxu1  ;;  %9938 = vmatprep.subr.bf16.mxu1 %v10604_v39  ;;  %v2054_v55 = vadd.f32 %v2013_v13, %v1881_v51  ;;  %v4769_v17 = vor.u32 %v4768_v26, %v4764_v43  ;;  %v10616_v51 = vld [vmem:[%s10873_s22 + $0x148] sm:$0xff]  }
 0x17b   : > { %v11670_v32 = vpop.f32.mrf.mxu0  ;;  %9871 = vmatmul.mubr.bf16.gmra.mxu0 %v4360_v42  ;;  %v1632_v41 = vadd.f32 %v11596_v19, %v1434_v46 }
 0x17c   : > { %v2075_v9 = vmax.f32 %v11654_v28, %v11657_v45  ;;  %9911 = vmatpush3.bf16.msra.mxu0 %v10603_v16  ;;  %9899 = vmatmul.mubr.bf16.gmra.mxu1 %v10606_v60  ;;  %v11676_v20 = vpop.f32.mrf.mxu1  ;;  %v2068_v14 = vadd.f32 %v11624_v6, %v2054_v55  ;;  %v4774_v58 = vsel %vm322_vm0, %v4769_v17, %v11688_v38  ;;  %v4779_v28 = vshll.u32 %v11705_v37, 16  ;;  %v11731_v45 = vld [vmem:[%s10890_s29 + $0x84] sm:$0xff]   ;;  %v11752_v17 = vld [vmem:[%s10890_s29 + $0x94] sm:$0xff]  }
 0x17d   : > { %9939 = vmatpush3.bf16.msra.mxu1 %v10604_v39  ;;  %v2025_v34 = vpop.f32.mrf.mxu0  ;;  %9912 = vmatprep.subr.bf16.mxu0 %v10607_v54  ;;  %v4787_v55 = vshll.u32 %v11731_v45, 16 }
 0x17e   : > { %v2056_v24 = vadd.f32 %v2025_v34, %v1883_v36  ;;  %9940 = vmatprep.subr.bf16.mxu1 %v10608_v7  ;;  %v11684_v4 = vpop.f32.mrf.mxu1  ;;  %9874 = vmatprep.mubr.bf16.mxu0 %v4362_v2  ;;  %v4777_v34 = vor.u32 %v4775_v21, %v11688_v38  ;;  %v10625_v38 = vld [vmem:[%s10873_s22 + $0x1b0] sm:$0xff]  }
 0x17f   : > { %v9537_v16 = vpop.f32.mrf.mxu0  ;;  %9902 = vmatprep.mubr.bf16.mxu1 %v10611_v0 }
 0x180   : > { %v2070_v39 = vadd.f32 %v11624_v6, %v2056_v24  ;;  %9913 = vmatpush3.bf16.msra.mxu0 %v10607_v54  ;;  %v11697_v56 = vpop.f32.mrf.mxu1  ;;  %v2058_v30 = vadd.f32 %v9537_v16, %v1885_v11  ;;  %v10624_v24 = vld [vmem:[%s10873_s22 + $0x1f8] sm:$0xff]   ;;  %v4789_v16 = vrot.slane %v4787_v55, 1  ;;  %v10632_v55 = vld [vmem:[%s10873_s22 + $0x1e0] sm:$0xff]  }
 0x181   : > { %9941 = vmatpush3.bf16.msra.mxu1 %v10608_v7  ;;  %v2028_v60 = vpop.f32.mrf.mxu0  ;;  %9914 = vmatprep.subr.bf16.mxu0 %v10609_v25  ;;  %v1884_v7 = vadd.f32 %v11545_v29, %v1630_v5  ;;  %v1886_v29 = vadd.f32 %v11600_v12, %v1632_v41  ;;  %v4977_v12 = vrot.slane %v11705_v37, 1  ;;  %v10626_v5 = vld [vmem:[%s10873_s22 + $0x1f0] sm:$0xff]   ;;  %v4981_v41 = vrot.slane %v11739_v10, 1 }
 0x182   : > { %v2076_v50 = vmax.f32 %v2068_v14, %v2070_v39  ;;  %9942 = vmatprep.subr.bf16.mxu1 %v10610_v57  ;;  %v2335_v54 = vpop.f32.mrf.mxu1  ;;  %v2072_v2 = vadd.f32 %v11624_v6, %v2058_v30  ;;  %v5323_v14 = vld [vmem:[%s10890_s29 + $0x78] sm:$0xf]  ;;  %v11757_v39 = vld [vmem:[%s10890_s29 + $0x7c] sm:$0xf]  ;;  %v4799_v30 = vshrl.u32 %v11739_v10, 16 }
 0x183   : > { %v9540_v63 = vpop.f32.mrf.mxu0  ;;  %9875 = vmatmul.mubr.bf16.gmra.mxu0 %v4364_v44  ;;  %v2057_v43 = vadd.f32 %v11670_v32, %v1884_v7  ;;  %v4783_v32 = vshrl.u32 %v11705_v37, 16  ;;  %v4978_v60 = vsel %vm658_vm1, %v4975_v3, %v4977_v12  ;;  %v4803_v54 = vshll.u32 %v11752_v17, 16 }
 0x184   : > { %v8742_v31 = vpack.c.bf16 %v2076_v50, %v2075_v9  ;;  %v2060_v42 = vadd.f32 %v9540_v63, %v1887_v59  ;;  %9915 = vmatpush3.bf16.msra.mxu0 %v10609_v25  ;;  %9903 = vmatmul.mubr.bf16.gmra.mxu1 %v10612_v1  ;;  %v11722_v35 = vpop.f32.mrf.mxu1  ;;  %v10618_v9 = vld [vmem:[%s10873_s22 + $0x140] sm:$0xff]   ;;  %v4791_v1 = vshrl.u32 %v11731_v45, 16  ;;  %v11774_v3 = vcombine.low %v5323_v14, %v11757_v39 }
 0x185   : > { %9943 = vmatpush3.bf16.msra.mxu1 %v10610_v57  ;;  %v2040_v13 = vpop.f32.mrf.mxu0  ;;  %9916 = vmatprep.subr.bf16.mxu0 %v10613_v22  ;;  %v2071_v25 = vadd.f32 %v11624_v6, %v2057_v43  ;;  %v4781_v57 = vrot.slane %v4779_v28, 1  ;;  %v4805_v7 = vrot.slane %v4803_v54, 1  ;;  %v11784_v28 = vld [vmem:[%s10890_s29 + $0x80] sm:$0xff]  }
 0x186   : > { %8743 = vst [vmem:[%s11712_s12] sm:$0xff] %v8742_v31   ;;  %v2074_v48 = vadd.f32 %v11624_v6, %v2060_v42  ;;  %9944 = vmatprep.subr.bf16.mxu1 %v10614_v53  ;;  %v2347_v19 = vpop.f32.mrf.mxu1  ;;  %9922 = vmatprep.mubr.bf16.mxu0 %v4774_v58  ;;  %v10630_v13 = vld [vmem:[%s10873_s22 + $0x1e8] sm:$0xff]  }
 0x187   : > { %v9541_v0 = vpop.f32.mrf.mxu0  ;;  %9950 = vmatprep.mubr.bf16.mxu1 %v4976_v49  ;;  %v4785_v11 = vor.u32 %v4783_v32, %v4781_v57  ;;  %v4782_v46 = vsel %vm322_vm0, %v4777_v34, %v4781_v57  ;;  %v10629_v49 = vld [vmem:[%s10873_s22 + $0x1a8] sm:$0xff]   ;;  %v5393_v34 = vshll.u32 %v11784_v28, 16 }
 0x188   : > { %v2078_v52 = vmax.f32 %v2072_v2, %v2074_v48  ;;  %9917 = vmatpush3.bf16.msra.mxu0 %v10613_v22  ;;  %v9569_v8 = vpop.f32.mrf.mxu1  ;;  %v4795_v22 = vshll.u32 %v11739_v10, 16  ;;  %v4807_v2 = vshrl.u32 %v11752_v17, 16  ;;  %v5386_v10 = vshrl.u32 %v11774_v3, 16 }
 0x189   : > { %9945 = vmatpush3.bf16.msra.mxu1 %v10614_v53  ;;  %v2042_v26 = vpop.f32.mrf.mxu0  ;;  %9918 = vmatprep.subr.bf16.mxu0 %v10615_v15  ;;  %v11770_v53 = vld [vmem:[%s10890_s29 + $0x9c] ss:$0 sps:$4 sm:$0x11]   ;;  %v4790_v62 = vsel %vm322_vm0, %v4785_v11, %v4789_v16 }
 0x18a   : > { %v2059_v36 = vadd.f32 %v2042_v26, %v1886_v29  ;;  %9946 = vmatprep.subr.bf16.mxu1 %v10616_v51  ;;  %v11765_v59 = vpop.f32.mrf.mxu1  ;;  %v4797_v50 = vrot.slane %v4795_v22, 1  ;;  %v4811_v48 = vshll.u32 %v11770_v53, 16  ;;  %v4985_v22 = vrot.slane %v11770_v53, 1 }
 0x18c   : > { %v2073_v27 = vadd.f32 %v11624_v6, %v2059_v36  ;;  %9919 = vmatpush3.bf16.msra.mxu0 %v10615_v15  ;;  %v4979_v6 = vrot.slane %v11731_v45, 1  ;;  %v4793_v15 = vor.u32 %v4791_v1, %v4789_v16  ;;  %v5388_v45 = vshll.u32 %v11774_v3, 16  ;;  %v10636_v16 = vld [vmem:[%s10873_s22 + $0x1d8] sm:$0xff]   ;;  %v10639_v3 = vld [vmem:[%s10873_s22 + $0x188] sm:$0xff]  }
 0x18d   : > { %9947 = vmatpush3.bf16.msra.mxu1 %v10616_v51  ;;  %9920 = vmatprep.subr.bf16.mxu0 %v10617_v40  ;;  %v4801_v51 = vor.u32 %v4799_v30, %v4797_v50  ;;  %v10637_v30 = vld [vmem:[%s10873_s22 + $0x190] sm:$0xff]  }
 0x18e   : > { %v2077_v23 = vmax.f32 %v2071_v25, %v2073_v27  ;;  %9948 = vmatprep.subr.bf16.mxu1 %v10618_v9  ;;  %v4980_v58 = vsel %vm658_vm1, %v4977_v12, %v4979_v6  ;;  %v4798_v43 = vsel %vm322_vm0, %v4793_v15, %v4797_v50  ;;  %v4982_v26 = vsel %vm658_vm1, %v4979_v6, %v4981_v41 }
 0x18f   : > { %v4806_v32 = vsel %vm322_vm0, %v4801_v51, %v4805_v7  ;;  %v4809_v25 = vor.u32 %v4807_v2, %v4805_v7  ;;  %v5390_v27 = vrot.slane %v5388_v45, 1  ;;  %v10641_v2 = vld [vmem:[%s10873_s22 + $0x180] sm:$0xff]  }
 0x190   : > { %v8747_v44 = vpack.c.bf16 %v2078_v52, %v2077_v23  ;;  %9921 = vmatpush3.bf16.msra.mxu0 %v10617_v40  ;;  %v4983_v52 = vrot.slane %v11752_v17, 1  ;;  %v10631_v40 = vld [vmem:[%s10873_s22 + $0x1a0] sm:$0xff]   ;;  %v10635_v23 = vld [vmem:[%s10873_s22 + $0x198] sm:$0xff]  }
 0x191   : > { %9949 = vmatpush3.bf16.msra.mxu1 %v10618_v9  ;;  %9962 = vmatprep.subr.bf16.mxu0 %v10623_v61 }
 0x192   : > { %8779 = vst [vmem:[%s11712_s12 + $0x8] sm:$0xff] %v8747_v44   ;;  %9990 = vmatprep.subr.bf16.mxu1 %v10624_v24  ;;  %v4986_v50 = vsel %vm658_vm1, %v4983_v52, %v4985_v22 }
 0x193   : > { %v9588_v37 = vpop.f32.mrf.mxu0  ;;  %9923 = vmatmul.mubr.bf16.vlgmr.msra.gmra.mxu0 %v4782_v46 }
 0x194   : > { %v9616_v63 = vpop.f32.mrf.mxu1  ;;  %9951 = vmatmul.mubr.bf16.vlgmr.msra.gmra.mxu1 %v4978_v60  ;;  %9963 = vmatpush3.bf16.msra.mxu0 %v10623_v61  ;;  %v5395_v60 = vrot.slane %v5393_v34, 1  ;;  %v10643_v37 = vld [vmem:[%s10890_s29 + $0x78] sm:$0xff]   ;;  %v10652_v34 = vld [vmem:[%s10890_s29 + $0x88] sm:$0xff]  }
 0x195   : > { %9991 = vmatpush3.bf16.msra.mxu1 %v10624_v24  ;;  %v2448_v21 = vpop.f32.mrf.mxu0  ;;  %9964 = vmatprep.subr.bf16.mxu0 %v10625_v38  ;;  %v4984_v24 = vsel %vm658_vm1, %v4981_v41, %v4983_v52  ;;  %v5397_v41 = vshrl.u32 %v11784_v28, 16 }
 0x196   : > { %v2449_v31 = vadd.f32 %v2448_v21, %v11630_v47  ;;  %v2612_v42 = vpop.f32.mrf.mxu1  ;;  %9992 = vmatprep.subr.bf16.mxu1 %v10626_v5  ;;  %9926 = vmatprep.mubr.bf16.mxu0 %v4790_v62 }
 0x197   : > { %v9589_v19 = vpop.f32.mrf.mxu0  ;;  %9954 = vmatprep.mubr.bf16.mxu1 %v4980_v58  ;;  %v10640_v58 = vld [vmem:[%s10873_s22 + $0x1c8] sm:$0xff]   ;;  %v5399_v52 = vor.u32 %v5397_v41, %v5395_v60 }
 0x198   : > { %v11787_v0 = vadd.f32 %v2612_v42, %v2449_v31  ;;  %v2459_v47 = vadd.f32 %v9589_v19, %v11643_v33  ;;  %v9617_v29 = vpop.f32.mrf.mxu1  ;;  %9965 = vmatpush3.bf16.msra.mxu0 %v10625_v38  ;;  %v4813_v33 = vrot.slane %v4811_v48, 1  ;;  %v11828_v31 = vld [vmem:[%s10890_s29 + $0x88] sm:$0xff]   ;;  %v11831_v42 = vld [vmem:[%s10890_s29 + $0x90] sm:$0xff]   ;;  %v10642_v19 = vld [vmem:[%s10873_s22 + $0x1c0] sm:$0xff]  }
 0x199   : > { %9993 = vmatpush3.bf16.msra.mxu1 %v10626_v5  ;;  %v11792_v8 = vpop.f32.mrf.mxu0  ;;  %9966 = vmatprep.subr.bf16.mxu0 %v10629_v49  ;;  %v5401_v51 = vshll.u32 %v11828_v31, 16  ;;  %v5405_v45 = vshrl.u32 %v11828_v31, 16 }
 0x19a   : > { %v11796_v36 = vadd.f32 %v9617_v29, %v2459_v47  ;;  %v11798_v9 = vpop.f32.mrf.mxu1  ;;  %9994 = vmatprep.subr.bf16.mxu1 %v10630_v13  ;;  %v4814_v11 = vsel %vm322_vm0, %v4809_v25, %v4813_v33  ;;  %v5409_v47 = vshll.u32 %v11831_v42, 16  ;;  %v11841_v29 = vld [vmem:[%s10890_s29 + $0x98] sm:$0xff]   ;;  %v10650_v25 = vld [vmem:[%s10873_s22 + $0x230] sm:$0xff]  }
 0x19b   : > { %v9592_v12 = vpop.f32.mrf.mxu0  ;;  %9927 = vmatmul.mubr.bf16.gmra.mxu0 %v4798_v43  ;;  %v10648_v43 = vld [vmem:[%s10873_s22 + $0x238] sm:$0xff]  }
 0x19c   : > { %v2471_v57 = vadd.f32 %v9592_v12, %v11676_v20  ;;  %9967 = vmatpush3.bf16.msra.mxu0 %v10629_v49  ;;  %v9620_v61 = vpop.f32.mrf.mxu1  ;;  %9955 = vmatmul.mubr.bf16.gmra.mxu1 %v4982_v26  ;;  %v10646_v26 = vld [vmem:[%s10890_s29 + $0x80] sm:$0xff]   ;;  %v5411_v33 = vrot.slane %v5409_v47, 1  ;;  %v5417_v12 = vshll.u32 %v11841_v29, 16 }
 0x19d   : > { %9995 = vmatpush3.bf16.msra.mxu1 %v10630_v13  ;;  %v2463_v1 = vpop.f32.mrf.mxu0  ;;  %9968 = vmatprep.subr.bf16.mxu0 %v10631_v40 }
 0x19e   : > { %v2464_v6 = vadd.f32 %v2463_v1, %v11684_v4  ;;  %v11810_v17 = vadd.f32 %v9620_v61, %v2471_v57  ;;  %v2627_v38 = vpop.f32.mrf.mxu1  ;;  %9996 = vmatprep.subr.bf16.mxu1 %v10632_v55  ;;  %9930 = vmatprep.mubr.bf16.mxu0 %v4806_v32  ;;  %v5391_v4 = vor.u32 %v5390_v27, %v5386_v10  ;;  %v5413_v10 = vshrl.u32 %v11831_v42, 16  ;;  %v11849_v32 = vld [vmem:[%s10890_s29 + $0xa0] sm:$0xff]   ;;  %v10651_v27 = vld [vmem:[%s10873_s22 + $0x70] sm:$0xff]  }
 0x19f   : > { %v9593_v20 = vpop.f32.mrf.mxu0  ;;  %9958 = vmatprep.mubr.bf16.mxu1 %v4984_v24  ;;  %v5781_v61 = vld [vmem:[%s10890_s29 + $0x90] sm:$0xf]  ;;  %v5419_v22 = vrot.slane %v5417_v12, 1 }
 0x1a0   : > { %v2474_v14 = vadd.f32 %v9593_v20, %v11697_v56  ;;  %v11814_v44 = vadd.f32 %v2627_v38, %v2464_v6  ;;  %9969 = vmatpush3.bf16.msra.mxu0 %v10631_v40  ;;  %v9621_v46 = vpop.f32.mrf.mxu1  ;;  %v10638_v56 = vld [vmem:[%s10873_s22 + $0x1d0] sm:$0xff]   ;;  %v5396_v21 = vsel %vm322_vm0, %v5391_v4, %v5395_v60  ;;  %v5403_v40 = vrot.slane %v5401_v51, 1  ;;  %v11866_v20 = vld [vmem:[%s10890_s29 + $0xa8] ss:$0 sps:$4 sm:$0x11]   ;;  %v10659_v51 = vld [vmem:[%s10873_s22 + $0x60] sm:$0xff]  }
 0x1a1   : > { %9997 = vmatpush3.bf16.msra.mxu1 %v10632_v55  ;;  %v2466_v5 = vpop.f32.mrf.mxu0  ;;  %9970 = vmatprep.subr.bf16.mxu0 %v10635_v23  ;;  %v10649_v55 = vld [vmem:[%s10873_s22 + $0x78] sm:$0xff]   ;;  %v5421_v6 = vshrl.u32 %v11841_v29, 16  ;;  %v5425_v38 = vshll.u32 %v11849_v32, 16  ;;  %v10655_v4 = vld [vmem:[%s10873_s22 + $0x68] sm:$0xff]  }
 0x1a2   : > { %v11818_v54 = vadd.f32 %v9621_v46, %v2474_v14  ;;  %v2630_v53 = vpop.f32.mrf.mxu1  ;;  %9998 = vmatprep.subr.bf16.mxu1 %v10636_v16  ;;  %v5407_v57 = vor.u32 %v5405_v45, %v5403_v40  ;;  %v5404_v1 = vsel %vm322_vm0, %v5399_v52, %v5403_v40  ;;  %v10654_v14 = vld [vmem:[%s10873_s22 + $0x228] sm:$0xff]   ;;  %v10660_v45 = vld [vmem:[%s10890_s29 + $0x98] sm:$0xff]  }
 0x1a3   : > { %v9596_v62 = vpop.f32.mrf.mxu0  ;;  %9931 = vmatmul.mubr.bf16.gmra.mxu0 %v4814_v11  ;;  %v5415_v53 = vor.u32 %v5413_v10, %v5411_v33 }
 0x1a4   : > { %v2486_v63 = vadd.f32 %v9596_v62, %v11722_v35  ;;  %9971 = vmatpush3.bf16.msra.mxu0 %v10635_v23  ;;  %v9624_v15 = vpop.f32.mrf.mxu1  ;;  %9959 = vmatmul.mubr.bf16.gmra.mxu1 %v4986_v50  ;;  %v11859_v23 = vld [vmem:[%s10890_s29 + $0x94] sm:$0xf]  ;;  %v5412_v60 = vsel %vm322_vm0, %v5407_v57, %v5411_v33  ;;  %v5427_v62 = vrot.slane %v5425_v38, 1 }
 0x1a5   : > { %9999 = vmatpush3.bf16.msra.mxu1 %v10636_v16  ;;  %v2478_v49 = vpop.f32.mrf.mxu0  ;;  %9972 = vmatprep.subr.bf16.mxu0 %v10637_v30  ;;  %v11872_v5 = vcombine.low %v5781_v61, %v11859_v23 }
 0x1a6   : > { %v11833_v13 = vadd.f32 %v9624_v15, %v2486_v63  ;;  %v2642_v35 = vpop.f32.mrf.mxu1  ;;  %10000 = vmatprep.subr.bf16.mxu1 %v10638_v56  ;;  %9978 = vmatprep.mubr.bf16.mxu0 %v10643_v37  ;;  %v5576_v63 = vld [vmem:[%s10890_s29 + $0x78] sm:$0xe] }
 0x1a7   : > { %v9597_v7 = vpop.f32.mrf.mxu0  ;;  %10006 = vmatprep.mubr.bf16.mxu1 %v5396_v21  ;;  %v11885_v49 = vld [vmem:[%s10890_s29 + $0x98] sm:$0xff]   ;;  %v5862_v41 = vshll.u32 %v11872_v5, 16  ;;  %v5860_v40 = vshrl.u32 %v11872_v5, 16 }
 0x1a8   : > { %9973 = vmatpush3.bf16.msra.mxu0 %v10637_v30  ;;  %v9625_v48 = vpop.f32.mrf.mxu1  ;;  %v10653_v30 = vld [vmem:[%s10890_s29 + $0x90] sm:$0xff]   ;;  %v5420_v7 = vsel %vm322_vm0, %v5415_v53, %v5419_v22 }
 0x1a9   : > { %10001 = vmatpush3.bf16.msra.mxu1 %v10638_v56  ;;  %9974 = vmatprep.subr.bf16.mxu0 %v10639_v3  ;;  %v11855_v24 = vpop.f32.mrf.mxu0  ;;  %v5429_v48 = vshrl.u32 %v11849_v32, 16  ;;  %v5864_v12 = vrot.slane %v5862_v41, 1 }
 0x1aa   : > { %10002 = vmatprep.subr.bf16.mxu1 %v10640_v58  ;;  %v11861_v16 = vpop.f32.mrf.mxu1 }
 0x1ac   : > { %9975 = vmatpush3.bf16.msra.mxu0 %v10639_v3  ;;  %v5433_v3 = vshll.u32 %v11866_v20, 16 }
 0x1ad   : > { %10003 = vmatpush3.bf16.msra.mxu1 %v10640_v58  ;;  %9976 = vmatprep.subr.bf16.mxu0 %v10641_v2 }
 0x1ae   : > { %10004 = vmatprep.subr.bf16.mxu1 %v10642_v19  ;;  %v5435_v52 = vrot.slane %v5433_v3, 1 }
 0x1b0   : > { %9977 = vmatpush3.bf16.msra.mxu0 %v10641_v2  ;;  %v10658_v2 = vld [vmem:[%s10873_s22 + $0x220] sm:$0xff]  }
 0x1b1   : > { %10005 = vmatpush3.bf16.msra.mxu1 %v10642_v19  ;;  %10018 = vmatprep.subr.bf16.mxu0 %v10648_v43 }
 0x1b2   : > { %10046 = vmatprep.subr.bf16.mxu1 %v10649_v55 }
 0x1b3   : > { %v9644_v11 = vpop.f32.mrf.mxu0  ;;  %9979 = vmatmul.mubr.bf16.vlgmr.msra.gmra.mxu0 %v10646_v26  ;;  %v8460_v26 = vcombine.low %v5576_v63, %v11757_v39  ;;  %v10668_v63 = vld [vmem:[%s10873_s22 + $0x208] sm:$0xff]  }
 0x1b4   : > { %v9672_v46 = vpop.f32.mrf.mxu1  ;;  %10007 = vmatmul.mubr.bf16.vlgmr.msra.gmra.mxu1 %v5404_v1  ;;  %10019 = vmatpush3.bf16.msra.mxu0 %v10648_v43  ;;  %v10662_v43 = vld [vmem:[%s10873_s22 + $0x218] sm:$0xff]   ;;  %v10661_v1 = vld [vmem:[%s10890_s29 + $0xa0] sm:$0xff]  }
 0x1b5   : > { %10047 = vmatpush3.bf16.msra.mxu1 %v10649_v55  ;;  %v2809_v50 = vpop.f32.mrf.mxu0  ;;  %10020 = vmatprep.subr.bf16.mxu0 %v10650_v25 }
 0x1b6   : > { %v2852_v56 = vadd.f32 %v2809_v50, %v11787_v0  ;;  %v3062_v37 = vpop.f32.mrf.mxu1  ;;  %10048 = vmatprep.subr.bf16.mxu1 %v10651_v27  ;;  %9982 = vmatprep.mubr.bf16.mxu0 %v10652_v34  ;;  %v5423_v0 = vor.u32 %v5421_v6, %v5419_v22  ;;  %v5431_v34 = vor.u32 %v5429_v48, %v5427_v62  ;;  %v5596_v22 = vrot.slane %v8460_v26, 1  ;;  %v10666_v50 = vld [vmem:[%s10873_s22 + $0x210] sm:$0xff]  }
 0x1b7   : > { %v11878_v15 = vpop.f32.mrf.mxu0  ;;  %10010 = vmatprep.mubr.bf16.mxu1 %v5412_v60  ;;  %v5597_v6 = vrot.slane %v11784_v28, 1  ;;  %v10667_v28 = vld [vmem:[%s10873_s22 + $0x50] sm:$0xff]   ;;  %v5599_v26 = vrot.slane %v11828_v31, 1 }
 0x1b8   : > { %v11880_v58 = vadd.f32 %v3062_v37, %v2852_v56  ;;  %v11882_v21 = vpop.f32.mrf.mxu1  ;;  %10021 = vmatpush3.bf16.msra.mxu0 %v10650_v25  ;;  %v5428_v10 = vsel %vm322_vm0, %v5423_v0, %v5427_v62  ;;  %v5867_v25 = vshll.u32 %v11885_v49, 16  ;;  %v5436_v60 = vsel %vm322_vm0, %v5431_v34, %v5435_v52  ;;  %v11926_v0 = vld [vmem:[%s10890_s29 + $0xa0] sm:$0xff]   ;;  %v10677_v34 = vld [vmem:[%s10873_s22 + $0xb8] sm:$0xff]  }
 0x1b9   : > { %10049 = vmatpush3.bf16.msra.mxu1 %v10651_v27  ;;  %v11888_v35 = vpop.f32.mrf.mxu0  ;;  %10022 = vmatprep.subr.bf16.mxu0 %v10654_v14  ;;  %v10671_v52 = vld [vmem:[%s10873_s22 + $0x40] sm:$0xff]   ;;  %v5600_v31 = vsel %vm658_vm1, %v5597_v6, %v5599_v26 }
 0x1ba   : > { %v11893_v19 = vpop.f32.mrf.mxu1  ;;  %10050 = vmatprep.subr.bf16.mxu1 %v10655_v4  ;;  %v5869_v46 = vrot.slane %v5867_v25, 1  ;;  %v11941_v25 = vld [vmem:[%s10890_s29 + $0xb0] sm:$0xff]  }
 0x1bb   : > { %v9648_v47 = vpop.f32.mrf.mxu0  ;;  %9983 = vmatmul.mubr.bf16.gmra.mxu0 %v10653_v30 }
 0x1bc   : > { %v2856_v55 = vadd.f32 %v9648_v47, %v11810_v17  ;;  %10023 = vmatpush3.bf16.msra.mxu0 %v10654_v14  ;;  %v9676_v33 = vpop.f32.mrf.mxu1  ;;  %10011 = vmatmul.mubr.bf16.gmra.mxu1 %v5420_v7  ;;  %v10663_v17 = vld [vmem:[%s10873_s22 + $0x58] sm:$0xff]   ;;  %v5865_v14 = vor.u32 %v5864_v12, %v5860_v40  ;;  %v10669_v7 = vld [vmem:[%s10873_s22 + $0x48] sm:$0xff]   ;;  %v5871_v47 = vshrl.u32 %v11885_v49, 16  ;;  %v5879_v40 = vshrl.u32 %v11926_v0, 16 }
 0x1bd   : > { %10051 = vmatpush3.bf16.msra.mxu1 %v10655_v4  ;;  %v11903_v27 = vpop.f32.mrf.mxu0  ;;  %10024 = vmatprep.subr.bf16.mxu0 %v10658_v2  ;;  %v10676_v12 = vld [vmem:[%s10873_s22 + $0x38] sm:$0xff]  }
 0x1be   : > { %v11905_v39 = vadd.f32 %v9676_v33, %v2856_v55  ;;  %v11907_v57 = vpop.f32.mrf.mxu1  ;;  %10052 = vmatprep.subr.bf16.mxu1 %v10659_v51  ;;  %9986 = vmatprep.mubr.bf16.mxu0 %v10660_v45  ;;  %v5870_v62 = vsel %vm322_vm0, %v5865_v14, %v5869_v46  ;;  %v10670_v45 = vld [vmem:[%s10873_s22 + $0x200] sm:$0xff]   ;;  %v5873_v33 = vor.u32 %v5871_v47, %v5869_v46  ;;  %v10678_v14 = vld [vmem:[%s10873_s22 + $0x30] sm:$0xff]  }
 0x1bf   : > { %v9649_v61 = vpop.f32.mrf.mxu0  ;;  %10014 = vmatprep.mubr.bf16.mxu1 %v5428_v10 }
 0x1c0   : > { %v2857_v38 = vadd.f32 %v9649_v61, %v11818_v54  ;;  %10025 = vmatpush3.bf16.msra.mxu0 %v10658_v2  ;;  %v9677_v11 = vpop.f32.mrf.mxu1  ;;  %v5598_v54 = vsel %vm658_vm1, %v5596_v22, %v5597_v6  ;;  %v11947_v22 = vld [vmem:[%s10890_s29 + $0xb8] sm:$0xff]  }
 0x1c1   : > { %10053 = vmatpush3.bf16.msra.mxu1 %v10659_v51  ;;  %v2827_v4 = vpop.f32.mrf.mxu0  ;;  %10026 = vmatprep.subr.bf16.mxu0 %v10662_v43  ;;  %v11930_v51 = vld [vmem:[%s10890_s29 + $0xa8] sm:$0xff]  }
 0x1c2   : > { %v11915_v30 = vadd.f32 %v9677_v11, %v2857_v38  ;;  %v3080_v53 = vpop.f32.mrf.mxu1  ;;  %10054 = vmatprep.subr.bf16.mxu1 %v10663_v17  ;;  %v5883_v55 = vshll.u32 %v11930_v51, 16  ;;  %v5887_v46 = vshrl.u32 %v11930_v51, 16  ;;  %v5891_v4 = vshll.u32 %v11941_v25, 16 }
 0x1c3   : > { %v11918_v56 = vpop.f32.mrf.mxu0  ;;  %9987 = vmatmul.mubr.bf16.gmra.mxu0 %v10661_v1 }
 0x1c4   : > { %10027 = vmatpush3.bf16.msra.mxu0 %v10662_v43  ;;  %v11921_v37 = vpop.f32.mrf.mxu1  ;;  %10015 = vmatmul.mubr.bf16.gmra.mxu1 %v5436_v60  ;;  %v5875_v43 = vshll.u32 %v11926_v0, 16  ;;  %v5885_v1 = vrot.slane %v5883_v55, 1 }
 0x1c5   : > { %10055 = vmatpush3.bf16.msra.mxu1 %v10663_v17  ;;  %v2839_v3 = vpop.f32.mrf.mxu0  ;;  %10028 = vmatprep.subr.bf16.mxu0 %v10666_v50  ;;  %v5601_v17 = vrot.slane %v11831_v42, 1  ;;  %v10679_v42 = vld [vmem:[%s10873_s22 + $0xb0] sm:$0xff]  }
 0x1c6   : > { %v3092_v41 = vpop.f32.mrf.mxu1  ;;  %10056 = vmatprep.subr.bf16.mxu1 %v10667_v28  ;;  %10034 = vmatprep.mubr.bf16.mxu0 %v5598_v54  ;;  %v5877_v10 = vrot.slane %v5875_v43, 1  ;;  %v5899_v3 = vshll.u32 %v11947_v22, 16  ;;  %v5605_v43 = vrot.slane %v11849_v32, 1  ;;  %v6173_v32 = vld [vmem:[%s10890_s29 + $0x90] sm:$0xe] }
 0x1c7   : > { %v9653_v2 = vpop.f32.mrf.mxu0  ;;  %10062 = vmatprep.mubr.bf16.mxu1 %v5870_v62  ;;  %v5895_v62 = vshrl.u32 %v11941_v25, 16  ;;  %v10680_v41 = vld [vmem:[%s10873_s22 + $0x28] sm:$0xff]  }
 0x1c8   : > { %10029 = vmatpush3.bf16.msra.mxu0 %v10666_v50  ;;  %v9681_v48 = vpop.f32.mrf.mxu1  ;;  %v5881_v61 = vor.u32 %v5879_v40, %v5877_v10  ;;  %v5878_v11 = vsel %vm322_vm0, %v5873_v33, %v5877_v10  ;;  %v5602_v50 = vsel %vm658_vm1, %v5599_v26, %v5601_v17  ;;  %v5893_v2 = vrot.slane %v5891_v4, 1  ;;  %v10683_v10 = vld [vmem:[%s10873_s22 + $0x20] sm:$0xff]  }
 0x1c9   : > { %10057 = vmatpush3.bf16.msra.mxu1 %v10667_v28  ;;  %10030 = vmatprep.subr.bf16.mxu0 %v10668_v63  ;;  %v11949_v38 = vpop.f32.mrf.mxu0  ;;  %v5603_v28 = vrot.slane %v11841_v29, 1  ;;  %v11967_v48 = vld [vmem:[%s10890_s29 + $0xc0] ss:$0 sps:$4 sm:$0x11]   ;;  %v10681_v29 = vld [vmem:[%s10873_s22 + $0xa8] sm:$0xff]   ;;  %v5901_v55 = vrot.slane %v5899_v3, 1 }
 0x1ca   : > { %10058 = vmatprep.subr.bf16.mxu1 %v10669_v7  ;;  %v11955_v60 = vpop.f32.mrf.mxu1  ;;  %v5886_v54 = vsel %vm322_vm0, %v5881_v61, %v5885_v1  ;;  %v5897_v40 = vor.u32 %v5895_v62, %v5893_v2  ;;  %v10687_v62 = vld [vmem:[%s10873_s22 + $0x98] sm:$0xff]  }
 0x1cb   : > { %v5604_v26 = vsel %vm658_vm1, %v5601_v17, %v5603_v28 }
 0x1cc   : > { %10031 = vmatpush3.bf16.msra.mxu0 %v10668_v63  ;;  %v5902_v4 = vsel %vm322_vm0, %v5897_v40, %v5901_v55 }
 0x1cd   : > { %10059 = vmatpush3.bf16.msra.mxu1 %v10669_v7  ;;  %10032 = vmatprep.subr.bf16.mxu0 %v10670_v45  ;;  %v5889_v7 = vor.u32 %v5887_v46, %v5885_v1  ;;  %v10684_v1 = vld [vmem:[%s10873_s22 + $0xa0] sm:$0xff]   ;;  %v5607_v46 = vrot.slane %v11866_v20, 1 }
 0x1ce   : > { %10060 = vmatprep.subr.bf16.mxu1 %v10671_v52 }
 0x1d0   : > { %10033 = vmatpush3.bf16.msra.mxu0 %v10670_v45 }
 0x1d1   : > { %10061 = vmatpush3.bf16.msra.mxu1 %v10671_v52  ;;  %10074 = vmatprep.subr.bf16.mxu0 %v10676_v12 }
 0x1d2   : > { %10102 = vmatprep.subr.bf16.mxu1 %v10677_v34 }
 0x1d3   : > { %v9700_v6 = vpop.f32.mrf.mxu0  ;;  %10035 = vmatmul.mubr.bf16.vlgmr.msra.gmra.mxu0 %v5600_v31  ;;  %v5907_v31 = vshll.u32 %v11967_v48, 16 }
 0x1d4   : > { %v9728_v53 = vpop.f32.mrf.mxu1  ;;  %10063 = vmatmul.mubr.bf16.vlgmr.msra.gmra.mxu1 %v5878_v11  ;;  %10075 = vmatpush3.bf16.msra.mxu0 %v10676_v12  ;;  %v5894_v12 = vsel %vm322_vm0, %v5889_v7, %v5893_v2  ;;  %v5606_v11 = vsel %vm658_vm1, %v5603_v28, %v5605_v43  ;;  %v6194_v7 = vrot.slane %v11885_v49, 1 }
 0x1d5   : > { %10103 = vmatpush3.bf16.msra.mxu1 %v10677_v34  ;;  %v11963_v63 = vpop.f32.mrf.mxu0  ;;  %10076 = vmatprep.subr.bf16.mxu0 %v10678_v14  ;;  %v5903_v34 = vshrl.u32 %v11947_v22, 16 }
 0x1d6   : > { %v11969_v45 = vpop.f32.mrf.mxu1  ;;  %10104 = vmatprep.subr.bf16.mxu1 %v10679_v42  ;;  %10038 = vmatprep.mubr.bf16.mxu0 %v5602_v50  ;;  %v10686_v50 = vld [vmem:[%s10873_s22 + $0x18] sm:$0xff]  }
 0x1d7   : > { %v11972_v47 = vpop.f32.mrf.mxu0  ;;  %10066 = vmatprep.mubr.bf16.mxu1 %v5886_v54  ;;  %v5905_v53 = vor.u32 %v5903_v34, %v5901_v55  ;;  %v5909_v54 = vrot.slane %v5907_v31, 1  ;;  %v10690_v55 = vld [vmem:[%s10873_s22 + $0x90] sm:$0xff]   ;;  %v10692_v31 = vld [vmem:[%s10873_s22 + $0x8] sm:$0xff]  }
 0x1d8   : > { %v11975_v52 = vpop.f32.mrf.mxu1  ;;  %10077 = vmatpush3.bf16.msra.mxu0 %v10678_v14 }
 0x1d9   : > { %10105 = vmatpush3.bf16.msra.mxu1 %v10679_v42  ;;  %v11978_v33 = vpop.f32.mrf.mxu0  ;;  %10078 = vmatprep.subr.bf16.mxu0 %v10680_v41  ;;  %v8532_v42 = vcombine.low %v6173_v32, %v11859_v23  ;;  %v5608_v23 = vsel %vm658_vm1, %v5605_v43, %v5607_v46  ;;  %v2452_v46 = vadd.f32 %v11792_v8, %v11659_v18  ;;  %v6196_v18 = vrot.slane %v11926_v0, 1  ;;  %v10697_v8 = vld [vmem:[%s10873_s22 + $0xf8] sm:$0xff]  }
 0x1da   : > { %v11985_v61 = vpop.f32.mrf.mxu1  ;;  %10106 = vmatprep.subr.bf16.mxu1 %v10681_v29 }
 0x1db   : > { %v11988_v17 = vpop.f32.mrf.mxu0  ;;  %10039 = vmatmul.mubr.bf16.gmra.mxu0 %v5604_v26  ;;  %v5910_v26 = vsel %vm322_vm0, %v5905_v53, %v5909_v54  ;;  %v2656_v53 = vadd.f32 %v11798_v9, %v2452_v46  ;;  %v3277_v9 = vadd.f32 %v11963_v63, %v11880_v58  ;;  %v12064_v46 = vld [vmem:[%s10890_s29 + $0xa4] sm:$0xff]  }
 0x1dc   : > { %10079 = vmatpush3.bf16.msra.mxu0 %v10680_v41  ;;  %v11991_v14 = vpop.f32.mrf.mxu1  ;;  %10067 = vmatmul.mubr.bf16.gmra.mxu1 %v5894_v12  ;;  %v6193_v41 = vrot.slane %v8532_v42, 1  ;;  %v10694_v42 = vld [vmem:[%s10873_s22] sm:$0xff]  }
 0x1dd   : > { %10107 = vmatpush3.bf16.msra.mxu1 %v10681_v29  ;;  %v11996_v6 = vpop.f32.mrf.mxu0  ;;  %10080 = vmatprep.subr.bf16.mxu0 %v10683_v10  ;;  %v10689_v29 = vld [vmem:[%s10873_s22 + $0x10] sm:$0xff]   ;;  %v2853_v54 = vadd.f32 %v11888_v35, %v2656_v53 }
 0x1de   : > { %v11999_v28 = vpop.f32.mrf.mxu1  ;;  %10108 = vmatprep.subr.bf16.mxu1 %v10684_v1  ;;  %10042 = vmatprep.mubr.bf16.mxu0 %v5606_v11  ;;  %v6195_v43 = vsel %vm658_vm1, %v6193_v41, %v6194_v7  ;;  %v12036_v41 = vld [vmem:[%s10890_s29 + $0xa0] sm:$0xf]  ;;  %v10699_v35 = vld [vmem:[%s10873_s22 + $0xf0] sm:$0xff]  }
 0x1df   : > { %v12002_v3 = vpop.f32.mrf.mxu0  ;;  %10070 = vmatprep.mubr.bf16.mxu1 %v5902_v4 }
 0x1e0   : > { %10081 = vmatpush3.bf16.msra.mxu0 %v10683_v10  ;;  %v12004_v20 = vpop.f32.mrf.mxu1 }
 0x1e1   : > { %10109 = vmatpush3.bf16.msra.mxu1 %v10684_v1  ;;  %v3252_v2 = vpop.f32.mrf.mxu0  ;;  %10082 = vmatprep.subr.bf16.mxu0 %v10686_v50  ;;  %v10693_v1 = vld [vmem:[%s10873_s22 + $0x88] sm:$0xff]  }
 0x1e2   : > { %v3449_v40 = vpop.f32.mrf.mxu1  ;;  %10110 = vmatprep.subr.bf16.mxu1 %v10687_v62 }
 0x1e3   : > { %v12011_v12 = vpop.f32.mrf.mxu0  ;;  %10043 = vmatmul.mubr.bf16.gmra.mxu0 %v5608_v23  ;;  %v10700_v40 = vld [vmem:[%s10873_s22 + $0x130] sm:$0xff]  }
 0x1e4   : > { %10083 = vmatpush3.bf16.msra.mxu0 %v10686_v50  ;;  %v12013_v10 = vpop.f32.mrf.mxu1  ;;  %10071 = vmatmul.mubr.bf16.gmra.mxu1 %v5910_v26  ;;  %v10695_v50 = vld [vmem:[%s10873_s22 + $0x80] sm:$0xff]   ;;  %v3106_v26 = vadd.f32 %v11893_v19, %v2853_v54 }
 0x1e5   : > { %10111 = vmatpush3.bf16.msra.mxu1 %v10687_v62  ;;  %v3264_v34 = vpop.f32.mrf.mxu0  ;;  %10084 = vmatprep.subr.bf16.mxu0 %v10689_v29  ;;  %v10698_v62 = vld [vmem:[%s10873_s22 + $0x138] sm:$0xff]  }
 0x1e6   : > { %v3461_v32 = vpop.f32.mrf.mxu1  ;;  %10112 = vmatprep.subr.bf16.mxu1 %v10690_v55  ;;  %10090 = vmatprep.mubr.bf16.mxu0 %v11872_v5  ;;  %v2854_v5 = vadd.f32 %v11878_v15, %v11796_v36  ;;  %v6198_v36 = vrot.slane %v11930_v51, 1  ;;  %v6542_v15 = vld [vmem:[%s10890_s29 + $0x9c] sm:$0xf]  ;;  %v3278_v19 = vadd.f32 %v11978_v33, %v3106_v26  ;;  %v10702_v33 = vld [vmem:[%s10873_s22 + $0x128] sm:$0xff]  }
 0x1e7   : > { %v9709_v11 = vpop.f32.mrf.mxu0  ;;  %10118 = vmatprep.mubr.bf16.mxu1 %v6195_v43  ;;  %v12051_v43 = vcombine.low %v6542_v15, %v12036_v41 }
 0x1e8   : > { %10085 = vmatpush3.bf16.msra.mxu0 %v10689_v29  ;;  %v9737_v4 = vpop.f32.mrf.mxu1  ;;  %v3107_v23 = vadd.f32 %v11882_v21, %v2854_v5  ;;  %v6197_v29 = vsel %vm658_vm1, %v6194_v7, %v6196_v18  ;;  %v2855_v21 = vadd.f32 %v11903_v27, %v11814_v44  ;;  %v3474_v7 = vadd.f32 %v11969_v45, %v3277_v9 }
 0x1e9   : > { %10113 = vmatpush3.bf16.msra.mxu1 %v10690_v55  ;;  %10086 = vmatprep.subr.bf16.mxu0 %v10692_v31  ;;  %v12038_v2 = vpop.f32.mrf.mxu0  ;;  %v6199_v44 = vsel %vm658_vm1, %v6196_v18, %v6198_v36  ;;  %v6202_v11 = vrot.slane %v11947_v22, 1  ;;  %v2481_v4 = vadd.f32 %v11855_v24, %v11765_v59  ;;  %v3282_v59 = vadd.f32 %v12002_v3, %v11915_v30 }
 0x1ea   : > { %10114 = vmatprep.subr.bf16.mxu1 %v10693_v1  ;;  %v3279_v58 = vadd.f32 %v11972_v47, %v3107_v23  ;;  %v12046_v63 = vpop.f32.mrf.mxu1  ;;  %v10701_v47 = vld [vmem:[%s10873_s22 + $0xe8] sm:$0xff]   ;;  %v6612_v23 = vshll.u32 %v12064_v46, 16 }
 0x1eb   : > { %v2661_v30 = vadd.f32 %v11861_v16, %v2481_v4  ;;  %v10708_v4 = vld [vmem:[%s10873_s22 + $0x110] sm:$0xff]  }
 0x1ec   : > { %10087 = vmatpush3.bf16.msra.mxu0 %v10692_v31  ;;  %v3108_v31 = vadd.f32 %v11907_v57, %v2855_v21  ;;  %v3476_v32 = vadd.f32 %v11975_v52, %v3279_v58  ;;  %v6607_v52 = vshll.u32 %v12051_v43, 16 }
 0x1ed   : > { %10115 = vmatpush3.bf16.msra.mxu1 %v10693_v1  ;;  %10088 = vmatprep.subr.bf16.mxu0 %v10694_v42 }
 0x1ee   : > { %10116 = vmatprep.subr.bf16.mxu1 %v10695_v50  ;;  %v6609_v15 = vrot.slane %v6607_v52, 1 }
 0x1f0   : > { %10089 = vmatpush3.bf16.msra.mxu0 %v10694_v42  ;;  %v2859_v42 = vadd.f32 %v11918_v56, %v11833_v13  ;;  %v10703_v56 = vld [vmem:[%s10873_s22 + $0xe0] sm:$0xff]  }
 0x1f1   : > { %10117 = vmatpush3.bf16.msra.mxu1 %v10695_v50  ;;  %10130 = vmatprep.subr.bf16.mxu0 %v10697_v8  ;;  %v3475_v50 = vadd.f32 %v11985_v61, %v3278_v19 }
 0x1f2   : > { %10158 = vmatprep.subr.bf16.mxu1 %v10698_v62  ;;  %v3112_v3 = vadd.f32 %v11921_v37, %v2859_v42  ;;  %v2858_v37 = vadd.f32 %v11949_v38, %v2661_v30  ;;  %v3281_v38 = vadd.f32 %v11988_v17, %v11905_v39  ;;  %v10713_v42 = vld [vmem:[%s10890_s29 + $0x9c] sm:$0xff]  }
 0x1f3   : > { %v9756_v55 = vpop.f32.mrf.mxu0  ;;  %10091 = vmatmul.mubr.bf16.vlgmr.msra.gmra.mxu0 %v11885_v49  ;;  %v6200_v49 = vrot.slane %v11941_v25, 1  ;;  %v10711_v30 = vld [vmem:[%s10873_s22 + $0xc0] sm:$0xff]  }
 0x1f4   : > { %v9784_v34 = vpop.f32.mrf.mxu1  ;;  %10119 = vmatmul.mubr.bf16.vlgmr.msra.gmra.mxu1 %v6197_v29  ;;  %10131 = vmatpush3.bf16.msra.mxu0 %v10697_v8  ;;  %v3284_v55 = vadd.f32 %v12011_v12, %v3112_v3  ;;  %v6616_v3 = vshrl.u32 %v12064_v46, 16 }
 0x1f5   : > { %10159 = vmatpush3.bf16.msra.mxu1 %v10698_v62  ;;  %v3684_v27 = vpop.f32.mrf.mxu0  ;;  %10132 = vmatprep.subr.bf16.mxu0 %v10699_v35  ;;  %v6201_v13 = vsel %vm658_vm1, %v6198_v36, %v6200_v49  ;;  %v10704_v62 = vld [vmem:[%s10873_s22 + $0x120] sm:$0xff]   ;;  %v6605_v36 = vshrl.u32 %v12051_v43, 16 }
 0x1f6   : > { %v3727_v45 = vadd.f32 %v3684_v27, %v3474_v7  ;;  %v3856_v1 = vpop.f32.mrf.mxu1  ;;  %10160 = vmatprep.subr.bf16.mxu1 %v10700_v40  ;;  %10094 = vmatprep.mubr.bf16.mxu0 %v11926_v0  ;;  %v3280_v0 = vadd.f32 %v11996_v6, %v3108_v31  ;;  %v6203_v6 = vsel %vm658_vm1, %v6200_v49, %v6202_v11 }
 0x1f7   : > { %v9757_v57 = vpop.f32.mrf.mxu0  ;;  %10122 = vmatprep.mubr.bf16.mxu1 %v6199_v44  ;;  %v10706_v44 = vld [vmem:[%s10873_s22 + $0x118] sm:$0xff]   ;;  %v3111_v31 = vadd.f32 %v11955_v60, %v2858_v37  ;;  %v3481_v17 = vadd.f32 %v12013_v10, %v3284_v55  ;;  %v3478_v60 = vadd.f32 %v11991_v14, %v3281_v38  ;;  %v10709_v14 = vld [vmem:[%s10873_s22 + $0xc8] sm:$0xff]  }
 0x1f8   : > { %v3899_v53 = vadd.f32 %v3856_v1, %v3727_v45  ;;  %v3729_v5 = vadd.f32 %v9757_v57, %v3476_v32  ;;  %v9785_v18 = vpop.f32.mrf.mxu1  ;;  %10133 = vmatpush3.bf16.msra.mxu0 %v10699_v35  ;;  %v3477_v29 = vadd.f32 %v11999_v28, %v3280_v0  ;;  %v12090_v35 = vld [vmem:[%s11606_s5] ss:$0 sm:$0xff]  ;;  %v6204_v28 = vrot.slane %v11967_v48, 1 }
 0x1f9   : > { %10161 = vmatpush3.bf16.msra.mxu1 %v10700_v40  ;;  %v3687_v24 = vpop.f32.mrf.mxu0  ;;  %10134 = vmatprep.subr.bf16.mxu0 %v10701_v47  ;;  %v10705_v40 = vld [vmem:[%s10873_s22 + $0xd8] sm:$0xff]   ;;  %v3283_v57 = vadd.f32 %v12038_v2, %v3111_v31  ;;  %v10721_v31 = vld [vmem:[%s10873_s22 + $0x1b0] sm:$0xff]  }
 0x1fa   : > { %v3901_v8 = vadd.f32 %v9785_v18, %v3729_v5  ;;  %v3728_v54 = vadd.f32 %v3687_v24, %v3475_v50  ;;  %v3859_v61 = vpop.f32.mrf.mxu1  ;;  %10162 = vmatprep.subr.bf16.mxu1 %v10702_v33  ;;  %v3907_v26 = vadd.f32 %v12090_v35, %v3899_v53  ;;  %v6205_v39 = vsel %vm658_vm1, %v6202_v11, %v6204_v28  ;;  %v12124_v18 = vld [vmem:[%s10890_s29 + $0xac] sm:$0xff]   ;;  %v12145_v28 = vld [vmem:[%s10890_s29 + $0xbc] sm:$0xff]  }
 0x1fb   : > { %v12084_v9 = vpop.f32.mrf.mxu0  ;;  %10095 = vmatmul.mubr.bf16.gmra.mxu0 %v11930_v51  ;;  %v3479_v51 = vadd.f32 %v12004_v20, %v3282_v59  ;;  %v6610_v20 = vor.u32 %v6609_v15, %v6605_v36  ;;  %v6624_v37 = vshrl.u32 %v12124_v18, 16 }
 0x1fc   : > { %v3909_v21 = vadd.f32 %v12090_v35, %v3901_v8  ;;  %10135 = vmatpush3.bf16.msra.mxu0 %v10701_v47  ;;  %v12094_v16 = vpop.f32.mrf.mxu1  ;;  %10123 = vmatmul.mubr.bf16.gmra.mxu1 %v6201_v13  ;;  %v3900_v7 = vadd.f32 %v3859_v61, %v3728_v54  ;;  %v12105_v47 = vrot.slane %v6612_v23, 1  ;;  %v10710_v13 = vld [vmem:[%s10873_s22 + $0x108] sm:$0xff]   ;;  %v3480_v8 = vadd.f32 %v12046_v63, %v3283_v57 }
 0x1fd   : > { %10163 = vmatpush3.bf16.msra.mxu1 %v10702_v33  ;;  %v3699_v58 = vpop.f32.mrf.mxu0  ;;  %10136 = vmatprep.subr.bf16.mxu0 %v10703_v56  ;;  %v12166_v57 = vld [vmem:[%s10890_s29 + $0xcc] ss:$0 sps:$4 sm:$0x11]  }
 0x1fe   : > { %v3915_v43 = vmax.f32 %v3907_v26, %v3909_v21  ;;  %v3730_v19 = vadd.f32 %v3699_v58, %v3477_v29  ;;  %v3871_v34 = vpop.f32.mrf.mxu1  ;;  %10164 = vmatprep.subr.bf16.mxu1 %v10704_v62  ;;  %10098 = vmatprep.mubr.bf16.mxu0 %v11941_v25  ;;  %v10707_v25 = vld [vmem:[%s10873_s22 + $0xd0] sm:$0xff]   ;;  %v3908_v45 = vadd.f32 %v12090_v35, %v3900_v7  ;;  %v10712_v26 = vld [vmem:[%s10873_s22 + $0x100] sm:$0xff]   ;;  %v10719_v7 = vld [vmem:[%s10873_s22 + $0x1b8] sm:$0xff]  }
 0x1ff   : > { %v9761_v27 = vpop.f32.mrf.mxu0  ;;  %10126 = vmatprep.mubr.bf16.mxu1 %v6203_v6  ;;  %v6615_v10 = vsel %vm322_vm0, %v6610_v20, %v12105_v47  ;;  %v12133_v6 = vld [vmem:[%s10890_s29 + $0xb4] sm:$0xff]   ;;  %v6618_v58 = vor.u32 %v6616_v3, %v12105_v47 }
 0x200   : > { %v3732_v48 = vadd.f32 %v9761_v27, %v3479_v51  ;;  %v3902_v12 = vadd.f32 %v3871_v34, %v3730_v19  ;;  %10137 = vmatpush3.bf16.msra.mxu0 %v10703_v56  ;;  %v9789_v49 = vpop.f32.mrf.mxu1  ;;  %v6628_v51 = vshll.u32 %v12133_v6, 16  ;;  %v10716_v19 = vld [vmem:[%s10890_s29 + $0xa4] sm:$0xff]   ;;  %v10720_v47 = vld [vmem:[%s10873_s22 + $0x170] sm:$0xff]  }
 0x201   : > { %10165 = vmatpush3.bf16.msra.mxu1 %v10704_v62  ;;  %v3702_v32 = vpop.f32.mrf.mxu0  ;;  %10138 = vmatprep.subr.bf16.mxu0 %v10705_v40  ;;  %v12152_v27 = vld [vmem:[%s10890_s29 + $0xc4] sm:$0xff]  }
 0x202   : > { %v3910_v1 = vadd.f32 %v12090_v35, %v3902_v12  ;;  %v3874_v33 = vpop.f32.mrf.mxu1  ;;  %10166 = vmatprep.subr.bf16.mxu1 %v10706_v44  ;;  %v3904_v50 = vadd.f32 %v9789_v49, %v3732_v48  ;;  %v6630_v38 = vrot.slane %v6628_v51, 1  ;;  %v6632_v48 = vshrl.u32 %v12133_v6, 16  ;;  %v10722_v32 = vld [vmem:[%s10890_s29 + $0xac] sm:$0xff]   ;;  %v10733_v51 = vld [vmem:[%s10873_s22 + $0x198] sm:$0xff]  }
 0x203   : > { %v9764_v52 = vpop.f32.mrf.mxu0  ;;  %10099 = vmatmul.mubr.bf16.gmra.mxu0 %v11947_v22  ;;  %v3731_v22 = vadd.f32 %v12084_v9, %v3478_v60  ;;  %v6620_v9 = vshll.u32 %v12124_v18, 16  ;;  %v6636_v12 = vshll.u32 %v12145_v28, 16 }
 0x204   : > { %v3916_v11 = vmax.f32 %v3908_v45, %v3910_v1  ;;  %v3734_v0 = vadd.f32 %v9764_v52, %v3481_v17  ;;  %10139 = vmatpush3.bf16.msra.mxu0 %v10705_v40  ;;  %v9792_v53 = vpop.f32.mrf.mxu1  ;;  %10127 = vmatmul.mubr.bf16.gmra.mxu1 %v6205_v39  ;;  %v3912_v54 = vadd.f32 %v12090_v35, %v3904_v50  ;;  %v6640_v45 = vshrl.u32 %v12145_v28, 16 }
 0x205   : > { %10167 = vmatpush3.bf16.msra.mxu1 %v10706_v44  ;;  %v3714_v5 = vpop.f32.mrf.mxu0  ;;  %10140 = vmatprep.subr.bf16.mxu0 %v10707_v25  ;;  %v3903_v63 = vadd.f32 %v12094_v16, %v3731_v22  ;;  %v6622_v40 = vrot.slane %v6620_v9, 1  ;;  %v10718_v16 = vld [vmem:[%s10873_s22 + $0x178] sm:$0xff]   ;;  %v6644_v1 = vshll.u32 %v12152_v27, 16  ;;  %v6638_v60 = vrot.slane %v6636_v12, 1 }
 0x206   : > { %v8752_v2 = vpack.c.bf16 %v3916_v11, %v3915_v43  ;;  %v3906_v59 = vadd.f32 %v9792_v53, %v3734_v0  ;;  %v3886_v24 = vpop.f32.mrf.mxu1  ;;  %10168 = vmatprep.subr.bf16.mxu1 %v10708_v4  ;;  %10146 = vmatprep.mubr.bf16.mxu0 %v10713_v42  ;;  %v6634_v42 = vor.u32 %v6632_v48, %v6630_v38  ;;  %v10723_v0 = vld [vmem:[%s10890_s29 + $0xb4] sm:$0xff]   ;;  %v6795_v22 = vld [vmem:[%s10890_s29 + $0x9c] sm:$0xe] }
 0x207   : > { %v9765_v56 = vpop.f32.mrf.mxu0  ;;  %10174 = vmatprep.mubr.bf16.mxu1 %v6615_v10  ;;  %v3911_v55 = vadd.f32 %v12090_v35, %v3903_v63  ;;  %v6626_v44 = vor.u32 %v6624_v37, %v6622_v40  ;;  %v6623_v20 = vsel %vm322_vm0, %v6618_v58, %v6622_v40  ;;  %v10725_v10 = vld [vmem:[%s10873_s22 + $0x1a8] sm:$0xff]   ;;  %v6642_v5 = vor.u32 %v6640_v45, %v6638_v60 }
 0x208   : > { %8780 = vst [vmem:[%s11712_s12 + $0x10] sm:$0xff] %v8752_v2   ;;  %v3914_v61 = vadd.f32 %v12090_v35, %v3906_v59  ;;  %10141 = vmatpush3.bf16.msra.mxu0 %v10707_v25  ;;  %v9793_v62 = vpop.f32.mrf.mxu1  ;;  %v6639_v24 = vsel %vm322_vm0, %v6634_v42, %v6638_v60  ;;  %v6648_v56 = vshrl.u32 %v12152_v27, 16  ;;  %v8618_v3 = vcombine.low %v6795_v22, %v12036_v41  ;;  %v10731_v40 = vld [vmem:[%s10890_s29 + $0xc4] sm:$0xff]   ;;  %v12216_v22 = vld [vmem:[%s10890_s29 + $0xac] sm:$0xf] }
 0x209   : > { %10169 = vmatpush3.bf16.msra.mxu1 %v10708_v4  ;;  %v3716_v23 = vpop.f32.mrf.mxu0  ;;  %10142 = vmatprep.subr.bf16.mxu0 %v10709_v14  ;;  %v6631_v17 = vsel %vm322_vm0, %v6626_v44, %v6630_v38  ;;  %v10724_v4 = vld [vmem:[%s10873_s22 + $0x168] sm:$0xff]   ;;  %v10730_v62 = vld [vmem:[%s10890_s29 + $0xbc] sm:$0xff]   ;;  %v10736_v44 = vld [vmem:[%s10873_s22 + $0x150] sm:$0xff]  }
 0x20a   : > { %v3918_v36 = vmax.f32 %v3912_v54, %v3914_v61  ;;  %v3733_v15 = vadd.f32 %v3716_v23, %v3480_v8  ;;  %v3888_v29 = vpop.f32.mrf.mxu1  ;;  %10170 = vmatprep.subr.bf16.mxu1 %v10710_v13  ;;  %v6652_v8 = vshll.u32 %v12166_v57, 16  ;;  %v10729_v61 = vld [vmem:[%s10873_s22 + $0x1a0] sm:$0xff]  }
 0x20b   : > { %v10741_v42 = vld [vmem:[%s10873_s22 + $0x180] sm:$0xff]  }
 0x20c   : > { %v3905_v21 = vadd.f32 %v3888_v29, %v3733_v15  ;;  %10143 = vmatpush3.bf16.msra.mxu0 %v10709_v14  ;;  %v6646_v14 = vrot.slane %v6644_v1, 1  ;;  %v10732_v29 = vld [vmem:[%s10873_s22 + $0x158] sm:$0xff]  }
 0x20d   : > { %10171 = vmatpush3.bf16.msra.mxu1 %v10710_v13  ;;  %10144 = vmatprep.subr.bf16.mxu0 %v10711_v30  ;;  %v10728_v13 = vld [vmem:[%s10873_s22 + $0x160] sm:$0xff]  }
 0x20e   : > { %v3913_v43 = vadd.f32 %v12090_v35, %v3905_v21  ;;  %10172 = vmatprep.subr.bf16.mxu1 %v10712_v26  ;;  %v6647_v63 = vsel %vm322_vm0, %v6642_v5, %v6646_v14  ;;  %v6654_v21 = vrot.slane %v6652_v8, 1  ;;  %v10744_v5 = vld [vmem:[%s10890_s29 + $0xb0] sm:$0xff]  }
 0x210   : > { %v3917_v34 = vmax.f32 %v3911_v55, %v3913_v43  ;;  %10145 = vmatpush3.bf16.msra.mxu0 %v10711_v30  ;;  %v6816_v55 = vrot.slane %v12064_v46, 1  ;;  %v10743_v46 = vld [vmem:[%s10890_s29 + $0xa8] sm:$0xff]  }
 0x211   : > { %10173 = vmatpush3.bf16.msra.mxu1 %v10712_v26  ;;  %10186 = vmatprep.subr.bf16.mxu0 %v10718_v16  ;;  %v6650_v26 = vor.u32 %v6648_v56, %v6646_v14  ;;  %v7164_v14 = vld [vmem:[%s10890_s29 + $0xa8] sm:$0xf]  ;;  %v10751_v56 = vld [vmem:[%s10890_s29 + $0xb8] sm:$0xff]  }
 0x212   : > { %v8757_v49 = vpack.c.bf16 %v3918_v36, %v3917_v34  ;;  %10214 = vmatprep.subr.bf16.mxu1 %v10719_v7 }
 0x213   : > { %v9812_v39 = vpop.f32.mrf.mxu0  ;;  %10147 = vmatmul.mubr.bf16.vlgmr.msra.gmra.mxu0 %v10716_v19  ;;  %v6655_v34 = vsel %vm322_vm0, %v6650_v26, %v6654_v21 }
 0x214   : > { %8781 = vst [vmem:[%s11712_s12 + $0x18] sm:$0xff] %v8757_v49   ;;  %v9840_v25 = vpop.f32.mrf.mxu1  ;;  %10175 = vmatmul.mubr.bf16.vlgmr.msra.gmra.mxu1 %v6623_v20  ;;  %10187 = vmatpush3.bf16.msra.mxu0 %v10718_v16  ;;  %v6815_v16 = vrot.slane %v8618_v3, 1  ;;  %v10737_v20 = vld [vmem:[%s10873_s22 + $0x190] sm:$0xff]  }
 0x215   : > { %10215 = vmatpush3.bf16.msra.mxu1 %v10719_v7  ;;  %v4158_v33 = vpop.f32.mrf.mxu0  ;;  %10188 = vmatprep.subr.bf16.mxu0 %v10720_v47  ;;  %v10739_v25 = vld [vmem:[%s10873_s22 + $0x188] sm:$0xff]  }
 0x216   : > { %v4289_v52 = vpop.f32.mrf.mxu1  ;;  %10216 = vmatprep.subr.bf16.mxu1 %v10721_v31  ;;  %10150 = vmatprep.mubr.bf16.mxu0 %v10722_v32  ;;  %v6817_v48 = vsel %vm658_vm1, %v6815_v16, %v6816_v55  ;;  %v10738_v32 = vld [vmem:[%s10873_s22 + $0x148] sm:$0xff]  }
 0x217   : > { %v12169_v11 = vadd.f32 %v4289_v52, %v4158_v33  ;;  %v9813_v50 = vpop.f32.mrf.mxu0  ;;  %10178 = vmatprep.mubr.bf16.mxu1 %v6631_v17  ;;  %v10740_v33 = vld [vmem:[%s10873_s22 + $0x140] sm:$0xff]   ;;  %v6818_v52 = vrot.slane %v12124_v18, 1  ;;  %v10747_v18 = vld [vmem:[%s10873_s22 + $0x1f0] sm:$0xff]  }
 0x218   : > { %v9841_v53 = vpop.f32.mrf.mxu1  ;;  %10189 = vmatpush3.bf16.msra.mxu0 %v10720_v47 }
 0x219   : > { %v12173_v2 = vadd.f32 %v9841_v53, %v9813_v50  ;;  %10217 = vmatpush3.bf16.msra.mxu1 %v10721_v31  ;;  %v4161_v59 = vpop.f32.mrf.mxu0  ;;  %10190 = vmatprep.subr.bf16.mxu0 %v10724_v4  ;;  %v10746_v50 = vld [vmem:[%s10873_s22 + $0x238] sm:$0xff]   ;;  %v6819_v53 = vsel %vm658_vm1, %v6816_v55, %v6818_v52 }
 0x21a   : > { %v4292_v54 = vpop.f32.mrf.mxu1  ;;  %10218 = vmatprep.subr.bf16.mxu1 %v10725_v10 }
 0x21b   : > { %v12181_v23 = vadd.f32 %v4292_v54, %v4161_v59  ;;  %10151 = vmatmul.mubr.bf16.gmra.mxu0 %v10723_v0  ;;  %v9816_v30 = vpop.f32.mrf.mxu0  ;;  %v6820_v0 = vrot.slane %v12133_v6, 1  ;;  %v10748_v59 = vld [vmem:[%s10873_s22 + $0x230] sm:$0xff]   ;;  %v12223_v6 = vcombine.low %v7164_v14, %v12216_v22  ;;  %v6822_v54 = vrot.slane %v12145_v28, 1 }
 0x21c   : > { %10191 = vmatpush3.bf16.msra.mxu0 %v10724_v4  ;;  %10179 = vmatmul.mubr.bf16.gmra.mxu1 %v6639_v24  ;;  %v9844_v9 = vpop.f32.mrf.mxu1 }
 0x21d   : > { %10219 = vmatpush3.bf16.msra.mxu1 %v10725_v10  ;;  %v12185_v36 = vadd.f32 %v9844_v9, %v9816_v30  ;;  %10192 = vmatprep.subr.bf16.mxu0 %v10728_v13  ;;  %v4173_v15 = vpop.f32.mrf.mxu0  ;;  %v10745_v10 = vld [vmem:[%s10873_s22 + $0x1f8] sm:$0xff]   ;;  %v10750_v9 = vld [vmem:[%s10873_s22 + $0x228] sm:$0xff]   ;;  %v7229_v28 = vshll.u32 %v12223_v6, 16 }
 0x21e   : > { %10220 = vmatprep.subr.bf16.mxu1 %v10729_v61  ;;  %v4304_v37 = vpop.f32.mrf.mxu1  ;;  %10154 = vmatprep.mubr.bf16.mxu0 %v10730_v62  ;;  %v10749_v62 = vld [vmem:[%s10873_s22 + $0x1e8] sm:$0xff]  }
 0x21f   : > { %v12189_v41 = vadd.f32 %v4304_v37, %v4173_v15  ;;  %v9817_v58 = vpop.f32.mrf.mxu0  ;;  %10182 = vmatprep.mubr.bf16.mxu1 %v6647_v63  ;;  %v6824_v15 = vrot.slane %v12152_v27, 1  ;;  %v6823_v37 = vsel %vm658_vm1, %v6820_v0, %v6822_v54  ;;  %v7417_v27 = vld [vmem:[%s10890_s29 + $0xa8] sm:$0xe] }
 0x220   : > { %10193 = vmatpush3.bf16.msra.mxu0 %v10728_v13  ;;  %v9845_v43 = vpop.f32.mrf.mxu1  ;;  %v6821_v13 = vsel %vm658_vm1, %v6818_v52, %v6820_v0 }
 0x221   : > { %10221 = vmatpush3.bf16.msra.mxu1 %v10729_v61  ;;  %v12193_v7 = vadd.f32 %v9845_v43, %v9817_v58  ;;  %10194 = vmatprep.subr.bf16.mxu0 %v10732_v29  ;;  %v4176_v19 = vpop.f32.mrf.mxu0 }
 0x222   : > { %10222 = vmatprep.subr.bf16.mxu1 %v10733_v51  ;;  %v4307_v38 = vpop.f32.mrf.mxu1  ;;  %v10754_v19 = vld [vmem:[%s10873_s22 + $0x220] sm:$0xff]  }
 0x223   : > { %10155 = vmatmul.mubr.bf16.gmra.mxu0 %v10731_v40  ;;  %v9820_v47 = vpop.f32.mrf.mxu0  ;;  %v10753_v40 = vld [vmem:[%s10873_s22 + $0x1e0] sm:$0xff]   ;;  %v10757_v38 = vld [vmem:[%s10890_s29 + $0xc8] sm:$0xff]  }
 0x224   : > { %10195 = vmatpush3.bf16.msra.mxu0 %v10732_v29  ;;  %10183 = vmatmul.mubr.bf16.gmra.mxu1 %v6655_v34  ;;  %v9848_v12 = vpop.f32.mrf.mxu1  ;;  %v12231_v29 = vld [vmem:[%s10890_s29 + $0xb0] sm:$0xff]  }
 0x225   : > { %10223 = vmatpush3.bf16.msra.mxu1 %v10733_v51  ;;  %v12200_v49 = vadd.f32 %v9848_v12, %v9820_v47  ;;  %10196 = vmatprep.subr.bf16.mxu0 %v10736_v44  ;;  %v4188_v31 = vpop.f32.mrf.mxu0  ;;  %v10752_v51 = vld [vmem:[%s10890_s29 + $0xc0] sm:$0xff]   ;;  %v7231_v47 = vrot.slane %v7229_v28, 1  ;;  %v7438_v0 = vrot.slane %v12231_v29, 1 }
 0x226   : > { %10224 = vmatprep.subr.bf16.mxu1 %v10737_v20  ;;  %v4319_v39 = vpop.f32.mrf.mxu1  ;;  %10202 = vmatprep.mubr.bf16.mxu0 %v6817_v48  ;;  %v7234_v48 = vshll.u32 %v12231_v29, 16 }
 0x227   : > { %v9821_v17 = vpop.f32.mrf.mxu0  ;;  %10230 = vmatprep.mubr.bf16.mxu1 %v10743_v46 }
 0x228   : > { %10197 = vmatpush3.bf16.msra.mxu0 %v10736_v44  ;;  %v9849_v45 = vpop.f32.mrf.mxu1  ;;  %v6825_v44 = vsel %vm658_vm1, %v6822_v54, %v6824_v15  ;;  %v10761_v54 = vld [vmem:[%s10873_s22 + $0x1c8] sm:$0xff]  }
 0x229   : > { %10225 = vmatpush3.bf16.msra.mxu1 %v10737_v20  ;;  %10198 = vmatprep.subr.bf16.mxu0 %v10738_v32  ;;  %v4190_v1 = vpop.f32.mrf.mxu0  ;;  %v7227_v20 = vshrl.u32 %v12223_v6, 16  ;;  %v10756_v45 = vld [vmem:[%s10873_s22 + $0x218] sm:$0xff]  }
 0x22a   : > { %10226 = vmatprep.subr.bf16.mxu1 %v10739_v25  ;;  %v4321_v4 = vpop.f32.mrf.mxu1 }
 0x22b   : > { %v12206_v60 = vadd.f32 %v4321_v4, %v4190_v1  ;;  %v7236_v4 = vrot.slane %v7234_v48, 1 }
 0x22c   : > { %10199 = vmatpush3.bf16.msra.mxu0 %v10738_v32  ;;  %v10755_v32 = vld [vmem:[%s10873_s22 + $0x1d8] sm:$0xff]  }
 0x22d   : > { %10227 = vmatpush3.bf16.msra.mxu1 %v10739_v25  ;;  %10200 = vmatprep.subr.bf16.mxu0 %v10740_v33 }
 0x22e   : > { %10228 = vmatprep.subr.bf16.mxu1 %v10741_v42 }
 0x230   : > { %10201 = vmatpush3.bf16.msra.mxu0 %v10740_v33  ;;  %v7232_v33 = vor.u32 %v7231_v47, %v7227_v20 }
 0x231   : > { %10229 = vmatpush3.bf16.msra.mxu1 %v10741_v42  ;;  %10242 = vmatprep.subr.bf16.mxu0 %v10745_v10 }
 0x232   : > { %10270 = vmatprep.subr.bf16.mxu1 %v10746_v50 }
 0x233   : > { %v9868_v24 = vpop.f32.mrf.mxu0  ;;  %10203 = vmatmul.mubr.bf16.vlgmr.msra.gmra.mxu0 %v6819_v53 }
 0x234   : > { %v9896_v8 = vpop.f32.mrf.mxu1  ;;  %10231 = vmatmul.mubr.bf16.vlgmr.msra.gmra.mxu1 %v10744_v5  ;;  %10243 = vmatpush3.bf16.msra.mxu0 %v10745_v10  ;;  %v10758_v10 = vld [vmem:[%s10890_s29 + $0xd0] sm:$0xff]   ;;  %v10768_v24 = vld [vmem:[%s10890_s29 + $0xb8] sm:$0xff]  }
 0x235   : > { %10271 = vmatpush3.bf16.msra.mxu1 %v10746_v50  ;;  %v4453_v61 = vpop.f32.mrf.mxu0  ;;  %10244 = vmatprep.subr.bf16.mxu0 %v10747_v18  ;;  %v10759_v5 = vld [vmem:[%s10873_s22 + $0x1d0] sm:$0xff]  }
 0x236   : > { %v4496_v30 = vadd.f32 %v4453_v61, %v12169_v11  ;;  %v4650_v3 = vpop.f32.mrf.mxu1  ;;  %10272 = vmatprep.subr.bf16.mxu1 %v10748_v59  ;;  %10206 = vmatprep.mubr.bf16.mxu0 %v6821_v13  ;;  %v12277_v61 = vld [vmem:[%s10890_s29 + $0xc0] sm:$0xff]  }
 0x237   : > { %v9869_v63 = vpop.f32.mrf.mxu0  ;;  %10234 = vmatprep.mubr.bf16.mxu1 %v10751_v56  ;;  %v7442_v20 = vrot.slane %v12277_v61, 1  ;;  %v7254_v48 = vshrl.u32 %v12277_v61, 16 }
 0x238   : > { %v12234_v26 = vadd.f32 %v4650_v3, %v4496_v30  ;;  %v4498_v21 = vadd.f32 %v9869_v63, %v12173_v2  ;;  %v9897_v11 = vpop.f32.mrf.mxu1  ;;  %10245 = vmatpush3.bf16.msra.mxu0 %v10747_v18  ;;  %v6826_v2 = vrot.slane %v12166_v57, 1  ;;  %v8704_v57 = vcombine.low %v7417_v27, %v12216_v22  ;;  %v10762_v3 = vld [vmem:[%s10873_s22 + $0x208] sm:$0xff]  }
 0x239   : > { %10273 = vmatpush3.bf16.msra.mxu1 %v10748_v59  ;;  %v4456_v58 = vpop.f32.mrf.mxu0  ;;  %10246 = vmatprep.subr.bf16.mxu0 %v10749_v62  ;;  %v7237_v59 = vsel %vm322_vm0, %v7232_v33, %v7236_v4 }
 0x23a   : > { %v12241_v16 = vadd.f32 %v9897_v11, %v4498_v21  ;;  %v4497_v55 = vadd.f32 %v4456_v58, %v12181_v23  ;;  %v4653_v43 = vpop.f32.mrf.mxu1  ;;  %10274 = vmatprep.subr.bf16.mxu1 %v10750_v9  ;;  %v6827_v1 = vsel %vm658_vm1, %v6824_v15, %v6826_v2  ;;  %v7437_v50 = vrot.slane %v8704_v57, 1  ;;  %v10763_v21 = vld [vmem:[%s10873_s22 + $0x1c0] sm:$0xff]  }
 0x23b   : > { %v9872_v34 = vpop.f32.mrf.mxu0  ;;  %10207 = vmatmul.mubr.bf16.gmra.mxu0 %v6823_v37  ;;  %v7238_v15 = vshrl.u32 %v12231_v29, 16  ;;  %v7246_v11 = vshrl.u32 %v10768_v24, 16  ;;  %v7250_v37 = vshll.u32 %v12277_v61, 16  ;;  %v7440_v2 = vrot.slane %v10768_v24, 1 }
 0x23c   : > { %v12250_v46 = vadd.f32 %v4653_v43, %v4497_v55  ;;  %v4500_v23 = vadd.f32 %v9872_v34, %v12185_v36  ;;  %10247 = vmatpush3.bf16.msra.mxu0 %v10749_v62  ;;  %v9900_v12 = vpop.f32.mrf.mxu1  ;;  %10235 = vmatmul.mubr.bf16.gmra.mxu1 %v10752_v51  ;;  %v7439_v6 = vsel %vm658_vm1, %v7437_v50, %v7438_v0  ;;  %v10770_v55 = vld [vmem:[%s10890_s29 + $0xc8] sm:$0xff]  }
 0x23d   : > { %10275 = vmatpush3.bf16.msra.mxu1 %v10750_v9  ;;  %v4468_v31 = vpop.f32.mrf.mxu0  ;;  %10248 = vmatprep.subr.bf16.mxu0 %v10753_v40  ;;  %v7242_v9 = vshll.u32 %v10768_v24, 16  ;;  %v7258_v47 = vshll.u32 %v10770_v55, 16  ;;  %v7262_v57 = vshrl.u32 %v10770_v55, 16 }
 0x23e   : > { %v4499_v39 = vadd.f32 %v4468_v31, %v12189_v41  ;;  %v12256_v25 = vadd.f32 %v9900_v12, %v4500_v23  ;;  %v4665_v17 = vpop.f32.mrf.mxu1  ;;  %10276 = vmatprep.subr.bf16.mxu1 %v10754_v19  ;;  %10210 = vmatprep.mubr.bf16.mxu0 %v6825_v44  ;;  %v7252_v44 = vrot.slane %v7250_v37, 1  ;;  %v7441_v23 = vsel %vm658_vm1, %v7438_v0, %v7440_v2 }
 0x23f   : > { %v9873_v36 = vpop.f32.mrf.mxu0  ;;  %10238 = vmatprep.mubr.bf16.mxu1 %v10757_v38  ;;  %v7244_v27 = vrot.slane %v7242_v9, 1  ;;  %v10771_v38 = vld [vmem:[%s10890_s29 + $0xd0] sm:$0xff]  }
 0x240   : > { %v4501_v42 = vadd.f32 %v9873_v36, %v12193_v7  ;;  %v12261_v52 = vadd.f32 %v4665_v17, %v4499_v39  ;;  %10249 = vmatpush3.bf16.msra.mxu0 %v10753_v40  ;;  %v9901_v41 = vpop.f32.mrf.mxu1  ;;  %v10760_v7 = vld [vmem:[%s10873_s22 + $0x210] sm:$0xff]   ;;  %v10764_v40 = vld [vmem:[%s10873_s22 + $0x200] sm:$0xff]   ;;  %v7266_v31 = vshll.u32 %v10771_v38, 16  ;;  %v7260_v17 = vrot.slane %v7258_v47, 1 }
 0x241   : > { %10277 = vmatpush3.bf16.msra.mxu1 %v10754_v19  ;;  %v4471_v53 = vpop.f32.mrf.mxu0  ;;  %10250 = vmatprep.subr.bf16.mxu0 %v10755_v32  ;;  %v7240_v19 = vor.u32 %v7238_v15, %v7236_v4  ;;  %v7248_v34 = vor.u32 %v7246_v11, %v7244_v27  ;;  %v7256_v36 = vor.u32 %v7254_v48, %v7252_v44  ;;  %v7444_v4 = vrot.slane %v10770_v55, 1 }
 0x242   : > { %v12266_v14 = vadd.f32 %v9901_v41, %v4501_v42  ;;  %v4668_v22 = vpop.f32.mrf.mxu1  ;;  %10278 = vmatprep.subr.bf16.mxu1 %v10756_v45  ;;  %v7264_v29 = vor.u32 %v7262_v57, %v7260_v17  ;;  %v7268_v42 = vrot.slane %v7266_v31, 1  ;;  %v7446_v50 = vrot.slane %v10771_v38, 1 }
 0x243   : > { %v9876_v18 = vpop.f32.mrf.mxu0  ;;  %10211 = vmatmul.mubr.bf16.gmra.mxu0 %v6827_v1  ;;  %v7253_v12 = vsel %vm322_vm0, %v7248_v34, %v7252_v44  ;;  %v10772_v1 = vld [vmem:[%s10890_s29 + $0xd8] ss:$0 sps:$4 sm:$0x11]   ;;  %v7261_v22 = vsel %vm322_vm0, %v7256_v36, %v7260_v17  ;;  %v7445_v24 = vsel %vm658_vm1, %v7442_v20, %v7444_v4 }
 0x244   : > { %v4503_v13 = vadd.f32 %v9876_v18, %v12200_v49  ;;  %10251 = vmatpush3.bf16.msra.mxu0 %v10755_v32  ;;  %v9904_v56 = vpop.f32.mrf.mxu1  ;;  %10239 = vmatmul.mubr.bf16.gmra.mxu1 %v10758_v10  ;;  %v7443_v32 = vsel %vm658_vm1, %v7440_v2, %v7442_v20  ;;  %v7274_v18 = vshll.u32 %v10772_v1, 16 }
 0x245   : > { %10279 = vmatpush3.bf16.msra.mxu1 %v10756_v45  ;;  %v4483_v8 = vpop.f32.mrf.mxu0  ;;  %10252 = vmatprep.subr.bf16.mxu0 %v10759_v5 }
 0x246   : > { %v12279_v62 = vadd.f32 %v9904_v56, %v4503_v13  ;;  %v4680_v30 = vpop.f32.mrf.mxu1  ;;  %10280 = vmatprep.subr.bf16.mxu1 %v10760_v7  ;;  %10258 = vmatprep.mubr.bf16.mxu0 %v7237_v59  ;;  %v7269_v13 = vsel %vm322_vm0, %v7264_v29, %v7268_v42 }
 0x247   : > { %v9877_v49 = vpop.f32.mrf.mxu0  ;;  %10286 = vmatprep.mubr.bf16.mxu1 %v7439_v6  ;;  %v7276_v30 = vrot.slane %v7274_v18, 1 }
 0x248   : > { %10253 = vmatpush3.bf16.msra.mxu0 %v10759_v5  ;;  %v9905_v63 = vpop.f32.mrf.mxu1  ;;  %v7448_v49 = vrot.slane %v10772_v1, 1 }
 0x249   : > { %10281 = vmatpush3.bf16.msra.mxu1 %v10760_v7  ;;  %v4485_v28 = vpop.f32.mrf.mxu0  ;;  %10254 = vmatprep.subr.bf16.mxu0 %v10761_v54  ;;  %v7270_v7 = vshrl.u32 %v10771_v38, 16 }
 0x24a   : > { %v4502_v51 = vadd.f32 %v4485_v28, %v12206_v60  ;;  %v4682_v58 = vpop.f32.mrf.mxu1  ;;  %10282 = vmatprep.subr.bf16.mxu1 %v10762_v3  ;;  %v7245_v60 = vsel %vm322_vm0, %v7240_v19, %v7244_v27 }
 0x24b   : > { %v7272_v61 = vor.u32 %v7270_v7, %v7268_v42 }
 0x24c   : > { %v12288_v43 = vadd.f32 %v4682_v58, %v4502_v51  ;;  %10255 = vmatpush3.bf16.msra.mxu0 %v10761_v54 }
 0x24d   : > { %10283 = vmatpush3.bf16.msra.mxu1 %v10762_v3  ;;  %10256 = vmatprep.subr.bf16.mxu0 %v10763_v21  ;;  %v7277_v11 = vsel %vm322_vm0, %v7272_v61, %v7276_v30 }
 0x24e   : > { %10284 = vmatprep.subr.bf16.mxu1 %v10764_v40 }
 0x250   : > { %10257 = vmatpush3.bf16.msra.mxu0 %v10763_v21 }
 0x251   : > { %10285 = vmatpush3.bf16.msra.mxu1 %v10764_v40 }
 0x253   : > { %v9924_v39 = vpop.f32.mrf.mxu0  ;;  %10259 = vmatmul.mubr.bf16.vlgmr.msra.gmra.mxu0 %v7245_v60 }
 0x254   : > { %v9952_v45 = vpop.f32.mrf.mxu1  ;;  %10287 = vmatmul.mubr.bf16.vlgmr.msra.gmra.mxu1 %v7441_v23  ;;  %10262 = vmatprep.mubr.bf16.mxu0 %v7253_v12 }
 0x255   : > { %v4903_v33 = vpop.f32.mrf.mxu0  ;;  %10290 = vmatprep.mubr.bf16.mxu1 %v7443_v32 }
 0x256   : > { %v4946_v41 = vadd.f32 %v4903_v33, %v12234_v26  ;;  %v5075_v10 = vpop.f32.mrf.mxu1  ;;  %v7447_v26 = vsel %vm658_vm1, %v7444_v4, %v7446_v50 }
 0x257   : > { %v12301_v0 = vpop.f32.mrf.mxu0 }
 0x258   : > { %v12303_v53 = vadd.f32 %v5075_v10, %v4946_v41  ;;  %v12305_v5 = vpop.f32.mrf.mxu1 }
 0x259   : > { %v4906_v59 = vpop.f32.mrf.mxu0 }
 0x25a   : > { %v12310_v56 = vpop.f32.mrf.mxu1  ;;  %v4947_v18 = vadd.f32 %v4906_v59, %v12250_v46 }
 0x25b   : > { %v9928_v6 = vpop.f32.mrf.mxu0  ;;  %10263 = vmatmul.mubr.bf16.gmra.mxu0 %v7261_v22  ;;  %v4948_v22 = vadd.f32 %v12301_v0, %v12241_v16 }
 0x25c   : > { %v4950_v8 = vadd.f32 %v9928_v6, %v12256_v25  ;;  %10291 = vmatmul.mubr.bf16.gmra.mxu1 %v7445_v24  ;;  %v9956_v54 = vpop.f32.mrf.mxu1  ;;  %10266 = vmatprep.mubr.bf16.mxu0 %v7269_v13  ;;  %v7449_v25 = vsel %vm658_vm1, %v7446_v50, %v7448_v49  ;;  %v5119_v61 = vadd.f32 %v12310_v56, %v4947_v18 }
 0x25d   : > { %v4918_v3 = vpop.f32.mrf.mxu0  ;;  %10294 = vmatprep.mubr.bf16.mxu1 %v7447_v26  ;;  %v5120_v7 = vadd.f32 %v12305_v5, %v4948_v22  ;;  %v12346_v22 = vld [vmem:[%s11606_s5] ss:$0 sm:$0xff] }
 0x25e   : > { %v12314_v9 = vadd.f32 %v9956_v54, %v4950_v8  ;;  %v5090_v63 = vpop.f32.mrf.mxu1  ;;  %v4949_v26 = vadd.f32 %v4918_v3, %v12261_v52 }
 0x25f   : > { %v9929_v15 = vpop.f32.mrf.mxu0 }
 0x260   : > { %v4951_v28 = vadd.f32 %v9929_v15, %v12266_v14  ;;  %v9957_v21 = vpop.f32.mrf.mxu1 }
 0x261   : > { %v4921_v37 = vpop.f32.mrf.mxu0 }
 0x262   : > { %v12319_v51 = vadd.f32 %v9957_v21, %v4951_v28  ;;  %v5093_v58 = vpop.f32.mrf.mxu1  ;;  %v5121_v28 = vadd.f32 %v5090_v63, %v4949_v26 }
 0x263   : > { %v9932_v40 = vpop.f32.mrf.mxu0  ;;  %10267 = vmatmul.mubr.bf16.gmra.mxu0 %v7277_v11 }
 0x264   : > { %10295 = vmatmul.mubr.bf16.gmra.mxu1 %v7449_v25  ;;  %v9960_v27 = vpop.f32.mrf.mxu1  ;;  %v4953_v46 = vadd.f32 %v9932_v40, %v12279_v62 }
 0x265   : > { %v4933_v55 = vpop.f32.mrf.mxu0 }
 0x266   : > { %v5105_v19 = vpop.f32.mrf.mxu1  ;;  %v5125_v55 = vadd.f32 %v9960_v27, %v4953_v46 }
 0x267   : > { %v9933_v2 = vpop.f32.mrf.mxu0 }
 0x268   : > { %v9961_v34 = vpop.f32.mrf.mxu1 }
 0x269   : > { %v4935_v44 = vpop.f32.mrf.mxu0 }
 0x26a   : > { %v12321_v38 = vpop.f32.mrf.mxu1  ;;  %v4952_v62 = vadd.f32 %v4935_v44, %v12288_v43 }
 0x273   : > { %v9980_v14 = vpop.f32.mrf.mxu0 }
 0x274   : > { %v10008_v20 = vpop.f32.mrf.mxu1 }
 0x275   : > { %v5272_v47 = vpop.f32.mrf.mxu0 }
 0x276   : > { %v5525_v60 = vpop.f32.mrf.mxu1  ;;  %v5315_v24 = vadd.f32 %v5272_v47, %v12303_v53 }
 0x277   : > { %v9981_v48 = vpop.f32.mrf.mxu0 }
 0x278   : > { %v10009_v23 = vpop.f32.mrf.mxu1  ;;  %v5317_v6 = vadd.f32 %v9981_v48, %v5120_v7  ;;  %v5568_v30 = vadd.f32 %v5525_v60, %v5315_v24 }
 0x279   : > { %v5275_v12 = vpop.f32.mrf.mxu0 }
 0x27a   : > { %v5528_v57 = vpop.f32.mrf.mxu1  ;;  %v5570_v21 = vadd.f32 %v10009_v23, %v5317_v6  ;;  %v5316_v16 = vadd.f32 %v5275_v12, %v5119_v61 }
 0x27b   : > { %v9984_v31 = vpop.f32.mrf.mxu0 }
 0x27c   : > { %v12323_v32 = vpop.f32.mrf.mxu1  ;;  %v5569_v37 = vadd.f32 %v5528_v57, %v5316_v16 }
 0x27d   : > { %v5287_v39 = vpop.f32.mrf.mxu0 }
 0x27e   : > { %v5540_v17 = vpop.f32.mrf.mxu1  ;;  %v5318_v59 = vadd.f32 %v5287_v39, %v5121_v28 }
 0x27f   : > { %v9985_v45 = vpop.f32.mrf.mxu0 }
 0x280   : > { %v10013_v36 = vpop.f32.mrf.mxu1  ;;  %v5320_v19 = vadd.f32 %v9985_v45, %v12319_v51  ;;  %v5571_v2 = vadd.f32 %v5540_v17, %v5318_v59  ;;  %v5124_v51 = vadd.f32 %v12321_v38, %v4952_v62  ;;  %v5319_v45 = vadd.f32 %v9984_v31, %v12314_v9 }
 0x281   : > { %v5290_v1 = vpop.f32.mrf.mxu0 }
 0x282   : > { %v5543_v33 = vpop.f32.mrf.mxu1  ;;  %v5573_v12 = vadd.f32 %v10013_v36, %v5320_v19 }
 0x283   : > { %v9988_v4 = vpop.f32.mrf.mxu0 }
 0x284   : > { %v10016_v29 = vpop.f32.mrf.mxu1  ;;  %v5322_v47 = vadd.f32 %v9988_v4, %v5125_v55 }
 0x285   : > { %v5302_v42 = vpop.f32.mrf.mxu0 }
 0x286   : > { %v5555_v41 = vpop.f32.mrf.mxu1  ;;  %v5575_v1 = vadd.f32 %v10016_v29, %v5322_v47 }
 0x287   : > { %v9989_v10 = vpop.f32.mrf.mxu0 }
 0x288   : > { %v10017_v50 = vpop.f32.mrf.mxu1 }
 0x289   : > { %v5304_v13 = vpop.f32.mrf.mxu0 }
 0x28a   : > { %v5557_v8 = vpop.f32.mrf.mxu1  ;;  %v5321_v42 = vadd.f32 %v5304_v13, %v5124_v51 }
 0x28c   : > { %v5574_v7 = vadd.f32 %v5557_v8, %v5321_v42 }
 0x293   : > { %v10036_v54 = vpop.f32.mrf.mxu0 }
 0x294   : > { %v10064_v49 = vpop.f32.mrf.mxu1 }
 0x295   : > { %v5697_v15 = vpop.f32.mrf.mxu0 }
 0x296   : > { %v5740_v0 = vadd.f32 %v5697_v15, %v5568_v30  ;;  %v12332_v5 = vpop.f32.mrf.mxu1 }
 0x297   : > { %v10037_v53 = vpop.f32.mrf.mxu0 }
 0x298   : > { %v5742_v11 = vadd.f32 %v10037_v53, %v5570_v21  ;;  %v10065_v52 = vpop.f32.mrf.mxu1  ;;  %v5748_v25 = vadd.f32 %v12090_v35, %v5740_v0 }
 0x299   : > { %v5700_v3 = vpop.f32.mrf.mxu0 }
 0x29a   : > { %v5750_v56 = vadd.f32 %v12090_v35, %v5742_v11  ;;  %v6002_v58 = vpop.f32.mrf.mxu1  ;;  %v5741_v14 = vadd.f32 %v5700_v3, %v5569_v37 }
 0x29b   : > { %v10040_v63 = vpop.f32.mrf.mxu0 }
 0x29c   : > { %v5756_v34 = vmax.f32 %v5748_v25, %v5750_v56  ;;  %v10068_v20 = vpop.f32.mrf.mxu1  ;;  %v5749_v57 = vadd.f32 %v12090_v35, %v5741_v14 }
 0x29d   : > { %v5712_v40 = vpop.f32.mrf.mxu0 }
 0x29e   : > { %v5743_v60 = vadd.f32 %v5712_v40, %v5571_v2  ;;  %v6014_v48 = vpop.f32.mrf.mxu1 }
 0x29f   : > { %v10041_v23 = vpop.f32.mrf.mxu0 }
 0x2a0   : > { %v5751_v39 = vadd.f32 %v12090_v35, %v5743_v60  ;;  %v10069_v27 = vpop.f32.mrf.mxu1  ;;  %v5745_v44 = vadd.f32 %v10041_v23, %v5573_v12  ;;  %v5572_v35 = vadd.f32 %v12323_v32, %v5319_v45 }
 0x2a1   : > { %v5715_v17 = vpop.f32.mrf.mxu0 }
 0x2a2   : > { %v5757_v43 = vmax.f32 %v5749_v57, %v5751_v39  ;;  %v6017_v33 = vpop.f32.mrf.mxu1  ;;  %v5753_v38 = vadd.f32 %v12346_v22, %v5745_v44  ;;  %v5744_v18 = vadd.f32 %v10040_v63, %v5572_v35 }
 0x2a3   : > { %v10044_v4 = vpop.f32.mrf.mxu0 }
 0x2a4   : > { %v8762_v41 = vpack.c.bf16 %v5757_v43, %v5756_v34  ;;  %v5747_v36 = vadd.f32 %v10044_v4, %v5575_v1  ;;  %v10072_v10 = vpop.f32.mrf.mxu1  ;;  %v5752_v54 = vadd.f32 %v12346_v22, %v5744_v18 }
 0x2a5   : > { %v5727_v50 = vpop.f32.mrf.mxu0 }
 0x2a6   : > { %8782 = vst [vmem:[%s11712_s12 + $0x20] sm:$0xff] %v8762_v41   ;;  %v5755_v9 = vadd.f32 %v12346_v22, %v5747_v36  ;;  %v6029_v31 = vpop.f32.mrf.mxu1 }
 0x2a7   : > { %v10045_v29 = vpop.f32.mrf.mxu0 }
 0x2a8   : > { %v5759_v24 = vmax.f32 %v5753_v38, %v5755_v9  ;;  %v10073_v13 = vpop.f32.mrf.mxu1 }
 0x2a9   : > { %v5729_v26 = vpop.f32.mrf.mxu0 }
 0x2aa   : > { %v5746_v6 = vadd.f32 %v5729_v26, %v5574_v7  ;;  %v6031_v49 = vpop.f32.mrf.mxu1 }
 0x2ac   : > { %v5754_v32 = vadd.f32 %v12346_v22, %v5746_v6 }
 0x2ae   : > { %v5758_v61 = vmax.f32 %v5752_v54, %v5754_v32 }
 0x2b0   : > { %v8767_v30 = vpack.c.bf16 %v5759_v24, %v5758_v61 }
 0x2b2   : > { %8783 = vst [vmem:[%s11712_s12 + $0x28] sm:$0xff] %v8767_v30  }
 0x2b3   : > { %v10092_v15 = vpop.f32.mrf.mxu0 }
 0x2b4   : > { %v10120_v28 = vpop.f32.mrf.mxu1 }
 0x2b5   : > { %v6130_v21 = vpop.f32.mrf.mxu0 }
 0x2b6   : > { %v6131_v16 = vadd.f32 %v6130_v21, %v12332_v5  ;;  %v6294_v0 = vpop.f32.mrf.mxu1 }
 0x2b7   : > { %v10093_v8 = vpop.f32.mrf.mxu0 }
 0x2b8   : > { %v6337_v46 = vadd.f32 %v6294_v0, %v6131_v16  ;;  %v6141_v53 = vadd.f32 %v10093_v8, %v10065_v52  ;;  %v10121_v59 = vpop.f32.mrf.mxu1 }
 0x2b9   : > { %v6133_v11 = vpop.f32.mrf.mxu0 }
 0x2ba   : > { %v12354_v3 = vadd.f32 %v10121_v59, %v6141_v53  ;;  %v6134_v37 = vadd.f32 %v6133_v11, %v6002_v58  ;;  %v6297_v25 = vpop.f32.mrf.mxu1 }
 0x2bb   : > { %v10096_v56 = vpop.f32.mrf.mxu0 }
 0x2bc   : > { %v12356_v55 = vadd.f32 %v6297_v25, %v6134_v37  ;;  %v6153_v63 = vadd.f32 %v10096_v56, %v10068_v20  ;;  %v10124_v19 = vpop.f32.mrf.mxu1 }
 0x2bd   : > { %v6145_v2 = vpop.f32.mrf.mxu0 }
 0x2be   : > { %v6146_v34 = vadd.f32 %v6145_v2, %v6014_v48  ;;  %v6341_v14 = vadd.f32 %v10124_v19, %v6153_v63  ;;  %v6309_v62 = vpop.f32.mrf.mxu1 }
 0x2bf   : > { %v10097_v5 = vpop.f32.mrf.mxu0 }
 0x2c0   : > { %v6156_v40 = vadd.f32 %v10097_v5, %v10069_v27  ;;  %v12358_v47 = vadd.f32 %v6309_v62, %v6146_v34  ;;  %v10125_v52 = vpop.f32.mrf.mxu1 }
 0x2c1   : > { %v6148_v60 = vpop.f32.mrf.mxu0 }
 0x2c2   : > { %v6342_v23 = vadd.f32 %v10125_v52, %v6156_v40  ;;  %v6312_v12 = vpop.f32.mrf.mxu1 }
 0x2c3   : > { %v10100_v57 = vpop.f32.mrf.mxu0 }
 0x2c4   : > { %v6168_v58 = vadd.f32 %v10100_v57, %v10072_v10  ;;  %v10128_v39 = vpop.f32.mrf.mxu1 }
 0x2c5   : > { %v6160_v51 = vpop.f32.mrf.mxu0 }
 0x2c6   : > { %v12360_v17 = vadd.f32 %v10128_v39, %v6168_v58  ;;  %v6324_v20 = vpop.f32.mrf.mxu1 }
 0x2c7   : > { %v10101_v45 = vpop.f32.mrf.mxu0 }
 0x2c8   : > { %v10129_v1 = vpop.f32.mrf.mxu1 }
 0x2c9   : > { %v6162_v48 = vpop.f32.mrf.mxu0 }
 0x2ca   : > { %v6163_v43 = vadd.f32 %v6162_v48, %v6031_v49  ;;  %v6326_v44 = vpop.f32.mrf.mxu1 }
 0x2cc   : > { %v12362_v33 = vadd.f32 %v6326_v44, %v6163_v43 }
 0x2d3   : > { %v10148_v27 = vpop.f32.mrf.mxu0 }
 0x2d4   : > { %v10176_v4 = vpop.f32.mrf.mxu1 }
 0x2d5   : > { %v6491_v42 = vpop.f32.mrf.mxu0 }
 0x2d6   : > { %v6534_v41 = vadd.f32 %v6491_v42, %v6337_v46  ;;  %v6744_v36 = vpop.f32.mrf.mxu1 }
 0x2d7   : > { %v10149_v50 = vpop.f32.mrf.mxu0 }
 0x2d8   : > { %v6787_v35 = vadd.f32 %v6744_v36, %v6534_v41  ;;  %v10177_v10 = vpop.f32.mrf.mxu1  ;;  %v6536_v20 = vadd.f32 %v10149_v50, %v12354_v3 }
 0x2d9   : > { %v6494_v38 = vpop.f32.mrf.mxu0 }
 0x2da   : > { %v6747_v9 = vpop.f32.mrf.mxu1  ;;  %v6535_v45 = vadd.f32 %v6494_v38, %v12356_v55  ;;  %v6789_v1 = vadd.f32 %v10177_v10, %v6536_v20 }
 0x2db   : > { %v10152_v31 = vpop.f32.mrf.mxu0 }
 0x2dc   : > { %v6538_v29 = vadd.f32 %v10152_v31, %v6341_v14  ;;  %v10180_v7 = vpop.f32.mrf.mxu1  ;;  %v6788_v44 = vadd.f32 %v6747_v9, %v6535_v45 }
 0x2dd   : > { %v6506_v18 = vpop.f32.mrf.mxu0 }
 0x2de   : > { %v12364_v24 = vadd.f32 %v10180_v7, %v6538_v29  ;;  %v6759_v13 = vpop.f32.mrf.mxu1  ;;  %v6537_v27 = vadd.f32 %v6506_v18, %v12358_v47 }
 0x2df   : > { %v10153_v26 = vpop.f32.mrf.mxu0 }
 0x2e0   : > { %v6539_v6 = vadd.f32 %v10153_v26, %v6342_v23  ;;  %v10181_v54 = vpop.f32.mrf.mxu1  ;;  %v6790_v26 = vadd.f32 %v6759_v13, %v6537_v27 }
 0x2e1   : > { %v6509_v32 = vpop.f32.mrf.mxu0 }
 0x2e2   : > { %v6792_v61 = vadd.f32 %v10181_v54, %v6539_v6  ;;  %v6762_v30 = vpop.f32.mrf.mxu1 }
 0x2e3   : > { %v10156_v49 = vpop.f32.mrf.mxu0 }
 0x2e4   : > { %v10184_v15 = vpop.f32.mrf.mxu1  ;;  %v6541_v3 = vadd.f32 %v10156_v49, %v12360_v17 }
 0x2e5   : > { %v6521_v28 = vpop.f32.mrf.mxu0 }
 0x2e6   : > { %v6774_v21 = vpop.f32.mrf.mxu1 }
 0x2e7   : > { %v10157_v16 = vpop.f32.mrf.mxu0 }
 0x2e8   : > { %v10185_v0 = vpop.f32.mrf.mxu1 }
 0x2e9   : > { %v6523_v8 = vpop.f32.mrf.mxu0  ;;  %v6794_v0 = vadd.f32 %v10184_v15, %v6541_v3 }
 0x2ea   : > { %v12366_v46 = vpop.f32.mrf.mxu1  ;;  %v6540_v17 = vadd.f32 %v6523_v8, %v12362_v33 }
 0x2f3   : > { %v10204_v53 = vpop.f32.mrf.mxu0 }
 0x2f4   : > { %v10232_v59 = vpop.f32.mrf.mxu1 }
 0x2f5   : > { %v6916_v11 = vpop.f32.mrf.mxu0 }
 0x2f6   : > { %v7113_v37 = vpop.f32.mrf.mxu1  ;;  %v6959_v48 = vadd.f32 %v6916_v11, %v6787_v35 }
 0x2f7   : > { %v10205_v25 = vpop.f32.mrf.mxu0 }
 0x2f8   : > { %v10233_v56 = vpop.f32.mrf.mxu1  ;;  %v6961_v4 = vadd.f32 %v10205_v25, %v6789_v1  ;;  %v7156_v36 = vadd.f32 %v7113_v37, %v6959_v48 }
 0x2f9   : > { %v6919_v63 = vpop.f32.mrf.mxu0 }
 0x2fa   : > { %v7116_v19 = vpop.f32.mrf.mxu1  ;;  %v6960_v31 = vadd.f32 %v6919_v63, %v6788_v44  ;;  %v7158_v6 = vadd.f32 %v10233_v56, %v6961_v4 }
 0x2fb   : > { %v10208_v2 = vpop.f32.mrf.mxu0 }
 0x2fc   : > { %v12368_v34 = vpop.f32.mrf.mxu1  ;;  %v7157_v50 = vadd.f32 %v7116_v19, %v6960_v31 }
 0x2fd   : > { %v6931_v14 = vpop.f32.mrf.mxu0 }
 0x2fe   : > { %v7128_v62 = vpop.f32.mrf.mxu1  ;;  %v6962_v35 = vadd.f32 %v6931_v14, %v6790_v26  ;;  %v6963_v14 = vadd.f32 %v10208_v2, %v12364_v24 }
 0x2ff   : > { %v10209_v5 = vpop.f32.mrf.mxu0 }
 0x300   : > { %v10237_v40 = vpop.f32.mrf.mxu1  ;;  %v6964_v47 = vadd.f32 %v10209_v5, %v6792_v61  ;;  %v7159_v53 = vadd.f32 %v7128_v62, %v6962_v35 }
 0x301   : > { %v6934_v52 = vpop.f32.mrf.mxu0 }
 0x302   : > { %v7131_v60 = vpop.f32.mrf.mxu1  ;;  %v7161_v49 = vadd.f32 %v10237_v40, %v6964_v47  ;;  %v7160_v40 = vadd.f32 %v12368_v34, %v6963_v14 }
 0x303   : > { %v10212_v23 = vpop.f32.mrf.mxu0 }
 0x304   : > { %v10240_v12 = vpop.f32.mrf.mxu1  ;;  %v6966_v25 = vadd.f32 %v10212_v23, %v6794_v0 }
 0x305   : > { %v6946_v57 = vpop.f32.mrf.mxu0 }
 0x306   : > { %v7143_v58 = vpop.f32.mrf.mxu1  ;;  %v6793_v57 = vadd.f32 %v12366_v46, %v6540_v17 }
 0x307   : > { %v10213_v39 = vpop.f32.mrf.mxu0  ;;  %v7163_v58 = vadd.f32 %v10240_v12, %v6966_v25 }
 0x308   : > { %v10241_v51 = vpop.f32.mrf.mxu1 }
 0x309   : > { %v6948_v43 = vpop.f32.mrf.mxu0 }
 0x30a   : > { %v7145_v42 = vpop.f32.mrf.mxu1  ;;  %v6965_v51 = vadd.f32 %v6948_v43, %v6793_v57 }
 0x30c   : > { %v7162_v4 = vadd.f32 %v7145_v42, %v6965_v51 }
 0x313   : > { %v10260_v41 = vpop.f32.mrf.mxu0 }
 0x314   : > { %v10288_v29 = vpop.f32.mrf.mxu1 }
 0x315   : > { %v7366_v7 = vpop.f32.mrf.mxu0 }
 0x316   : > { %v7409_v54 = vadd.f32 %v7366_v7, %v7156_v36  ;;  %v7538_v32 = vpop.f32.mrf.mxu1 }
 0x317   : > { %v10261_v55 = vpop.f32.mrf.mxu0 }
 0x318   : > { %v7581_v10 = vadd.f32 %v7538_v32, %v7409_v54  ;;  %v7411_v38 = vadd.f32 %v10261_v55, %v7158_v6  ;;  %v10289_v9 = vpop.f32.mrf.mxu1 }
 0x319   : > { %v7369_v18 = vpop.f32.mrf.mxu0 }
 0x31a   : > { %v7583_v30 = vadd.f32 %v10289_v9, %v7411_v38  ;;  %v7410_v28 = vadd.f32 %v7369_v18, %v7157_v50  ;;  %v7541_v21 = vpop.f32.mrf.mxu1  ;;  %v7589_v13 = vadd.f32 %v12346_v22, %v7581_v10 }
 0x31b   : > { %v10264_v16 = vpop.f32.mrf.mxu0 }
 0x31c   : > { %v7591_v59 = vadd.f32 %v12346_v22, %v7583_v30  ;;  %v10292_v11 = vpop.f32.mrf.mxu1  ;;  %v7582_v63 = vadd.f32 %v7541_v21, %v7410_v28  ;;  %v7413_v48 = vadd.f32 %v10264_v16, %v7160_v40 }
 0x31d   : > { %v7381_v37 = vpop.f32.mrf.mxu0 }
 0x31e   : > { %v7597_v56 = vmax.f32 %v7589_v13, %v7591_v59  ;;  %v7412_v61 = vadd.f32 %v7381_v37, %v7159_v53  ;;  %v7553_v19 = vpop.f32.mrf.mxu1  ;;  %v7590_v39 = vadd.f32 %v12346_v22, %v7582_v63  ;;  %v7585_v43 = vadd.f32 %v10292_v11, %v7413_v48 }
 0x31f   : > { %v10265_v5 = vpop.f32.mrf.mxu0 }
 0x320   : > { %v7584_v52 = vadd.f32 %v7553_v19, %v7412_v61  ;;  %v7414_v15 = vadd.f32 %v10265_v5, %v7161_v49  ;;  %v10293_v62 = vpop.f32.mrf.mxu1  ;;  %v7593_v54 = vadd.f32 %v12346_v22, %v7585_v43 }
 0x321   : > { %v7384_v60 = vpop.f32.mrf.mxu0 }
 0x322   : > { %v7592_v33 = vadd.f32 %v12346_v22, %v7584_v52  ;;  %v7556_v8 = vpop.f32.mrf.mxu1  ;;  %v7586_v24 = vadd.f32 %v10293_v62, %v7414_v15 }
 0x323   : > { %v10268_v23 = vpop.f32.mrf.mxu0 }
 0x324   : > { %v7598_v20 = vmax.f32 %v7590_v39, %v7592_v33  ;;  %v7416_v2 = vadd.f32 %v10268_v23, %v7163_v58  ;;  %v10296_v45 = vpop.f32.mrf.mxu1  ;;  %v7594_v41 = vadd.f32 %v12346_v22, %v7586_v24 }
 0x325   : > { %v7396_v1 = vpop.f32.mrf.mxu0 }
 0x326   : > { %v8772_v44 = vpack.c.bf16 %v7598_v20, %v7597_v56  ;;  %v7588_v27 = vadd.f32 %v10296_v45, %v7416_v2  ;;  %v7568_v46 = vpop.f32.mrf.mxu1 }
 0x327   : > { %v10269_v12 = vpop.f32.mrf.mxu0 }
 0x328   : > { %8784 = vst [vmem:[%s11712_s12 + $0x30] sm:$0xff] %v8772_v44   ;;  %v7596_v36 = vadd.f32 %v12346_v22, %v7588_v27  ;;  %v10297_v34 = vpop.f32.mrf.mxu1 }
 0x329   : > { %v7398_v31 = vpop.f32.mrf.mxu0 }
 0x32a   : > { %v7600_v29 = vmax.f32 %v7594_v41, %v7596_v36  ;;  %v7415_v7 = vadd.f32 %v7398_v31, %v7162_v4  ;;  %v7570_v26 = vpop.f32.mrf.mxu1 }
 0x32c   : > { %v7587_v6 = vadd.f32 %v7570_v26, %v7415_v7 }
 0x32e   : > { %v7595_v32 = vadd.f32 %v12346_v22, %v7587_v6 }
 0x330   : > { %v7599_v3 = vmax.f32 %v7593_v54, %v7595_v32 }
 0x332   : > { %v8777_v55 = vpack.c.bf16 %v7600_v29, %v7599_v3 }
 0x334   : > { %8785 = vst [vmem:[%s11712_s12 + $0x38] sm:$0xff] %v8777_v55  }
 0x335 PF: > { %s13_s16 = sadd.s32 1, %s10813_s16   ;;  %s12407_s12 = smov %s10805_s14 }
 0x336   : > { %p10_p7 = scmp.ge.s32.totalorder %s13_s16, 10   ;;  %s12408_s13 = smov %s10809_s15 }
 0x337   : > { %s12409_s14 = smov %s12412_s17  ;;  %s12410_s15 = smov %s12416_s18 }
 0x338   :  { %12 = sbr.rel (!%p10_p7) target bundleno = 3 (0x3), region = 79 }

</bundles_post_ra>
